<compile_context>
chip_gen: v6e
topology: v6e:2x2x1
jax: 0.10.0
libtpu: 0.0.40
codegen_flags: <defaults>
</compile_context>

<pallas_src>
import math

import jax
import jax.numpy as jnp
from jax.experimental import pallas as pl
from jax.experimental.pallas import tpu as pltpu

# (cin, cout, num_dilation_rates) for the four Wave_Blocks, matching
# wavenet(inch=16, kernel_size=3): 16->16 (4), 16->32 (4), 32->64 (2), 64->128 (1).
CFG = ((16, 16, 4), (16, 32, 4), (32, 64, 2), (64, 128, 1))
NUM_CLASSES = 3
KS = 3
POOL_OUT = 4
PAD = max(2 ** (r - 1) for _, _, r in CFG)   # max dilation in the net (= 8)
C_MAX = max(c for _, c, _ in CFG)            # widest channel count (= 128)


# ----------------------------------------------------------------------------
# Fused whole-network kernel
# ----------------------------------------------------------------------------
def make_wavenet_kernel(L, cfg, num_classes, pad):
    seg = L // POOL_OUT

    def kernel(*refs):
        x_ref = refs[0]            # (1, L, Cin) block for this batch element
        o_ref = refs[-2]           # (1, 1, num_classes)
        act_ref = refs[-1]         # VMEM scratch (L + 2*pad, C_MAX)
        w_refs = iter(refs[1:-2])  # all weights, in flatten_params() order

        # Zero the padded activation scratch; the pad bands ([:pad] and
        # [pad+L:]) are never written afterwards, so the shifted reads below
        # see zeros exactly like Conv1d "same" zero padding.
        act_ref[...] = jnp.zeros_like(act_ref)

        cur = x_ref[0].astype(jnp.float32)                     # (L, Cin)
        for (cin, cout, rates) in cfg:
            w0_ref = next(w_refs)          # (cin, cout)   1x1 conv
            b0_ref = next(w_refs)          # (1, cout)
            x = jnp.dot(cur, w0_ref[...],
                        preferred_element_type=jnp.float32) + b0_ref[...]
            res = x
            act_ref[pad:pad + L, :cout] = x
            for i in range(rates):
                d = 2 ** i
                wfg_ref = next(w_refs)     # (3, cout, 2*cout): [filter|gate] per tap
                bfg_ref = next(w_refs)     # (1, 2*cout)
                wr_ref = next(w_refs)      # (cout, cout)   1x1 conv
                br_ref = next(w_refs)      # (1, cout)
                # Shifted taps read straight from the padded VMEM scratch.
                xl = act_ref[pad - d:pad - d + L, :cout]       # x[t - d]
                xr = act_ref[pad + d:pad + d + L, :cout]       # x[t + d]
                # Widened MXU matmuls: filter & gate share the same 3 pushes.
                fg = (jnp.dot(xl, wfg_ref[0], preferred_element_type=jnp.float32)
                      + jnp.dot(x, wfg_ref[1], preferred_element_type=jnp.float32)
                      + jnp.dot(xr, wfg_ref[2], preferred_element_type=jnp.float32)
                      + bfg_ref[...])
                z = jnp.tanh(fg[:, :cout]) * jax.nn.sigmoid(fg[:, cout:])
                xn = jnp.dot(z, wr_ref[...],
                             preferred_element_type=jnp.float32) + br_ref[...]
                res = res + xn
                x = xn
                act_ref[pad:pad + L, :cout] = xn
            cur = res                                           # (L, cout)

        # Fused adaptive average pool (POOL_OUT segments) + linear head.
        w_fc_ref = next(w_refs)     # (POOL_OUT, C_fin, num_classes)
        b_fc_ref = next(w_refs)     # (1, num_classes)
        assert next(w_refs, None) is None  # trace-time sanity check
        acc = b_fc_ref[...]
        for p in range(POOL_OUT):
            m = jnp.mean(cur[p * seg:(p + 1) * seg, :], axis=0, keepdims=True)
            acc = acc + jnp.dot(m, w_fc_ref[p],
                                preferred_element_type=jnp.float32)
        o_ref[0] = acc

    return kernel


# ----------------------------------------------------------------------------
# Parameters (deterministic synthetic init, mimics PyTorch uniform bounds)
# ----------------------------------------------------------------------------
def _uniform(key, shape, bound):
    return jax.random.uniform(key, shape, jnp.float32, -bound, bound)


def init_params(key, cfg=CFG, num_classes=NUM_CLASSES, ks=KS):
    n_keys = sum(2 + 4 * r for _, _, r in cfg) + 2
    keys = iter(jax.random.split(key, n_keys))
    blocks = []
    for (cin, cout, rates) in cfg:
        b0 = 1.0 / math.sqrt(cin)        # Conv1d k=1 bound
        bd = 1.0 / math.sqrt(cout * ks)  # dilated conv bound
        b1 = 1.0 / math.sqrt(cout)       # 1x1 conv bound
        blk = {
            "w0": _uniform(next(keys), (cin, cout), b0),   # (Cin, Cout)
            "b0": _uniform(next(keys), (1, cout), b0),
            "dil": [],
        }
        for _ in range(rates):
            blk["dil"].append(dict(
                # wfg[k][:, :cout] = filter tap k, wfg[k][:, cout:] = gate tap k
                wfg=_uniform(next(keys), (3, cout, 2 * cout), bd),
                bfg=_uniform(next(keys), (1, 2 * cout), bd),
                wr=_uniform(next(keys), (cout, cout), b1),
                br=_uniform(next(keys), (1, cout), b1),
            ))
        blocks.append(blk)
    c_fin = cfg[-1][1]
    bfc = 1.0 / math.sqrt(POOL_OUT * c_fin)
    return {
        "blocks": blocks,
        # w_fc[p, c, n] corresponds to torch fc.weight[n, c*POOL_OUT + p]
        # (PyTorch flattens the pooled (B, C, 4) channel-major).
        "w_fc": _uniform(next(keys), (POOL_OUT, c_fin, num_classes), bfc),
        "b_fc": _uniform(next(keys), (1, num_classes), bfc),
    }


def flatten_params(params, cfg=CFG):
    flat = []
    for bi, (_, _, rates) in enumerate(cfg):
        bp = params["blocks"][bi]
        flat += [bp["w0"], bp["b0"]]
        for i in range(rates):
            dp = bp["dil"][i]
            flat += [dp["wfg"], dp["bfg"], dp["wr"], dp["br"]]
    flat += [params["w_fc"], params["b_fc"]]
    return flat


# ----------------------------------------------------------------------------
# Forward pass (single pallas_call)
# ----------------------------------------------------------------------------
@jax.jit
def wavenet_forward(params, x_ncw):
    # x_ncw: (B, C, L) exactly as the PyTorch module expects.
    x = jnp.transpose(x_ncw, (0, 2, 1)).astype(jnp.float32)    # (B, L, C)
    B, L, cin = x.shape
    assert cin == CFG[0][0], "input channel count must match inch"
    # TODO(synk): AdaptiveAvgPool1d with L % 4 != 0 uses overlapping windows;
    # this kernel assumes L divisible by 4 (exact match in that case).
    assert L % POOL_OUT == 0

    flat = flatten_params(params)
    kernel = make_wavenet_kernel(L, CFG, NUM_CLASSES, PAD)

    in_specs = [pl.BlockSpec((1, L, cin), lambda b: (b, 0, 0))]
    for w in flat:
        in_specs.append(pl.BlockSpec(w.shape, lambda b, nd=w.ndim: (0,) * nd))

    out = pl.pallas_call(
        kernel,
        out_shape=jax.ShapeDtypeStruct((B, 1, NUM_CLASSES), jnp.float32),
        grid_spec=pltpu.PrefetchScalarGridSpec(
            num_scalar_prefetch=0,
            grid=(B,),
            in_specs=in_specs,
            out_specs=pl.BlockSpec((1, 1, NUM_CLASSES), lambda b: (b, 0, 0)),
            scratch_shapes=[pltpu.VMEM((L + 2 * PAD, C_MAX), jnp.float32)],
        ),
        compiler_params=pltpu.CompilerParams(
            dimension_semantics=("parallel",),
        ),
    )(x, *flat)
    return out.reshape(B, NUM_CLASSES)


# ----------------------------------------------------------------------------
# Pure-JAX reference (same math, no Pallas) for validation
# ----------------------------------------------------------------------------
@jax.jit
def reference_forward(params, x_ncw):
    hp = jax.lax.Precision.HIGHEST
    x = jnp.transpose(x_ncw, (0, 2, 1)).astype(jnp.float32)    # (B, L, C)
    for bi, (cin, cout, rates) in enumerate(CFG):
        bp = params["blocks"][bi]
        x = jnp.einsum("blc,cd->bld", x, bp["w0"], precision=hp) + bp["b0"]
        res = x
        for i in range(rates):
            d = 2 ** i
            dp = bp["dil"][i]
            B, L, C = x.shape
            z = jnp.zeros((B, d, C), x.dtype)
            xl = jnp.concatenate([z, x[:, :L - d, :]], axis=1)   # x[t-d]
            xr = jnp.concatenate([x[:, d:, :], z], axis=1)       # x[t+d]
            fg = (jnp.einsum("blc,cd->bld", xl, dp["wfg"][0], precision=hp)
                  + jnp.einsum("blc,cd->bld", x, dp["wfg"][1], precision=hp)
                  + jnp.einsum("blc,cd->bld", xr, dp["wfg"][2], precision=hp)
                  + dp["bfg"])
            zact = jnp.tanh(fg[..., :cout]) * jax.nn.sigmoid(fg[..., cout:])
            xn = jnp.einsum("blc,cd->bld", zact, dp["wr"], precision=hp) + dp["br"]
            res = res + xn
            x = xn
        x = res
    B, L, C = x.shape
    pooled = x.reshape(B, POOL_OUT, L // POOL_OUT, C).mean(axis=2)   # (B, 4, C)
    return (jnp.einsum("bpc,pcn->bn", pooled, params["w_fc"], precision=hp)
            + params["b_fc"][0])


if __name__ == "__main__":
    key = jax.random.PRNGKey(0)
    kp, kx = jax.random.split(key)
    params = init_params(kp)

    B, C, L = 2, 16, 64  # L divisible by 4 so AdaptiveAvgPool1d(4) is exact
    x = jax.random.normal(kx, (B, C, L), dtype=jnp.float32)

    out = wavenet_forward(params, x)
    jax.block_until_ready(out)
    assert out.shape == (B, NUM_CLASSES) and out.dtype == jnp.float32

    ref = reference_forward(params, x)
    max_err = float(jnp.max(jnp.abs(out - ref)))
    assert max_err < 5e-3, f"mismatch vs pure-JAX reference: {max_err}"

    print("KERNEL_OK")
</pallas_src>

<mosaic_0001>
module attributes {stable_mosaic.version = 11 : i64} {
  func.func @kernel(%arg0: i32, %arg1: memref<1x64x16xf32, #tpu.memory_space<vmem>>, %arg2: memref<16x16xf32, #tpu.memory_space<vmem>>, %arg3: memref<1x16xf32, #tpu.memory_space<vmem>>, %arg4: memref<3x16x32xf32, #tpu.memory_space<vmem>>, %arg5: memref<1x32xf32, #tpu.memory_space<vmem>>, %arg6: memref<16x16xf32, #tpu.memory_space<vmem>>, %arg7: memref<1x16xf32, #tpu.memory_space<vmem>>, %arg8: memref<3x16x32xf32, #tpu.memory_space<vmem>>, %arg9: memref<1x32xf32, #tpu.memory_space<vmem>>, %arg10: memref<16x16xf32, #tpu.memory_space<vmem>>, %arg11: memref<1x16xf32, #tpu.memory_space<vmem>>, %arg12: memref<3x16x32xf32, #tpu.memory_space<vmem>>, %arg13: memref<1x32xf32, #tpu.memory_space<vmem>>, %arg14: memref<16x16xf32, #tpu.memory_space<vmem>>, %arg15: memref<1x16xf32, #tpu.memory_space<vmem>>, %arg16: memref<3x16x32xf32, #tpu.memory_space<vmem>>, %arg17: memref<1x32xf32, #tpu.memory_space<vmem>>, %arg18: memref<16x16xf32, #tpu.memory_space<vmem>>, %arg19: memref<1x16xf32, #tpu.memory_space<vmem>>, %arg20: memref<16x32xf32, #tpu.memory_space<vmem>>, %arg21: memref<1x32xf32, #tpu.memory_space<vmem>>, %arg22: memref<3x32x64xf32, #tpu.memory_space<vmem>>, %arg23: memref<1x64xf32, #tpu.memory_space<vmem>>, %arg24: memref<32x32xf32, #tpu.memory_space<vmem>>, %arg25: memref<1x32xf32, #tpu.memory_space<vmem>>, %arg26: memref<3x32x64xf32, #tpu.memory_space<vmem>>, %arg27: memref<1x64xf32, #tpu.memory_space<vmem>>, %arg28: memref<32x32xf32, #tpu.memory_space<vmem>>, %arg29: memref<1x32xf32, #tpu.memory_space<vmem>>, %arg30: memref<3x32x64xf32, #tpu.memory_space<vmem>>, %arg31: memref<1x64xf32, #tpu.memory_space<vmem>>, %arg32: memref<32x32xf32, #tpu.memory_space<vmem>>, %arg33: memref<1x32xf32, #tpu.memory_space<vmem>>, %arg34: memref<3x32x64xf32, #tpu.memory_space<vmem>>, %arg35: memref<1x64xf32, #tpu.memory_space<vmem>>, %arg36: memref<32x32xf32, #tpu.memory_space<vmem>>, %arg37: memref<1x32xf32, #tpu.memory_space<vmem>>, %arg38: memref<32x64xf32, #tpu.memory_space<vmem>>, %arg39: memref<1x64xf32, #tpu.memory_space<vmem>>, %arg40: memref<3x64x128xf32, #tpu.memory_space<vmem>>, %arg41: memref<1x128xf32, #tpu.memory_space<vmem>>, %arg42: memref<64x64xf32, #tpu.memory_space<vmem>>, %arg43: memref<1x64xf32, #tpu.memory_space<vmem>>, %arg44: memref<3x64x128xf32, #tpu.memory_space<vmem>>, %arg45: memref<1x128xf32, #tpu.memory_space<vmem>>, %arg46: memref<64x64xf32, #tpu.memory_space<vmem>>, %arg47: memref<1x64xf32, #tpu.memory_space<vmem>>, %arg48: memref<64x128xf32, #tpu.memory_space<vmem>>, %arg49: memref<1x128xf32, #tpu.memory_space<vmem>>, %arg50: memref<3x128x256xf32, #tpu.memory_space<vmem>>, %arg51: memref<1x256xf32, #tpu.memory_space<vmem>>, %arg52: memref<128x128xf32, #tpu.memory_space<vmem>>, %arg53: memref<1x128xf32, #tpu.memory_space<vmem>>, %arg54: memref<4x128x3xf32, #tpu.memory_space<vmem>>, %arg55: memref<1x3xf32, #tpu.memory_space<vmem>>, %arg56: memref<1x1x3xf32, #tpu.memory_space<vmem>>, %arg57: memref<80x128xf32, #tpu.memory_space<vmem>>) attributes {dimension_semantics = [#tpu.dimension_semantics<parallel>], iteration_bounds = array<i64: 2>, scalar_prefetch = 0 : i64, scratch_operands = 1 : i64, tpu.core_type = #tpu.core_type<tc>, window_params = [{transform_indices = @transform_0, window_bounds = array<i64: 1, 64, 16>}, {pipeline_mode = #tpu.pipeline_mode<synchronous>, transform_indices = @transform_1, window_bounds = array<i64: 16, 16>}, {pipeline_mode = #tpu.pipeline_mode<synchronous>, transform_indices = @transform_2, window_bounds = array<i64: 1, 16>}, {pipeline_mode = #tpu.pipeline_mode<synchronous>, transform_indices = @transform_3, window_bounds = array<i64: 3, 16, 32>}, {pipeline_mode = #tpu.pipeline_mode<synchronous>, transform_indices = @transform_4, window_bounds = array<i64: 1, 32>}, {pipeline_mode = #tpu.pipeline_mode<synchronous>, transform_indices = @transform_5, window_bounds = array<i64: 16, 16>}, {pipeline_mode = #tpu.pipeline_mode<synchronous>, transform_indices = @transform_6, window_bounds = array<i64: 1, 16>}, {pipeline_mode = #tpu.pipeline_mode<synchronous>, transform_indices = @transform_7, window_bounds = array<i64: 3, 16, 32>}, {pipeline_mode = #tpu.pipeline_mode<synchronous>, transform_indices = @transform_8, window_bounds = array<i64: 1, 32>}, {pipeline_mode = #tpu.pipeline_mode<synchronous>, transform_indices = @transform_9, window_bounds = array<i64: 16, 16>}, {pipeline_mode = #tpu.pipeline_mode<synchronous>, transform_indices = @transform_10, window_bounds = array<i64: 1, 16>}, {pipeline_mode = #tpu.pipeline_mode<synchronous>, transform_indices = @transform_11, window_bounds = array<i64: 3, 16, 32>}, {pipeline_mode = #tpu.pipeline_mode<synchronous>, transform_indices = @transform_12, window_bounds = array<i64: 1, 32>}, {pipeline_mode = #tpu.pipeline_mode<synchronous>, transform_indices = @transform_13, window_bounds = array<i64: 16, 16>}, {pipeline_mode = #tpu.pipeline_mode<synchronous>, transform_indices = @transform_14, window_bounds = array<i64: 1, 16>}, {pipeline_mode = #tpu.pipeline_mode<synchronous>, transform_indices = @transform_15, window_bounds = array<i64: 3, 16, 32>}, {pipeline_mode = #tpu.pipeline_mode<synchronous>, transform_indices = @transform_16, window_bounds = array<i64: 1, 32>}, {pipeline_mode = #tpu.pipeline_mode<synchronous>, transform_indices = @transform_17, window_bounds = array<i64: 16, 16>}, {pipeline_mode = #tpu.pipeline_mode<synchronous>, transform_indices = @transform_18, window_bounds = array<i64: 1, 16>}, {pipeline_mode = #tpu.pipeline_mode<synchronous>, transform_indices = @transform_19, window_bounds = array<i64: 16, 32>}, {pipeline_mode = #tpu.pipeline_mode<synchronous>, transform_indices = @transform_20, window_bounds = array<i64: 1, 32>}, {pipeline_mode = #tpu.pipeline_mode<synchronous>, transform_indices = @transform_21, window_bounds = array<i64: 3, 32, 64>}, {pipeline_mode = #tpu.pipeline_mode<synchronous>, transform_indices = @transform_22, window_bounds = array<i64: 1, 64>}, {pipeline_mode = #tpu.pipeline_mode<synchronous>, transform_indices = @transform_23, window_bounds = array<i64: 32, 32>}, {pipeline_mode = #tpu.pipeline_mode<synchronous>, transform_indices = @transform_24, window_bounds = array<i64: 1, 32>}, {pipeline_mode = #tpu.pipeline_mode<synchronous>, transform_indices = @transform_25, window_bounds = array<i64: 3, 32, 64>}, {pipeline_mode = #tpu.pipeline_mode<synchronous>, transform_indices = @transform_26, window_bounds = array<i64: 1, 64>}, {pipeline_mode = #tpu.pipeline_mode<synchronous>, transform_indices = @transform_27, window_bounds = array<i64: 32, 32>}, {pipeline_mode = #tpu.pipeline_mode<synchronous>, transform_indices = @transform_28, window_bounds = array<i64: 1, 32>}, {pipeline_mode = #tpu.pipeline_mode<synchronous>, transform_indices = @transform_29, window_bounds = array<i64: 3, 32, 64>}, {pipeline_mode = #tpu.pipeline_mode<synchronous>, transform_indices = @transform_30, window_bounds = array<i64: 1, 64>}, {pipeline_mode = #tpu.pipeline_mode<synchronous>, transform_indices = @transform_31, window_bounds = array<i64: 32, 32>}, {pipeline_mode = #tpu.pipeline_mode<synchronous>, transform_indices = @transform_32, window_bounds = array<i64: 1, 32>}, {pipeline_mode = #tpu.pipeline_mode<synchronous>, transform_indices = @transform_33, window_bounds = array<i64: 3, 32, 64>}, {pipeline_mode = #tpu.pipeline_mode<synchronous>, transform_indices = @transform_34, window_bounds = array<i64: 1, 64>}, {pipeline_mode = #tpu.pipeline_mode<synchronous>, transform_indices = @transform_35, window_bounds = array<i64: 32, 32>}, {pipeline_mode = #tpu.pipeline_mode<synchronous>, transform_indices = @transform_36, window_bounds = array<i64: 1, 32>}, {pipeline_mode = #tpu.pipeline_mode<synchronous>, transform_indices = @transform_37, window_bounds = array<i64: 32, 64>}, {pipeline_mode = #tpu.pipeline_mode<synchronous>, transform_indices = @transform_38, window_bounds = array<i64: 1, 64>}, {pipeline_mode = #tpu.pipeline_mode<synchronous>, transform_indices = @transform_39, window_bounds = array<i64: 3, 64, 128>}, {pipeline_mode = #tpu.pipeline_mode<synchronous>, transform_indices = @transform_40, window_bounds = array<i64: 1, 128>}, {pipeline_mode = #tpu.pipeline_mode<synchronous>, transform_indices = @transform_41, window_bounds = array<i64: 64, 64>}, {pipeline_mode = #tpu.pipeline_mode<synchronous>, transform_indices = @transform_42, window_bounds = array<i64: 1, 64>}, {pipeline_mode = #tpu.pipeline_mode<synchronous>, transform_indices = @transform_43, window_bounds = array<i64: 3, 64, 128>}, {pipeline_mode = #tpu.pipeline_mode<synchronous>, transform_indices = @transform_44, window_bounds = array<i64: 1, 128>}, {pipeline_mode = #tpu.pipeline_mode<synchronous>, transform_indices = @transform_45, window_bounds = array<i64: 64, 64>}, {pipeline_mode = #tpu.pipeline_mode<synchronous>, transform_indices = @transform_46, window_bounds = array<i64: 1, 64>}, {pipeline_mode = #tpu.pipeline_mode<synchronous>, transform_indices = @transform_47, window_bounds = array<i64: 64, 128>}, {pipeline_mode = #tpu.pipeline_mode<synchronous>, transform_indices = @transform_48, window_bounds = array<i64: 1, 128>}, {pipeline_mode = #tpu.pipeline_mode<synchronous>, transform_indices = @transform_49, window_bounds = array<i64: 3, 128, 256>}, {pipeline_mode = #tpu.pipeline_mode<synchronous>, transform_indices = @transform_50, window_bounds = array<i64: 1, 256>}, {pipeline_mode = #tpu.pipeline_mode<synchronous>, transform_indices = @transform_51, window_bounds = array<i64: 128, 128>}, {pipeline_mode = #tpu.pipeline_mode<synchronous>, transform_indices = @transform_52, window_bounds = array<i64: 1, 128>}, {pipeline_mode = #tpu.pipeline_mode<synchronous>, transform_indices = @transform_53, window_bounds = array<i64: 4, 128, 3>}, {pipeline_mode = #tpu.pipeline_mode<synchronous>, transform_indices = @transform_54, window_bounds = array<i64: 1, 3>}, {transform_indices = @transform_55, window_bounds = array<i64: 1, 1, 3>}]} {
    %cst = arith.constant 0.000000e+00 : f32
    %0 = vector.broadcast %cst : f32 to vector<80x128xf32>
    %c0 = arith.constant 0 : index
    %c0_0 = arith.constant 0 : index
    %1 = vector.load %arg57[%c0, %c0_0] : memref<80x128xf32, #tpu.memory_space<vmem>>, vector<80x128xf32>
    tpu.vector_store %arg57[%c0, %c0_0], %0 {strides = array<i32>} : memref<80x128xf32, #tpu.memory_space<vmem>>, vector<80x128xf32>,
    %c0_1 = arith.constant 0 : index
    %c0_2 = arith.constant 0 : index
    %c0_3 = arith.constant 0 : index
    %2 = vector.load %arg1[%c0_1, %c0_2, %c0_3] : memref<1x64x16xf32, #tpu.memory_space<vmem>>, vector<1x64x16xf32>
    %3 = vector.shape_cast %2 : vector<1x64x16xf32> to vector<64x16xf32>
    %c0_4 = arith.constant 0 : index
    %c0_5 = arith.constant 0 : index
    %4 = vector.load %arg2[%c0_4, %c0_5] : memref<16x16xf32, #tpu.memory_space<vmem>>, vector<16x16xf32>
    %cst_6 = arith.constant dense<0.000000e+00> : vector<64x16xf32>
    %5 = tpu.matmul %3, %4, %cst_6 {dimension_numbers = #tpu.dot_dimension_numbers<[1], [0], [0], [1], [0, 0, 1, 1], [], []>} : vector<64x16xf32>, vector<16x16xf32>, vector<64x16xf32> -> vector<64x16xf32>
    %c0_7 = arith.constant 0 : index
    %c0_8 = arith.constant 0 : index
    %6 = vector.load %arg3[%c0_7, %c0_8] : memref<1x16xf32, #tpu.memory_space<vmem>>, vector<1x16xf32>
    %7 = vector.broadcast %6 : vector<1x16xf32> to vector<64x16xf32>
    %8 = arith.addf %5, %7 : vector<64x16xf32>
    %c8 = arith.constant 8 : index
    %c0_9 = arith.constant 0 : index
    %9 = vector.load %arg57[%c8, %c0_9] : memref<80x128xf32, #tpu.memory_space<vmem>>, vector<64x16xf32>
    tpu.vector_store %arg57[%c8, %c0_9], %8 {strides = array<i32>} : memref<80x128xf32, #tpu.memory_space<vmem>>, vector<64x16xf32>,
    %c7 = arith.constant 7 : index
    %c0_10 = arith.constant 0 : index
    %10 = vector.load %arg57[%c7, %c0_10] : memref<80x128xf32, #tpu.memory_space<vmem>>, vector<64x16xf32>
    %c9 = arith.constant 9 : index
    %c0_11 = arith.constant 0 : index
    %11 = vector.load %arg57[%c9, %c0_11] : memref<80x128xf32, #tpu.memory_space<vmem>>, vector<64x16xf32>
    %c0_12 = arith.constant 0 : index
    %c0_13 = arith.constant 0 : index
    %c0_14 = arith.constant 0 : index
    %12 = vector.load %arg4[%c0_12, %c0_13, %c0_14] : memref<3x16x32xf32, #tpu.memory_space<vmem>>, vector<1x16x32xf32>
    %13 = vector.shape_cast %12 : vector<1x16x32xf32> to vector<16x32xf32>
    %cst_15 = arith.constant dense<0.000000e+00> : vector<64x32xf32>
    %14 = tpu.matmul %10, %13, %cst_15 {dimension_numbers = #tpu.dot_dimension_numbers<[1], [0], [0], [1], [0, 0, 1, 1], [], []>} : vector<64x16xf32>, vector<16x32xf32>, vector<64x32xf32> -> vector<64x32xf32>
    %c1 = arith.constant 1 : index
    %c0_16 = arith.constant 0 : index
    %c0_17 = arith.constant 0 : index
    %15 = vector.load %arg4[%c1, %c0_16, %c0_17] : memref<3x16x32xf32, #tpu.memory_space<vmem>>, vector<1x16x32xf32>
    %16 = vector.shape_cast %15 : vector<1x16x32xf32> to vector<16x32xf32>
    %cst_18 = arith.constant dense<0.000000e+00> : vector<64x32xf32>
    %17 = tpu.matmul %8, %16, %cst_18 {dimension_numbers = #tpu.dot_dimension_numbers<[1], [0], [0], [1], [0, 0, 1, 1], [], []>} : vector<64x16xf32>, vector<16x32xf32>, vector<64x32xf32> -> vector<64x32xf32>
    %18 = arith.addf %14, %17 : vector<64x32xf32>
    %c2 = arith.constant 2 : index
    %c0_19 = arith.constant 0 : index
    %c0_20 = arith.constant 0 : index
    %19 = vector.load %arg4[%c2, %c0_19, %c0_20] : memref<3x16x32xf32, #tpu.memory_space<vmem>>, vector<1x16x32xf32>
    %20 = vector.shape_cast %19 : vector<1x16x32xf32> to vector<16x32xf32>
    %cst_21 = arith.constant dense<0.000000e+00> : vector<64x32xf32>
    %21 = tpu.matmul %11, %20, %cst_21 {dimension_numbers = #tpu.dot_dimension_numbers<[1], [0], [0], [1], [0, 0, 1, 1], [], []>} : vector<64x16xf32>, vector<16x32xf32>, vector<64x32xf32> -> vector<64x32xf32>
    %22 = arith.addf %18, %21 : vector<64x32xf32>
    %c0_22 = arith.constant 0 : index
    %c0_23 = arith.constant 0 : index
    %23 = vector.load %arg5[%c0_22, %c0_23] : memref<1x32xf32, #tpu.memory_space<vmem>>, vector<1x32xf32>
    %24 = vector.broadcast %23 : vector<1x32xf32> to vector<64x32xf32>
    %25 = arith.addf %22, %24 : vector<64x32xf32>
    %26 = vector.extract_strided_slice %25 {offsets = [0, 0], sizes = [64, 16], strides = [1, 1]} : vector<64x32xf32> to vector<64x16xf32>
    %27 = math.tanh %26 : vector<64x16xf32>
    %28 = vector.extract_strided_slice %25 {offsets = [0, 16], sizes = [64, 16], strides = [1, 1]} : vector<64x32xf32> to vector<64x16xf32>
    %29 = arith.negf %28 : vector<64x16xf32>
    %30 = math.exp %29 : vector<64x16xf32>
    %cst_24 = arith.constant 1.000000e+00 : f32
    %31 = vector.broadcast %cst_24 : f32 to vector<64x16xf32>
    %32 = arith.addf %31, %30 : vector<64x16xf32>
    %33 = arith.divf %31, %32 : vector<64x16xf32>
    %34 = arith.mulf %27, %33 : vector<64x16xf32>
    %c0_25 = arith.constant 0 : index
    %c0_26 = arith.constant 0 : index
    %35 = vector.load %arg6[%c0_25, %c0_26] : memref<16x16xf32, #tpu.memory_space<vmem>>, vector<16x16xf32>
    %cst_27 = arith.constant dense<0.000000e+00> : vector<64x16xf32>
    %36 = tpu.matmul %34, %35, %cst_27 {dimension_numbers = #tpu.dot_dimension_numbers<[1], [0], [0], [1], [0, 0, 1, 1], [], []>} : vector<64x16xf32>, vector<16x16xf32>, vector<64x16xf32> -> vector<64x16xf32>
    %c0_28 = arith.constant 0 : index
    %c0_29 = arith.constant 0 : index
    %37 = vector.load %arg7[%c0_28, %c0_29] : memref<1x16xf32, #tpu.memory_space<vmem>>, vector<1x16xf32>
    %38 = vector.broadcast %37 : vector<1x16xf32> to vector<64x16xf32>
    %39 = arith.addf %36, %38 : vector<64x16xf32>
    %40 = arith.addf %8, %39 : vector<64x16xf32>
    %c8_30 = arith.constant 8 : index
    %c0_31 = arith.constant 0 : index
    %41 = vector.load %arg57[%c8_30, %c0_31] : memref<80x128xf32, #tpu.memory_space<vmem>>, vector<64x16xf32>
    tpu.vector_store %arg57[%c8_30, %c0_31], %39 {strides = array<i32>} : memref<80x128xf32, #tpu.memory_space<vmem>>, vector<64x16xf32>,
    %c6 = arith.constant 6 : index
    %c0_32 = arith.constant 0 : index
    %42 = vector.load %arg57[%c6, %c0_32] : memref<80x128xf32, #tpu.memory_space<vmem>>, vector<64x16xf32>
    %c10 = arith.constant 10 : index
    %c0_33 = arith.constant 0 : index
    %43 = vector.load %arg57[%c10, %c0_33] : memref<80x128xf32, #tpu.memory_space<vmem>>, vector<64x16xf32>
    %c0_34 = arith.constant 0 : index
    %c0_35 = arith.constant 0 : index
    %c0_36 = arith.constant 0 : index
    %44 = vector.load %arg8[%c0_34, %c0_35, %c0_36] : memref<3x16x32xf32, #tpu.memory_space<vmem>>, vector<1x16x32xf32>
    %45 = vector.shape_cast %44 : vector<1x16x32xf32> to vector<16x32xf32>
    %cst_37 = arith.constant dense<0.000000e+00> : vector<64x32xf32>
    %46 = tpu.matmul %42, %45, %cst_37 {dimension_numbers = #tpu.dot_dimension_numbers<[1], [0], [0], [1], [0, 0, 1, 1], [], []>} : vector<64x16xf32>, vector<16x32xf32>, vector<64x32xf32> -> vector<64x32xf32>
    %c1_38 = arith.constant 1 : index
    %c0_39 = arith.constant 0 : index
    %c0_40 = arith.constant 0 : index
    %47 = vector.load %arg8[%c1_38, %c0_39, %c0_40] : memref<3x16x32xf32, #tpu.memory_space<vmem>>, vector<1x16x32xf32>
    %48 = vector.shape_cast %47 : vector<1x16x32xf32> to vector<16x32xf32>
    %cst_41 = arith.constant dense<0.000000e+00> : vector<64x32xf32>
    %49 = tpu.matmul %39, %48, %cst_41 {dimension_numbers = #tpu.dot_dimension_numbers<[1], [0], [0], [1], [0, 0, 1, 1], [], []>} : vector<64x16xf32>, vector<16x32xf32>, vector<64x32xf32> -> vector<64x32xf32>
    %50 = arith.addf %46, %49 : vector<64x32xf32>
    %c2_42 = arith.constant 2 : index
    %c0_43 = arith.constant 0 : index
    %c0_44 = arith.constant 0 : index
    %51 = vector.load %arg8[%c2_42, %c0_43, %c0_44] : memref<3x16x32xf32, #tpu.memory_space<vmem>>, vector<1x16x32xf32>
    %52 = vector.shape_cast %51 : vector<1x16x32xf32> to vector<16x32xf32>
    %cst_45 = arith.constant dense<0.000000e+00> : vector<64x32xf32>
    %53 = tpu.matmul %43, %52, %cst_45 {dimension_numbers = #tpu.dot_dimension_numbers<[1], [0], [0], [1], [0, 0, 1, 1], [], []>} : vector<64x16xf32>, vector<16x32xf32>, vector<64x32xf32> -> vector<64x32xf32>
    %54 = arith.addf %50, %53 : vector<64x32xf32>
    %c0_46 = arith.constant 0 : index
    %c0_47 = arith.constant 0 : index
    %55 = vector.load %arg9[%c0_46, %c0_47] : memref<1x32xf32, #tpu.memory_space<vmem>>, vector<1x32xf32>
    %56 = vector.broadcast %55 : vector<1x32xf32> to vector<64x32xf32>
    %57 = arith.addf %54, %56 : vector<64x32xf32>
    %58 = vector.extract_strided_slice %57 {offsets = [0, 0], sizes = [64, 16], strides = [1, 1]} : vector<64x32xf32> to vector<64x16xf32>
    %59 = math.tanh %58 : vector<64x16xf32>
    %60 = vector.extract_strided_slice %57 {offsets = [0, 16], sizes = [64, 16], strides = [1, 1]} : vector<64x32xf32> to vector<64x16xf32>
    %61 = arith.negf %60 : vector<64x16xf32>
    %62 = math.exp %61 : vector<64x16xf32>
    %cst_48 = arith.constant 1.000000e+00 : f32
    %63 = vector.broadcast %cst_48 : f32 to vector<64x16xf32>
    %64 = arith.addf %63, %62 : vector<64x16xf32>
    %65 = arith.divf %63, %64 : vector<64x16xf32>
    %66 = arith.mulf %59, %65 : vector<64x16xf32>
    %c0_49 = arith.constant 0 : index
    %c0_50 = arith.constant 0 : index
    %67 = vector.load %arg10[%c0_49, %c0_50] : memref<16x16xf32, #tpu.memory_space<vmem>>, vector<16x16xf32>
    %cst_51 = arith.constant dense<0.000000e+00> : vector<64x16xf32>
    %68 = tpu.matmul %66, %67, %cst_51 {dimension_numbers = #tpu.dot_dimension_numbers<[1], [0], [0], [1], [0, 0, 1, 1], [], []>} : vector<64x16xf32>, vector<16x16xf32>, vector<64x16xf32> -> vector<64x16xf32>
    %c0_52 = arith.constant 0 : index
    %c0_53 = arith.constant 0 : index
    %69 = vector.load %arg11[%c0_52, %c0_53] : memref<1x16xf32, #tpu.memory_space<vmem>>, vector<1x16xf32>
    %70 = vector.broadcast %69 : vector<1x16xf32> to vector<64x16xf32>
    %71 = arith.addf %68, %70 : vector<64x16xf32>
    %72 = arith.addf %40, %71 : vector<64x16xf32>
    %c8_54 = arith.constant 8 : index
    %c0_55 = arith.constant 0 : index
    %73 = vector.load %arg57[%c8_54, %c0_55] : memref<80x128xf32, #tpu.memory_space<vmem>>, vector<64x16xf32>
    tpu.vector_store %arg57[%c8_54, %c0_55], %71 {strides = array<i32>} : memref<80x128xf32, #tpu.memory_space<vmem>>, vector<64x16xf32>,
    %c4 = arith.constant 4 : index
    %c0_56 = arith.constant 0 : index
    %74 = vector.load %arg57[%c4, %c0_56] : memref<80x128xf32, #tpu.memory_space<vmem>>, vector<64x16xf32>
    %c12 = arith.constant 12 : index
    %c0_57 = arith.constant 0 : index
    %75 = vector.load %arg57[%c12, %c0_57] : memref<80x128xf32, #tpu.memory_space<vmem>>, vector<64x16xf32>
    %c0_58 = arith.constant 0 : index
    %c0_59 = arith.constant 0 : index
    %c0_60 = arith.constant 0 : index
    %76 = vector.load %arg12[%c0_58, %c0_59, %c0_60] : memref<3x16x32xf32, #tpu.memory_space<vmem>>, vector<1x16x32xf32>
    %77 = vector.shape_cast %76 : vector<1x16x32xf32> to vector<16x32xf32>
    %cst_61 = arith.constant dense<0.000000e+00> : vector<64x32xf32>
    %78 = tpu.matmul %74, %77, %cst_61 {dimension_numbers = #tpu.dot_dimension_numbers<[1], [0], [0], [1], [0, 0, 1, 1], [], []>} : vector<64x16xf32>, vector<16x32xf32>, vector<64x32xf32> -> vector<64x32xf32>
    %c1_62 = arith.constant 1 : index
    %c0_63 = arith.constant 0 : index
    %c0_64 = arith.constant 0 : index
    %79 = vector.load %arg12[%c1_62, %c0_63, %c0_64] : memref<3x16x32xf32, #tpu.memory_space<vmem>>, vector<1x16x32xf32>
    %80 = vector.shape_cast %79 : vector<1x16x32xf32> to vector<16x32xf32>
    %cst_65 = arith.constant dense<0.000000e+00> : vector<64x32xf32>
    %81 = tpu.matmul %71, %80, %cst_65 {dimension_numbers = #tpu.dot_dimension_numbers<[1], [0], [0], [1], [0, 0, 1, 1], [], []>} : vector<64x16xf32>, vector<16x32xf32>, vector<64x32xf32> -> vector<64x32xf32>
    %82 = arith.addf %78, %81 : vector<64x32xf32>
    %c2_66 = arith.constant 2 : index
    %c0_67 = arith.constant 0 : index
    %c0_68 = arith.constant 0 : index
    %83 = vector.load %arg12[%c2_66, %c0_67, %c0_68] : memref<3x16x32xf32, #tpu.memory_space<vmem>>, vector<1x16x32xf32>
    %84 = vector.shape_cast %83 : vector<1x16x32xf32> to vector<16x32xf32>
    %cst_69 = arith.constant dense<0.000000e+00> : vector<64x32xf32>
    %85 = tpu.matmul %75, %84, %cst_69 {dimension_numbers = #tpu.dot_dimension_numbers<[1], [0], [0], [1], [0, 0, 1, 1], [], []>} : vector<64x16xf32>, vector<16x32xf32>, vector<64x32xf32> -> vector<64x32xf32>
    %86 = arith.addf %82, %85 : vector<64x32xf32>
    %c0_70 = arith.constant 0 : index
    %c0_71 = arith.constant 0 : index
    %87 = vector.load %arg13[%c0_70, %c0_71] : memref<1x32xf32, #tpu.memory_space<vmem>>, vector<1x32xf32>
    %88 = vector.broadcast %87 : vector<1x32xf32> to vector<64x32xf32>
    %89 = arith.addf %86, %88 : vector<64x32xf32>
    %90 = vector.extract_strided_slice %89 {offsets = [0, 0], sizes = [64, 16], strides = [1, 1]} : vector<64x32xf32> to vector<64x16xf32>
    %91 = math.tanh %90 : vector<64x16xf32>
    %92 = vector.extract_strided_slice %89 {offsets = [0, 16], sizes = [64, 16], strides = [1, 1]} : vector<64x32xf32> to vector<64x16xf32>
    %93 = arith.negf %92 : vector<64x16xf32>
    %94 = math.exp %93 : vector<64x16xf32>
    %cst_72 = arith.constant 1.000000e+00 : f32
    %95 = vector.broadcast %cst_72 : f32 to vector<64x16xf32>
    %96 = arith.addf %95, %94 : vector<64x16xf32>
    %97 = arith.divf %95, %96 : vector<64x16xf32>
    %98 = arith.mulf %91, %97 : vector<64x16xf32>
    %c0_73 = arith.constant 0 : index
    %c0_74 = arith.constant 0 : index
    %99 = vector.load %arg14[%c0_73, %c0_74] : memref<16x16xf32, #tpu.memory_space<vmem>>, vector<16x16xf32>
    %cst_75 = arith.constant dense<0.000000e+00> : vector<64x16xf32>
    %100 = tpu.matmul %98, %99, %cst_75 {dimension_numbers = #tpu.dot_dimension_numbers<[1], [0], [0], [1], [0, 0, 1, 1], [], []>} : vector<64x16xf32>, vector<16x16xf32>, vector<64x16xf32> -> vector<64x16xf32>
    %c0_76 = arith.constant 0 : index
    %c0_77 = arith.constant 0 : index
    %101 = vector.load %arg15[%c0_76, %c0_77] : memref<1x16xf32, #tpu.memory_space<vmem>>, vector<1x16xf32>
    %102 = vector.broadcast %101 : vector<1x16xf32> to vector<64x16xf32>
    %103 = arith.addf %100, %102 : vector<64x16xf32>
    %104 = arith.addf %72, %103 : vector<64x16xf32>
    %c8_78 = arith.constant 8 : index
    %c0_79 = arith.constant 0 : index
    %105 = vector.load %arg57[%c8_78, %c0_79] : memref<80x128xf32, #tpu.memory_space<vmem>>, vector<64x16xf32>
    tpu.vector_store %arg57[%c8_78, %c0_79], %103 {strides = array<i32>} : memref<80x128xf32, #tpu.memory_space<vmem>>, vector<64x16xf32>,
    %c0_80 = arith.constant 0 : index
    %c0_81 = arith.constant 0 : index
    %106 = vector.load %arg57[%c0_80, %c0_81] : memref<80x128xf32, #tpu.memory_space<vmem>>, vector<64x16xf32>
    %c16 = arith.constant 16 : index
    %c0_82 = arith.constant 0 : index
    %107 = vector.load %arg57[%c16, %c0_82] : memref<80x128xf32, #tpu.memory_space<vmem>>, vector<64x16xf32>
    %c0_83 = arith.constant 0 : index
    %c0_84 = arith.constant 0 : index
    %c0_85 = arith.constant 0 : index
    %108 = vector.load %arg16[%c0_83, %c0_84, %c0_85] : memref<3x16x32xf32, #tpu.memory_space<vmem>>, vector<1x16x32xf32>
    %109 = vector.shape_cast %108 : vector<1x16x32xf32> to vector<16x32xf32>
    %cst_86 = arith.constant dense<0.000000e+00> : vector<64x32xf32>
    %110 = tpu.matmul %106, %109, %cst_86 {dimension_numbers = #tpu.dot_dimension_numbers<[1], [0], [0], [1], [0, 0, 1, 1], [], []>} : vector<64x16xf32>, vector<16x32xf32>, vector<64x32xf32> -> vector<64x32xf32>
    %c1_87 = arith.constant 1 : index
    %c0_88 = arith.constant 0 : index
    %c0_89 = arith.constant 0 : index
    %111 = vector.load %arg16[%c1_87, %c0_88, %c0_89] : memref<3x16x32xf32, #tpu.memory_space<vmem>>, vector<1x16x32xf32>
    %112 = vector.shape_cast %111 : vector<1x16x32xf32> to vector<16x32xf32>
    %cst_90 = arith.constant dense<0.000000e+00> : vector<64x32xf32>
    %113 = tpu.matmul %103, %112, %cst_90 {dimension_numbers = #tpu.dot_dimension_numbers<[1], [0], [0], [1], [0, 0, 1, 1], [], []>} : vector<64x16xf32>, vector<16x32xf32>, vector<64x32xf32> -> vector<64x32xf32>
    %114 = arith.addf %110, %113 : vector<64x32xf32>
    %c2_91 = arith.constant 2 : index
    %c0_92 = arith.constant 0 : index
    %c0_93 = arith.constant 0 : index
    %115 = vector.load %arg16[%c2_91, %c0_92, %c0_93] : memref<3x16x32xf32, #tpu.memory_space<vmem>>, vector<1x16x32xf32>
    %116 = vector.shape_cast %115 : vector<1x16x32xf32> to vector<16x32xf32>
    %cst_94 = arith.constant dense<0.000000e+00> : vector<64x32xf32>
    %117 = tpu.matmul %107, %116, %cst_94 {dimension_numbers = #tpu.dot_dimension_numbers<[1], [0], [0], [1], [0, 0, 1, 1], [], []>} : vector<64x16xf32>, vector<16x32xf32>, vector<64x32xf32> -> vector<64x32xf32>
    %118 = arith.addf %114, %117 : vector<64x32xf32>
    %c0_95 = arith.constant 0 : index
    %c0_96 = arith.constant 0 : index
    %119 = vector.load %arg17[%c0_95, %c0_96] : memref<1x32xf32, #tpu.memory_space<vmem>>, vector<1x32xf32>
    %120 = vector.broadcast %119 : vector<1x32xf32> to vector<64x32xf32>
    %121 = arith.addf %118, %120 : vector<64x32xf32>
    %122 = vector.extract_strided_slice %121 {offsets = [0, 0], sizes = [64, 16], strides = [1, 1]} : vector<64x32xf32> to vector<64x16xf32>
    %123 = math.tanh %122 : vector<64x16xf32>
    %124 = vector.extract_strided_slice %121 {offsets = [0, 16], sizes = [64, 16], strides = [1, 1]} : vector<64x32xf32> to vector<64x16xf32>
    %125 = arith.negf %124 : vector<64x16xf32>
    %126 = math.exp %125 : vector<64x16xf32>
    %cst_97 = arith.constant 1.000000e+00 : f32
    %127 = vector.broadcast %cst_97 : f32 to vector<64x16xf32>
    %128 = arith.addf %127, %126 : vector<64x16xf32>
    %129 = arith.divf %127, %128 : vector<64x16xf32>
    %130 = arith.mulf %123, %129 : vector<64x16xf32>
    %c0_98 = arith.constant 0 : index
    %c0_99 = arith.constant 0 : index
    %131 = vector.load %arg18[%c0_98, %c0_99] : memref<16x16xf32, #tpu.memory_space<vmem>>, vector<16x16xf32>
    %cst_100 = arith.constant dense<0.000000e+00> : vector<64x16xf32>
    %132 = tpu.matmul %130, %131, %cst_100 {dimension_numbers = #tpu.dot_dimension_numbers<[1], [0], [0], [1], [0, 0, 1, 1], [], []>} : vector<64x16xf32>, vector<16x16xf32>, vector<64x16xf32> -> vector<64x16xf32>
    %c0_101 = arith.constant 0 : index
    %c0_102 = arith.constant 0 : index
    %133 = vector.load %arg19[%c0_101, %c0_102] : memref<1x16xf32, #tpu.memory_space<vmem>>, vector<1x16xf32>
    %134 = vector.broadcast %133 : vector<1x16xf32> to vector<64x16xf32>
    %135 = arith.addf %132, %134 : vector<64x16xf32>
    %136 = arith.addf %104, %135 : vector<64x16xf32>
    %c8_103 = arith.constant 8 : index
    %c0_104 = arith.constant 0 : index
    %137 = vector.load %arg57[%c8_103, %c0_104] : memref<80x128xf32, #tpu.memory_space<vmem>>, vector<64x16xf32>
    tpu.vector_store %arg57[%c8_103, %c0_104], %135 {strides = array<i32>} : memref<80x128xf32, #tpu.memory_space<vmem>>, vector<64x16xf32>,
    %c0_105 = arith.constant 0 : index
    %c0_106 = arith.constant 0 : index
    %138 = vector.load %arg20[%c0_105, %c0_106] : memref<16x32xf32, #tpu.memory_space<vmem>>, vector<16x32xf32>
    %cst_107 = arith.constant dense<0.000000e+00> : vector<64x32xf32>
    %139 = tpu.matmul %136, %138, %cst_107 {dimension_numbers = #tpu.dot_dimension_numbers<[1], [0], [0], [1], [0, 0, 1, 1], [], []>} : vector<64x16xf32>, vector<16x32xf32>, vector<64x32xf32> -> vector<64x32xf32>
    %c0_108 = arith.constant 0 : index
    %c0_109 = arith.constant 0 : index
    %140 = vector.load %arg21[%c0_108, %c0_109] : memref<1x32xf32, #tpu.memory_space<vmem>>, vector<1x32xf32>
    %141 = vector.broadcast %140 : vector<1x32xf32> to vector<64x32xf32>
    %142 = arith.addf %139, %141 : vector<64x32xf32>
    %c8_110 = arith.constant 8 : index
    %c0_111 = arith.constant 0 : index
    %143 = vector.load %arg57[%c8_110, %c0_111] : memref<80x128xf32, #tpu.memory_space<vmem>>, vector<64x32xf32>
    tpu.vector_store %arg57[%c8_110, %c0_111], %142 {strides = array<i32>} : memref<80x128xf32, #tpu.memory_space<vmem>>, vector<64x32xf32>,
    %c7_112 = arith.constant 7 : index
    %c0_113 = arith.constant 0 : index
    %144 = vector.load %arg57[%c7_112, %c0_113] : memref<80x128xf32, #tpu.memory_space<vmem>>, vector<64x32xf32>
    %c9_114 = arith.constant 9 : index
    %c0_115 = arith.constant 0 : index
    %145 = vector.load %arg57[%c9_114, %c0_115] : memref<80x128xf32, #tpu.memory_space<vmem>>, vector<64x32xf32>
    %c0_116 = arith.constant 0 : index
    %c0_117 = arith.constant 0 : index
    %c0_118 = arith.constant 0 : index
    %146 = vector.load %arg22[%c0_116, %c0_117, %c0_118] : memref<3x32x64xf32, #tpu.memory_space<vmem>>, vector<1x32x64xf32>
    %147 = vector.shape_cast %146 : vector<1x32x64xf32> to vector<32x64xf32>
    %cst_119 = arith.constant dense<0.000000e+00> : vector<64x64xf32>
    %148 = tpu.matmul %144, %147, %cst_119 {dimension_numbers = #tpu.dot_dimension_numbers<[1], [0], [0], [1], [0, 0, 1, 1], [], []>} : vector<64x32xf32>, vector<32x64xf32>, vector<64x64xf32> -> vector<64x64xf32>
    %c1_120 = arith.constant 1 : index
    %c0_121 = arith.constant 0 : index
    %c0_122 = arith.constant 0 : index
    %149 = vector.load %arg22[%c1_120, %c0_121, %c0_122] : memref<3x32x64xf32, #tpu.memory_space<vmem>>, vector<1x32x64xf32>
    %150 = vector.shape_cast %149 : vector<1x32x64xf32> to vector<32x64xf32>
    %cst_123 = arith.constant dense<0.000000e+00> : vector<64x64xf32>
    %151 = tpu.matmul %142, %150, %cst_123 {dimension_numbers = #tpu.dot_dimension_numbers<[1], [0], [0], [1], [0, 0, 1, 1], [], []>} : vector<64x32xf32>, vector<32x64xf32>, vector<64x64xf32> -> vector<64x64xf32>
    %152 = arith.addf %148, %151 : vector<64x64xf32>
    %c2_124 = arith.constant 2 : index
    %c0_125 = arith.constant 0 : index
    %c0_126 = arith.constant 0 : index
    %153 = vector.load %arg22[%c2_124, %c0_125, %c0_126] : memref<3x32x64xf32, #tpu.memory_space<vmem>>, vector<1x32x64xf32>
    %154 = vector.shape_cast %153 : vector<1x32x64xf32> to vector<32x64xf32>
    %cst_127 = arith.constant dense<0.000000e+00> : vector<64x64xf32>
    %155 = tpu.matmul %145, %154, %cst_127 {dimension_numbers = #tpu.dot_dimension_numbers<[1], [0], [0], [1], [0, 0, 1, 1], [], []>} : vector<64x32xf32>, vector<32x64xf32>, vector<64x64xf32> -> vector<64x64xf32>
    %156 = arith.addf %152, %155 : vector<64x64xf32>
    %c0_128 = arith.constant 0 : index
    %c0_129 = arith.constant 0 : index
    %157 = vector.load %arg23[%c0_128, %c0_129] : memref<1x64xf32, #tpu.memory_space<vmem>>, vector<1x64xf32>
    %158 = vector.broadcast %157 : vector<1x64xf32> to vector<64x64xf32>
    %159 = arith.addf %156, %158 : vector<64x64xf32>
    %160 = vector.extract_strided_slice %159 {offsets = [0, 0], sizes = [64, 32], strides = [1, 1]} : vector<64x64xf32> to vector<64x32xf32>
    %161 = math.tanh %160 : vector<64x32xf32>
    %162 = vector.extract_strided_slice %159 {offsets = [0, 32], sizes = [64, 32], strides = [1, 1]} : vector<64x64xf32> to vector<64x32xf32>
    %163 = arith.negf %162 : vector<64x32xf32>
    %164 = math.exp %163 : vector<64x32xf32>
    %cst_130 = arith.constant 1.000000e+00 : f32
    %165 = vector.broadcast %cst_130 : f32 to vector<64x32xf32>
    %166 = arith.addf %165, %164 : vector<64x32xf32>
    %167 = arith.divf %165, %166 : vector<64x32xf32>
    %168 = arith.mulf %161, %167 : vector<64x32xf32>
    %c0_131 = arith.constant 0 : index
    %c0_132 = arith.constant 0 : index
    %169 = vector.load %arg24[%c0_131, %c0_132] : memref<32x32xf32, #tpu.memory_space<vmem>>, vector<32x32xf32>
    %cst_133 = arith.constant dense<0.000000e+00> : vector<64x32xf32>
    %170 = tpu.matmul %168, %169, %cst_133 {dimension_numbers = #tpu.dot_dimension_numbers<[1], [0], [0], [1], [0, 0, 1, 1], [], []>} : vector<64x32xf32>, vector<32x32xf32>, vector<64x32xf32> -> vector<64x32xf32>
    %c0_134 = arith.constant 0 : index
    %c0_135 = arith.constant 0 : index
    %171 = vector.load %arg25[%c0_134, %c0_135] : memref<1x32xf32, #tpu.memory_space<vmem>>, vector<1x32xf32>
    %172 = vector.broadcast %171 : vector<1x32xf32> to vector<64x32xf32>
    %173 = arith.addf %170, %172 : vector<64x32xf32>
    %174 = arith.addf %142, %173 : vector<64x32xf32>
    %c8_136 = arith.constant 8 : index
    %c0_137 = arith.constant 0 : index
    %175 = vector.load %arg57[%c8_136, %c0_137] : memref<80x128xf32, #tpu.memory_space<vmem>>, vector<64x32xf32>
    tpu.vector_store %arg57[%c8_136, %c0_137], %173 {strides = array<i32>} : memref<80x128xf32, #tpu.memory_space<vmem>>, vector<64x32xf32>,
    %c6_138 = arith.constant 6 : index
    %c0_139 = arith.constant 0 : index
    %176 = vector.load %arg57[%c6_138, %c0_139] : memref<80x128xf32, #tpu.memory_space<vmem>>, vector<64x32xf32>
    %c10_140 = arith.constant 10 : index
    %c0_141 = arith.constant 0 : index
    %177 = vector.load %arg57[%c10_140, %c0_141] : memref<80x128xf32, #tpu.memory_space<vmem>>, vector<64x32xf32>
    %c0_142 = arith.constant 0 : index
    %c0_143 = arith.constant 0 : index
    %c0_144 = arith.constant 0 : index
    %178 = vector.load %arg26[%c0_142, %c0_143, %c0_144] : memref<3x32x64xf32, #tpu.memory_space<vmem>>, vector<1x32x64xf32>
    %179 = vector.shape_cast %178 : vector<1x32x64xf32> to vector<32x64xf32>
    %cst_145 = arith.constant dense<0.000000e+00> : vector<64x64xf32>
    %180 = tpu.matmul %176, %179, %cst_145 {dimension_numbers = #tpu.dot_dimension_numbers<[1], [0], [0], [1], [0, 0, 1, 1], [], []>} : vector<64x32xf32>, vector<32x64xf32>, vector<64x64xf32> -> vector<64x64xf32>
    %c1_146 = arith.constant 1 : index
    %c0_147 = arith.constant 0 : index
    %c0_148 = arith.constant 0 : index
    %181 = vector.load %arg26[%c1_146, %c0_147, %c0_148] : memref<3x32x64xf32, #tpu.memory_space<vmem>>, vector<1x32x64xf32>
    %182 = vector.shape_cast %181 : vector<1x32x64xf32> to vector<32x64xf32>
    %cst_149 = arith.constant dense<0.000000e+00> : vector<64x64xf32>
    %183 = tpu.matmul %173, %182, %cst_149 {dimension_numbers = #tpu.dot_dimension_numbers<[1], [0], [0], [1], [0, 0, 1, 1], [], []>} : vector<64x32xf32>, vector<32x64xf32>, vector<64x64xf32> -> vector<64x64xf32>
    %184 = arith.addf %180, %183 : vector<64x64xf32>
    %c2_150 = arith.constant 2 : index
    %c0_151 = arith.constant 0 : index
    %c0_152 = arith.constant 0 : index
    %185 = vector.load %arg26[%c2_150, %c0_151, %c0_152] : memref<3x32x64xf32, #tpu.memory_space<vmem>>, vector<1x32x64xf32>
    %186 = vector.shape_cast %185 : vector<1x32x64xf32> to vector<32x64xf32>
    %cst_153 = arith.constant dense<0.000000e+00> : vector<64x64xf32>
    %187 = tpu.matmul %177, %186, %cst_153 {dimension_numbers = #tpu.dot_dimension_numbers<[1], [0], [0], [1], [0, 0, 1, 1], [], []>} : vector<64x32xf32>, vector<32x64xf32>, vector<64x64xf32> -> vector<64x64xf32>
    %188 = arith.addf %184, %187 : vector<64x64xf32>
    %c0_154 = arith.constant 0 : index
    %c0_155 = arith.constant 0 : index
    %189 = vector.load %arg27[%c0_154, %c0_155] : memref<1x64xf32, #tpu.memory_space<vmem>>, vector<1x64xf32>
    %190 = vector.broadcast %189 : vector<1x64xf32> to vector<64x64xf32>
    %191 = arith.addf %188, %190 : vector<64x64xf32>
    %192 = vector.extract_strided_slice %191 {offsets = [0, 0], sizes = [64, 32], strides = [1, 1]} : vector<64x64xf32> to vector<64x32xf32>
    %193 = math.tanh %192 : vector<64x32xf32>
    %194 = vector.extract_strided_slice %191 {offsets = [0, 32], sizes = [64, 32], strides = [1, 1]} : vector<64x64xf32> to vector<64x32xf32>
    %195 = arith.negf %194 : vector<64x32xf32>
    %196 = math.exp %195 : vector<64x32xf32>
    %cst_156 = arith.constant 1.000000e+00 : f32
    %197 = vector.broadcast %cst_156 : f32 to vector<64x32xf32>
    %198 = arith.addf %197, %196 : vector<64x32xf32>
    %199 = arith.divf %197, %198 : vector<64x32xf32>
    %200 = arith.mulf %193, %199 : vector<64x32xf32>
    %c0_157 = arith.constant 0 : index
    %c0_158 = arith.constant 0 : index
    %201 = vector.load %arg28[%c0_157, %c0_158] : memref<32x32xf32, #tpu.memory_space<vmem>>, vector<32x32xf32>
    %cst_159 = arith.constant dense<0.000000e+00> : vector<64x32xf32>
    %202 = tpu.matmul %200, %201, %cst_159 {dimension_numbers = #tpu.dot_dimension_numbers<[1], [0], [0], [1], [0, 0, 1, 1], [], []>} : vector<64x32xf32>, vector<32x32xf32>, vector<64x32xf32> -> vector<64x32xf32>
    %c0_160 = arith.constant 0 : index
    %c0_161 = arith.constant 0 : index
    %203 = vector.load %arg29[%c0_160, %c0_161] : memref<1x32xf32, #tpu.memory_space<vmem>>, vector<1x32xf32>
    %204 = vector.broadcast %203 : vector<1x32xf32> to vector<64x32xf32>
    %205 = arith.addf %202, %204 : vector<64x32xf32>
    %206 = arith.addf %174, %205 : vector<64x32xf32>
    %c8_162 = arith.constant 8 : index
    %c0_163 = arith.constant 0 : index
    %207 = vector.load %arg57[%c8_162, %c0_163] : memref<80x128xf32, #tpu.memory_space<vmem>>, vector<64x32xf32>
    tpu.vector_store %arg57[%c8_162, %c0_163], %205 {strides = array<i32>} : memref<80x128xf32, #tpu.memory_space<vmem>>, vector<64x32xf32>,
    %c4_164 = arith.constant 4 : index
    %c0_165 = arith.constant 0 : index
    %208 = vector.load %arg57[%c4_164, %c0_165] : memref<80x128xf32, #tpu.memory_space<vmem>>, vector<64x32xf32>
    %c12_166 = arith.constant 12 : index
    %c0_167 = arith.constant 0 : index
    %209 = vector.load %arg57[%c12_166, %c0_167] : memref<80x128xf32, #tpu.memory_space<vmem>>, vector<64x32xf32>
    %c0_168 = arith.constant 0 : index
    %c0_169 = arith.constant 0 : index
    %c0_170 = arith.constant 0 : index
    %210 = vector.load %arg30[%c0_168, %c0_169, %c0_170] : memref<3x32x64xf32, #tpu.memory_space<vmem>>, vector<1x32x64xf32>
    %211 = vector.shape_cast %210 : vector<1x32x64xf32> to vector<32x64xf32>
    %cst_171 = arith.constant dense<0.000000e+00> : vector<64x64xf32>
    %212 = tpu.matmul %208, %211, %cst_171 {dimension_numbers = #tpu.dot_dimension_numbers<[1], [0], [0], [1], [0, 0, 1, 1], [], []>} : vector<64x32xf32>, vector<32x64xf32>, vector<64x64xf32> -> vector<64x64xf32>
    %c1_172 = arith.constant 1 : index
    %c0_173 = arith.constant 0 : index
    %c0_174 = arith.constant 0 : index
    %213 = vector.load %arg30[%c1_172, %c0_173, %c0_174] : memref<3x32x64xf32, #tpu.memory_space<vmem>>, vector<1x32x64xf32>
    %214 = vector.shape_cast %213 : vector<1x32x64xf32> to vector<32x64xf32>
    %cst_175 = arith.constant dense<0.000000e+00> : vector<64x64xf32>
    %215 = tpu.matmul %205, %214, %cst_175 {dimension_numbers = #tpu.dot_dimension_numbers<[1], [0], [0], [1], [0, 0, 1, 1], [], []>} : vector<64x32xf32>, vector<32x64xf32>, vector<64x64xf32> -> vector<64x64xf32>
    %216 = arith.addf %212, %215 : vector<64x64xf32>
    %c2_176 = arith.constant 2 : index
    %c0_177 = arith.constant 0 : index
    %c0_178 = arith.constant 0 : index
    %217 = vector.load %arg30[%c2_176, %c0_177, %c0_178] : memref<3x32x64xf32, #tpu.memory_space<vmem>>, vector<1x32x64xf32>
    %218 = vector.shape_cast %217 : vector<1x32x64xf32> to vector<32x64xf32>
    %cst_179 = arith.constant dense<0.000000e+00> : vector<64x64xf32>
    %219 = tpu.matmul %209, %218, %cst_179 {dimension_numbers = #tpu.dot_dimension_numbers<[1], [0], [0], [1], [0, 0, 1, 1], [], []>} : vector<64x32xf32>, vector<32x64xf32>, vector<64x64xf32> -> vector<64x64xf32>
    %220 = arith.addf %216, %219 : vector<64x64xf32>
    %c0_180 = arith.constant 0 : index
    %c0_181 = arith.constant 0 : index
    %221 = vector.load %arg31[%c0_180, %c0_181] : memref<1x64xf32, #tpu.memory_space<vmem>>, vector<1x64xf32>
    %222 = vector.broadcast %221 : vector<1x64xf32> to vector<64x64xf32>
    %223 = arith.addf %220, %222 : vector<64x64xf32>
    %224 = vector.extract_strided_slice %223 {offsets = [0, 0], sizes = [64, 32], strides = [1, 1]} : vector<64x64xf32> to vector<64x32xf32>
    %225 = math.tanh %224 : vector<64x32xf32>
    %226 = vector.extract_strided_slice %223 {offsets = [0, 32], sizes = [64, 32], strides = [1, 1]} : vector<64x64xf32> to vector<64x32xf32>
    %227 = arith.negf %226 : vector<64x32xf32>
    %228 = math.exp %227 : vector<64x32xf32>
    %cst_182 = arith.constant 1.000000e+00 : f32
    %229 = vector.broadcast %cst_182 : f32 to vector<64x32xf32>
    %230 = arith.addf %229, %228 : vector<64x32xf32>
    %231 = arith.divf %229, %230 : vector<64x32xf32>
    %232 = arith.mulf %225, %231 : vector<64x32xf32>
    %c0_183 = arith.constant 0 : index
    %c0_184 = arith.constant 0 : index
    %233 = vector.load %arg32[%c0_183, %c0_184] : memref<32x32xf32, #tpu.memory_space<vmem>>, vector<32x32xf32>
    %cst_185 = arith.constant dense<0.000000e+00> : vector<64x32xf32>
    %234 = tpu.matmul %232, %233, %cst_185 {dimension_numbers = #tpu.dot_dimension_numbers<[1], [0], [0], [1], [0, 0, 1, 1], [], []>} : vector<64x32xf32>, vector<32x32xf32>, vector<64x32xf32> -> vector<64x32xf32>
    %c0_186 = arith.constant 0 : index
    %c0_187 = arith.constant 0 : index
    %235 = vector.load %arg33[%c0_186, %c0_187] : memref<1x32xf32, #tpu.memory_space<vmem>>, vector<1x32xf32>
    %236 = vector.broadcast %235 : vector<1x32xf32> to vector<64x32xf32>
    %237 = arith.addf %234, %236 : vector<64x32xf32>
    %238 = arith.addf %206, %237 : vector<64x32xf32>
    %c8_188 = arith.constant 8 : index
    %c0_189 = arith.constant 0 : index
    %239 = vector.load %arg57[%c8_188, %c0_189] : memref<80x128xf32, #tpu.memory_space<vmem>>, vector<64x32xf32>
    tpu.vector_store %arg57[%c8_188, %c0_189], %237 {strides = array<i32>} : memref<80x128xf32, #tpu.memory_space<vmem>>, vector<64x32xf32>,
    %c0_190 = arith.constant 0 : index
    %c0_191 = arith.constant 0 : index
    %240 = vector.load %arg57[%c0_190, %c0_191] : memref<80x128xf32, #tpu.memory_space<vmem>>, vector<64x32xf32>
    %c16_192 = arith.constant 16 : index
    %c0_193 = arith.constant 0 : index
    %241 = vector.load %arg57[%c16_192, %c0_193] : memref<80x128xf32, #tpu.memory_space<vmem>>, vector<64x32xf32>
    %c0_194 = arith.constant 0 : index
    %c0_195 = arith.constant 0 : index
    %c0_196 = arith.constant 0 : index
    %242 = vector.load %arg34[%c0_194, %c0_195, %c0_196] : memref<3x32x64xf32, #tpu.memory_space<vmem>>, vector<1x32x64xf32>
    %243 = vector.shape_cast %242 : vector<1x32x64xf32> to vector<32x64xf32>
    %cst_197 = arith.constant dense<0.000000e+00> : vector<64x64xf32>
    %244 = tpu.matmul %240, %243, %cst_197 {dimension_numbers = #tpu.dot_dimension_numbers<[1], [0], [0], [1], [0, 0, 1, 1], [], []>} : vector<64x32xf32>, vector<32x64xf32>, vector<64x64xf32> -> vector<64x64xf32>
    %c1_198 = arith.constant 1 : index
    %c0_199 = arith.constant 0 : index
    %c0_200 = arith.constant 0 : index
    %245 = vector.load %arg34[%c1_198, %c0_199, %c0_200] : memref<3x32x64xf32, #tpu.memory_space<vmem>>, vector<1x32x64xf32>
    %246 = vector.shape_cast %245 : vector<1x32x64xf32> to vector<32x64xf32>
    %cst_201 = arith.constant dense<0.000000e+00> : vector<64x64xf32>
    %247 = tpu.matmul %237, %246, %cst_201 {dimension_numbers = #tpu.dot_dimension_numbers<[1], [0], [0], [1], [0, 0, 1, 1], [], []>} : vector<64x32xf32>, vector<32x64xf32>, vector<64x64xf32> -> vector<64x64xf32>
    %248 = arith.addf %244, %247 : vector<64x64xf32>
    %c2_202 = arith.constant 2 : index
    %c0_203 = arith.constant 0 : index
    %c0_204 = arith.constant 0 : index
    %249 = vector.load %arg34[%c2_202, %c0_203, %c0_204] : memref<3x32x64xf32, #tpu.memory_space<vmem>>, vector<1x32x64xf32>
    %250 = vector.shape_cast %249 : vector<1x32x64xf32> to vector<32x64xf32>
    %cst_205 = arith.constant dense<0.000000e+00> : vector<64x64xf32>
    %251 = tpu.matmul %241, %250, %cst_205 {dimension_numbers = #tpu.dot_dimension_numbers<[1], [0], [0], [1], [0, 0, 1, 1], [], []>} : vector<64x32xf32>, vector<32x64xf32>, vector<64x64xf32> -> vector<64x64xf32>
    %252 = arith.addf %248, %251 : vector<64x64xf32>
    %c0_206 = arith.constant 0 : index
    %c0_207 = arith.constant 0 : index
    %253 = vector.load %arg35[%c0_206, %c0_207] : memref<1x64xf32, #tpu.memory_space<vmem>>, vector<1x64xf32>
    %254 = vector.broadcast %253 : vector<1x64xf32> to vector<64x64xf32>
    %255 = arith.addf %252, %254 : vector<64x64xf32>
    %256 = vector.extract_strided_slice %255 {offsets = [0, 0], sizes = [64, 32], strides = [1, 1]} : vector<64x64xf32> to vector<64x32xf32>
    %257 = math.tanh %256 : vector<64x32xf32>
    %258 = vector.extract_strided_slice %255 {offsets = [0, 32], sizes = [64, 32], strides = [1, 1]} : vector<64x64xf32> to vector<64x32xf32>
    %259 = arith.negf %258 : vector<64x32xf32>
    %260 = math.exp %259 : vector<64x32xf32>
    %cst_208 = arith.constant 1.000000e+00 : f32
    %261 = vector.broadcast %cst_208 : f32 to vector<64x32xf32>
    %262 = arith.addf %261, %260 : vector<64x32xf32>
    %263 = arith.divf %261, %262 : vector<64x32xf32>
    %264 = arith.mulf %257, %263 : vector<64x32xf32>
    %c0_209 = arith.constant 0 : index
    %c0_210 = arith.constant 0 : index
    %265 = vector.load %arg36[%c0_209, %c0_210] : memref<32x32xf32, #tpu.memory_space<vmem>>, vector<32x32xf32>
    %cst_211 = arith.constant dense<0.000000e+00> : vector<64x32xf32>
    %266 = tpu.matmul %264, %265, %cst_211 {dimension_numbers = #tpu.dot_dimension_numbers<[1], [0], [0], [1], [0, 0, 1, 1], [], []>} : vector<64x32xf32>, vector<32x32xf32>, vector<64x32xf32> -> vector<64x32xf32>
    %c0_212 = arith.constant 0 : index
    %c0_213 = arith.constant 0 : index
    %267 = vector.load %arg37[%c0_212, %c0_213] : memref<1x32xf32, #tpu.memory_space<vmem>>, vector<1x32xf32>
    %268 = vector.broadcast %267 : vector<1x32xf32> to vector<64x32xf32>
    %269 = arith.addf %266, %268 : vector<64x32xf32>
    %270 = arith.addf %238, %269 : vector<64x32xf32>
    %c8_214 = arith.constant 8 : index
    %c0_215 = arith.constant 0 : index
    %271 = vector.load %arg57[%c8_214, %c0_215] : memref<80x128xf32, #tpu.memory_space<vmem>>, vector<64x32xf32>
    tpu.vector_store %arg57[%c8_214, %c0_215], %269 {strides = array<i32>} : memref<80x128xf32, #tpu.memory_space<vmem>>, vector<64x32xf32>,
    %c0_216 = arith.constant 0 : index
    %c0_217 = arith.constant 0 : index
    %272 = vector.load %arg38[%c0_216, %c0_217] : memref<32x64xf32, #tpu.memory_space<vmem>>, vector<32x64xf32>
    %cst_218 = arith.constant dense<0.000000e+00> : vector<64x64xf32>
    %273 = tpu.matmul %270, %272, %cst_218 {dimension_numbers = #tpu.dot_dimension_numbers<[1], [0], [0], [1], [0, 0, 1, 1], [], []>} : vector<64x32xf32>, vector<32x64xf32>, vector<64x64xf32> -> vector<64x64xf32>
    %c0_219 = arith.constant 0 : index
    %c0_220 = arith.constant 0 : index
    %274 = vector.load %arg39[%c0_219, %c0_220] : memref<1x64xf32, #tpu.memory_space<vmem>>, vector<1x64xf32>
    %275 = vector.broadcast %274 : vector<1x64xf32> to vector<64x64xf32>
    %276 = arith.addf %273, %275 : vector<64x64xf32>
    %c8_221 = arith.constant 8 : index
    %c0_222 = arith.constant 0 : index
    %277 = vector.load %arg57[%c8_221, %c0_222] : memref<80x128xf32, #tpu.memory_space<vmem>>, vector<64x64xf32>
    tpu.vector_store %arg57[%c8_221, %c0_222], %276 {strides = array<i32>} : memref<80x128xf32, #tpu.memory_space<vmem>>, vector<64x64xf32>,
    %c7_223 = arith.constant 7 : index
    %c0_224 = arith.constant 0 : index
    %278 = vector.load %arg57[%c7_223, %c0_224] : memref<80x128xf32, #tpu.memory_space<vmem>>, vector<64x64xf32>
    %c9_225 = arith.constant 9 : index
    %c0_226 = arith.constant 0 : index
    %279 = vector.load %arg57[%c9_225, %c0_226] : memref<80x128xf32, #tpu.memory_space<vmem>>, vector<64x64xf32>
    %c0_227 = arith.constant 0 : index
    %c0_228 = arith.constant 0 : index
    %c0_229 = arith.constant 0 : index
    %280 = vector.load %arg40[%c0_227, %c0_228, %c0_229] : memref<3x64x128xf32, #tpu.memory_space<vmem>>, vector<1x64x128xf32>
    %281 = vector.shape_cast %280 : vector<1x64x128xf32> to vector<64x128xf32>
    %cst_230 = arith.constant dense<0.000000e+00> : vector<64x128xf32>
    %282 = tpu.matmul %278, %281, %cst_230 {dimension_numbers = #tpu.dot_dimension_numbers<[1], [0], [0], [1], [0, 0, 1, 1], [], []>} : vector<64x64xf32>, vector<64x128xf32>, vector<64x128xf32> -> vector<64x128xf32>
    %c1_231 = arith.constant 1 : index
    %c0_232 = arith.constant 0 : index
    %c0_233 = arith.constant 0 : index
    %283 = vector.load %arg40[%c1_231, %c0_232, %c0_233] : memref<3x64x128xf32, #tpu.memory_space<vmem>>, vector<1x64x128xf32>
    %284 = vector.shape_cast %283 : vector<1x64x128xf32> to vector<64x128xf32>
    %cst_234 = arith.constant dense<0.000000e+00> : vector<64x128xf32>
    %285 = tpu.matmul %276, %284, %cst_234 {dimension_numbers = #tpu.dot_dimension_numbers<[1], [0], [0], [1], [0, 0, 1, 1], [], []>} : vector<64x64xf32>, vector<64x128xf32>, vector<64x128xf32> -> vector<64x128xf32>
    %286 = arith.addf %282, %285 : vector<64x128xf32>
    %c2_235 = arith.constant 2 : index
    %c0_236 = arith.constant 0 : index
    %c0_237 = arith.constant 0 : index
    %287 = vector.load %arg40[%c2_235, %c0_236, %c0_237] : memref<3x64x128xf32, #tpu.memory_space<vmem>>, vector<1x64x128xf32>
    %288 = vector.shape_cast %287 : vector<1x64x128xf32> to vector<64x128xf32>
    %cst_238 = arith.constant dense<0.000000e+00> : vector<64x128xf32>
    %289 = tpu.matmul %279, %288, %cst_238 {dimension_numbers = #tpu.dot_dimension_numbers<[1], [0], [0], [1], [0, 0, 1, 1], [], []>} : vector<64x64xf32>, vector<64x128xf32>, vector<64x128xf32> -> vector<64x128xf32>
    %290 = arith.addf %286, %289 : vector<64x128xf32>
    %c0_239 = arith.constant 0 : index
    %c0_240 = arith.constant 0 : index
    %291 = vector.load %arg41[%c0_239, %c0_240] : memref<1x128xf32, #tpu.memory_space<vmem>>, vector<1x128xf32>
    %292 = vector.broadcast %291 : vector<1x128xf32> to vector<64x128xf32>
    %293 = arith.addf %290, %292 : vector<64x128xf32>
    %294 = vector.extract_strided_slice %293 {offsets = [0, 0], sizes = [64, 64], strides = [1, 1]} : vector<64x128xf32> to vector<64x64xf32>
    %295 = math.tanh %294 : vector<64x64xf32>
    %296 = vector.extract_strided_slice %293 {offsets = [0, 64], sizes = [64, 64], strides = [1, 1]} : vector<64x128xf32> to vector<64x64xf32>
    %297 = arith.negf %296 : vector<64x64xf32>
    %298 = math.exp %297 : vector<64x64xf32>
    %cst_241 = arith.constant 1.000000e+00 : f32
    %299 = vector.broadcast %cst_241 : f32 to vector<64x64xf32>
    %300 = arith.addf %299, %298 : vector<64x64xf32>
    %301 = arith.divf %299, %300 : vector<64x64xf32>
    %302 = arith.mulf %295, %301 : vector<64x64xf32>
    %c0_242 = arith.constant 0 : index
    %c0_243 = arith.constant 0 : index
    %303 = vector.load %arg42[%c0_242, %c0_243] : memref<64x64xf32, #tpu.memory_space<vmem>>, vector<64x64xf32>
    %cst_244 = arith.constant dense<0.000000e+00> : vector<64x64xf32>
    %304 = tpu.matmul %302, %303, %cst_244 {dimension_numbers = #tpu.dot_dimension_numbers<[1], [0], [0], [1], [0, 0, 1, 1], [], []>} : vector<64x64xf32>, vector<64x64xf32>, vector<64x64xf32> -> vector<64x64xf32>
    %c0_245 = arith.constant 0 : index
    %c0_246 = arith.constant 0 : index
    %305 = vector.load %arg43[%c0_245, %c0_246] : memref<1x64xf32, #tpu.memory_space<vmem>>, vector<1x64xf32>
    %306 = vector.broadcast %305 : vector<1x64xf32> to vector<64x64xf32>
    %307 = arith.addf %304, %306 : vector<64x64xf32>
    %308 = arith.addf %276, %307 : vector<64x64xf32>
    %c8_247 = arith.constant 8 : index
    %c0_248 = arith.constant 0 : index
    %309 = vector.load %arg57[%c8_247, %c0_248] : memref<80x128xf32, #tpu.memory_space<vmem>>, vector<64x64xf32>
    tpu.vector_store %arg57[%c8_247, %c0_248], %307 {strides = array<i32>} : memref<80x128xf32, #tpu.memory_space<vmem>>, vector<64x64xf32>,
    %c6_249 = arith.constant 6 : index
    %c0_250 = arith.constant 0 : index
    %310 = vector.load %arg57[%c6_249, %c0_250] : memref<80x128xf32, #tpu.memory_space<vmem>>, vector<64x64xf32>
    %c10_251 = arith.constant 10 : index
    %c0_252 = arith.constant 0 : index
    %311 = vector.load %arg57[%c10_251, %c0_252] : memref<80x128xf32, #tpu.memory_space<vmem>>, vector<64x64xf32>
    %c0_253 = arith.constant 0 : index
    %c0_254 = arith.constant 0 : index
    %c0_255 = arith.constant 0 : index
    %312 = vector.load %arg44[%c0_253, %c0_254, %c0_255] : memref<3x64x128xf32, #tpu.memory_space<vmem>>, vector<1x64x128xf32>
    %313 = vector.shape_cast %312 : vector<1x64x128xf32> to vector<64x128xf32>
    %cst_256 = arith.constant dense<0.000000e+00> : vector<64x128xf32>
    %314 = tpu.matmul %310, %313, %cst_256 {dimension_numbers = #tpu.dot_dimension_numbers<[1], [0], [0], [1], [0, 0, 1, 1], [], []>} : vector<64x64xf32>, vector<64x128xf32>, vector<64x128xf32> -> vector<64x128xf32>
    %c1_257 = arith.constant 1 : index
    %c0_258 = arith.constant 0 : index
    %c0_259 = arith.constant 0 : index
    %315 = vector.load %arg44[%c1_257, %c0_258, %c0_259] : memref<3x64x128xf32, #tpu.memory_space<vmem>>, vector<1x64x128xf32>
    %316 = vector.shape_cast %315 : vector<1x64x128xf32> to vector<64x128xf32>
    %cst_260 = arith.constant dense<0.000000e+00> : vector<64x128xf32>
    %317 = tpu.matmul %307, %316, %cst_260 {dimension_numbers = #tpu.dot_dimension_numbers<[1], [0], [0], [1], [0, 0, 1, 1], [], []>} : vector<64x64xf32>, vector<64x128xf32>, vector<64x128xf32> -> vector<64x128xf32>
    %318 = arith.addf %314, %317 : vector<64x128xf32>
    %c2_261 = arith.constant 2 : index
    %c0_262 = arith.constant 0 : index
    %c0_263 = arith.constant 0 : index
    %319 = vector.load %arg44[%c2_261, %c0_262, %c0_263] : memref<3x64x128xf32, #tpu.memory_space<vmem>>, vector<1x64x128xf32>
    %320 = vector.shape_cast %319 : vector<1x64x128xf32> to vector<64x128xf32>
    %cst_264 = arith.constant dense<0.000000e+00> : vector<64x128xf32>
    %321 = tpu.matmul %311, %320, %cst_264 {dimension_numbers = #tpu.dot_dimension_numbers<[1], [0], [0], [1], [0, 0, 1, 1], [], []>} : vector<64x64xf32>, vector<64x128xf32>, vector<64x128xf32> -> vector<64x128xf32>
    %322 = arith.addf %318, %321 : vector<64x128xf32>
    %c0_265 = arith.constant 0 : index
    %c0_266 = arith.constant 0 : index
    %323 = vector.load %arg45[%c0_265, %c0_266] : memref<1x128xf32, #tpu.memory_space<vmem>>, vector<1x128xf32>
    %324 = vector.broadcast %323 : vector<1x128xf32> to vector<64x128xf32>
    %325 = arith.addf %322, %324 : vector<64x128xf32>
    %326 = vector.extract_strided_slice %325 {offsets = [0, 0], sizes = [64, 64], strides = [1, 1]} : vector<64x128xf32> to vector<64x64xf32>
    %327 = math.tanh %326 : vector<64x64xf32>
    %328 = vector.extract_strided_slice %325 {offsets = [0, 64], sizes = [64, 64], strides = [1, 1]} : vector<64x128xf32> to vector<64x64xf32>
    %329 = arith.negf %328 : vector<64x64xf32>
    %330 = math.exp %329 : vector<64x64xf32>
    %cst_267 = arith.constant 1.000000e+00 : f32
    %331 = vector.broadcast %cst_267 : f32 to vector<64x64xf32>
    %332 = arith.addf %331, %330 : vector<64x64xf32>
    %333 = arith.divf %331, %332 : vector<64x64xf32>
    %334 = arith.mulf %327, %333 : vector<64x64xf32>
    %c0_268 = arith.constant 0 : index
    %c0_269 = arith.constant 0 : index
    %335 = vector.load %arg46[%c0_268, %c0_269] : memref<64x64xf32, #tpu.memory_space<vmem>>, vector<64x64xf32>
    %cst_270 = arith.constant dense<0.000000e+00> : vector<64x64xf32>
    %336 = tpu.matmul %334, %335, %cst_270 {dimension_numbers = #tpu.dot_dimension_numbers<[1], [0], [0], [1], [0, 0, 1, 1], [], []>} : vector<64x64xf32>, vector<64x64xf32>, vector<64x64xf32> -> vector<64x64xf32>
    %c0_271 = arith.constant 0 : index
    %c0_272 = arith.constant 0 : index
    %337 = vector.load %arg47[%c0_271, %c0_272] : memref<1x64xf32, #tpu.memory_space<vmem>>, vector<1x64xf32>
    %338 = vector.broadcast %337 : vector<1x64xf32> to vector<64x64xf32>
    %339 = arith.addf %336, %338 : vector<64x64xf32>
    %340 = arith.addf %308, %339 : vector<64x64xf32>
    %c8_273 = arith.constant 8 : index
    %c0_274 = arith.constant 0 : index
    %341 = vector.load %arg57[%c8_273, %c0_274] : memref<80x128xf32, #tpu.memory_space<vmem>>, vector<64x64xf32>
    tpu.vector_store %arg57[%c8_273, %c0_274], %339 {strides = array<i32>} : memref<80x128xf32, #tpu.memory_space<vmem>>, vector<64x64xf32>,
    %c0_275 = arith.constant 0 : index
    %c0_276 = arith.constant 0 : index
    %342 = vector.load %arg48[%c0_275, %c0_276] : memref<64x128xf32, #tpu.memory_space<vmem>>, vector<64x128xf32>
    %cst_277 = arith.constant dense<0.000000e+00> : vector<64x128xf32>
    %343 = tpu.matmul %340, %342, %cst_277 {dimension_numbers = #tpu.dot_dimension_numbers<[1], [0], [0], [1], [0, 0, 1, 1], [], []>} : vector<64x64xf32>, vector<64x128xf32>, vector<64x128xf32> -> vector<64x128xf32>
    %c0_278 = arith.constant 0 : index
    %c0_279 = arith.constant 0 : index
    %344 = vector.load %arg49[%c0_278, %c0_279] : memref<1x128xf32, #tpu.memory_space<vmem>>, vector<1x128xf32>
    %345 = vector.broadcast %344 : vector<1x128xf32> to vector<64x128xf32>
    %346 = arith.addf %343, %345 : vector<64x128xf32>
    %c8_280 = arith.constant 8 : index
    %c0_281 = arith.constant 0 : index
    %347 = vector.load %arg57[%c8_280, %c0_281] : memref<80x128xf32, #tpu.memory_space<vmem>>, vector<64x128xf32>
    tpu.vector_store %arg57[%c8_280, %c0_281], %346 {strides = array<i32>} : memref<80x128xf32, #tpu.memory_space<vmem>>, vector<64x128xf32>,
    %c7_282 = arith.constant 7 : index
    %c0_283 = arith.constant 0 : index
    %348 = vector.load %arg57[%c7_282, %c0_283] : memref<80x128xf32, #tpu.memory_space<vmem>>, vector<64x128xf32>
    %c9_284 = arith.constant 9 : index
    %c0_285 = arith.constant 0 : index
    %349 = vector.load %arg57[%c9_284, %c0_285] : memref<80x128xf32, #tpu.memory_space<vmem>>, vector<64x128xf32>
    %c0_286 = arith.constant 0 : index
    %c0_287 = arith.constant 0 : index
    %c0_288 = arith.constant 0 : index
    %350 = vector.load %arg50[%c0_286, %c0_287, %c0_288] : memref<3x128x256xf32, #tpu.memory_space<vmem>>, vector<1x128x256xf32>
    %351 = vector.shape_cast %350 : vector<1x128x256xf32> to vector<128x256xf32>
    %cst_289 = arith.constant dense<0.000000e+00> : vector<64x256xf32>
    %352 = tpu.matmul %348, %351, %cst_289 {dimension_numbers = #tpu.dot_dimension_numbers<[1], [0], [0], [1], [0, 0, 1, 1], [], []>} : vector<64x128xf32>, vector<128x256xf32>, vector<64x256xf32> -> vector<64x256xf32>
    %c1_290 = arith.constant 1 : index
    %c0_291 = arith.constant 0 : index
    %c0_292 = arith.constant 0 : index
    %353 = vector.load %arg50[%c1_290, %c0_291, %c0_292] : memref<3x128x256xf32, #tpu.memory_space<vmem>>, vector<1x128x256xf32>
    %354 = vector.shape_cast %353 : vector<1x128x256xf32> to vector<128x256xf32>
    %cst_293 = arith.constant dense<0.000000e+00> : vector<64x256xf32>
    %355 = tpu.matmul %346, %354, %cst_293 {dimension_numbers = #tpu.dot_dimension_numbers<[1], [0], [0], [1], [0, 0, 1, 1], [], []>} : vector<64x128xf32>, vector<128x256xf32>, vector<64x256xf32> -> vector<64x256xf32>
    %356 = arith.addf %352, %355 : vector<64x256xf32>
    %c2_294 = arith.constant 2 : index
    %c0_295 = arith.constant 0 : index
    %c0_296 = arith.constant 0 : index
    %357 = vector.load %arg50[%c2_294, %c0_295, %c0_296] : memref<3x128x256xf32, #tpu.memory_space<vmem>>, vector<1x128x256xf32>
    %358 = vector.shape_cast %357 : vector<1x128x256xf32> to vector<128x256xf32>
    %cst_297 = arith.constant dense<0.000000e+00> : vector<64x256xf32>
    %359 = tpu.matmul %349, %358, %cst_297 {dimension_numbers = #tpu.dot_dimension_numbers<[1], [0], [0], [1], [0, 0, 1, 1], [], []>} : vector<64x128xf32>, vector<128x256xf32>, vector<64x256xf32> -> vector<64x256xf32>
    %360 = arith.addf %356, %359 : vector<64x256xf32>
    %c0_298 = arith.constant 0 : index
    %c0_299 = arith.constant 0 : index
    %361 = vector.load %arg51[%c0_298, %c0_299] : memref<1x256xf32, #tpu.memory_space<vmem>>, vector<1x256xf32>
    %362 = vector.broadcast %361 : vector<1x256xf32> to vector<64x256xf32>
    %363 = arith.addf %360, %362 : vector<64x256xf32>
    %364 = vector.extract_strided_slice %363 {offsets = [0, 0], sizes = [64, 128], strides = [1, 1]} : vector<64x256xf32> to vector<64x128xf32>
    %365 = math.tanh %364 : vector<64x128xf32>
    %366 = vector.extract_strided_slice %363 {offsets = [0, 128], sizes = [64, 128], strides = [1, 1]} : vector<64x256xf32> to vector<64x128xf32>
    %367 = arith.negf %366 : vector<64x128xf32>
    %368 = math.exp %367 : vector<64x128xf32>
    %cst_300 = arith.constant 1.000000e+00 : f32
    %369 = vector.broadcast %cst_300 : f32 to vector<64x128xf32>
    %370 = arith.addf %369, %368 : vector<64x128xf32>
    %371 = arith.divf %369, %370 : vector<64x128xf32>
    %372 = arith.mulf %365, %371 : vector<64x128xf32>
    %c0_301 = arith.constant 0 : index
    %c0_302 = arith.constant 0 : index
    %373 = vector.load %arg52[%c0_301, %c0_302] : memref<128x128xf32, #tpu.memory_space<vmem>>, vector<128x128xf32>
    %cst_303 = arith.constant dense<0.000000e+00> : vector<64x128xf32>
    %374 = tpu.matmul %372, %373, %cst_303 {dimension_numbers = #tpu.dot_dimension_numbers<[1], [0], [0], [1], [0, 0, 1, 1], [], []>} : vector<64x128xf32>, vector<128x128xf32>, vector<64x128xf32> -> vector<64x128xf32>
    %c0_304 = arith.constant 0 : index
    %c0_305 = arith.constant 0 : index
    %375 = vector.load %arg53[%c0_304, %c0_305] : memref<1x128xf32, #tpu.memory_space<vmem>>, vector<1x128xf32>
    %376 = vector.broadcast %375 : vector<1x128xf32> to vector<64x128xf32>
    %377 = arith.addf %374, %376 : vector<64x128xf32>
    %378 = arith.addf %346, %377 : vector<64x128xf32>
    %c8_306 = arith.constant 8 : index
    %c0_307 = arith.constant 0 : index
    %379 = vector.load %arg57[%c8_306, %c0_307] : memref<80x128xf32, #tpu.memory_space<vmem>>, vector<64x128xf32>
    tpu.vector_store %arg57[%c8_306, %c0_307], %377 {strides = array<i32>} : memref<80x128xf32, #tpu.memory_space<vmem>>, vector<64x128xf32>,
    %c0_308 = arith.constant 0 : index
    %c0_309 = arith.constant 0 : index
    %380 = vector.load %arg55[%c0_308, %c0_309] : memref<1x3xf32, #tpu.memory_space<vmem>>, vector<1x3xf32>
    %381 = vector.extract_strided_slice %378 {offsets = [0, 0], sizes = [16, 128], strides = [1, 1]} : vector<64x128xf32> to vector<16x128xf32>
    %cst_310 = arith.constant dense<0.000000e+00> : vector<128xf32>
    %382 = vector.multi_reduction <add>, %381, %cst_310 [0] : vector<16x128xf32> to vector<128xf32>
    %383 = vector.shape_cast %382 : vector<128xf32> to vector<1x128xf32>
    %cst_311 = arith.constant 1.600000e+01 : f32
    %384 = vector.broadcast %cst_311 : f32 to vector<1x128xf32>
    %385 = arith.divf %383, %384 : vector<1x128xf32>
    %c0_312 = arith.constant 0 : index
    %c0_313 = arith.constant 0 : index
    %c0_314 = arith.constant 0 : index
    %386 = vector.load %arg54[%c0_312, %c0_313, %c0_314] : memref<4x128x3xf32, #tpu.memory_space<vmem>>, vector<1x128x3xf32>
    %387 = vector.shape_cast %386 : vector<1x128x3xf32> to vector<128x3xf32>
    %cst_315 = arith.constant dense<0.000000e+00> : vector<1x3xf32>
    %388 = tpu.matmul %385, %387, %cst_315 {dimension_numbers = #tpu.dot_dimension_numbers<[1], [0], [0], [1], [0, 0, 1, 1], [], []>} : vector<1x128xf32>, vector<128x3xf32>, vector<1x3xf32> -> vector<1x3xf32>
    %389 = arith.addf %380, %388 : vector<1x3xf32>
    %390 = vector.extract_strided_slice %378 {offsets = [16, 0], sizes = [16, 128], strides = [1, 1]} : vector<64x128xf32> to vector<16x128xf32>
    %cst_316 = arith.constant dense<0.000000e+00> : vector<128xf32>
    %391 = vector.multi_reduction <add>, %390, %cst_316 [0] : vector<16x128xf32> to vector<128xf32>
    %392 = vector.shape_cast %391 : vector<128xf32> to vector<1x128xf32>
    %cst_317 = arith.constant 1.600000e+01 : f32
    %393 = vector.broadcast %cst_317 : f32 to vector<1x128xf32>
    %394 = arith.divf %392, %393 : vector<1x128xf32>
    %c1_318 = arith.constant 1 : index
    %c0_319 = arith.constant 0 : index
    %c0_320 = arith.constant 0 : index
    %395 = vector.load %arg54[%c1_318, %c0_319, %c0_320] : memref<4x128x3xf32, #tpu.memory_space<vmem>>, vector<1x128x3xf32>
    %396 = vector.shape_cast %395 : vector<1x128x3xf32> to vector<128x3xf32>
    %cst_321 = arith.constant dense<0.000000e+00> : vector<1x3xf32>
    %397 = tpu.matmul %394, %396, %cst_321 {dimension_numbers = #tpu.dot_dimension_numbers<[1], [0], [0], [1], [0, 0, 1, 1], [], []>} : vector<1x128xf32>, vector<128x3xf32>, vector<1x3xf32> -> vector<1x3xf32>
    %398 = arith.addf %389, %397 : vector<1x3xf32>
    %399 = vector.extract_strided_slice %378 {offsets = [32, 0], sizes = [16, 128], strides = [1, 1]} : vector<64x128xf32> to vector<16x128xf32>
    %cst_322 = arith.constant dense<0.000000e+00> : vector<128xf32>
    %400 = vector.multi_reduction <add>, %399, %cst_322 [0] : vector<16x128xf32> to vector<128xf32>
    %401 = vector.shape_cast %400 : vector<128xf32> to vector<1x128xf32>
    %cst_323 = arith.constant 1.600000e+01 : f32
    %402 = vector.broadcast %cst_323 : f32 to vector<1x128xf32>
    %403 = arith.divf %401, %402 : vector<1x128xf32>
    %c2_324 = arith.constant 2 : index
    %c0_325 = arith.constant 0 : index
    %c0_326 = arith.constant 0 : index
    %404 = vector.load %arg54[%c2_324, %c0_325, %c0_326] : memref<4x128x3xf32, #tpu.memory_space<vmem>>, vector<1x128x3xf32>
    %405 = vector.shape_cast %404 : vector<1x128x3xf32> to vector<128x3xf32>
    %cst_327 = arith.constant dense<0.000000e+00> : vector<1x3xf32>
    %406 = tpu.matmul %403, %405, %cst_327 {dimension_numbers = #tpu.dot_dimension_numbers<[1], [0], [0], [1], [0, 0, 1, 1], [], []>} : vector<1x128xf32>, vector<128x3xf32>, vector<1x3xf32> -> vector<1x3xf32>
    %407 = arith.addf %398, %406 : vector<1x3xf32>
    %408 = vector.extract_strided_slice %378 {offsets = [48, 0], sizes = [16, 128], strides = [1, 1]} : vector<64x128xf32> to vector<16x128xf32>
    %cst_328 = arith.constant dense<0.000000e+00> : vector<128xf32>
    %409 = vector.multi_reduction <add>, %408, %cst_328 [0] : vector<16x128xf32> to vector<128xf32>
    %410 = vector.shape_cast %409 : vector<128xf32> to vector<1x128xf32>
    %cst_329 = arith.constant 1.600000e+01 : f32
    %411 = vector.broadcast %cst_329 : f32 to vector<1x128xf32>
    %412 = arith.divf %410, %411 : vector<1x128xf32>
    %c3 = arith.constant 3 : index
    %c0_330 = arith.constant 0 : index
    %c0_331 = arith.constant 0 : index
    %413 = vector.load %arg54[%c3, %c0_330, %c0_331] : memref<4x128x3xf32, #tpu.memory_space<vmem>>, vector<1x128x3xf32>
    %414 = vector.shape_cast %413 : vector<1x128x3xf32> to vector<128x3xf32>
    %cst_332 = arith.constant dense<0.000000e+00> : vector<1x3xf32>
    %415 = tpu.matmul %412, %414, %cst_332 {dimension_numbers = #tpu.dot_dimension_numbers<[1], [0], [0], [1], [0, 0, 1, 1], [], []>} : vector<1x128xf32>, vector<128x3xf32>, vector<1x3xf32> -> vector<1x3xf32>
    %416 = arith.addf %407, %415 : vector<1x3xf32>
    %c0_333 = arith.constant 0 : index
    %c0_334 = arith.constant 0 : index
    %c0_335 = arith.constant 0 : index
    %417 = vector.load %arg56[%c0_333, %c0_334, %c0_335] : memref<1x1x3xf32, #tpu.memory_space<vmem>>, vector<1x1x3xf32>
    %418 = vector.shape_cast %417 : vector<1x1x3xf32> to vector<1x3xf32>
    %419 = vector.shape_cast %416 : vector<1x3xf32> to vector<1x1x3xf32>
    tpu.vector_store %arg56[%c0_333, %c0_334, %c0_335], %419 {strides = array<i32>} : memref<1x1x3xf32, #tpu.memory_space<vmem>>, vector<1x1x3xf32>,
    return
  }
  func.func @transform_0(%arg0: i32) -> (i32, i32, i32) {
    %c0_i32 = arith.constant 0 : i32
    %c0_i32_0 = arith.constant 0 : i32
    %c0_i32_1 = arith.constant 0 : i32
    return %arg0, %c0_i32, %c0_i32_0 : i32, i32, i32
  }
  func.func @transform_1(%arg0: i32) -> (i32, i32) {
    %c0_i32 = arith.constant 0 : i32
    %c0_i32_0 = arith.constant 0 : i32
    %c0_i32_1 = arith.constant 0 : i32
    return %c0_i32, %c0_i32_0 : i32, i32
  }
  func.func @transform_2(%arg0: i32) -> (i32, i32) {
    %c0_i32 = arith.constant 0 : i32
    %c0_i32_0 = arith.constant 0 : i32
    %c0_i32_1 = arith.constant 0 : i32
    return %c0_i32, %c0_i32_0 : i32, i32
  }
  func.func @transform_3(%arg0: i32) -> (i32, i32, i32) {
    %c0_i32 = arith.constant 0 : i32
    %c0_i32_0 = arith.constant 0 : i32
    %c0_i32_1 = arith.constant 0 : i32
    %c0_i32_2 = arith.constant 0 : i32
    return %c0_i32, %c0_i32_0, %c0_i32_1 : i32, i32, i32
  }
  func.func @transform_4(%arg0: i32) -> (i32, i32) {
    %c0_i32 = arith.constant 0 : i32
    %c0_i32_0 = arith.constant 0 : i32
    %c0_i32_1 = arith.constant 0 : i32
    return %c0_i32, %c0_i32_0 : i32, i32
  }
  func.func @transform_5(%arg0: i32) -> (i32, i32) {
    %c0_i32 = arith.constant 0 : i32
    %c0_i32_0 = arith.constant 0 : i32
    %c0_i32_1 = arith.constant 0 : i32
    return %c0_i32, %c0_i32_0 : i32, i32
  }
  func.func @transform_6(%arg0: i32) -> (i32, i32) {
    %c0_i32 = arith.constant 0 : i32
    %c0_i32_0 = arith.constant 0 : i32
    %c0_i32_1 = arith.constant 0 : i32
    return %c0_i32, %c0_i32_0 : i32, i32
  }
  func.func @transform_7(%arg0: i32) -> (i32, i32, i32) {
    %c0_i32 = arith.constant 0 : i32
    %c0_i32_0 = arith.constant 0 : i32
    %c0_i32_1 = arith.constant 0 : i32
    %c0_i32_2 = arith.constant 0 : i32
    return %c0_i32, %c0_i32_0, %c0_i32_1 : i32, i32, i32
  }
  func.func @transform_8(%arg0: i32) -> (i32, i32) {
    %c0_i32 = arith.constant 0 : i32
    %c0_i32_0 = arith.constant 0 : i32
    %c0_i32_1 = arith.constant 0 : i32
    return %c0_i32, %c0_i32_0 : i32, i32
  }
  func.func @transform_9(%arg0: i32) -> (i32, i32) {
    %c0_i32 = arith.constant 0 : i32
    %c0_i32_0 = arith.constant 0 : i32
    %c0_i32_1 = arith.constant 0 : i32
    return %c0_i32, %c0_i32_0 : i32, i32
  }
  func.func @transform_10(%arg0: i32) -> (i32, i32) {
    %c0_i32 = arith.constant 0 : i32
    %c0_i32_0 = arith.constant 0 : i32
    %c0_i32_1 = arith.constant 0 : i32
    return %c0_i32, %c0_i32_0 : i32, i32
  }
  func.func @transform_11(%arg0: i32) -> (i32, i32, i32) {
    %c0_i32 = arith.constant 0 : i32
    %c0_i32_0 = arith.constant 0 : i32
    %c0_i32_1 = arith.constant 0 : i32
    %c0_i32_2 = arith.constant 0 : i32
    return %c0_i32, %c0_i32_0, %c0_i32_1 : i32, i32, i32
  }
  func.func @transform_12(%arg0: i32) -> (i32, i32) {
    %c0_i32 = arith.constant 0 : i32
    %c0_i32_0 = arith.constant 0 : i32
    %c0_i32_1 = arith.constant 0 : i32
    return %c0_i32, %c0_i32_0 : i32, i32
  }
  func.func @transform_13(%arg0: i32) -> (i32, i32) {
    %c0_i32 = arith.constant 0 : i32
    %c0_i32_0 = arith.constant 0 : i32
    %c0_i32_1 = arith.constant 0 : i32
    return %c0_i32, %c0_i32_0 : i32, i32
  }
  func.func @transform_14(%arg0: i32) -> (i32, i32) {
    %c0_i32 = arith.constant 0 : i32
    %c0_i32_0 = arith.constant 0 : i32
    %c0_i32_1 = arith.constant 0 : i32
    return %c0_i32, %c0_i32_0 : i32, i32
  }
  func.func @transform_15(%arg0: i32) -> (i32, i32, i32) {
    %c0_i32 = arith.constant 0 : i32
    %c0_i32_0 = arith.constant 0 : i32
    %c0_i32_1 = arith.constant 0 : i32
    %c0_i32_2 = arith.constant 0 : i32
    return %c0_i32, %c0_i32_0, %c0_i32_1 : i32, i32, i32
  }
  func.func @transform_16(%arg0: i32) -> (i32, i32) {
    %c0_i32 = arith.constant 0 : i32
    %c0_i32_0 = arith.constant 0 : i32
    %c0_i32_1 = arith.constant 0 : i32
    return %c0_i32, %c0_i32_0 : i32, i32
  }
  func.func @transform_17(%arg0: i32) -> (i32, i32) {
    %c0_i32 = arith.constant 0 : i32
    %c0_i32_0 = arith.constant 0 : i32
    %c0_i32_1 = arith.constant 0 : i32
    return %c0_i32, %c0_i32_0 : i32, i32
  }
  func.func @transform_18(%arg0: i32) -> (i32, i32) {
    %c0_i32 = arith.constant 0 : i32
    %c0_i32_0 = arith.constant 0 : i32
    %c0_i32_1 = arith.constant 0 : i32
    return %c0_i32, %c0_i32_0 : i32, i32
  }
  func.func @transform_19(%arg0: i32) -> (i32, i32) {
    %c0_i32 = arith.constant 0 : i32
    %c0_i32_0 = arith.constant 0 : i32
    %c0_i32_1 = arith.constant 0 : i32
    return %c0_i32, %c0_i32_0 : i32, i32
  }
  func.func @transform_20(%arg0: i32) -> (i32, i32) {
    %c0_i32 = arith.constant 0 : i32
    %c0_i32_0 = arith.constant 0 : i32
    %c0_i32_1 = arith.constant 0 : i32
    return %c0_i32, %c0_i32_0 : i32, i32
  }
  func.func @transform_21(%arg0: i32) -> (i32, i32, i32) {
    %c0_i32 = arith.constant 0 : i32
    %c0_i32_0 = arith.constant 0 : i32
    %c0_i32_1 = arith.constant 0 : i32
    %c0_i32_2 = arith.constant 0 : i32
    return %c0_i32, %c0_i32_0, %c0_i32_1 : i32, i32, i32
  }
  func.func @transform_22(%arg0: i32) -> (i32, i32) {
    %c0_i32 = arith.constant 0 : i32
    %c0_i32_0 = arith.constant 0 : i32
    %c0_i32_1 = arith.constant 0 : i32
    return %c0_i32, %c0_i32_0 : i32, i32
  }
  func.func @transform_23(%arg0: i32) -> (i32, i32) {
    %c0_i32 = arith.constant 0 : i32
    %c0_i32_0 = arith.constant 0 : i32
    %c0_i32_1 = arith.constant 0 : i32
    return %c0_i32, %c0_i32_0 : i32, i32
  }
  func.func @transform_24(%arg0: i32) -> (i32, i32) {
    %c0_i32 = arith.constant 0 : i32
    %c0_i32_0 = arith.constant 0 : i32
    %c0_i32_1 = arith.constant 0 : i32
    return %c0_i32, %c0_i32_0 : i32, i32
  }
  func.func @transform_25(%arg0: i32) -> (i32, i32, i32) {
    %c0_i32 = arith.constant 0 : i32
    %c0_i32_0 = arith.constant 0 : i32
    %c0_i32_1 = arith.constant 0 : i32
    %c0_i32_2 = arith.constant 0 : i32
    return %c0_i32, %c0_i32_0, %c0_i32_1 : i32, i32, i32
  }
  func.func @transform_26(%arg0: i32) -> (i32, i32) {
    %c0_i32 = arith.constant 0 : i32
    %c0_i32_0 = arith.constant 0 : i32
    %c0_i32_1 = arith.constant 0 : i32
    return %c0_i32, %c0_i32_0 : i32, i32
  }
  func.func @transform_27(%arg0: i32) -> (i32, i32) {
    %c0_i32 = arith.constant 0 : i32
    %c0_i32_0 = arith.constant 0 : i32
    %c0_i32_1 = arith.constant 0 : i32
    return %c0_i32, %c0_i32_0 : i32, i32
  }
  func.func @transform_28(%arg0: i32) -> (i32, i32) {
    %c0_i32 = arith.constant 0 : i32
    %c0_i32_0 = arith.constant 0 : i32
    %c0_i32_1 = arith.constant 0 : i32
    return %c0_i32, %c0_i32_0 : i32, i32
  }
  func.func @transform_29(%arg0: i32) -> (i32, i32, i32) {
    %c0_i32 = arith.constant 0 : i32
    %c0_i32_0 = arith.constant 0 : i32
    %c0_i32_1 = arith.constant 0 : i32
    %c0_i32_2 = arith.constant 0 : i32
    return %c0_i32, %c0_i32_0, %c0_i32_1 : i32, i32, i32
  }
  func.func @transform_30(%arg0: i32) -> (i32, i32) {
    %c0_i32 = arith.constant 0 : i32
    %c0_i32_0 = arith.constant 0 : i32
    %c0_i32_1 = arith.constant 0 : i32
    return %c0_i32, %c0_i32_0 : i32, i32
  }
  func.func @transform_31(%arg0: i32) -> (i32, i32) {
    %c0_i32 = arith.constant 0 : i32
    %c0_i32_0 = arith.constant 0 : i32
    %c0_i32_1 = arith.constant 0 : i32
    return %c0_i32, %c0_i32_0 : i32, i32
  }
  func.func @transform_32(%arg0: i32) -> (i32, i32) {
    %c0_i32 = arith.constant 0 : i32
    %c0_i32_0 = arith.constant 0 : i32
    %c0_i32_1 = arith.constant 0 : i32
    return %c0_i32, %c0_i32_0 : i32, i32
  }
  func.func @transform_33(%arg0: i32) -> (i32, i32, i32) {
    %c0_i32 = arith.constant 0 : i32
    %c0_i32_0 = arith.constant 0 : i32
    %c0_i32_1 = arith.constant 0 : i32
    %c0_i32_2 = arith.constant 0 : i32
    return %c0_i32, %c0_i32_0, %c0_i32_1 : i32, i32, i32
  }
  func.func @transform_34(%arg0: i32) -> (i32, i32) {
    %c0_i32 = arith.constant 0 : i32
    %c0_i32_0 = arith.constant 0 : i32
    %c0_i32_1 = arith.constant 0 : i32
    return %c0_i32, %c0_i32_0 : i32, i32
  }
  func.func @transform_35(%arg0: i32) -> (i32, i32) {
    %c0_i32 = arith.constant 0 : i32
    %c0_i32_0 = arith.constant 0 : i32
    %c0_i32_1 = arith.constant 0 : i32
    return %c0_i32, %c0_i32_0 : i32, i32
  }
  func.func @transform_36(%arg0: i32) -> (i32, i32) {
    %c0_i32 = arith.constant 0 : i32
    %c0_i32_0 = arith.constant 0 : i32
    %c0_i32_1 = arith.constant 0 : i32
    return %c0_i32, %c0_i32_0 : i32, i32
  }
  func.func @transform_37(%arg0: i32) -> (i32, i32) {
    %c0_i32 = arith.constant 0 : i32
    %c0_i32_0 = arith.constant 0 : i32
    %c0_i32_1 = arith.constant 0 : i32
    return %c0_i32, %c0_i32_0 : i32, i32
  }
  func.func @transform_38(%arg0: i32) -> (i32, i32) {
    %c0_i32 = arith.constant 0 : i32
    %c0_i32_0 = arith.constant 0 : i32
    %c0_i32_1 = arith.constant 0 : i32
    return %c0_i32, %c0_i32_0 : i32, i32
  }
  func.func @transform_39(%arg0: i32) -> (i32, i32, i32) {
    %c0_i32 = arith.constant 0 : i32
    %c0_i32_0 = arith.constant 0 : i32
    %c0_i32_1 = arith.constant 0 : i32
    %c0_i32_2 = arith.constant 0 : i32
    return %c0_i32, %c0_i32_0, %c0_i32_1 : i32, i32, i32
  }
  func.func @transform_40(%arg0: i32) -> (i32, i32) {
    %c0_i32 = arith.constant 0 : i32
    %c0_i32_0 = arith.constant 0 : i32
    %c0_i32_1 = arith.constant 0 : i32
    return %c0_i32, %c0_i32_0 : i32, i32
  }
  func.func @transform_41(%arg0: i32) -> (i32, i32) {
    %c0_i32 = arith.constant 0 : i32
    %c0_i32_0 = arith.constant 0 : i32
    %c0_i32_1 = arith.constant 0 : i32
    return %c0_i32, %c0_i32_0 : i32, i32
  }
  func.func @transform_42(%arg0: i32) -> (i32, i32) {
    %c0_i32 = arith.constant 0 : i32
    %c0_i32_0 = arith.constant 0 : i32
    %c0_i32_1 = arith.constant 0 : i32
    return %c0_i32, %c0_i32_0 : i32, i32
  }
  func.func @transform_43(%arg0: i32) -> (i32, i32, i32) {
    %c0_i32 = arith.constant 0 : i32
    %c0_i32_0 = arith.constant 0 : i32
    %c0_i32_1 = arith.constant 0 : i32
    %c0_i32_2 = arith.constant 0 : i32
    return %c0_i32, %c0_i32_0, %c0_i32_1 : i32, i32, i32
  }
  func.func @transform_44(%arg0: i32) -> (i32, i32) {
    %c0_i32 = arith.constant 0 : i32
    %c0_i32_0 = arith.constant 0 : i32
    %c0_i32_1 = arith.constant 0 : i32
    return %c0_i32, %c0_i32_0 : i32, i32
  }
  func.func @transform_45(%arg0: i32) -> (i32, i32) {
    %c0_i32 = arith.constant 0 : i32
    %c0_i32_0 = arith.constant 0 : i32
    %c0_i32_1 = arith.constant 0 : i32
    return %c0_i32, %c0_i32_0 : i32, i32
  }
  func.func @transform_46(%arg0: i32) -> (i32, i32) {
    %c0_i32 = arith.constant 0 : i32
    %c0_i32_0 = arith.constant 0 : i32
    %c0_i32_1 = arith.constant 0 : i32
    return %c0_i32, %c0_i32_0 : i32, i32
  }
  func.func @transform_47(%arg0: i32) -> (i32, i32) {
    %c0_i32 = arith.constant 0 : i32
    %c0_i32_0 = arith.constant 0 : i32
    %c0_i32_1 = arith.constant 0 : i32
    return %c0_i32, %c0_i32_0 : i32, i32
  }
  func.func @transform_48(%arg0: i32) -> (i32, i32) {
    %c0_i32 = arith.constant 0 : i32
    %c0_i32_0 = arith.constant 0 : i32
    %c0_i32_1 = arith.constant 0 : i32
    return %c0_i32, %c0_i32_0 : i32, i32
  }
  func.func @transform_49(%arg0: i32) -> (i32, i32, i32) {
    %c0_i32 = arith.constant 0 : i32
    %c0_i32_0 = arith.constant 0 : i32
    %c0_i32_1 = arith.constant 0 : i32
    %c0_i32_2 = arith.constant 0 : i32
    return %c0_i32, %c0_i32_0, %c0_i32_1 : i32, i32, i32
  }
  func.func @transform_50(%arg0: i32) -> (i32, i32) {
    %c0_i32 = arith.constant 0 : i32
    %c0_i32_0 = arith.constant 0 : i32
    %c0_i32_1 = arith.constant 0 : i32
    return %c0_i32, %c0_i32_0 : i32, i32
  }
  func.func @transform_51(%arg0: i32) -> (i32, i32) {
    %c0_i32 = arith.constant 0 : i32
    %c0_i32_0 = arith.constant 0 : i32
    %c0_i32_1 = arith.constant 0 : i32
    return %c0_i32, %c0_i32_0 : i32, i32
  }
  func.func @transform_52(%arg0: i32) -> (i32, i32) {
    %c0_i32 = arith.constant 0 : i32
    %c0_i32_0 = arith.constant 0 : i32
    %c0_i32_1 = arith.constant 0 : i32
    return %c0_i32, %c0_i32_0 : i32, i32
  }
  func.func @transform_53(%arg0: i32) -> (i32, i32, i32) {
    %c0_i32 = arith.constant 0 : i32
    %c0_i32_0 = arith.constant 0 : i32
    %c0_i32_1 = arith.constant 0 : i32
    %c0_i32_2 = arith.constant 0 : i32
    return %c0_i32, %c0_i32_0, %c0_i32_1 : i32, i32, i32
  }
  func.func @transform_54(%arg0: i32) -> (i32, i32) {
    %c0_i32 = arith.constant 0 : i32
    %c0_i32_0 = arith.constant 0 : i32
    %c0_i32_1 = arith.constant 0 : i32
    return %c0_i32, %c0_i32_0 : i32, i32
  }
  func.func @transform_55(%arg0: i32) -> (i32, i32, i32) {
    %c0_i32 = arith.constant 0 : i32
    %c0_i32_0 = arith.constant 0 : i32
    %c0_i32_1 = arith.constant 0 : i32
    return %arg0, %c0_i32, %c0_i32_0 : i32, i32, i32
  }
}

</mosaic_0001>

<bundles_post_ra>
// kernel: wavenet_forward.1
= control target key start
LH: loop header
LB: loop body
LE: loop exit
PB: predicated region body
PF: predicated region fallthrough
CT: control target
= control target key end

     0   :  { %s16308_s6 = smov 1   ;;  %s16309_s10 = smov 2   ;;  %s18759_s0 = inlined_call_operand.smem [shape: u32[56], index: -1, kind: input, shape index: {}] }
   0x1   :  { %s16431_s5 = sld [smem:[%s18759_s0]]   ;;  %s16310_s14 = smov 3  }
   0x2   :  { %s16436_s9 = sld [smem:[%s18759_s0 + %s16308_s6]]   ;;  %s16311_s18 = smov 4  }
   0x3   :  { %s16441_s13 = sld [smem:[%s18759_s0 + %s16309_s10]]   ;;  %s16312_s22 = smov 5  }
   0x4   :  { %s16446_s17 = sld [smem:[%s18759_s0 + %s16310_s14]]   ;;  %s16313_s26 = smov 6  }
   0x5   :  { %s16451_s21 = sld [smem:[%s18759_s0 + %s16311_s18]]   ;;  %s16314_s30 = smov 7  }
   0x6   :  { %s16456_s25 = sld [smem:[%s18759_s0 + %s16312_s22]]   ;;  %s16315_s4 = smov 8  }
   0x7   :  { %18767 = sst [smem:[#allocation112_spill]] %s16431_s5  ;;  %s16316_s10 = smov 9  }
   0x8   :  { %18768 = sst [smem:[#allocation113_spill]] %s16436_s9  ;;  %s16317_s15 = smov 10  }
   0x9   :  { %18769 = sst [smem:[#allocation114_spill]] %s16441_s13  ;;  %s16318_s20 = smov 11  }
   0xa   :  { %18770 = sst [smem:[#allocation115_spill]] %s16446_s17  ;;  %s16320_s1 = smov 13  }
   0xb   :  { %s16461_s29 = sld [smem:[%s18759_s0 + %s16313_s26]]   ;;  %s16319_s26 = smov 12  }
   0xc   :  { %18771 = sst [smem:[#allocation116_spill]] %s16456_s25  ;;  %s16321_s7 = smov 14  }
   0xd   :  { %s16466_s3 = sld [smem:[%s18759_s0 + %s16314_s30]]   ;;  %s16323_s22 = smov 16  }
   0xe   :  { %s16471_s8 = sld [smem:[%s18759_s0 + %s16315_s4]]   ;;  %s16324_s28 = smov 17  }
   0xf   :  { %s16476_s14 = sld [smem:[%s18759_s0 + %s16316_s10]]  }
  0x10   :  { %s16481_s19 = sld [smem:[%s18759_s0 + %s16317_s15]]   ;;  %s16322_s15 = smov 15  }
  0x11   :  { %s16486_s24 = sld [smem:[%s18759_s0 + %s16318_s20]]  }
  0x12   :  { %s16491_s30 = sld [smem:[%s18759_s0 + %s16319_s26]]  }
  0x13   :  { %18772 = sst [smem:[#allocation117_spill]] %s16466_s3 }
  0x14   :  { %s16496_s6 = sld [smem:[%s18759_s0 + %s16320_s1]]  }
  0x15   :  { %18773 = sst [smem:[#allocation118_spill]] %s16476_s14 }
  0x16   :  { %s16501_s12 = sld [smem:[%s18759_s0 + %s16321_s7]]   ;;  %s16325_s7 = smov 18  }
  0x17   :  { %18774 = sst [smem:[#allocation119_spill]] %s16486_s24 }
  0x18   :  { %s16506_s20 = sld [smem:[%s18759_s0 + %s16322_s15]]   ;;  %s16326_s15 = smov 19  }
  0x19   :  { %s16511_s27 = sld [smem:[%s18759_s0 + %s16323_s22]]   ;;  %s16327_s22 = smov 20  }
  0x1a   :  { %18775 = sst [smem:[#allocation120_spill]] %s16496_s6 }
  0x1b   :  { %s16516_s4 = sld [smem:[%s18759_s0 + %s16324_s28]]   ;;  %s16328_s28 = smov 21  }
  0x1c   :  { %s16521_s5 = sld [smem:[%s18759_s0 + %s16325_s7]]   ;;  %s16329_s7 = smov 22  }
  0x1d   :  { %s16531_s6 = sld [smem:[%s18759_s0 + %s16327_s22]]   ;;  %s16331_s22 = smov 24  }
  0x1e   :  { %18776 = sst [smem:[#allocation121_spill]] %s16506_s20 }
  0x1f   :  { %s16526_s20 = sld [smem:[%s18759_s0 + %s16326_s15]]   ;;  %s16330_s15 = smov 23  }
  0x20   :  { %s16541_s24 = sld [smem:[%s18759_s0 + %s16329_s7]]   ;;  %s16333_s7 = smov 26  }
  0x21   :  { %18777 = sst [smem:[#allocation122_spill]] %s16516_s4 }
  0x22   :  { %s16536_s4 = sld [smem:[%s18759_s0 + %s16328_s28]]   ;;  %s16332_s28 = smov 25  }
  0x23   :  { %s16551_s14 = sld [smem:[%s18759_s0 + %s16331_s22]]   ;;  %s16335_s22 = smov 28  }
  0x24   :  { %s16561_s3 = sld [smem:[%s18759_s0 + %s16333_s7]]   ;;  %s16337_s7 = smov 30  }
  0x25   :  { %18778 = sst [smem:[#allocation123_spill]] %s16526_s20 }
  0x26   :  { %s16546_s20 = sld [smem:[%s18759_s0 + %s16330_s15]]   ;;  %s16334_s15 = smov 27  }
  0x27   :  { %s16571_s25 = sld [smem:[%s18759_s0 + %s16335_s22]]   ;;  %s16339_s22 = smov 32  }
  0x28   :  { %18779 = sst [smem:[#allocation124_spill]] %s16536_s4 }
  0x29   :  { %s16556_s4 = sld [smem:[%s18759_s0 + %s16332_s28]]   ;;  %s16336_s28 = smov 29  }
  0x2a   :  { %18782 = sst [smem:[#allocation127_spill]] %s16561_s3 }
  0x2b   :  { %s16581_s17 = sld [smem:[%s18759_s0 + %s16337_s7]]   ;;  %s16341_s7 = smov 34  }
  0x2c   :  { %18780 = sst [smem:[#allocation125_spill]] %s16546_s20 }
  0x2d   :  { %s16566_s20 = sld [smem:[%s18759_s0 + %s16334_s15]]   ;;  %s16338_s15 = smov 31  }
  0x2e   :  { %s16591_s9 = sld [smem:[%s18759_s0 + %s16339_s22]]   ;;  %s16343_s22 = smov 36  }
  0x2f   :  { %18781 = sst [smem:[#allocation126_spill]] %s16556_s4 }
  0x30   :  { %s16576_s4 = sld [smem:[%s18759_s0 + %s16336_s28]]   ;;  %s16340_s28 = smov 33  }
  0x31   :  { %18785 = sst [smem:[#allocation130_spill]] %s16581_s17 }
  0x32   :  { %s16601_s17 = sld [smem:[%s18759_s0 + %s16341_s7]]   ;;  %s16345_s7 = smov 38  }
  0x33   :  { %18783 = sst [smem:[#allocation128_spill]] %s16566_s20 }
  0x34   :  { %s16586_s20 = sld [smem:[%s18759_s0 + %s16338_s15]]   ;;  %s16342_s15 = smov 35  }
  0x35   :  { %18787 = sst [smem:[#allocation132_spill]] %s16591_s9 }
  0x36   :  { %18784 = sst [smem:[#allocation129_spill]] %s16576_s4 }
  0x37   :  { %s16596_s4 = sld [smem:[%s18759_s0 + %s16340_s28]]   ;;  %s16344_s28 = smov 37  }
  0x38   :  { %18789 = sst [smem:[#allocation134_spill]] %s16601_s17 }
  0x39   :  { %s16611_s9 = sld [smem:[%s18759_s0 + %s16343_s22]]   ;;  %s16347_s22 = smov 40  }
  0x3a   :  { %18786 = sst [smem:[#allocation131_spill]] %s16586_s20 }
  0x3b   :  { %s16606_s20 = sld [smem:[%s18759_s0 + %s16342_s15]]   ;;  %s16346_s15 = smov 39  }
  0x3c   :  { %s16621_s17 = sld [smem:[%s18759_s0 + %s16345_s7]]   ;;  %s16349_s7 = smov 42  }
  0x3d   :  { %18788 = sst [smem:[#allocation133_spill]] %s16596_s4 }
  0x3e   :  { %s16616_s4 = sld [smem:[%s18759_s0 + %s16344_s28]]   ;;  %s16348_s28 = smov 41  }
  0x3f   :  { %18791 = sst [smem:[#allocation136_spill]] %s16611_s9 }
  0x40   :  { %s16631_s9 = sld [smem:[%s18759_s0 + %s16347_s22]]   ;;  %s16351_s22 = smov 44  }
  0x41   :  { %18790 = sst [smem:[#allocation135_spill]] %s16606_s20 }
  0x42   :  { %18793 = sst [smem:[#allocation138_spill]] %s16621_s17 }
  0x43   :  { %s16626_s20 = sld [smem:[%s18759_s0 + %s16346_s15]]   ;;  %s16350_s15 = smov 43  }
  0x44   :  { %18792 = sst [smem:[#allocation137_spill]] %s16616_s4 }
  0x45   :  { %s16636_s4 = sld [smem:[%s18759_s0 + %s16348_s28]]   ;;  %s16352_s28 = smov 45  }
  0x46   :  { %18795 = sst [smem:[#allocation140_spill]] %s16631_s9 }
  0x47   :  { %s16641_s17 = sld [smem:[%s18759_s0 + %s16349_s7]]   ;;  %s16353_s7 = smov 46  }
  0x48   :  { %s16651_s9 = sld [smem:[%s18759_s0 + %s16351_s22]]   ;;  %s16355_s22 = smov 48  }
  0x49   :  { %18794 = sst [smem:[#allocation139_spill]] %s16626_s20 }
  0x4a   :  { %s16646_s20 = sld [smem:[%s18759_s0 + %s16350_s15]]   ;;  %s16354_s15 = smov 47  }
  0x4b   :  { %18796 = sst [smem:[#allocation141_spill]] %s16636_s4 }
  0x4c   :  { %s16656_s4 = sld [smem:[%s18759_s0 + %s16352_s28]]   ;;  %s16356_s28 = smov 49  }
  0x4d   :  { %18797 = sst [smem:[#allocation142_spill]] %s16641_s17 }
  0x4e   :  { %18799 = sst [smem:[#allocation144_spill]] %s16651_s9 }
  0x4f   :  { %s16661_s17 = sld [smem:[%s18759_s0 + %s16353_s7]]   ;;  %s16357_s7 = smov 50  }
  0x50   :  { %18798 = sst [smem:[#allocation143_spill]] %s16646_s20 }
  0x51   :  { %s16666_s20 = sld [smem:[%s18759_s0 + %s16354_s15]]   ;;  %s16358_s15 = smov 51  }
  0x52   :  { %18800 = sst [smem:[#allocation145_spill]] %s16656_s4 }
  0x53   :  { %s16671_s9 = sld [smem:[%s18759_s0 + %s16355_s22]]   ;;  %s16359_s22 = smov 52  }
  0x54   :  { %s16676_s4 = sld [smem:[%s18759_s0 + %s16356_s28]]   ;;  %s16360_s28 = smov 53  }
  0x55   :  { %18801 = sst [smem:[#allocation146_spill]] %s16661_s17 }
  0x56   :  { %s16681_s17 = sld [smem:[%s18759_s0 + %s16357_s7]]   ;;  %s16361_s7 = smov 54  }
  0x57   :  { %18802 = sst [smem:[#allocation147_spill]] %s16666_s20 }
  0x58   :  { %s16686_s20 = sld [smem:[%s18759_s0 + %s16358_s15]]   ;;  %s16362_s15 = smov 55  }
  0x59   :  { %18803 = sst [smem:[#allocation148_spill]] %s16671_s9 }
  0x5a   :  { %18804 = sst [smem:[#allocation149_spill]] %s16676_s4 }
  0x5b   :  { %s16691_s9 = sld [smem:[%s18759_s0 + %s16359_s22]]  }
  0x5c   :  { %18805 = sst [smem:[#allocation150_spill]] %s16681_s17 }
  0x5d   :  { %s16696_s4 = sld [smem:[%s18759_s0 + %s16360_s28]]  }
  0x5e   :  { %18806 = sst [smem:[#allocation151_spill]] %s16686_s20 }
  0x5f   :  { %s16701_s17 = sld [smem:[%s18759_s0 + %s16361_s7]]  }
  0x60   :  { %s16706_s20 = sld [smem:[%s18759_s0 + %s16362_s15]]  }
  0x61   :  { %116 = vsyncpa [#allocation4], 0 }
  0x62   :  { %117 = vsyncpa [#allocation7], 0 }
  0x63   :  { %118 = vsyncpa [#allocation10], 0 }
  0x64   :  { %119 = vsyncpa [#allocation13], 0 }
  0x65   :  { %120 = vsyncpa [#allocation16], 0 }
  0x66   :  { %121 = vsyncpa [#allocation19], 0 }
  0x67   :  { %122 = vsyncpa [#allocation22], 0 }
  0x68   :  { %123 = vsyncpa [#allocation25], 0 }
  0x69   :  { %124 = vsyncpa [#allocation28], 0 }
  0x6a   :  { %125 = vsyncpa [#allocation31], 0 }
  0x6b   :  { %126 = vsyncpa [#allocation34], 0 }
  0x6c   :  { %127 = vsyncpa [#allocation37], 0 }
  0x6d   :  { %128 = vsyncpa [#allocation40], 0 }
  0x6e   :  { %129 = vsyncpa [#allocation43], 0 }
  0x6f   :  { %130 = vsyncpa [#allocation46], 0 }
  0x70   :  { %131 = vsyncpa [#allocation49], 0 }
  0x71   :  { %132 = vsyncpa [#allocation52], 0 }
  0x72   :  { %133 = vsyncpa [#allocation55], 0 }
  0x73   :  { %134 = vsyncpa [#allocation58], 0 }
  0x74   :  { %135 = vsyncpa [#allocation61], 0 }
  0x75   :  { %136 = vsyncpa [#allocation64], 0 }
  0x76   :  { %137 = vsyncpa [#allocation67], 0 }
  0x77   :  { %138 = vsyncpa [#allocation70], 0 }
  0x78   :  { %139 = vsyncpa [#allocation73], 0 }
  0x79   :  { %140 = vsyncpa [#allocation76], 0 }
  0x7a   :  { %141 = vsyncpa [#allocation79], 0 }
  0x7b   :  { %142 = vsyncpa [#allocation82], 0 }
  0x7c   :  { %143 = vsyncpa [#allocation5], 0 }
  0x7d   :  { %145 = vsyncpa [#allocation5 + $0x1], 0  ;;  %s16708_s0 = smov 0   ;;  %s16710_s22 = smov 0  }
  0x7e   :  { %s16712_s23 = smov 0   ;;  %s16714_s26 = smov 0  }
  0x7f LB: > { %18807 = sst [smem:[#allocation152_spill]] %s16294_s0  ;;  %s16729_s28 = sadd.s32 4294967295, %s16306_s26   ;;  %s16306_s26 = sphi %s16714_s26, %s18859_s26   ;;  %s16302_s23 = sphi %s16712_s23, %s18861_s23   ;;  %s16298_s22 = sphi %s16710_s22, %s18863_s22   ;;  %s16294_s0 = sphi %s16708_s0, %s18862_s0  }
  0x80   : > { %18808 = sst [smem:[#allocation153_spill]] %s16302_s23  ;;  %s11518_s1 = sadd.s32 4294967294, %s16306_s26  }
  0x81   : > { %s16733_s2 = sadd.s32 1, %s16306_s26   ;;  %s1318_s7 = sadd.s32 1, %s16302_s23 }
  0x82   : > { %18809 = sst [smem:[#allocation154_spill]] %s16733_s2  ;;  %s1315_s10 = ssub.s32 %s16306_s26, %s16733_s2 }
  0x83   : > { %p1328_p0 = scmp.ne.s32.totalorder %s16302_s23, %s16298_s22  ;;  %p1316_p1 = scmp.eq.s32.totalorder %s1315_s10, 0 }
  0x84   : > { %p1329_p2 = scmp.eq.s32.totalorder %s16729_s28, 1  ;;  %p1334_p3 = scmp.ne.s32.totalorder %s16298_s22, %s16294_s0 }
  0x85   : > { %p1335_p4 = scmp.eq.s32.totalorder %s11518_s1, 1  ;;  %p11519_p7 = scmp.ge.s32.totalorder %s16306_s26, 1 }
  0x86   : > { %s16744_s11 = scalar_select %p1316_p1, %s16302_s23, %s1318_s7  }
  0x87   : > { %p16746_p5 = por %p1329_p2, %p1328_p0  ;;  %p16750_p6 = por %p1335_p4, %p1334_p3 }
  0x88   : > { %18810 = sst [smem:[#allocation155_spill]] %s16744_s11  ;;  %p1342_p8 = scmp.lt.s32.totalorder %s16306_s26, 3 }
  0x89   : > { %s18811_s15 = scalar_select %p16746_p5, 1, 0 }
  0x8a   : > { %s18812_s16 = scalar_select %p16750_p6, 1, 0 }
  0x8b   : > { %p16756_p9 = pnand %p11519_p7, %p1342_p8 }
  0x8c   : > { %18813 = sst [smem:[#allocation156_spill]] %s18812_s16  ;;  %p14107_p10 = scmp.eq.s32.totalorder (!%p16756_p9), %s16729_s28, 0 }
  0x8d   : > { %1346 = sbr.rel (%p16756_p9) target bundleno = 731 (0x2db), region = 12  ;;  %s16363_s1 = smov (!%p16756_p9), [#allocation6]  }
  0x8e   : > { %s1368_s7 = sshll.u32 (!%p16756_p9), %s16363_s1, 4  ;;  %s16364_s10 = smov (!%p16756_p9), [#allocation9]   ;;  %s1369_s7 = int_to_ptr.vmem [resolvable:$true] %s1368_s7 }
  0x8f   : > { %s1392_s11 = sshll.u32 (!%p16756_p9), %s16364_s10, 4  ;;  %s14900_s23 = scalar_lea.vmem (!%p16756_p9), %s1369_s7, 16  ;;  %s1393_s11 = int_to_ptr.vmem [resolvable:$true] %s1392_s11 }
  0x90   : > { %p14901_p11 = scmp.ne.s32.totalorder (!%p16756_p9), %s1369_s7, %s14900_s23  ;;  %s14906_s2 = scalar_lea.vmem (!%p16756_p9), %s1369_s7, 32 }
  0x91   : > { %p14907_p0 = scmp.lt.s32.totalorder (!%p16756_p9), %s1369_s7, %s1369_s7  ;;  %p14908_p1 = scmp.lt.s32.totalorder (!%p16756_p9), %s14906_s2, %s14900_s23 }
  0x92   : > { %p14902_p12 = pnand %p14901_p11, %p14107_p10 }
  0x93   : > { %p14909_p2 = por %p14908_p1, %p14907_p0 }
  0x94   : > { %p14903_p13 = pneg %p14902_p12 }
  0x96   : > { %p14910_p3 = pnand %p14909_p2, %p14903_p13 }
  0x98   : > { %14913 = shalt.err (!%p14910_p3)
}
  0x99   : > { %s18815_s13 = sld [smem:[#allocation114_spill]]  ;;  %s14924_s1 = scalar_lea.vmem %s1393_s11, 16 }
  0x9a   : > { %p14925_p4 = scmp.ne.s32.totalorder %s1393_s11, %s14924_s1  ;;  %s14930_s10 = scalar_lea.vmem %s1393_s11, 32 }
  0x9b   : > { %p14931_p11 = scmp.lt.s32.totalorder %s1393_s11, %s1393_s11  ;;  %p14932_p12 = scmp.lt.s32.totalorder %s14930_s10, %s14924_s1 }
  0x9c   : > { %p14926_p7 = pnand %p14925_p4, %p14107_p10 }
  0x9d   : > { %p14933_p6 = por %p14932_p12, %p14931_p11 }
  0x9e   : > { %p14927_p8 = pneg %p14926_p7 }
  0x9f   : > { %13896 = dma.hbm_to_vmem [thread:$0]  (%p14107_p10), %s18815_s13, 16, %s1369_s7, [#allocation7]  }
  0xa0   : > { %p14934_p5 = pnand %p14933_p6, %p14927_p8 }
  0xa2   : > { %14937 = shalt.err (!%p14934_p5)
}
  0xa3   : > { %13900 = dma.hbm_to_vmem [thread:$0]  (%p14107_p10), %s16451_s21, 16, %s1393_s11, [#allocation10]  }
  0xa4   : > { %s16365_s23 = smov [#allocation12]   ;;  %s16366_s7 = smov [#allocation15]  }
  0xa5   : > { %s1416_s2 = sshll.u32 %s16365_s23, 4  ;;  %s1440_s13 = sshll.u32 %s16366_s7, 4  ;;  %s1417_s2 = int_to_ptr.vmem [resolvable:$true] %s1416_s2  ;;  %s1441_s13 = int_to_ptr.vmem [resolvable:$true] %s1440_s13 }
  0xa6   : > { %s14948_s16 = scalar_lea.vmem %s1417_s2, 16  ;;  %s14954_s0 = scalar_lea.vmem %s1417_s2, 32 }
  0xa7   : > { %p14949_p13 = scmp.ne.s32.totalorder %s1417_s2, %s14948_s16  ;;  %p14955_p2 = scmp.lt.s32.totalorder %s1417_s2, %s1417_s2 }
  0xa8   : > { %p14956_p3 = scmp.lt.s32.totalorder %s14954_s0, %s14948_s16 }
  0xa9   : > { %p14950_p0 = pnand %p14949_p13, %p14107_p10 }
  0xaa   : > { %p14957_p6 = por %p14956_p3, %p14955_p2 }
  0xab   : > { %p14951_p1 = pneg %p14950_p0 }
  0xad   : > { %p14958_p5 = pnand %p14957_p6, %p14951_p1 }
  0xaf   : > { %14961 = shalt.err (!%p14958_p5)
}
  0xb0   : > { %13904 = dma.hbm_to_vmem [thread:$0]  (%p14107_p10), %s16461_s29, 16, %s1417_s2, [#allocation13]  }
  0xb1   : > { %s14972_s11 = scalar_lea.vmem %s1441_s13, 16  ;;  %s14978_s1 = scalar_lea.vmem %s1441_s13, 32 }
  0xb2   : > { %p14973_p4 = scmp.ne.s32.totalorder %s1441_s13, %s14972_s11  ;;  %p14979_p11 = scmp.lt.s32.totalorder %s1441_s13, %s1441_s13 }
  0xb3   : > { %p14980_p12 = scmp.lt.s32.totalorder %s14978_s1, %s14972_s11 }
  0xb4   : > { %p14974_p7 = pnand %p14973_p4, %p14107_p10 }
  0xb5   : > { %p14981_p13 = por %p14980_p12, %p14979_p11 }
  0xb6   : > { %p14975_p8 = pneg %p14974_p7 }
  0xb8   : > { %p14982_p0 = pnand %p14981_p13, %p14975_p8 }
  0xba   : > { %14985 = shalt.err (!%p14982_p0)
}
  0xbb   : > { %13908 = dma.hbm_to_vmem [thread:$0]  (%p14107_p10), %s16471_s8, 16, %s1441_s13, [#allocation16]  }
  0xbc   : > { %s16367_s0 = smov [#allocation18]   ;;  %s16368_s10 = smov [#allocation21]  }
  0xbd   : > { %s1464_s16 = sshll.u32 %s16367_s0, 4  ;;  %s1488_s23 = sshll.u32 %s16368_s10, 4  ;;  %s1465_s16 = int_to_ptr.vmem [resolvable:$true] %s1464_s16  ;;  %s1489_s23 = int_to_ptr.vmem [resolvable:$true] %s1488_s23 }
  0xbe   : > { %s14996_s2 = scalar_lea.vmem %s1465_s16, 16  ;;  %s15002_s7 = scalar_lea.vmem %s1465_s16, 32 }
  0xbf   : > { %p14997_p1 = scmp.ne.s32.totalorder %s1465_s16, %s14996_s2  ;;  %p15003_p6 = scmp.lt.s32.totalorder %s1465_s16, %s1465_s16 }
  0xc0   : > { %p15004_p5 = scmp.lt.s32.totalorder %s15002_s7, %s14996_s2 }
  0xc1   : > { %p14998_p2 = pnand %p14997_p1, %p14107_p10 }
  0xc2   : > { %p15005_p4 = por %p15004_p5, %p15003_p6 }
  0xc3   : > { %p14999_p3 = pneg %p14998_p2 }
  0xc5   : > { %p15006_p7 = pnand %p15005_p4, %p14999_p3 }
  0xc7   : > { %15009 = shalt.err (!%p15006_p7)
}
  0xc8   : > { %13912 = dma.hbm_to_vmem [thread:$0]  (%p14107_p10), %s16481_s19, 16, %s1465_s16, [#allocation19]  }
  0xc9   : > { %s15020_s13 = scalar_lea.vmem %s1489_s23, 16  ;;  %s15026_s11 = scalar_lea.vmem %s1489_s23, 32 }
  0xca   : > { %p15021_p8 = scmp.ne.s32.totalorder %s1489_s23, %s15020_s13  ;;  %p15027_p13 = scmp.lt.s32.totalorder %s1489_s23, %s1489_s23 }
  0xcb   : > { %p15028_p0 = scmp.lt.s32.totalorder %s15026_s11, %s15020_s13 }
  0xcc   : > { %p15022_p11 = pnand %p15021_p8, %p14107_p10 }
  0xcd   : > { %p15029_p1 = por %p15028_p0, %p15027_p13 }
  0xce   : > { %p15023_p12 = pneg %p15022_p11 }
  0xd0   : > { %p15030_p2 = pnand %p15029_p1, %p15023_p12 }
  0xd2   : > { %15033 = shalt.err (!%p15030_p2)
}
  0xd3   : > { %13916 = dma.hbm_to_vmem [thread:$0]  (%p14107_p10), %s16491_s30, 16, %s1489_s23, [#allocation22]  }
  0xd4   : > { %s16369_s1 = smov [#allocation24]   ;;  %s16370_s16 = smov [#allocation27]  }
  0xd5   : > { %s1512_s0 = sshll.u32 %s16369_s1, 4  ;;  %s1536_s10 = sshll.u32 %s16370_s16, 4  ;;  %s1513_s0 = int_to_ptr.vmem [resolvable:$true] %s1512_s0  ;;  %s1537_s10 = int_to_ptr.vmem [resolvable:$true] %s1536_s10 }
  0xd6   : > { %s15044_s2 = scalar_lea.vmem %s1513_s0, 16  ;;  %s15050_s7 = scalar_lea.vmem %s1513_s0, 32 }
  0xd7   : > { %p15045_p3 = scmp.ne.s32.totalorder %s1513_s0, %s15044_s2  ;;  %p15051_p4 = scmp.lt.s32.totalorder %s1513_s0, %s1513_s0 }
  0xd8   : > { %p15052_p7 = scmp.lt.s32.totalorder %s15050_s7, %s15044_s2 }
  0xd9   : > { %p15046_p6 = pnand %p15045_p3, %p14107_p10 }
  0xda   : > { %p15053_p8 = por %p15052_p7, %p15051_p4 }
  0xdb   : > { %p15047_p5 = pneg %p15046_p6 }
  0xdd   : > { %p15054_p11 = pnand %p15053_p8, %p15047_p5 }
  0xdf   : > { %15057 = shalt.err (!%p15054_p11)
}
  0xe0   : > { %13920 = dma.hbm_to_vmem [thread:$0]  (%p14107_p10), %s16501_s12, 16, %s1513_s0, [#allocation25]  }
  0xe1   : > { %s15068_s23 = scalar_lea.vmem %s1537_s10, 16  ;;  %s15074_s13 = scalar_lea.vmem %s1537_s10, 32 }
  0xe2   : > { %p15069_p12 = scmp.ne.s32.totalorder %s1537_s10, %s15068_s23  ;;  %p15075_p1 = scmp.lt.s32.totalorder %s1537_s10, %s1537_s10 }
  0xe3   : > { %p15076_p2 = scmp.lt.s32.totalorder %s15074_s13, %s15068_s23 }
  0xe4   : > { %p15070_p13 = pnand %p15069_p12, %p14107_p10 }
  0xe5   : > { %p15077_p3 = por %p15076_p2, %p15075_p1 }
  0xe6   : > { %p15071_p0 = pneg %p15070_p13 }
  0xe8   : > { %p15078_p6 = pnand %p15077_p3, %p15071_p0 }
  0xea   : > { %15081 = shalt.err (!%p15078_p6)
}
  0xeb   : > { %13924 = dma.hbm_to_vmem [thread:$0]  (%p14107_p10), %s16511_s27, 16, %s1537_s10, [#allocation28]  }
  0xec   : > { %s16371_s11 = smov [#allocation30]   ;;  %s16372_s0 = smov [#allocation33]  }
  0xed   : > { %s1560_s1 = sshll.u32 %s16371_s11, 4  ;;  %s1584_s16 = sshll.u32 %s16372_s0, 4  ;;  %s1561_s1 = int_to_ptr.vmem [resolvable:$true] %s1560_s1  ;;  %s1585_s16 = int_to_ptr.vmem [resolvable:$true] %s1584_s16 }
  0xee   : > { %s15092_s2 = scalar_lea.vmem %s1561_s1, 16  ;;  %s15098_s7 = scalar_lea.vmem %s1561_s1, 32 }
  0xef   : > { %p15093_p5 = scmp.ne.s32.totalorder %s1561_s1, %s15092_s2  ;;  %p15099_p8 = scmp.lt.s32.totalorder %s1561_s1, %s1561_s1 }
  0xf0   : > { %p15100_p11 = scmp.lt.s32.totalorder %s15098_s7, %s15092_s2 }
  0xf1   : > { %p15094_p4 = pnand %p15093_p5, %p14107_p10 }
  0xf2   : > { %p15101_p12 = por %p15100_p11, %p15099_p8 }
  0xf3   : > { %p15095_p7 = pneg %p15094_p4 }
  0xf5   : > { %p15102_p13 = pnand %p15101_p12, %p15095_p7 }
  0xf7   : > { %15105 = shalt.err (!%p15102_p13)
}
  0xf8   : > { %13928 = dma.hbm_to_vmem [thread:$0]  (%p14107_p10), %s16521_s5, 16, %s1561_s1, [#allocation31]  }
  0xf9   : > { %s15116_s10 = scalar_lea.vmem %s1585_s16, 16  ;;  %s15122_s23 = scalar_lea.vmem %s1585_s16, 32 }
  0xfa   : > { %p15117_p0 = scmp.ne.s32.totalorder %s1585_s16, %s15116_s10  ;;  %p15123_p3 = scmp.lt.s32.totalorder %s1585_s16, %s1585_s16 }
  0xfb   : > { %p15124_p6 = scmp.lt.s32.totalorder %s15122_s23, %s15116_s10 }
  0xfc   : > { %p15118_p1 = pnand %p15117_p0, %p14107_p10 }
  0xfd   : > { %p15125_p5 = por %p15124_p6, %p15123_p3 }
  0xfe   : > { %p15119_p2 = pneg %p15118_p1 }
 0x100   : > { %p15126_p4 = pnand %p15125_p5, %p15119_p2 }
 0x102   : > { %15129 = shalt.err (!%p15126_p4)
}
 0x103   : > { %13932 = dma.hbm_to_vmem [thread:$0]  (%p14107_p10), %s16531_s6, 16, %s1585_s16, [#allocation34]  }
 0x104   : > { %s16373_s13 = smov [#allocation36]   ;;  %s16374_s1 = smov [#allocation39]  }
 0x105   : > { %s1608_s11 = sshll.u32 %s16373_s13, 4  ;;  %s1632_s0 = sshll.u32 %s16374_s1, 4  ;;  %s1609_s11 = int_to_ptr.vmem [resolvable:$true] %s1608_s11  ;;  %s1633_s0 = int_to_ptr.vmem [resolvable:$true] %s1632_s0 }
 0x106   : > { %s15140_s2 = scalar_lea.vmem %s1609_s11, 16  ;;  %s15146_s7 = scalar_lea.vmem %s1609_s11, 32 }
 0x107   : > { %p15141_p7 = scmp.ne.s32.totalorder %s1609_s11, %s15140_s2  ;;  %p15147_p12 = scmp.lt.s32.totalorder %s1609_s11, %s1609_s11 }
 0x108   : > { %p15148_p13 = scmp.lt.s32.totalorder %s15146_s7, %s15140_s2 }
 0x109   : > { %p15142_p8 = pnand %p15141_p7, %p14107_p10 }
 0x10a   : > { %p15149_p0 = por %p15148_p13, %p15147_p12 }
 0x10b   : > { %p15143_p11 = pneg %p15142_p8 }
 0x10d   : > { %p15150_p1 = pnand %p15149_p0, %p15143_p11 }
 0x10f   : > { %15153 = shalt.err (!%p15150_p1)
}
 0x110   : > { %13936 = dma.hbm_to_vmem [thread:$0]  (%p14107_p10), %s16541_s24, 16, %s1609_s11, [#allocation37]  }
 0x111   : > { %s15164_s16 = scalar_lea.vmem %s1633_s0, 16  ;;  %s15170_s10 = scalar_lea.vmem %s1633_s0, 32 }
 0x112   : > { %p15165_p2 = scmp.ne.s32.totalorder %s1633_s0, %s15164_s16  ;;  %p15171_p5 = scmp.lt.s32.totalorder %s1633_s0, %s1633_s0 }
 0x113   : > { %p15172_p4 = scmp.lt.s32.totalorder %s15170_s10, %s15164_s16 }
 0x114   : > { %p15166_p3 = pnand %p15165_p2, %p14107_p10 }
 0x115   : > { %p15173_p7 = por %p15172_p4, %p15171_p5 }
 0x116   : > { %p15167_p6 = pneg %p15166_p3 }
 0x118   : > { %p15174_p8 = pnand %p15173_p7, %p15167_p6 }
 0x11a   : > { %15177 = shalt.err (!%p15174_p8)
}
 0x11b   : > { %13940 = dma.hbm_to_vmem [thread:$0]  (%p14107_p10), %s16551_s14, 16, %s1633_s0, [#allocation40]  }
 0x11c   : > { %s16375_s23 = smov [#allocation42]   ;;  %s16376_s11 = smov [#allocation45]  }
 0x11d   : > { %s1656_s13 = sshll.u32 %s16375_s23, 4  ;;  %s1680_s1 = sshll.u32 %s16376_s11, 4  ;;  %s1657_s13 = int_to_ptr.vmem [resolvable:$true] %s1656_s13  ;;  %s1681_s1 = int_to_ptr.vmem [resolvable:$true] %s1680_s1 }
 0x11e   : > { %s15188_s2 = scalar_lea.vmem %s1657_s13, 16  ;;  %s15194_s7 = scalar_lea.vmem %s1657_s13, 32 }
 0x11f   : > { %p15189_p11 = scmp.ne.s32.totalorder %s1657_s13, %s15188_s2  ;;  %p15195_p0 = scmp.lt.s32.totalorder %s1657_s13, %s1657_s13 }
 0x120   : > { %p15196_p1 = scmp.lt.s32.totalorder %s15194_s7, %s15188_s2 }
 0x121   : > { %p15190_p12 = pnand %p15189_p11, %p14107_p10 }
 0x122   : > { %p15197_p2 = por %p15196_p1, %p15195_p0 }
 0x123   : > { %p15191_p13 = pneg %p15190_p12 }
 0x125   : > { %p15198_p3 = pnand %p15197_p2, %p15191_p13 }
 0x127   : > { %15201 = shalt.err (!%p15198_p3)
}
 0x128   : > { %s18816_s3 = sld [smem:[#allocation127_spill]]  ;;  %s15212_s0 = scalar_lea.vmem %s1681_s1, 16 }
 0x129   : > { %p15213_p6 = scmp.ne.s32.totalorder %s1681_s1, %s15212_s0  ;;  %s15218_s16 = scalar_lea.vmem %s1681_s1, 32 }
 0x12a   : > { %p15219_p7 = scmp.lt.s32.totalorder %s1681_s1, %s1681_s1  ;;  %p15220_p8 = scmp.lt.s32.totalorder %s15218_s16, %s15212_s0 }
 0x12b   : > { %p15214_p5 = pnand %p15213_p6, %p14107_p10 }
 0x12c   : > { %p15221_p11 = por %p15220_p8, %p15219_p7 }
 0x12d   : > { %p15215_p4 = pneg %p15214_p5 }
 0x12e   : > { %13944 = dma.hbm_to_vmem [thread:$0]  (%p14107_p10), %s18816_s3, 16, %s1657_s13, [#allocation43]  }
 0x12f   : > { %p15222_p12 = pnand %p15221_p11, %p15215_p4 }
 0x131   : > { %15225 = shalt.err (!%p15222_p12)
}
 0x132   : > { %13948 = dma.hbm_to_vmem [thread:$0]  (%p14107_p10), %s16571_s25, 16, %s1681_s1, [#allocation46]  }
 0x133   : > { %s16377_s10 = smov [#allocation48]   ;;  %s16378_s13 = smov [#allocation51]  }
 0x134   : > { %s1704_s23 = sshll.u32 %s16377_s10, 4  ;;  %s1728_s11 = sshll.u32 %s16378_s13, 4  ;;  %s1705_s23 = int_to_ptr.vmem [resolvable:$true] %s1704_s23  ;;  %s1729_s11 = int_to_ptr.vmem [resolvable:$true] %s1728_s11 }
 0x135   : > { %s15236_s2 = scalar_lea.vmem %s1705_s23, 16  ;;  %s15242_s7 = scalar_lea.vmem %s1705_s23, 32 }
 0x136   : > { %p15237_p13 = scmp.ne.s32.totalorder %s1705_s23, %s15236_s2  ;;  %p15243_p2 = scmp.lt.s32.totalorder %s1705_s23, %s1705_s23 }
 0x137   : > { %p15244_p3 = scmp.lt.s32.totalorder %s15242_s7, %s15236_s2 }
 0x138   : > { %p15238_p0 = pnand %p15237_p13, %p14107_p10 }
 0x139   : > { %p15245_p6 = por %p15244_p3, %p15243_p2 }
 0x13a   : > { %p15239_p1 = pneg %p15238_p0 }
 0x13c   : > { %p15246_p5 = pnand %p15245_p6, %p15239_p1 }
 0x13e   : > { %15249 = shalt.err (!%p15246_p5)
}
 0x13f   : > { %s18817_s0 = sld [smem:[#allocation130_spill]]  ;;  %s15260_s1 = scalar_lea.vmem %s1729_s11, 16 }
 0x140   : > { %p15261_p4 = scmp.ne.s32.totalorder %s1729_s11, %s15260_s1  ;;  %s15266_s16 = scalar_lea.vmem %s1729_s11, 32 }
 0x141   : > { %p15267_p11 = scmp.lt.s32.totalorder %s1729_s11, %s1729_s11  ;;  %p15268_p12 = scmp.lt.s32.totalorder %s15266_s16, %s15260_s1 }
 0x142   : > { %p15262_p7 = pnand %p15261_p4, %p14107_p10 }
 0x143   : > { %p15269_p13 = por %p15268_p12, %p15267_p11 }
 0x144   : > { %p15263_p8 = pneg %p15262_p7 }
 0x145   : > { %13952 = dma.hbm_to_vmem [thread:$0]  (%p14107_p10), %s18817_s0, 16, %s1705_s23, [#allocation49]  }
 0x146   : > { %p15270_p0 = pnand %p15269_p13, %p15263_p8 }
 0x148   : > { %15273 = shalt.err (!%p15270_p0)
}
 0x149   : > { %s18818_s10 = sld [smem:[#allocation132_spill]]  ;;  %s16379_s13 = smov [#allocation54]  }
 0x14a   : > { %s1752_s2 = sshll.u32 %s16379_s13, 4  ;;  %s16380_s23 = smov [#allocation57]   ;;  %s1753_s2 = int_to_ptr.vmem [resolvable:$true] %s1752_s2 }
 0x14b   : > { %s1776_s7 = sshll.u32 %s16380_s23, 4  ;;  %s15284_s0 = scalar_lea.vmem %s1753_s2, 16  ;;  %s1777_s7 = int_to_ptr.vmem [resolvable:$true] %s1776_s7 }
 0x14c   : > { %p15285_p1 = scmp.ne.s32.totalorder %s1753_s2, %s15284_s0  ;;  %s15290_s3 = scalar_lea.vmem %s1753_s2, 32 }
 0x14d   : > { %p15291_p6 = scmp.lt.s32.totalorder %s1753_s2, %s1753_s2  ;;  %p15292_p5 = scmp.lt.s32.totalorder %s15290_s3, %s15284_s0 }
 0x14e   : > { %p15286_p2 = pnand %p15285_p1, %p14107_p10 }
 0x14f   : > { %13956 = dma.hbm_to_vmem [thread:$0]  (%p14107_p10), %s18818_s10, 16, %s1729_s11, [#allocation52]  }
 0x150   : > { %p15287_p3 = pneg %p15286_p2  ;;  %p15293_p4 = por %p15292_p5, %p15291_p6 }
 0x152   : > { %p15294_p7 = pnand %p15293_p4, %p15287_p3 }
 0x154   : > { %15297 = shalt.err (!%p15294_p7)
}
 0x155   : > { %s18819_s1 = sld [smem:[#allocation134_spill]]  ;;  %s15308_s11 = scalar_lea.vmem %s1777_s7, 16 }
 0x156   : > { %p15309_p8 = scmp.ne.s32.totalorder %s1777_s7, %s15308_s11  ;;  %s15314_s16 = scalar_lea.vmem %s1777_s7, 32 }
 0x157   : > { %p15315_p13 = scmp.lt.s32.totalorder %s1777_s7, %s1777_s7  ;;  %p15316_p0 = scmp.lt.s32.totalorder %s15314_s16, %s15308_s11 }
 0x158   : > { %p15310_p11 = pnand %p15309_p8, %p14107_p10 }
 0x159   : > { %p15317_p1 = por %p15316_p0, %p15315_p13 }
 0x15a   : > { %p15311_p12 = pneg %p15310_p11 }
 0x15b   : > { %13960 = dma.hbm_to_vmem [thread:$0]  (%p14107_p10), %s18819_s1, 16, %s1753_s2, [#allocation55]  }
 0x15c   : > { %p15318_p2 = pnand %p15317_p1, %p15311_p12 }
 0x15e   : > { %15321 = shalt.err (!%p15318_p2)
}
 0x15f   : > { %s18820_s3 = sld [smem:[#allocation136_spill]]  ;;  %s16381_s10 = smov [#allocation60]  }
 0x160   : > { %s1800_s13 = sshll.u32 %s16381_s10, 4  ;;  %s16382_s2 = smov [#allocation63]   ;;  %s1801_s13 = int_to_ptr.vmem [resolvable:$true] %s1800_s13 }
 0x161   : > { %s1824_s23 = sshll.u32 %s16382_s2, 4  ;;  %s15332_s0 = scalar_lea.vmem %s1801_s13, 16  ;;  %s1825_s23 = int_to_ptr.vmem [resolvable:$true] %s1824_s23 }
 0x162   : > { %p15333_p3 = scmp.ne.s32.totalorder %s1801_s13, %s15332_s0  ;;  %s15338_s1 = scalar_lea.vmem %s1801_s13, 32 }
 0x163   : > { %p15339_p4 = scmp.lt.s32.totalorder %s1801_s13, %s1801_s13  ;;  %p15340_p7 = scmp.lt.s32.totalorder %s15338_s1, %s15332_s0 }
 0x164   : > { %p15334_p6 = pnand %p15333_p3, %p14107_p10 }
 0x165   : > { %13964 = dma.hbm_to_vmem [thread:$0]  (%p14107_p10), %s18820_s3, 16, %s1777_s7, [#allocation58]  }
 0x166   : > { %p15335_p5 = pneg %p15334_p6  ;;  %p15341_p8 = por %p15340_p7, %p15339_p4 }
 0x168   : > { %p15342_p11 = pnand %p15341_p8, %p15335_p5 }
 0x16a   : > { %15345 = shalt.err (!%p15342_p11)
}
 0x16b   : > { %s18821_s11 = sld [smem:[#allocation138_spill]]  ;;  %s15356_s7 = scalar_lea.vmem %s1825_s23, 16 }
 0x16c   : > { %p15357_p12 = scmp.ne.s32.totalorder %s1825_s23, %s15356_s7  ;;  %s15362_s16 = scalar_lea.vmem %s1825_s23, 32 }
 0x16d   : > { %p15363_p1 = scmp.lt.s32.totalorder %s1825_s23, %s1825_s23  ;;  %p15364_p2 = scmp.lt.s32.totalorder %s15362_s16, %s15356_s7 }
 0x16e   : > { %p15358_p13 = pnand %p15357_p12, %p14107_p10 }
 0x16f   : > { %p15365_p3 = por %p15364_p2, %p15363_p1 }
 0x170   : > { %p15359_p0 = pneg %p15358_p13 }
 0x171   : > { %13968 = dma.hbm_to_vmem [thread:$0]  (%p14107_p10), %s18821_s11, 16, %s1801_s13, [#allocation61]  }
 0x172   : > { %p15366_p6 = pnand %p15365_p3, %p15359_p0 }
 0x174   : > { %15369 = shalt.err (!%p15366_p6)
}
 0x175   : > { %s18822_s3 = sld [smem:[#allocation140_spill]]  ;;  %s16383_s10 = smov [#allocation66]  }
 0x176   : > { %s1848_s2 = sshll.u32 %s16383_s10, 4  ;;  %s16384_s13 = smov [#allocation69]   ;;  %s1849_s2 = int_to_ptr.vmem [resolvable:$true] %s1848_s2 }
 0x177   : > { %s1872_s0 = sshll.u32 %s16384_s13, 4  ;;  %s15380_s1 = scalar_lea.vmem %s1849_s2, 16  ;;  %s1873_s0 = int_to_ptr.vmem [resolvable:$true] %s1872_s0 }
 0x178   : > { %p15381_p5 = scmp.ne.s32.totalorder %s1849_s2, %s15380_s1  ;;  %s15386_s11 = scalar_lea.vmem %s1849_s2, 32 }
 0x179   : > { %p15387_p8 = scmp.lt.s32.totalorder %s1849_s2, %s1849_s2  ;;  %p15388_p11 = scmp.lt.s32.totalorder %s15386_s11, %s15380_s1 }
 0x17a   : > { %p15382_p4 = pnand %p15381_p5, %p14107_p10 }
 0x17b   : > { %13972 = dma.hbm_to_vmem [thread:$0]  (%p14107_p10), %s18822_s3, 16, %s1825_s23, [#allocation64]  }
 0x17c   : > { %p15383_p7 = pneg %p15382_p4  ;;  %p15389_p12 = por %p15388_p11, %p15387_p8 }
 0x17e   : > { %p15390_p13 = pnand %p15389_p12, %p15383_p7 }
 0x180   : > { %15393 = shalt.err (!%p15390_p13)
}
 0x181   : > { %s18823_s7 = sld [smem:[#allocation142_spill]]  ;;  %s15404_s23 = scalar_lea.vmem %s1873_s0, 16 }
 0x182   : > { %p15405_p0 = scmp.ne.s32.totalorder %s1873_s0, %s15404_s23  ;;  %s15410_s16 = scalar_lea.vmem %s1873_s0, 32 }
 0x183   : > { %p15411_p3 = scmp.lt.s32.totalorder %s1873_s0, %s1873_s0  ;;  %p15412_p6 = scmp.lt.s32.totalorder %s15410_s16, %s15404_s23 }
 0x184   : > { %p15406_p1 = pnand %p15405_p0, %p14107_p10 }
 0x185   : > { %p15413_p5 = por %p15412_p6, %p15411_p3 }
 0x186   : > { %p15407_p2 = pneg %p15406_p1 }
 0x187   : > { %13976 = dma.hbm_to_vmem [thread:$0]  (%p14107_p10), %s18823_s7, 16, %s1849_s2, [#allocation67]  }
 0x188   : > { %p15414_p4 = pnand %p15413_p5, %p15407_p2 }
 0x18a   : > { %15417 = shalt.err (!%p15414_p4)
}
 0x18b   : > { %s18824_s3 = sld [smem:[#allocation144_spill]]  ;;  %s16385_s10 = smov [#allocation72]  }
 0x18c   : > { %s1896_s13 = sshll.u32 %s16385_s10, 4  ;;  %s16386_s2 = smov [#allocation75]   ;;  %s1897_s13 = int_to_ptr.vmem [resolvable:$true] %s1896_s13 }
 0x18d   : > { %s1920_s1 = sshll.u32 %s16386_s2, 4  ;;  %s15428_s11 = scalar_lea.vmem %s1897_s13, 16  ;;  %s1921_s1 = int_to_ptr.vmem [resolvable:$true] %s1920_s1 }
 0x18e   : > { %p15429_p7 = scmp.ne.s32.totalorder %s1897_s13, %s15428_s11  ;;  %s15434_s7 = scalar_lea.vmem %s1897_s13, 32 }
 0x18f   : > { %p15435_p12 = scmp.lt.s32.totalorder %s1897_s13, %s1897_s13  ;;  %p15436_p13 = scmp.lt.s32.totalorder %s15434_s7, %s15428_s11 }
 0x190   : > { %p15430_p8 = pnand %p15429_p7, %p14107_p10 }
 0x191   : > { %13980 = dma.hbm_to_vmem [thread:$0]  (%p14107_p10), %s18824_s3, 16, %s1873_s0, [#allocation70]  }
 0x192   : > { %p15431_p11 = pneg %p15430_p8  ;;  %p15437_p0 = por %p15436_p13, %p15435_p12 }
 0x194   : > { %p15438_p1 = pnand %p15437_p0, %p15431_p11 }
 0x196   : > { %15441 = shalt.err (!%p15438_p1)
}
 0x197   : > { %s18825_s23 = sld [smem:[#allocation146_spill]]  ;;  %s15452_s0 = scalar_lea.vmem %s1921_s1, 16 }
 0x198   : > { %p15453_p2 = scmp.ne.s32.totalorder %s1921_s1, %s15452_s0  ;;  %s15458_s16 = scalar_lea.vmem %s1921_s1, 32 }
 0x199   : > { %p15459_p5 = scmp.lt.s32.totalorder %s1921_s1, %s1921_s1  ;;  %p15460_p4 = scmp.lt.s32.totalorder %s15458_s16, %s15452_s0 }
 0x19a   : > { %p15454_p3 = pnand %p15453_p2, %p14107_p10 }
 0x19b   : > { %p15461_p7 = por %p15460_p4, %p15459_p5 }
 0x19c   : > { %p15455_p6 = pneg %p15454_p3 }
 0x19d   : > { %13984 = dma.hbm_to_vmem [thread:$0]  (%p14107_p10), %s18825_s23, 16, %s1897_s13, [#allocation73]  }
 0x19e   : > { %p15462_p8 = pnand %p15461_p7, %p15455_p6 }
 0x1a0   : > { %15465 = shalt.err (!%p15462_p8)
}
 0x1a1   : > { %s18826_s3 = sld [smem:[#allocation148_spill]]  ;;  %s16387_s10 = smov [#allocation78]  }
 0x1a2   : > { %s1944_s2 = sshll.u32 %s16387_s10, 4  ;;  %s1945_s2 = int_to_ptr.vmem [resolvable:$true] %s1944_s2 }
 0x1a3   : > { %s15476_s13 = scalar_lea.vmem %s1945_s2, 2048  ;;  %p15483_p0 = scmp.lt.s32.totalorder %s1945_s2, %s1945_s2 }
 0x1a4   : > { %p15477_p11 = scmp.ne.s32.totalorder %s1945_s2, %s15476_s13  ;;  %p15484_p1 = scmp.lt.s32.totalorder %s15476_s13, %s15476_s13 }
 0x1a6   : > { %p15478_p12 = pnand %p15477_p11, %p14107_p10  ;;  %p15485_p2 = por %p15484_p1, %p15483_p0 }
 0x1a7   : > { %13988 = dma.hbm_to_vmem [thread:$0]  (%p14107_p10), %s18826_s3, 16, %s1921_s1, [#allocation76]  }
 0x1a8   : > { %p15479_p13 = pneg %p15478_p12 }
 0x1aa   : > { %p15486_p3 = pnand %p15485_p2, %p15479_p13 }
 0x1ac   : > { %15489 = shalt.err (!%p15486_p3)
}
 0x1ad   : > { %s16388_s11 = smov 128   ;;  %s18827_s7 = sld [smem:[#allocation151_spill]] }
 0x1ae   : > { %s16389_s23 = smov 8   ;;  %s16390_s1 = smov [#allocation3]  }
 0x1af   : > { %s1354_s0 = sshll.u32 %s16390_s1, 4  ;;  %s16391_s16 = smov [#allocation8]   ;;  %s1355_s0 = int_to_ptr.vmem [resolvable:$true] %s1354_s0 }
 0x1b0   : > { %s1378_s3 = sshll.u32 %s16391_s16, 4  ;;  %s15500_s10 = scalar_lea.vmem %s1355_s0, 256  ;;  %s1379_s3 = int_to_ptr.vmem [resolvable:$true] %s1378_s3 }
 0x1b1   : > { %p15501_p6 = scmp.ne.s32.totalorder %s1355_s0, %s15500_s10  ;;  %p15507_p7 = scmp.lt.s32.totalorder %s1355_s0, %s1355_s0 }
 0x1b2   : > { %p15508_p8 = scmp.lt.s32.totalorder %s15500_s10, %s15500_s10 }
 0x1b3   : > { %13992 = dma.hbm_to_vmem [thread:$0]  (%p14107_p10), %s18827_s7, 2048, %s1945_s2, [#allocation79], %s16388_s11, %s16388_s11, %s16389_s23  }
 0x1b4   : > { %p15502_p5 = pnand %p15501_p6, %p14107_p10  ;;  %p15509_p11 = por %p15508_p8, %p15507_p7 }
 0x1b6   : > { %p15503_p4 = pneg %p15502_p5 }
 0x1b8   : > { %p15510_p12 = pnand %p15509_p11, %p15503_p4 }
 0x1ba   : > { %15513 = shalt.err (!%p15510_p12)
}
 0x1bb   : > { %s18828_s2 = sld [smem:[#allocation113_spill]]  ;;  %s15524_s13 = scalar_lea.vmem %s1379_s3, 768 }
 0x1bc   : > { %p15525_p13 = scmp.ne.s32.totalorder %s1379_s3, %s15524_s13  ;;  %p15531_p2 = scmp.lt.s32.totalorder %s1379_s3, %s1379_s3 }
 0x1bd   : > { %p15532_p3 = scmp.lt.s32.totalorder %s15524_s13, %s15524_s13 }
 0x1be   : > { %p15526_p0 = pnand %p15525_p13, %p14107_p10 }
 0x1bf   : > { %p15533_p6 = por %p15532_p3, %p15531_p2 }
 0x1c0   : > { %p15527_p1 = pneg %p15526_p0 }
 0x1c1   : > { %13894 = dma.hbm_to_vmem [thread:$0]  (%p14107_p10), %s18828_s2, 256, %s1355_s0, [#allocation4], %s16388_s11, %s16388_s11, %s16389_s23  }
 0x1c2   : > { %p15534_p5 = pnand %p15533_p6, %p15527_p1 }
 0x1c4   : > { %15537 = shalt.err (!%p15534_p5)
}
 0x1c5   : > { %s18829_s7 = sld [smem:[#allocation115_spill]]  ;;  %s16392_s1 = smov [#allocation11]  }
 0x1c6   : > { %s1402_s0 = sshll.u32 %s16392_s1, 4  ;;  %s16393_s16 = smov [#allocation14]   ;;  %s1403_s0 = int_to_ptr.vmem [resolvable:$true] %s1402_s0 }
 0x1c7   : > { %s1426_s10 = sshll.u32 %s16393_s16, 4  ;;  %s15548_s2 = scalar_lea.vmem %s1403_s0, 256  ;;  %s1427_s10 = int_to_ptr.vmem [resolvable:$true] %s1426_s10 }
 0x1c8   : > { %p15549_p4 = scmp.ne.s32.totalorder %s1403_s0, %s15548_s2  ;;  %p15555_p11 = scmp.lt.s32.totalorder %s1403_s0, %s1403_s0 }
 0x1c9   : > { %p15556_p12 = scmp.lt.s32.totalorder %s15548_s2, %s15548_s2 }
 0x1ca   : > { %p15550_p7 = pnand %p15549_p4, %p14107_p10 }
 0x1cb   : > { %13898 = dma.hbm_to_vmem [thread:$0]  (%p14107_p10), %s18829_s7, 768, %s1379_s3, [#allocation7], %s16388_s11, %s16388_s11, %s16389_s23  }
 0x1cc   : > { %p15551_p8 = pneg %p15550_p7  ;;  %p15557_p13 = por %p15556_p12, %p15555_p11 }
 0x1ce   : > { %p15558_p0 = pnand %p15557_p13, %p15551_p8 }
 0x1d0   : > { %15561 = shalt.err (!%p15558_p0)
}
 0x1d1   : > { %s18830_s3 = sld [smem:[#allocation116_spill]]  ;;  %s15572_s13 = scalar_lea.vmem %s1427_s10, 768 }
 0x1d2   : > { %p15573_p1 = scmp.ne.s32.totalorder %s1427_s10, %s15572_s13  ;;  %p15579_p6 = scmp.lt.s32.totalorder %s1427_s10, %s1427_s10 }
 0x1d3   : > { %p15580_p5 = scmp.lt.s32.totalorder %s15572_s13, %s15572_s13 }
 0x1d4   : > { %p15574_p2 = pnand %p15573_p1, %p14107_p10 }
 0x1d5   : > { %p15581_p4 = por %p15580_p5, %p15579_p6 }
 0x1d6   : > { %p15575_p3 = pneg %p15574_p2 }
 0x1d7   : > { %13902 = dma.hbm_to_vmem [thread:$0]  (%p14107_p10), %s18830_s3, 256, %s1403_s0, [#allocation10], %s16388_s11, %s16388_s11, %s16389_s23  }
 0x1d8   : > { %p15582_p7 = pnand %p15581_p4, %p15575_p3 }
 0x1da   : > { %15585 = shalt.err (!%p15582_p7)
}
 0x1db   : > { %s18831_s7 = sld [smem:[#allocation117_spill]]  ;;  %s16394_s1 = smov [#allocation17]  }
 0x1dc   : > { %s1450_s0 = sshll.u32 %s16394_s1, 4  ;;  %s16395_s16 = smov [#allocation20]   ;;  %s1451_s0 = int_to_ptr.vmem [resolvable:$true] %s1450_s0 }
 0x1dd   : > { %s1474_s2 = sshll.u32 %s16395_s16, 4  ;;  %s15596_s3 = scalar_lea.vmem %s1451_s0, 256  ;;  %s1475_s2 = int_to_ptr.vmem [resolvable:$true] %s1474_s2 }
 0x1de   : > { %p15597_p8 = scmp.ne.s32.totalorder %s1451_s0, %s15596_s3  ;;  %p15603_p13 = scmp.lt.s32.totalorder %s1451_s0, %s1451_s0 }
 0x1df   : > { %p15604_p0 = scmp.lt.s32.totalorder %s15596_s3, %s15596_s3 }
 0x1e0   : > { %p15598_p11 = pnand %p15597_p8, %p14107_p10 }
 0x1e1   : > { %13906 = dma.hbm_to_vmem [thread:$0]  (%p14107_p10), %s18831_s7, 768, %s1427_s10, [#allocation13], %s16388_s11, %s16388_s11, %s16389_s23  }
 0x1e2   : > { %p15599_p12 = pneg %p15598_p11  ;;  %p15605_p1 = por %p15604_p0, %p15603_p13 }
 0x1e4   : > { %p15606_p2 = pnand %p15605_p1, %p15599_p12 }
 0x1e6   : > { %15609 = shalt.err (!%p15606_p2)
}
 0x1e7   : > { %s18832_s10 = sld [smem:[#allocation118_spill]]  ;;  %s15620_s13 = scalar_lea.vmem %s1475_s2, 768 }
 0x1e8   : > { %p15621_p3 = scmp.ne.s32.totalorder %s1475_s2, %s15620_s13  ;;  %p15627_p4 = scmp.lt.s32.totalorder %s1475_s2, %s1475_s2 }
 0x1e9   : > { %p15628_p7 = scmp.lt.s32.totalorder %s15620_s13, %s15620_s13 }
 0x1ea   : > { %p15622_p6 = pnand %p15621_p3, %p14107_p10 }
 0x1eb   : > { %p15629_p8 = por %p15628_p7, %p15627_p4 }
 0x1ec   : > { %p15623_p5 = pneg %p15622_p6 }
 0x1ed   : > { %13910 = dma.hbm_to_vmem [thread:$0]  (%p14107_p10), %s18832_s10, 256, %s1451_s0, [#allocation16], %s16388_s11, %s16388_s11, %s16389_s23  }
 0x1ee   : > { %p15630_p11 = pnand %p15629_p8, %p15623_p5 }
 0x1f0   : > { %15633 = shalt.err (!%p15630_p11)
}
 0x1f1   : > { %s18833_s7 = sld [smem:[#allocation119_spill]]  ;;  %s16396_s1 = smov [#allocation23]  }
 0x1f2   : > { %s1498_s0 = sshll.u32 %s16396_s1, 4  ;;  %s16397_s16 = smov [#allocation26]   ;;  %s1499_s0 = int_to_ptr.vmem [resolvable:$true] %s1498_s0 }
 0x1f3   : > { %s1522_s3 = sshll.u32 %s16397_s16, 4  ;;  %s15644_s10 = scalar_lea.vmem %s1499_s0, 256  ;;  %s1523_s3 = int_to_ptr.vmem [resolvable:$true] %s1522_s3 }
 0x1f4   : > { %p15645_p12 = scmp.ne.s32.totalorder %s1499_s0, %s15644_s10  ;;  %p15651_p1 = scmp.lt.s32.totalorder %s1499_s0, %s1499_s0 }
 0x1f5   : > { %p15652_p2 = scmp.lt.s32.totalorder %s15644_s10, %s15644_s10 }
 0x1f6   : > { %p15646_p13 = pnand %p15645_p12, %p14107_p10 }
 0x1f7   : > { %13914 = dma.hbm_to_vmem [thread:$0]  (%p14107_p10), %s18833_s7, 768, %s1475_s2, [#allocation19], %s16388_s11, %s16388_s11, %s16389_s23  }
 0x1f8   : > { %p15647_p0 = pneg %p15646_p13  ;;  %p15653_p3 = por %p15652_p2, %p15651_p1 }
 0x1fa   : > { %p15654_p6 = pnand %p15653_p3, %p15647_p0 }
 0x1fc   : > { %15657 = shalt.err (!%p15654_p6)
}
 0x1fd   : > { %s18834_s2 = sld [smem:[#allocation120_spill]]  ;;  %s15668_s13 = scalar_lea.vmem %s1523_s3, 768 }
 0x1fe   : > { %p15669_p5 = scmp.ne.s32.totalorder %s1523_s3, %s15668_s13  ;;  %p15675_p8 = scmp.lt.s32.totalorder %s1523_s3, %s1523_s3 }
 0x1ff   : > { %p15676_p11 = scmp.lt.s32.totalorder %s15668_s13, %s15668_s13 }
 0x200   : > { %p15670_p4 = pnand %p15669_p5, %p14107_p10 }
 0x201   : > { %p15677_p12 = por %p15676_p11, %p15675_p8 }
 0x202   : > { %p15671_p7 = pneg %p15670_p4 }
 0x203   : > { %13918 = dma.hbm_to_vmem [thread:$0]  (%p14107_p10), %s18834_s2, 256, %s1499_s0, [#allocation22], %s16388_s11, %s16388_s11, %s16389_s23  }
 0x204   : > { %p15678_p13 = pnand %p15677_p12, %p15671_p7 }
 0x206   : > { %15681 = shalt.err (!%p15678_p13)
}
 0x207   : > { %s18835_s7 = sld [smem:[#allocation121_spill]]  ;;  %s16398_s1 = smov [#allocation29]  }
 0x208   : > { %s1546_s0 = sshll.u32 %s16398_s1, 4  ;;  %s16399_s16 = smov [#allocation32]   ;;  %s1547_s0 = int_to_ptr.vmem [resolvable:$true] %s1546_s0 }
 0x209   : > { %s1570_s10 = sshll.u32 %s16399_s16, 4  ;;  %s15692_s2 = scalar_lea.vmem %s1547_s0, 256  ;;  %s1571_s10 = int_to_ptr.vmem [resolvable:$true] %s1570_s10 }
 0x20a   : > { %p15693_p0 = scmp.ne.s32.totalorder %s1547_s0, %s15692_s2  ;;  %p15699_p3 = scmp.lt.s32.totalorder %s1547_s0, %s1547_s0 }
 0x20b   : > { %p15700_p6 = scmp.lt.s32.totalorder %s15692_s2, %s15692_s2 }
 0x20c   : > { %p15694_p1 = pnand %p15693_p0, %p14107_p10 }
 0x20d   : > { %13922 = dma.hbm_to_vmem [thread:$0]  (%p14107_p10), %s18835_s7, 768, %s1523_s3, [#allocation25], %s16388_s11, %s16388_s11, %s16389_s23  }
 0x20e   : > { %p15695_p2 = pneg %p15694_p1  ;;  %p15701_p5 = por %p15700_p6, %p15699_p3 }
 0x210   : > { %p15702_p4 = pnand %p15701_p5, %p15695_p2 }
 0x212   : > { %15705 = shalt.err (!%p15702_p4)
}
 0x213   : > { %s18836_s3 = sld [smem:[#allocation122_spill]]  ;;  %s15716_s13 = scalar_lea.vmem %s1571_s10, 256 }
 0x214   : > { %p15717_p7 = scmp.ne.s32.totalorder %s1571_s10, %s15716_s13  ;;  %p15723_p12 = scmp.lt.s32.totalorder %s1571_s10, %s1571_s10 }
 0x215   : > { %p15724_p13 = scmp.lt.s32.totalorder %s15716_s13, %s15716_s13 }
 0x216   : > { %p15718_p8 = pnand %p15717_p7, %p14107_p10 }
 0x217   : > { %p15725_p0 = por %p15724_p13, %p15723_p12 }
 0x218   : > { %p15719_p11 = pneg %p15718_p8 }
 0x219   : > { %13926 = dma.hbm_to_vmem [thread:$0]  (%p14107_p10), %s18836_s3, 256, %s1547_s0, [#allocation28], %s16388_s11, %s16388_s11, %s16389_s23  }
 0x21a   : > { %p15726_p1 = pnand %p15725_p0, %p15719_p11 }
 0x21c   : > { %15729 = shalt.err (!%p15726_p1)
}
 0x21d   : > { %s18837_s7 = sld [smem:[#allocation123_spill]]  ;;  %s16400_s1 = smov [#allocation35]  }
 0x21e   : > { %s1594_s0 = sshll.u32 %s16400_s1, 4  ;;  %s16401_s16 = smov [#allocation38]   ;;  %s1595_s0 = int_to_ptr.vmem [resolvable:$true] %s1594_s0 }
 0x21f   : > { %s1618_s2 = sshll.u32 %s16401_s16, 4  ;;  %s15740_s3 = scalar_lea.vmem %s1595_s0, 1536  ;;  %s1619_s2 = int_to_ptr.vmem [resolvable:$true] %s1618_s2 }
 0x220   : > { %p15741_p2 = scmp.ne.s32.totalorder %s1595_s0, %s15740_s3  ;;  %p15747_p5 = scmp.lt.s32.totalorder %s1595_s0, %s1595_s0 }
 0x221   : > { %p15748_p4 = scmp.lt.s32.totalorder %s15740_s3, %s15740_s3 }
 0x222   : > { %p15742_p3 = pnand %p15741_p2, %p14107_p10 }
 0x223   : > { %13930 = dma.hbm_to_vmem [thread:$0]  (%p14107_p10), %s18837_s7, 256, %s1571_s10, [#allocation31], %s16388_s11, %s16388_s11, %s16389_s23  }
 0x224   : > { %p15743_p6 = pneg %p15742_p3  ;;  %p15749_p7 = por %p15748_p4, %p15747_p5 }
 0x226   : > { %p15750_p8 = pnand %p15749_p7, %p15743_p6 }
 0x228   : > { %15753 = shalt.err (!%p15750_p8)
}
 0x229   : > { %s18838_s10 = sld [smem:[#allocation124_spill]]  ;;  %s15764_s13 = scalar_lea.vmem %s1619_s2, 512 }
 0x22a   : > { %p15765_p11 = scmp.ne.s32.totalorder %s1619_s2, %s15764_s13  ;;  %p15771_p0 = scmp.lt.s32.totalorder %s1619_s2, %s1619_s2 }
 0x22b   : > { %p15772_p1 = scmp.lt.s32.totalorder %s15764_s13, %s15764_s13 }
 0x22c   : > { %p15766_p12 = pnand %p15765_p11, %p14107_p10 }
 0x22d   : > { %p15773_p2 = por %p15772_p1, %p15771_p0 }
 0x22e   : > { %p15767_p13 = pneg %p15766_p12 }
 0x22f   : > { %13934 = dma.hbm_to_vmem [thread:$0]  (%p14107_p10), %s18838_s10, 1536, %s1595_s0, [#allocation34], %s16388_s11, %s16388_s11, %s16389_s23  }
 0x230   : > { %p15774_p3 = pnand %p15773_p2, %p15767_p13 }
 0x232   : > { %15777 = shalt.err (!%p15774_p3)
}
 0x233   : > { %s18839_s7 = sld [smem:[#allocation125_spill]]  ;;  %s16402_s1 = smov [#allocation41]  }
 0x234   : > { %s1642_s0 = sshll.u32 %s16402_s1, 4  ;;  %s16403_s16 = smov [#allocation44]   ;;  %s1643_s0 = int_to_ptr.vmem [resolvable:$true] %s1642_s0 }
 0x235   : > { %s1666_s3 = sshll.u32 %s16403_s16, 4  ;;  %s15788_s10 = scalar_lea.vmem %s1643_s0, 1536  ;;  %s1667_s3 = int_to_ptr.vmem [resolvable:$true] %s1666_s3 }
 0x236   : > { %p15789_p6 = scmp.ne.s32.totalorder %s1643_s0, %s15788_s10  ;;  %p15795_p7 = scmp.lt.s32.totalorder %s1643_s0, %s1643_s0 }
 0x237   : > { %p15796_p8 = scmp.lt.s32.totalorder %s15788_s10, %s15788_s10 }
 0x238   : > { %p15790_p5 = pnand %p15789_p6, %p14107_p10 }
 0x239   : > { %13938 = dma.hbm_to_vmem [thread:$0]  (%p14107_p10), %s18839_s7, 512, %s1619_s2, [#allocation37], %s16388_s11, %s16388_s11, %s16389_s23  }
 0x23a   : > { %p15791_p4 = pneg %p15790_p5  ;;  %p15797_p11 = por %p15796_p8, %p15795_p7 }
 0x23c   : > { %p15798_p12 = pnand %p15797_p11, %p15791_p4 }
 0x23e   : > { %15801 = shalt.err (!%p15798_p12)
}
 0x23f   : > { %s18840_s2 = sld [smem:[#allocation126_spill]]  ;;  %s15812_s13 = scalar_lea.vmem %s1667_s3, 512 }
 0x240   : > { %p15813_p13 = scmp.ne.s32.totalorder %s1667_s3, %s15812_s13  ;;  %p15819_p2 = scmp.lt.s32.totalorder %s1667_s3, %s1667_s3 }
 0x241   : > { %p15820_p3 = scmp.lt.s32.totalorder %s15812_s13, %s15812_s13 }
 0x242   : > { %p15814_p0 = pnand %p15813_p13, %p14107_p10 }
 0x243   : > { %p15821_p6 = por %p15820_p3, %p15819_p2 }
 0x244   : > { %p15815_p1 = pneg %p15814_p0 }
 0x245   : > { %13942 = dma.hbm_to_vmem [thread:$0]  (%p14107_p10), %s18840_s2, 1536, %s1643_s0, [#allocation40], %s16388_s11, %s16388_s11, %s16389_s23  }
 0x246   : > { %p15822_p5 = pnand %p15821_p6, %p15815_p1 }
 0x248   : > { %15825 = shalt.err (!%p15822_p5)
}
 0x249   : > { %s18841_s7 = sld [smem:[#allocation128_spill]]  ;;  %s16404_s1 = smov [#allocation47]  }
 0x24a   : > { %s1690_s0 = sshll.u32 %s16404_s1, 4  ;;  %s16405_s16 = smov [#allocation50]   ;;  %s1691_s0 = int_to_ptr.vmem [resolvable:$true] %s1690_s0 }
 0x24b   : > { %s1714_s10 = sshll.u32 %s16405_s16, 4  ;;  %s15836_s2 = scalar_lea.vmem %s1691_s0, 1536  ;;  %s1715_s10 = int_to_ptr.vmem [resolvable:$true] %s1714_s10 }
 0x24c   : > { %p15837_p4 = scmp.ne.s32.totalorder %s1691_s0, %s15836_s2  ;;  %p15843_p11 = scmp.lt.s32.totalorder %s1691_s0, %s1691_s0 }
 0x24d   : > { %p15844_p12 = scmp.lt.s32.totalorder %s15836_s2, %s15836_s2 }
 0x24e   : > { %p15838_p7 = pnand %p15837_p4, %p14107_p10 }
 0x24f   : > { %13946 = dma.hbm_to_vmem [thread:$0]  (%p14107_p10), %s18841_s7, 512, %s1667_s3, [#allocation43], %s16388_s11, %s16388_s11, %s16389_s23  }
 0x250   : > { %p15839_p8 = pneg %p15838_p7  ;;  %p15845_p13 = por %p15844_p12, %p15843_p11 }
 0x252   : > { %p15846_p0 = pnand %p15845_p13, %p15839_p8 }
 0x254   : > { %15849 = shalt.err (!%p15846_p0)
}
 0x255   : > { %s18842_s3 = sld [smem:[#allocation129_spill]]  ;;  %s15860_s13 = scalar_lea.vmem %s1715_s10, 512 }
 0x256   : > { %p15861_p1 = scmp.ne.s32.totalorder %s1715_s10, %s15860_s13  ;;  %p15867_p6 = scmp.lt.s32.totalorder %s1715_s10, %s1715_s10 }
 0x257   : > { %p15868_p5 = scmp.lt.s32.totalorder %s15860_s13, %s15860_s13 }
 0x258   : > { %p15862_p2 = pnand %p15861_p1, %p14107_p10 }
 0x259   : > { %p15869_p4 = por %p15868_p5, %p15867_p6 }
 0x25a   : > { %p15863_p3 = pneg %p15862_p2 }
 0x25b   : > { %13950 = dma.hbm_to_vmem [thread:$0]  (%p14107_p10), %s18842_s3, 1536, %s1691_s0, [#allocation46], %s16388_s11, %s16388_s11, %s16389_s23  }
 0x25c   : > { %p15870_p7 = pnand %p15869_p4, %p15863_p3 }
 0x25e   : > { %15873 = shalt.err (!%p15870_p7)
}
 0x25f   : > { %s18843_s7 = sld [smem:[#allocation131_spill]]  ;;  %s16406_s1 = smov [#allocation53]  }
 0x260   : > { %s1738_s0 = sshll.u32 %s16406_s1, 4  ;;  %s16407_s16 = smov [#allocation56]   ;;  %s1739_s0 = int_to_ptr.vmem [resolvable:$true] %s1738_s0 }
 0x261   : > { %s1762_s2 = sshll.u32 %s16407_s16, 4  ;;  %s15884_s3 = scalar_lea.vmem %s1739_s0, 1536  ;;  %s1763_s2 = int_to_ptr.vmem [resolvable:$true] %s1762_s2 }
 0x262   : > { %p15885_p8 = scmp.ne.s32.totalorder %s1739_s0, %s15884_s3  ;;  %p15891_p13 = scmp.lt.s32.totalorder %s1739_s0, %s1739_s0 }
 0x263   : > { %p15892_p0 = scmp.lt.s32.totalorder %s15884_s3, %s15884_s3 }
 0x264   : > { %p15886_p11 = pnand %p15885_p8, %p14107_p10 }
 0x265   : > { %13954 = dma.hbm_to_vmem [thread:$0]  (%p14107_p10), %s18843_s7, 512, %s1715_s10, [#allocation49], %s16388_s11, %s16388_s11, %s16389_s23  }
 0x266   : > { %p15887_p12 = pneg %p15886_p11  ;;  %p15893_p1 = por %p15892_p0, %p15891_p13 }
 0x268   : > { %p15894_p2 = pnand %p15893_p1, %p15887_p12 }
 0x26a   : > { %15897 = shalt.err (!%p15894_p2)
}
 0x26b   : > { %s18844_s10 = sld [smem:[#allocation133_spill]]  ;;  %s15908_s13 = scalar_lea.vmem %s1763_s2, 512 }
 0x26c   : > { %p15909_p3 = scmp.ne.s32.totalorder %s1763_s2, %s15908_s13  ;;  %p15915_p4 = scmp.lt.s32.totalorder %s1763_s2, %s1763_s2 }
 0x26d   : > { %p15916_p7 = scmp.lt.s32.totalorder %s15908_s13, %s15908_s13 }
 0x26e   : > { %p15910_p6 = pnand %p15909_p3, %p14107_p10 }
 0x26f   : > { %p15917_p8 = por %p15916_p7, %p15915_p4 }
 0x270   : > { %p15911_p5 = pneg %p15910_p6 }
 0x271   : > { %13958 = dma.hbm_to_vmem [thread:$0]  (%p14107_p10), %s18844_s10, 1536, %s1739_s0, [#allocation52], %s16388_s11, %s16388_s11, %s16389_s23  }
 0x272   : > { %p15918_p11 = pnand %p15917_p8, %p15911_p5 }
 0x274   : > { %15921 = shalt.err (!%p15918_p11)
}
 0x275   : > { %s18845_s7 = sld [smem:[#allocation135_spill]]  ;;  %s16408_s1 = smov [#allocation59]  }
 0x276   : > { %s1786_s0 = sshll.u32 %s16408_s1, 4  ;;  %s16409_s16 = smov [#allocation62]   ;;  %s1787_s0 = int_to_ptr.vmem [resolvable:$true] %s1786_s0 }
 0x277   : > { %s1810_s3 = sshll.u32 %s16409_s16, 4  ;;  %s15932_s10 = scalar_lea.vmem %s1787_s0, 512  ;;  %s1811_s3 = int_to_ptr.vmem [resolvable:$true] %s1810_s3 }
 0x278   : > { %p15933_p12 = scmp.ne.s32.totalorder %s1787_s0, %s15932_s10  ;;  %p15939_p1 = scmp.lt.s32.totalorder %s1787_s0, %s1787_s0 }
 0x279   : > { %p15940_p2 = scmp.lt.s32.totalorder %s15932_s10, %s15932_s10 }
 0x27a   : > { %p15934_p13 = pnand %p15933_p12, %p14107_p10 }
 0x27b   : > { %13962 = dma.hbm_to_vmem [thread:$0]  (%p14107_p10), %s18845_s7, 512, %s1763_s2, [#allocation55], %s16388_s11, %s16388_s11, %s16389_s23  }
 0x27c   : > { %p15935_p0 = pneg %p15934_p13  ;;  %p15941_p3 = por %p15940_p2, %p15939_p1 }
 0x27e   : > { %p15942_p6 = pnand %p15941_p3, %p15935_p0 }
 0x280   : > { %15945 = shalt.err (!%p15942_p6)
}
 0x281   : > { %s18846_s2 = sld [smem:[#allocation137_spill]]  ;;  %s15956_s13 = scalar_lea.vmem %s1811_s3, 3072 }
 0x282   : > { %p15957_p5 = scmp.ne.s32.totalorder %s1811_s3, %s15956_s13  ;;  %p15963_p8 = scmp.lt.s32.totalorder %s1811_s3, %s1811_s3 }
 0x283   : > { %p15964_p11 = scmp.lt.s32.totalorder %s15956_s13, %s15956_s13 }
 0x284   : > { %p15958_p4 = pnand %p15957_p5, %p14107_p10 }
 0x285   : > { %p15965_p12 = por %p15964_p11, %p15963_p8 }
 0x286   : > { %p15959_p7 = pneg %p15958_p4 }
 0x287   : > { %13966 = dma.hbm_to_vmem [thread:$0]  (%p14107_p10), %s18846_s2, 512, %s1787_s0, [#allocation58], %s16388_s11, %s16388_s11, %s16389_s23  }
 0x288   : > { %p15966_p13 = pnand %p15965_p12, %p15959_p7 }
 0x28a   : > { %15969 = shalt.err (!%p15966_p13)
}
 0x28b   : > { %s18847_s7 = sld [smem:[#allocation139_spill]]  ;;  %s16410_s1 = smov [#allocation65]  }
 0x28c   : > { %s1834_s0 = sshll.u32 %s16410_s1, 4  ;;  %s16411_s16 = smov [#allocation68]   ;;  %s1835_s0 = int_to_ptr.vmem [resolvable:$true] %s1834_s0 }
 0x28d   : > { %s1858_s10 = sshll.u32 %s16411_s16, 4  ;;  %s15980_s2 = scalar_lea.vmem %s1835_s0, 1024  ;;  %s1859_s10 = int_to_ptr.vmem [resolvable:$true] %s1858_s10 }
 0x28e   : > { %p15981_p0 = scmp.ne.s32.totalorder %s1835_s0, %s15980_s2  ;;  %p15987_p3 = scmp.lt.s32.totalorder %s1835_s0, %s1835_s0 }
 0x28f   : > { %p15988_p6 = scmp.lt.s32.totalorder %s15980_s2, %s15980_s2 }
 0x290   : > { %p15982_p1 = pnand %p15981_p0, %p14107_p10 }
 0x291   : > { %13970 = dma.hbm_to_vmem [thread:$0]  (%p14107_p10), %s18847_s7, 3072, %s1811_s3, [#allocation61], %s16388_s11, %s16388_s11, %s16389_s23  }
 0x292   : > { %p15983_p2 = pneg %p15982_p1  ;;  %p15989_p5 = por %p15988_p6, %p15987_p3 }
 0x294   : > { %p15990_p4 = pnand %p15989_p5, %p15983_p2 }
 0x296   : > { %15993 = shalt.err (!%p15990_p4)
}
 0x297   : > { %s18848_s3 = sld [smem:[#allocation141_spill]]  ;;  %s16004_s13 = scalar_lea.vmem %s1859_s10, 3072 }
 0x298   : > { %p16005_p7 = scmp.ne.s32.totalorder %s1859_s10, %s16004_s13  ;;  %p16011_p12 = scmp.lt.s32.totalorder %s1859_s10, %s1859_s10 }
 0x299   : > { %p16012_p13 = scmp.lt.s32.totalorder %s16004_s13, %s16004_s13 }
 0x29a   : > { %p16006_p8 = pnand %p16005_p7, %p14107_p10 }
 0x29b   : > { %p16013_p0 = por %p16012_p13, %p16011_p12 }
 0x29c   : > { %p16007_p11 = pneg %p16006_p8 }
 0x29d   : > { %13974 = dma.hbm_to_vmem [thread:$0]  (%p14107_p10), %s18848_s3, 1024, %s1835_s0, [#allocation64], %s16388_s11, %s16388_s11, %s16389_s23  }
 0x29e   : > { %p16014_p1 = pnand %p16013_p0, %p16007_p11 }
 0x2a0   : > { %16017 = shalt.err (!%p16014_p1)
}
 0x2a1   : > { %s18849_s7 = sld [smem:[#allocation143_spill]]  ;;  %s16412_s1 = smov [#allocation71]  }
 0x2a2   : > { %s1882_s0 = sshll.u32 %s16412_s1, 4  ;;  %s16413_s16 = smov [#allocation74]   ;;  %s1883_s0 = int_to_ptr.vmem [resolvable:$true] %s1882_s0 }
 0x2a3   : > { %s1906_s2 = sshll.u32 %s16413_s16, 4  ;;  %s16028_s3 = scalar_lea.vmem %s1883_s0, 1024  ;;  %s1907_s2 = int_to_ptr.vmem [resolvable:$true] %s1906_s2 }
 0x2a4   : > { %p16029_p2 = scmp.ne.s32.totalorder %s1883_s0, %s16028_s3  ;;  %p16035_p5 = scmp.lt.s32.totalorder %s1883_s0, %s1883_s0 }
 0x2a5   : > { %p16036_p4 = scmp.lt.s32.totalorder %s16028_s3, %s16028_s3 }
 0x2a6   : > { %p16030_p3 = pnand %p16029_p2, %p14107_p10 }
 0x2a7   : > { %13978 = dma.hbm_to_vmem [thread:$0]  (%p14107_p10), %s18849_s7, 3072, %s1859_s10, [#allocation67], %s16388_s11, %s16388_s11, %s16389_s23  }
 0x2a8   : > { %p16031_p6 = pneg %p16030_p3  ;;  %p16037_p7 = por %p16036_p4, %p16035_p5 }
 0x2aa   : > { %p16038_p8 = pnand %p16037_p7, %p16031_p6 }
 0x2ac   : > { %16041 = shalt.err (!%p16038_p8)
}
 0x2ad   : > { %s18850_s10 = sld [smem:[#allocation145_spill]]  ;;  %s16052_s13 = scalar_lea.vmem %s1907_s2, 1024 }
 0x2ae   : > { %p16053_p11 = scmp.ne.s32.totalorder %s1907_s2, %s16052_s13  ;;  %p16059_p0 = scmp.lt.s32.totalorder %s1907_s2, %s1907_s2 }
 0x2af   : > { %p16060_p1 = scmp.lt.s32.totalorder %s16052_s13, %s16052_s13 }
 0x2b0   : > { %p16054_p12 = pnand %p16053_p11, %p14107_p10 }
 0x2b1   : > { %p16061_p2 = por %p16060_p1, %p16059_p0 }
 0x2b2   : > { %p16055_p13 = pneg %p16054_p12 }
 0x2b3   : > { %13982 = dma.hbm_to_vmem [thread:$0]  (%p14107_p10), %s18850_s10, 1024, %s1883_s0, [#allocation70], %s16388_s11, %s16388_s11, %s16389_s23  }
 0x2b4   : > { %p16062_p3 = pnand %p16061_p2, %p16055_p13 }
 0x2b6   : > { %16065 = shalt.err (!%p16062_p3)
}
 0x2b7   : > { %s18851_s7 = sld [smem:[#allocation147_spill]]  ;;  %s16414_s1 = smov [#allocation77]  }
 0x2b8   : > { %s1934_s0 = sshll.u32 %s16414_s1, 4  ;;  %s16415_s16 = smov [#allocation80]   ;;  %s1935_s0 = int_to_ptr.vmem [resolvable:$true] %s1934_s0 }
 0x2b9   : > { %s1958_s3 = sshll.u32 %s16415_s16, 4  ;;  %s16076_s10 = scalar_lea.vmem %s1935_s0, 32  ;;  %s1959_s3 = int_to_ptr.vmem [resolvable:$true] %s1958_s3 }
 0x2ba   : > { %p16077_p6 = scmp.ne.s32.totalorder %s1935_s0, %s16076_s10  ;;  %p16083_p7 = scmp.lt.s32.totalorder %s1935_s0, %s1935_s0 }
 0x2bb   : > { %p16084_p8 = scmp.lt.s32.totalorder %s16076_s10, %s16076_s10 }
 0x2bc   : > { %p16078_p5 = pnand %p16077_p6, %p14107_p10 }
 0x2bd   : > { %13986 = dma.hbm_to_vmem [thread:$0]  (%p14107_p10), %s18851_s7, 1024, %s1907_s2, [#allocation73], %s16388_s11, %s16388_s11, %s16389_s23  }
 0x2be   : > { %p16079_p4 = pneg %p16078_p5  ;;  %p16085_p11 = por %p16084_p8, %p16083_p7 }
 0x2c0   : > { %p16086_p12 = pnand %p16085_p11, %p16079_p4 }
 0x2c2   : > { %16089 = shalt.err (!%p16086_p12)
}
 0x2c3   : > { %s18852_s13 = sld [smem:[#allocation150_spill]]  ;;  %s16100_s11 = scalar_lea.vmem %s1959_s3, 16 }
 0x2c4   : > { %p16101_p13 = scmp.ne.s32.totalorder %s1959_s3, %s16100_s11  ;;  %s16106_s23 = scalar_lea.vmem %s1959_s3, 32 }
 0x2c5   : > { %p16107_p2 = scmp.lt.s32.totalorder %s1959_s3, %s1959_s3  ;;  %p16108_p3 = scmp.lt.s32.totalorder %s16106_s23, %s16100_s11 }
 0x2c6   : > { %p16102_p0 = pnand %p16101_p13, %p14107_p10 }
 0x2c7   : > { %p16109_p6 = por %p16108_p3, %p16107_p2 }
 0x2c8   : > { %p16103_p1 = pneg %p16102_p0 }
 0x2c9   : > { %13990 = dma.hbm_to_vmem [thread:$0]  (%p14107_p10), %s18852_s13, 32, %s1935_s0, [#allocation76]  }
 0x2ca   : > { %p16110_p5 = pnand %p16109_p6, %p16103_p1 }
 0x2cc   : > { %16113 = shalt.err (!%p16110_p5)
}
 0x2cd   : > { %13994 = dma.hbm_to_vmem [thread:$0]  (%p14107_p10), %s16691_s9, 16, %s1959_s3, [#allocation79]  }
 0x2ce   : > { %s16416_s2 = smov [#allocation81]  }
 0x2cf   : > { %s1972_s7 = sshll.u32 %s16416_s2, 4  ;;  %s1973_s7 = int_to_ptr.vmem [resolvable:$true] %s1972_s7 }
 0x2d0   : > { %s16124_s1 = scalar_lea.vmem %s1973_s7, 16  ;;  %s16130_s0 = scalar_lea.vmem %s1973_s7, 32 }
 0x2d1   : > { %p16125_p4 = scmp.ne.s32.totalorder %s1973_s7, %s16124_s1  ;;  %p16131_p11 = scmp.lt.s32.totalorder %s1973_s7, %s1973_s7 }
 0x2d2   : > { %p16132_p12 = scmp.lt.s32.totalorder %s16130_s0, %s16124_s1 }
 0x2d3   : > { %p16126_p7 = pnand %p16125_p4, %p14107_p10 }
 0x2d4   : > { %p16133_p13 = por %p16132_p12, %p16131_p11 }
 0x2d5   : > { %p16127_p8 = pneg %p16126_p7 }
 0x2d7   : > { %p16134_p0 = pnand %p16133_p13, %p16127_p8 }
 0x2d9   : > { %16137 = shalt.err (!%p16134_p0)
}
 0x2da   : > { %13996 = dma.hbm_to_vmem [thread:$0]  (%p14107_p10), %s16701_s17, 16, %s1973_s7, [#allocation82]  }
 0x2db PF: > { %1993 = sbr.rel (%p16756_p9) target bundleno = 7962 (0x1f1a), region = 240  ;;  %p14159_p1 = scmp.eq.s32.totalorder (!%p16756_p9), %s16729_s28, 0 }
 0x2e0   : > { %16181 = dma.done.wait (%p14159_p1), [#allocation4], 256  }
 0x2e1   : > { %16183 = vsyncadd (%p14159_p1), [#allocation4], 4294967040 }
 0x2e2   : > { %16185 = dma.done.wait (%p14159_p1), [#allocation7], 784  }
 0x2e3   : > { %16187 = vsyncadd (%p14159_p1), [#allocation7], 4294966512 }
 0x2e4   : > { %16189 = dma.done.wait (%p14159_p1), [#allocation10], 272  }
 0x2e5   : > { %16191 = vsyncadd (%p14159_p1), [#allocation10], 4294967024 }
 0x2e6   : > { %16193 = dma.done.wait (%p14159_p1), [#allocation13], 784  }
 0x2e7   : > { %16195 = vsyncadd (%p14159_p1), [#allocation13], 4294966512 }
 0x2e8   : > { %16197 = dma.done.wait (%p14159_p1), [#allocation16], 272  }
 0x2e9   : > { %16199 = vsyncadd (%p14159_p1), [#allocation16], 4294967024 }
 0x2ea   : > { %16201 = dma.done.wait (%p14159_p1), [#allocation19], 784  }
 0x2eb   : > { %16203 = vsyncadd (%p14159_p1), [#allocation19], 4294966512 }
 0x2ec   : > { %16205 = dma.done.wait (%p14159_p1), [#allocation22], 272  }
 0x2ed   : > { %16207 = vsyncadd (%p14159_p1), [#allocation22], 4294967024 }
 0x2ee   : > { %16209 = dma.done.wait (%p14159_p1), [#allocation25], 784  }
 0x2ef   : > { %16211 = vsyncadd (%p14159_p1), [#allocation25], 4294966512 }
 0x2f0   : > { %16213 = dma.done.wait (%p14159_p1), [#allocation28], 272  }
 0x2f1   : > { %16215 = vsyncadd (%p14159_p1), [#allocation28], 4294967024 }
 0x2f2   : > { %16217 = dma.done.wait (%p14159_p1), [#allocation31], 272  }
 0x2f3   : > { %16219 = vsyncadd (%p14159_p1), [#allocation31], 4294967024 }
 0x2f4   : > { %16221 = dma.done.wait (%p14159_p1), [#allocation34], 1552  }
 0x2f5   : > { %16223 = vsyncadd (%p14159_p1), [#allocation34], 4294965744 }
 0x2f6   : > { %16225 = dma.done.wait (%p14159_p1), [#allocation37], 528  }
 0x2f7   : > { %16227 = vsyncadd (%p14159_p1), [#allocation37], 4294966768 }
 0x2f8   : > { %16229 = dma.done.wait (%p14159_p1), [#allocation40], 1552  }
 0x2f9   : > { %16231 = vsyncadd (%p14159_p1), [#allocation40], 4294965744 }
 0x2fa   : > { %16233 = dma.done.wait (%p14159_p1), [#allocation43], 528  }
 0x2fb   : > { %16235 = vsyncadd (%p14159_p1), [#allocation43], 4294966768 }
 0x2fc   : > { %16237 = dma.done.wait (%p14159_p1), [#allocation46], 1552  }
 0x2fd   : > { %16239 = vsyncadd (%p14159_p1), [#allocation46], 4294965744 }
 0x2fe   : > { %16241 = dma.done.wait (%p14159_p1), [#allocation49], 528  }
 0x2ff   : > { %16243 = vsyncadd (%p14159_p1), [#allocation49], 4294966768 }
 0x300   : > { %16245 = dma.done.wait (%p14159_p1), [#allocation52], 1552  }
 0x301   : > { %16247 = vsyncadd (%p14159_p1), [#allocation52], 4294965744 }
 0x302   : > { %16249 = dma.done.wait (%p14159_p1), [#allocation55], 528  }
 0x303   : > { %16251 = vsyncadd (%p14159_p1), [#allocation55], 4294966768 }
 0x304   : > { %16253 = dma.done.wait (%p14159_p1), [#allocation58], 528  }
 0x305   : > { %16255 = vsyncadd (%p14159_p1), [#allocation58], 4294966768 }
 0x306   : > { %16257 = dma.done.wait (%p14159_p1), [#allocation61], 3088  }
 0x307   : > { %16259 = vsyncadd (%p14159_p1), [#allocation61], 4294964208 }
 0x308   : > { %16261 = dma.done.wait (%p14159_p1), [#allocation64], 1040  }
 0x309   : > { %16263 = vsyncadd (%p14159_p1), [#allocation64], 4294966256 }
 0x30a   : > { %16265 = dma.done.wait (%p14159_p1), [#allocation67], 3088  }
 0x30b   : > { %16267 = vsyncadd (%p14159_p1), [#allocation67], 4294964208 }
 0x30c   : > { %16269 = dma.done.wait (%p14159_p1), [#allocation70], 1040  }
 0x30d   : > { %16271 = vsyncadd (%p14159_p1), [#allocation70], 4294966256 }
 0x30e   : > { %16273 = dma.done.wait (%p14159_p1), [#allocation73], 1040  }
 0x30f   : > { %16275 = vsyncadd (%p14159_p1), [#allocation73], 4294966256 }
 0x310   : > { %16277 = dma.done.wait (%p14159_p1), [#allocation76], 48  }
 0x311   : > { %16279 = vsyncadd (%p14159_p1), [#allocation76], 4294967248 }
 0x312   : > { %16281 = dma.done.wait (%p14159_p1), [#allocation79], 2064  }
 0x313   : > { %16283 = vsyncadd (%p14159_p1), [#allocation79], 4294965232 }
 0x314   : > { %16285 = dma.done.wait (%p14159_p1), [#allocation82], 16  }
 0x315   : > { %16287 = vsyncadd (%p14159_p1), [#allocation82], 4294967280  ;;  %s18853_s18 = sld [smem:[#allocation112_spill]]  ;;  %p2324_p9 = scmp.lt.s32.totalorder %s16729_s28, 1  ;;  %v16417_v0 = vmov 0.0   ;;  %vm2356_vm0 = vcmask 130048  }
 0x316   : > { %2331 = vst [vmem:[#allocation2 + $0x10] sm:$0xff] %v16417_v0  ;;  %2329 = vst [vmem:[#allocation2] sm:$0xff] %v16417_v0  ;;  %v2348_v1 = vld [vmem:[#allocation3 + $0x8] sm:$0xff]  ;;  %v2347_v2 = vld [vmem:[#allocation3] sm:$0xff]  ;;  %s16418_s13 = smov 112   ;;  %vm5340_vm1 = vcmask 261120  }
 0x317   : > { %2330 = vst [vmem:[#allocation2 + $0x8] sm:$0xff] %v16417_v0  ;;  %2332 = vst [vmem:[#allocation2 + $0x18] sm:$0xff] %v16417_v0  ;;  %s2325_s16 = scalar_select %p2324_p9, %s16729_s28, 1  ;;  %12829 = vmatprep.subr.mxu0 %v2348_v1  ;;  %v2514_v11 = vld [vmem:[#allocation8 + $0x18] sm:$0xff]  ;;  %v2513_v12 = vld [vmem:[#allocation8 + $0x10] sm:$0xff]  ;;  %vm8229_vm2 = vcmask 523264  }
 0x318   : > { %2333 = vst [vmem:[#allocation2 + $0x20] sm:$0xff] %v16417_v0  ;;  %2334 = vst [vmem:[#allocation2 + $0x28] sm:$0xff] %v16417_v0  ;;  %12830 = vmatpush3.msra.mxu0 %v2348_v1  ;;  %12845 = vmatprep.subr.mxu1 %v2514_v11  ;;  %v2511_v13 = vld [vmem:[#allocation8 + $0x8] sm:$0xff]  ;;  %v2510_v15 = vld [vmem:[#allocation8] sm:$0xff]  ;;  %s16419_s11 = smov 96   ;;  %s16420_s23 = smov 64  }
 0x319   : > { %2335 = vst [vmem:[#allocation2 + $0x30] sm:$0xff] %v16417_v0  ;;  %2336 = vst [vmem:[#allocation2 + $0x38] sm:$0xff] %v16417_v0  ;;  %s12208_s3 = sshll.u32 %s2325_s16, 6  ;;  %12831 = vmatprep.subr.mxu0 %v2347_v2  ;;  %12846 = vmatpush3.msra.mxu1 %v2514_v11  ;;  %v2775_v14 = vld [vmem:[#allocation8 + $0x28] sm:$0xff]  ;;  %v11628_v16 = vld [vmem:[#allocation6] ss:$0 sm:$0xff] }
 0x31a   : > { %2337 = vst [vmem:[#allocation2 + $0x40] sm:$0xff] %v16417_v0  ;;  %2338 = vst [vmem:[#allocation2 + $0x48] sm:$0xff] %v16417_v0  ;;  %12832 = vmatpush3.msra.mxu0 %v2347_v2  ;;  %12847 = vmatprep.subr.mxu1 %v2513_v12  ;;  %v2774_v23 = vld [vmem:[#allocation8 + $0x20] sm:$0xff]  ;;  %v3024_v51 = vld [vmem:[#allocation11] sm:$0xff]  ;;  %s18854_s2 = sld [smem:[#allocation149_spill]]  ;;  %vm16421_vm3 = vmmov 0  }
 0x31b   : > { %s2328_s10 = scalar_lea.vmem %s18853_s18, %s12208_s3  ;;  %12848 = vmatpush3.msra.mxu1 %v2513_v12  ;;  %12861 = vmatprep.subr.mxu0 %v2511_v13  ;;  %v3025_v50 = vld [vmem:[#allocation11 + $0x8] sm:$0xff]  ;;  %s2322_s7 = sand.u32 1, %s16298_s22   ;;  %vm10896_vm4 = vcmask 16384  }
 0x31c   : > { %v2339_v3 = vld [vmem:[%s2328_s10] sm:$0xff]  ;;  %v2340_v4 = vld [vmem:[%s2328_s10 + $0x8] sm:$0xff]  ;;  %v2341_v5 = vld [vmem:[%s2328_s10 + $0x10] sm:$0xff]  ;;  %12877 = vmatprep.subr.mxu1 %v2775_v14  ;;  %s12205_s1 = sshll.u32 %s16729_s28, 4  ;;  %s2323_s0 = scalar_lea.vmem [#allocation83], %s2322_s7 }
 0x31d   : > { %12833 = vmatprep.mubr.msk.f32.mxu0 %vm2356_vm0, %v2339_v3  ;;  %v2342_v6 = vld [vmem:[%s2328_s10 + $0x18] sm:$0xff]  ;;  %v2343_v7 = vld [vmem:[%s2328_s10 + $0x20] sm:$0xff]  ;;  %v2344_v8 = vld [vmem:[%s2328_s10 + $0x28] sm:$0xff]  ;;  %s10911_s18 = sshll.u32 %s2323_s0, 4  ;;  %s18728_s16 = scalar_lea.hbm %s16706_s20, %s12205_s1  ;;  %s10912_s18 = int_to_ptr.vmem [resolvable:$true] %s10911_s18 }
 0x31e   : > { %12834 = vmatmul.mubr.msk.f32.vlgmr.msra.gmra.mxu0 %vm2356_vm0, %v2340_v4  ;;  %v2345_v9 = vld [vmem:[%s2328_s10 + $0x30] sm:$0xff]  ;;  %v2346_v10 = vld [vmem:[%s2328_s10 + $0x38] sm:$0xff]  ;;  %s10899_s3 = scalar_lea.sflag [#allocation5], %s2322_s7  ;;  %s16138_s10 = scalar_lea.vmem %s10912_s18, 16 }
 0x31f   : > { %12836 = vmatprep.mubr.msk.f32.mxu0 %vm2356_vm0, %v2341_v5  ;;  %12862 = vmatpush3.msra.mxu0 %v2511_v13  ;;  %v11661_v3 = vld [vmem:[#allocation9] ss:$0 sm:$0xff]  ;;  %p16139_p10 = scmp.ne.s32.totalorder %s10912_s18, %s16138_s10  ;;  %p18855_p2 = scmp.ne.s32.totalorder %s18811_s15, 0 }
 0x320   : > { %12863 = vmatprep.subr.mxu0 %v2510_v15 }
 0x321   : > { %12864 = vmatpush3.msra.mxu0 %v2510_v15  ;;  %p16140_p3 = pnand %p16139_p10, %p18855_p2 }
 0x322   : > { %12837 = vmatmul.mubr.msk.f32.gmra.mxu0 %vm2356_vm0, %v2342_v6  ;;  %12893 = vmatprep.subr.mxu0 %v3025_v50 }
 0x323   : > { %12839 = vmatprep.mubr.msk.f32.mxu0 %vm2356_vm0, %v2343_v7  ;;  %p16141_p6 = pneg %p16140_p3 }
 0x326   : > { %12840 = vmatmul.mubr.msk.f32.gmra.mxu0 %vm2356_vm0, %v2344_v8 }
 0x327   : > { %12842 = vmatprep.mubr.msk.f32.mxu0 %vm2356_vm0, %v2345_v9 }
 0x32a   : > { %12843 = vmatmul.mubr.msk.f32.gmra.mxu0 %vm2356_vm0, %v2346_v10 }
 0x3de   : > { %v12835_v17 = vpop.f32.mrf.mxu0 }
 0x3df   : > { %v17220_v18 = vadd.f32 %v12835_v17, %v11628_v16 }
 0x3e0   : > { %v2447_v19 = vpop.f32.mrf.mxu0 }
 0x3e1   : > { %2487 = vst.msk [vmem:[#allocation2 + $0x10] sm:$0xff] %vm2356_vm0, %v17220_v18  ;;  %v17224_v20 = vadd.f32 %v11628_v16, %v2447_v19 }
 0x3e2   : > { %v12838_v21 = vpop.f32.mrf.mxu0 }
 0x3e3   : > { %2486 = vst.msk [vmem:[#allocation2 + $0x8] sm:$0xff] %vm2356_vm0, %v17224_v20  ;;  %v17228_v22 = vadd.f32 %v12838_v21, %v11628_v16  ;;  %12849 = vmatprep.mubr.msk.f32.mxu1 %vm2356_vm0, %v17224_v20 }
 0x3e4   : > { %v2457_v24 = vpop.f32.mrf.mxu0  ;;  %12850 = vmatmul.mubr.msk.f32.vlgmr.msra.gmra.mxu1 %vm2356_vm0, %v17220_v18 }
 0x3e5   : > { %2489 = vst.msk [vmem:[#allocation2 + $0x20] sm:$0xff] %vm2356_vm0, %v17228_v22  ;;  %v17236_v25 = vadd.f32 %v11628_v16, %v2457_v24  ;;  %12878 = vmatpush3.msra.mxu1 %v2775_v14 }
 0x3e6   : > { %v12841_v26 = vpop.f32.mrf.mxu0  ;;  %12879 = vmatprep.subr.mxu1 %v2774_v23 }
 0x3e7   : > { %2488 = vst.msk [vmem:[#allocation2 + $0x18] sm:$0xff] %vm2356_vm0, %v17236_v25  ;;  %v17240_v27 = vadd.f32 %v12841_v26, %v11628_v16  ;;  %12852 = vmatprep.mubr.msk.f32.mxu1 %vm2356_vm0, %v17236_v25  ;;  %12880 = vmatpush3.msra.mxu1 %v2774_v23 }
 0x3e8   : > { %v2467_v28 = vpop.f32.mrf.mxu0  ;;  %12853 = vmatmul.mubr.msk.f32.gmra.mxu1 %vm2356_vm0, %v17228_v22 }
 0x3e9   : > { %2491 = vst.msk [vmem:[#allocation2 + $0x30] sm:$0xff] %vm2356_vm0, %v17240_v27  ;;  %v17248_v29 = vadd.f32 %v11628_v16, %v2467_v28 }
 0x3ea   : > { %v2494_v30 = vld [vmem:[#allocation2 + $0x7] sm:$0xff]  ;;  %v2495_v31 = vld [vmem:[#allocation2 + $0xf] sm:$0xff]  ;;  %v12844_v32 = vpop.f32.mrf.mxu0 }
 0x3eb   : > { %2490 = vst.msk [vmem:[#allocation2 + $0x28] sm:$0xff] %vm2356_vm0, %v17248_v29  ;;  %v17252_v33 = vadd.f32 %v12844_v32, %v11628_v16  ;;  %12855 = vmatprep.mubr.msk.f32.mxu1 %vm2356_vm0, %v17248_v29  ;;  %12865 = vmatprep.mubr.msk.f32.mxu0 %vm2356_vm0, %v2494_v30  ;;  %v2502_v38 = vld [vmem:[#allocation2 + $0x9] sm:$0xff] }
 0x3ec   : > { %v2477_v34 = vpop.f32.mrf.mxu0  ;;  %12856 = vmatmul.mubr.msk.f32.gmra.mxu1 %vm2356_vm0, %v17240_v27  ;;  %12866 = vmatmul.mubr.msk.f32.vlgmr.msra.gmra.mxu0 %vm2356_vm0, %v2495_v31 }
 0x3ed   : > { %2493 = vst.msk [vmem:[#allocation2 + $0x40] sm:$0xff] %vm2356_vm0, %v17252_v33  ;;  %v17262_v35 = vadd.f32 %v11628_v16, %v2477_v34  ;;  %12894 = vmatpush3.msra.mxu0 %v3025_v50 }
 0x3ee   : > { %v2496_v36 = vld [vmem:[#allocation2 + $0x17] sm:$0xff]  ;;  %v2497_v37 = vld [vmem:[#allocation2 + $0x1f] sm:$0xff]  ;;  %12895 = vmatprep.subr.mxu0 %v3024_v51 }
 0x3ef   : > { %2492 = vst.msk [vmem:[#allocation2 + $0x38] sm:$0xff] %vm2356_vm0, %v17262_v35  ;;  %12858 = vmatprep.mubr.msk.f32.mxu1 %vm2356_vm0, %v17262_v35  ;;  %12868 = vmatprep.mubr.msk.f32.mxu0 %vm2356_vm0, %v2496_v36  ;;  %v2503_v41 = vld [vmem:[#allocation2 + $0x11] sm:$0xff]  ;;  %v2504_v42 = vld [vmem:[#allocation2 + $0x19] sm:$0xff] }
 0x3f0   : > { %12859 = vmatmul.mubr.msk.f32.gmra.mxu1 %vm2356_vm0, %v17252_v33  ;;  %12869 = vmatmul.mubr.msk.f32.gmra.mxu0 %vm2356_vm0, %v2497_v37 }
 0x3f1   : > { %12881 = vmatprep.mubr.msk.f32.mxu1 %vm2356_vm0, %v2502_v38  ;;  %12896 = vmatpush3.msra.mxu0 %v3024_v51 }
 0x3f2   : > { %v2498_v39 = vld [vmem:[#allocation2 + $0x27] sm:$0xff]  ;;  %v2499_v40 = vld [vmem:[#allocation2 + $0x2f] sm:$0xff] }
 0x3f3   : > { %12871 = vmatprep.mubr.msk.f32.mxu0 %vm2356_vm0, %v2498_v39  ;;  %v2505_v45 = vld [vmem:[#allocation2 + $0x21] sm:$0xff]  ;;  %v2506_v46 = vld [vmem:[#allocation2 + $0x29] sm:$0xff] }
 0x3f4   : > { %12872 = vmatmul.mubr.msk.f32.gmra.mxu0 %vm2356_vm0, %v2499_v40  ;;  %12882 = vmatmul.mubr.msk.f32.vlgmr.msra.gmra.mxu1 %vm2356_vm0, %v2503_v41  ;;  %v2509_v49 = vld [vmem:[#allocation2 + $0x41] sm:$0xff] }
 0x3f5   : > { %12884 = vmatprep.mubr.msk.f32.mxu1 %vm2356_vm0, %v2504_v42 }
 0x3f6   : > { %v2500_v43 = vld [vmem:[#allocation2 + $0x37] sm:$0xff]  ;;  %v2501_v44 = vld [vmem:[#allocation2 + $0x3f] sm:$0xff] }
 0x3f7   : > { %12874 = vmatprep.mubr.msk.f32.mxu0 %vm2356_vm0, %v2500_v43  ;;  %v2507_v47 = vld [vmem:[#allocation2 + $0x31] sm:$0xff]  ;;  %v2508_v48 = vld [vmem:[#allocation2 + $0x39] sm:$0xff] }
 0x3f8   : > { %12875 = vmatmul.mubr.msk.f32.gmra.mxu0 %vm2356_vm0, %v2501_v44  ;;  %12885 = vmatmul.mubr.msk.f32.gmra.mxu1 %vm2356_vm0, %v2505_v45 }
 0x3f9   : > { %12887 = vmatprep.mubr.msk.f32.mxu1 %vm2356_vm0, %v2506_v46 }
 0x3fc   : > { %12888 = vmatmul.mubr.msk.f32.gmra.mxu1 %vm2356_vm0, %v2507_v47 }
 0x3fd   : > { %12890 = vmatprep.mubr.msk.f32.mxu1 %vm2356_vm0, %v2508_v48 }
 0x400   : > { %12891 = vmatmul.mubr.msk.f32.gmra.mxu1 %vm2356_vm0, %v2509_v49 }
 0x4a4   : > { %v12851_v52 = vpop.f32.mrf.mxu1 }
 0x4a6   : > { %v2605_v53 = vpop.f32.mrf.mxu1 }
 0x4a8   : > { %v12854_v54 = vpop.f32.mrf.mxu1 }
 0x4aa   : > { %v2615_v55 = vpop.f32.mrf.mxu1 }
 0x4ac   : > { %v12857_v56 = vpop.f32.mrf.mxu1  ;;  %v12867_v57 = vpop.f32.mrf.mxu0 }
 0x4ad   : > { %v2740_v0 = vadd.f32 %v12867_v57, %v12851_v52 }
 0x4ae   : > { %v2625_v58 = vpop.f32.mrf.mxu1  ;;  %v2734_v59 = vpop.f32.mrf.mxu0 }
 0x4af   : > { %v2735_v4 = vadd.f32 %v2734_v59, %v2605_v53 }
 0x4b0   : > { %v12860_v60 = vpop.f32.mrf.mxu1  ;;  %v12870_v61 = vpop.f32.mrf.mxu0 }
 0x4b1   : > { %v2750_v10 = vadd.f32 %v12870_v61, %v12854_v54 }
 0x4b2   : > { %v2635_v62 = vpop.f32.mrf.mxu1  ;;  %v2744_v63 = vpop.f32.mrf.mxu0 }
 0x4b3   : > { %v2745_v12 = vadd.f32 %v2744_v63, %v2615_v55 }
 0x4b4   : > { %v12873_v1 = vpop.f32.mrf.mxu0  ;;  %v12883_v2 = vpop.f32.mrf.mxu1 }
 0x4b5   : > { %v2906_v5 = vadd.f32 %v12883_v2, %v2740_v0  ;;  %v2760_v19 = vadd.f32 %v12873_v1, %v12857_v56 }
 0x4b6   : > { %v2754_v6 = vpop.f32.mrf.mxu0  ;;  %v2866_v7 = vpop.f32.mrf.mxu1 }
 0x4b7   : > { %v17284_v8 = vadd.f32 %v11661_v3, %v2906_v5  ;;  %v2905_v9 = vadd.f32 %v2866_v7, %v2735_v4  ;;  %v2755_v28 = vadd.f32 %v2754_v6, %v2625_v58 }
 0x4b8   : > { %v12886_v11 = vpop.f32.mrf.mxu1  ;;  %v12876_v15 = vpop.f32.mrf.mxu0 }
 0x4b9   : > { %v11663_v13 = vmul.f32 -1.442695, %v17284_v8  ;;  %v17287_v14 = vadd.f32 %v11661_v3, %v2905_v9  ;;  %v2908_v16 = vadd.f32 %v12886_v11, %v2750_v10  ;;  %v2770_v37 = vadd.f32 %v12876_v15, %v12860_v60  ;;  %v3198_v9 = vld [vmem:[#allocation14 + $0x18] sm:$0xff]  ;;  %v3197_v11 = vld [vmem:[#allocation14 + $0x10] sm:$0xff] }
 0x4ba   : > { %v2876_v17 = vpop.f32.mrf.mxu1  ;;  %v2764_v30 = vpop.f32.mrf.mxu0  ;;  %12909 = vmatprep.subr.mxu1 %v3198_v9 }
 0x4bb   : > { %v11662_v21 = vmul.f32 -1.442695, %v17287_v14  ;;  %v2907_v23 = vadd.f32 %v2876_v17, %v2745_v12  ;;  %14358 = vpow2.f32 %v11663_v13  ;;  %v17290_v24 = vadd.f32 %v11661_v3, %v2908_v16  ;;  %12910 = vmatpush3.msra.mxu1 %v3198_v9 }
 0x4bc   : > { %v12889_v26 = vpop.f32.mrf.mxu1  ;;  %v2765_v41 = vadd.f32 %v2764_v30, %v2635_v62  ;;  %12911 = vmatprep.subr.mxu1 %v3197_v11 }
 0x4bd   : > { %14360 = vpow2.f32 %v11662_v21  ;;  %v17292_v31 = vadd.f32 %v11661_v3, %v2907_v23  ;;  %v2910_v32 = vadd.f32 %v12889_v26, %v2760_v19  ;;  %v11665_v34 = vmul.f32 -1.442695, %v17290_v24  ;;  %12912 = vmatpush3.msra.mxu1 %v3197_v11 }
 0x4be   : > { %v2886_v36 = vpop.f32.mrf.mxu1 }
 0x4bf   : > { %v11664_v38 = vmul.f32 -1.442695, %v17292_v31  ;;  %v17296_v39 = vadd.f32 %v11661_v3, %v2910_v32  ;;  %v2909_v40 = vadd.f32 %v2886_v36, %v2755_v28  ;;  %14362 = vpow2.f32 %v11665_v34 }
 0x4c0   : > { %v12892_v42 = vpop.f32.mrf.mxu1 }
 0x4c1   : > { %14364 = vpow2.f32 %v11664_v38  ;;  %v11667_v43 = vmul.f32 -1.442695, %v17296_v39  ;;  %v17299_v44 = vadd.f32 %v11661_v3, %v2909_v40  ;;  %v2912_v45 = vadd.f32 %v12892_v42, %v2770_v37 }
 0x4c2   : > { %v2896_v46 = vpop.f32.mrf.mxu1 }
 0x4c3   : > { %v11666_v47 = vmul.f32 -1.442695, %v17299_v44  ;;  %v17302_v48 = vadd.f32 %v11661_v3, %v2912_v45  ;;  %v2911_v49 = vadd.f32 %v2896_v46, %v2765_v41  ;;  %14366 = vpow2.f32 %v11667_v43 }
 0x4c5   : > { %14368 = vpow2.f32 %v11666_v47  ;;  %v11669_v50 = vmul.f32 -1.442695, %v17302_v48  ;;  %v2926_v51 = vadd.f32 %v11661_v3, %v2911_v49  ;;  %v3195_v47 = vld [vmem:[#allocation14 + $0x8] sm:$0xff]  ;;  %v3194_v49 = vld [vmem:[#allocation14] sm:$0xff] }
 0x4c6   : > { %12925 = vmatprep.subr.mxu0 %v3195_v47 }
 0x4c7   : > { %v11668_v52 = vmul.f32 -1.442695, %v2926_v51  ;;  %14370 = vpow2.f32 %v11669_v50  ;;  %v11670_v50 = vld [vmem:[#allocation12] ss:$0 sm:$0xff] }
 0x4c8   : > { %v14359_v53 = vpop.eup %14358 }
 0x4c9   : > { %14372 = vpow2.f32 %v11668_v52  ;;  %v2961_v56 = vadd.f32 1.0, %v14359_v53 }
 0x4ca   : > { %v14361_v54 = vpop.eup %14360 }
 0x4cb   : > { %v2960_v55 = vadd.f32 1.0, %v14361_v54 }
 0x4cc   : > { %v14363_v57 = vpop.eup %14362 }
 0x4cd   : > { %14374 = vrcp.f32 %v2960_v55  ;;  %v2963_v60 = vadd.f32 1.0, %v14363_v57  ;;  %v3458_v57 = vld [vmem:[#allocation14 + $0x20] sm:$0xff] }
 0x4ce   : > { %v14365_v58 = vpop.eup %14364  ;;  %14376 = vrcp.f32 %v2961_v56 }
 0x4cf   : > { %v2962_v59 = vadd.f32 1.0, %v14365_v58 }
 0x4d0   : > { %v14367_v61 = vpop.eup %14366 }
 0x4d1   : > { %14378 = vrcp.f32 %v2962_v59  ;;  %v2965_v0 = vadd.f32 1.0, %v14367_v61 }
 0x4d2   : > { %v14369_v62 = vpop.eup %14368  ;;  %14380 = vrcp.f32 %v2963_v60 }
 0x4d3   : > { %v2964_v63 = vadd.f32 1.0, %v14369_v62 }
 0x4d4   : > { %v14371_v1 = vpop.eup %14370 }
 0x4d5   : > { %14382 = vrcp.f32 %v2964_v63  ;;  %v2967_v4 = vadd.f32 1.0, %v14371_v1 }
 0x4d6   : > { %v14373_v2 = vpop.eup %14372  ;;  %14384 = vrcp.f32 %v2965_v0 }
 0x4d7   : > { %v2966_v3 = vadd.f32 1.0, %v14373_v2 }
 0x4d9   : > { %14386 = vrcp.f32 %v2966_v3 }
 0x4da   : > { %v14375_v5 = vpop.eup %14374  ;;  %14388 = vrcp.f32 %v2967_v4 }
 0x4db   : > { %2992 = vrot.lane.b32.xlu0 %v14375_v5, %s16418_s13  ;;  %v14377_v6 = vpop.eup %14376  ;;  %14390 = vtanh.f32 %v17287_v14 }
 0x4dc   : > { %14392 = vtanh.f32 %v17284_v8 }
 0x4dd   : > { %14394 = vtanh.f32 %v17292_v31 }
 0x4de   : > { %v14379_v7 = vpop.eup %14378  ;;  %14396 = vtanh.f32 %v17290_v24 }
 0x4df   : > { %2996 = vrot.lane.b32.xlu1 %v14379_v7, %s16418_s13  ;;  %2994 = vrot.lane.b32.xlu0 %v14377_v6, %s16418_s13  ;;  %v14381_v10 = vpop.eup %14380  ;;  %14398 = vtanh.f32 %v17299_v44 }
 0x4e0   : > { %14400 = vtanh.f32 %v17296_v39 }
 0x4e1   : > { %14402 = vtanh.f32 %v2926_v51 }
 0x4e2   : > { %v14383_v12 = vpop.eup %14382  ;;  %14404 = vtanh.f32 %v17302_v48  ;;  %v3459_v48 = vld [vmem:[#allocation14 + $0x28] sm:$0xff] }
 0x4e3   : > { %2998 = vrot.lane.b32.xlu1 %v14381_v10, %s16418_s13  ;;  %3000 = vrot.lane.b32.xlu0 %v14383_v12, %s16418_s13  ;;  %v14385_v13 = vpop.eup %14384 }
 0x4e4   : > { %12941 = vmatprep.subr.mxu1 %v3459_v48 }
 0x4e6   : > { %v14387_v15 = vpop.eup %14386 }
 0x4e7   : > { %3002 = vrot.lane.b32.xlu1 %v14385_v13, %s16418_s13  ;;  %3004 = vrot.lane.b32.xlu0 %v14387_v15, %s16418_s13  ;;  %v14389_v16 = vpop.eup %14388 }
 0x4e8   : > { %v14391_v17 = vpop.eup %14390 }
 0x4e9   : > { %v14393_v23 = vpop.eup %14392 }
 0x4ea   : > { %v14395_v14 = vpop.eup %14394 }
 0x4eb   : > { %3006 = vrot.lane.b32.xlu1 %v14389_v16, %s16418_s13  ;;  %v14397_v31 = vpop.eup %14396 }
 0x4ec   : > { %v14399_v24 = vpop.eup %14398 }
 0x4ed   : > { %v14401_v38 = vpop.eup %14400 }
 0x4ee   : > { %v14403_v39 = vpop.eup %14402 }
 0x4ef   : > { %v14405_v44 = vpop.eup %14404 }
 0x54d   : > { %v2993_v19 = vpop.permute.xlu0 %2992 }
 0x54e   : > { %v3016_v21 = vmul.f32 %v14391_v17, %v2993_v19 }
 0x550   : > { %12897 = vmatprep.mubr.msk.f32.mxu0 %vm2356_vm0, %v3016_v21 }
 0x551   : > { %v2997_v26 = vpop.permute.xlu1 %2996  ;;  %v2995_v8 = vpop.permute.xlu0 %2994 }
 0x552   : > { %v3018_v28 = vmul.f32 %v14395_v14, %v2997_v26  ;;  %v3017_v30 = vmul.f32 %v14393_v23, %v2995_v8  ;;  %v3709_v26 = vld [vmem:[#allocation17 + $0x8] sm:$0xff]  ;;  %v3708_v8 = vld [vmem:[#allocation17] sm:$0xff] }
 0x554   : > { %12898 = vmatmul.mubr.msk.f32.vlgmr.msra.gmra.mxu0 %vm2356_vm0, %v3017_v30 }
 0x555   : > { %v2999_v32 = vpop.permute.xlu1 %2998  ;;  %v3001_v34 = vpop.permute.xlu0 %3000  ;;  %12900 = vmatprep.mubr.msk.f32.mxu0 %vm2356_vm0, %v3018_v28  ;;  %12926 = vmatpush3.msra.mxu0 %v3195_v47 }
 0x556   : > { %v3019_v36 = vmul.f32 %v14397_v31, %v2999_v32  ;;  %v3020_v37 = vmul.f32 %v14399_v24, %v3001_v34  ;;  %12927 = vmatprep.subr.mxu0 %v3194_v49 }
 0x557   : > { %12928 = vmatpush3.msra.mxu0 %v3194_v49 }
 0x558   : > { %12901 = vmatmul.mubr.msk.f32.gmra.mxu0 %vm2356_vm0, %v3019_v36  ;;  %12957 = vmatprep.subr.mxu0 %v3709_v26 }
 0x559   : > { %v3003_v40 = vpop.permute.xlu1 %3002  ;;  %v3005_v41 = vpop.permute.xlu0 %3004  ;;  %12903 = vmatprep.mubr.msk.f32.mxu0 %vm2356_vm0, %v3020_v37 }
 0x55a   : > { %v3021_v42 = vmul.f32 %v14401_v38, %v3003_v40  ;;  %v3022_v43 = vmul.f32 %v14403_v39, %v3005_v41 }
 0x55c   : > { %12904 = vmatmul.mubr.msk.f32.gmra.mxu0 %vm2356_vm0, %v3021_v42 }
 0x55d   : > { %v3007_v45 = vpop.permute.xlu1 %3006  ;;  %12906 = vmatprep.mubr.msk.f32.mxu0 %vm2356_vm0, %v3022_v43 }
 0x55e   : > { %v3023_v46 = vmul.f32 %v14405_v44, %v3007_v45  ;;  %v11703_v45 = vld [vmem:[#allocation15] ss:$0 sm:$0xff] }
 0x560   : > { %12907 = vmatmul.mubr.msk.f32.gmra.mxu0 %vm2356_vm0, %v3023_v46 }
 0x614   : > { %v12899_v51 = vpop.f32.mrf.mxu0 }
 0x615   : > { %v17328_v52 = vadd.f32 %v12899_v51, %v11670_v50 }
 0x616   : > { %v3123_v53 = vpop.f32.mrf.mxu0 }
 0x617   : > { %3171 = vst.msk [vmem:[#allocation2 + $0x10] sm:$0xff] %vm2356_vm0, %v17328_v52  ;;  %v17332_v54 = vadd.f32 %v11670_v50, %v3123_v53 }
 0x618   : > { %v12902_v55 = vpop.f32.mrf.mxu0 }
 0x619   : > { %3170 = vst.msk [vmem:[#allocation2 + $0x8] sm:$0xff] %vm2356_vm0, %v17332_v54  ;;  %v17336_v56 = vadd.f32 %v12902_v55, %v11670_v50  ;;  %12913 = vmatprep.mubr.msk.f32.mxu1 %vm2356_vm0, %v17332_v54 }
 0x61a   : > { %v3133_v58 = vpop.f32.mrf.mxu0  ;;  %12914 = vmatmul.mubr.msk.f32.vlgmr.msra.gmra.mxu1 %vm2356_vm0, %v17328_v52 }
 0x61b   : > { %3173 = vst.msk [vmem:[#allocation2 + $0x20] sm:$0xff] %vm2356_vm0, %v17336_v56  ;;  %v17344_v59 = vadd.f32 %v11670_v50, %v3133_v58  ;;  %12942 = vmatpush3.msra.mxu1 %v3459_v48 }
 0x61c   : > { %v12905_v60 = vpop.f32.mrf.mxu0  ;;  %12943 = vmatprep.subr.mxu1 %v3458_v57 }
 0x61d   : > { %3172 = vst.msk [vmem:[#allocation2 + $0x18] sm:$0xff] %vm2356_vm0, %v17344_v59  ;;  %v17348_v61 = vadd.f32 %v12905_v60, %v11670_v50  ;;  %12916 = vmatprep.mubr.msk.f32.mxu1 %vm2356_vm0, %v17344_v59  ;;  %12944 = vmatpush3.msra.mxu1 %v3458_v57 }
 0x61e   : > { %v3143_v62 = vpop.f32.mrf.mxu0  ;;  %12917 = vmatmul.mubr.msk.f32.gmra.mxu1 %vm2356_vm0, %v17336_v56 }
 0x61f   : > { %3175 = vst.msk [vmem:[#allocation2 + $0x30] sm:$0xff] %vm2356_vm0, %v17348_v61  ;;  %v17356_v63 = vadd.f32 %v11670_v50, %v3143_v62 }
 0x620   : > { %v3179_v0 = vld [vmem:[#allocation2 + $0xe] sm:$0xff]  ;;  %v12908_v1 = vpop.f32.mrf.mxu0  ;;  %v3178_v2 = vld [vmem:[#allocation2 + $0x6] sm:$0xff] }
 0x621   : > { %3174 = vst.msk [vmem:[#allocation2 + $0x28] sm:$0xff] %vm2356_vm0, %v17356_v63  ;;  %v17360_v3 = vadd.f32 %v12908_v1, %v11670_v50  ;;  %12919 = vmatprep.mubr.msk.f32.mxu1 %vm2356_vm0, %v17356_v63  ;;  %12929 = vmatprep.mubr.msk.f32.mxu0 %vm2356_vm0, %v3178_v2  ;;  %v3186_v9 = vld [vmem:[#allocation2 + $0xa] sm:$0xff] }
 0x622   : > { %v3153_v4 = vpop.f32.mrf.mxu0  ;;  %12920 = vmatmul.mubr.msk.f32.gmra.mxu1 %vm2356_vm0, %v17348_v61  ;;  %12930 = vmatmul.mubr.msk.f32.vlgmr.msra.gmra.mxu0 %vm2356_vm0, %v3179_v0 }
 0x623   : > { %3177 = vst.msk [vmem:[#allocation2 + $0x40] sm:$0xff] %vm2356_vm0, %v17360_v3  ;;  %v17370_v5 = vadd.f32 %v11670_v50, %v3153_v4  ;;  %12958 = vmatpush3.msra.mxu0 %v3709_v26 }
 0x624   : > { %v3180_v6 = vld [vmem:[#allocation2 + $0x16] sm:$0xff]  ;;  %v3181_v7 = vld [vmem:[#allocation2 + $0x1e] sm:$0xff]  ;;  %12959 = vmatprep.subr.mxu0 %v3708_v8 }
 0x625   : > { %3176 = vst.msk [vmem:[#allocation2 + $0x38] sm:$0xff] %vm2356_vm0, %v17370_v5  ;;  %12922 = vmatprep.mubr.msk.f32.mxu1 %vm2356_vm0, %v17370_v5  ;;  %12932 = vmatprep.mubr.msk.f32.mxu0 %vm2356_vm0, %v3180_v6  ;;  %v3187_v12 = vld [vmem:[#allocation2 + $0x12] sm:$0xff]  ;;  %v3188_v13 = vld [vmem:[#allocation2 + $0x1a] sm:$0xff] }
 0x626   : > { %12923 = vmatmul.mubr.msk.f32.gmra.mxu1 %vm2356_vm0, %v17360_v3  ;;  %12933 = vmatmul.mubr.msk.f32.gmra.mxu0 %vm2356_vm0, %v3181_v7 }
 0x627   : > { %12945 = vmatprep.mubr.msk.f32.mxu1 %vm2356_vm0, %v3186_v9  ;;  %12960 = vmatpush3.msra.mxu0 %v3708_v8 }
 0x628   : > { %v3182_v10 = vld [vmem:[#allocation2 + $0x26] sm:$0xff]  ;;  %v3183_v11 = vld [vmem:[#allocation2 + $0x2e] sm:$0xff] }
 0x629   : > { %12935 = vmatprep.mubr.msk.f32.mxu0 %vm2356_vm0, %v3182_v10  ;;  %v3189_v17 = vld [vmem:[#allocation2 + $0x22] sm:$0xff]  ;;  %v3190_v19 = vld [vmem:[#allocation2 + $0x2a] sm:$0xff] }
 0x62a   : > { %12936 = vmatmul.mubr.msk.f32.gmra.mxu0 %vm2356_vm0, %v3183_v11  ;;  %12946 = vmatmul.mubr.msk.f32.vlgmr.msra.gmra.mxu1 %vm2356_vm0, %v3187_v12  ;;  %v3193_v14 = vld [vmem:[#allocation2 + $0x42] sm:$0xff] }
 0x62b   : > { %12948 = vmatprep.mubr.msk.f32.mxu1 %vm2356_vm0, %v3188_v13 }
 0x62c   : > { %v3184_v15 = vld [vmem:[#allocation2 + $0x36] sm:$0xff]  ;;  %v3185_v16 = vld [vmem:[#allocation2 + $0x3e] sm:$0xff] }
 0x62d   : > { %12938 = vmatprep.mubr.msk.f32.mxu0 %vm2356_vm0, %v3184_v15  ;;  %v3191_v21 = vld [vmem:[#allocation2 + $0x32] sm:$0xff]  ;;  %v3192_v23 = vld [vmem:[#allocation2 + $0x3a] sm:$0xff] }
 0x62e   : > { %12939 = vmatmul.mubr.msk.f32.gmra.mxu0 %vm2356_vm0, %v3185_v16  ;;  %12949 = vmatmul.mubr.msk.f32.gmra.mxu1 %vm2356_vm0, %v3189_v17 }
 0x62f   : > { %12951 = vmatprep.mubr.msk.f32.mxu1 %vm2356_vm0, %v3190_v19 }
 0x632   : > { %12952 = vmatmul.mubr.msk.f32.gmra.mxu1 %vm2356_vm0, %v3191_v21 }
 0x633   : > { %12954 = vmatprep.mubr.msk.f32.mxu1 %vm2356_vm0, %v3192_v23 }
 0x636   : > { %12955 = vmatmul.mubr.msk.f32.gmra.mxu1 %vm2356_vm0, %v3193_v14 }
 0x6da   : > { %v12915_v28 = vpop.f32.mrf.mxu1 }
 0x6dc   : > { %v3289_v30 = vpop.f32.mrf.mxu1 }
 0x6de   : > { %v12918_v31 = vpop.f32.mrf.mxu1 }
 0x6e0   : > { %v3299_v24 = vpop.f32.mrf.mxu1 }
 0x6e2   : > { %v12921_v32 = vpop.f32.mrf.mxu1  ;;  %v12931_v34 = vpop.f32.mrf.mxu0 }
 0x6e3   : > { %v3424_v42 = vadd.f32 %v12931_v34, %v12915_v28 }
 0x6e4   : > { %v3309_v36 = vpop.f32.mrf.mxu1  ;;  %v3418_v37 = vpop.f32.mrf.mxu0 }
 0x6e5   : > { %v3419_v46 = vadd.f32 %v3418_v37, %v3289_v30 }
 0x6e6   : > { %v12924_v38 = vpop.f32.mrf.mxu1  ;;  %v12934_v39 = vpop.f32.mrf.mxu0 }
 0x6e7   : > { %v3434_v53 = vadd.f32 %v12934_v39, %v12918_v31 }
 0x6e8   : > { %v3319_v40 = vpop.f32.mrf.mxu1  ;;  %v3428_v41 = vpop.f32.mrf.mxu0 }
 0x6e9   : > { %v3429_v57 = vadd.f32 %v3428_v41, %v3299_v24 }
 0x6ea   : > { %v12937_v43 = vpop.f32.mrf.mxu0  ;;  %v12947_v44 = vpop.f32.mrf.mxu1 }
 0x6eb   : > { %v3590_v47 = vadd.f32 %v12947_v44, %v3424_v42  ;;  %v3444_v2 = vadd.f32 %v12937_v43, %v12921_v32 }
 0x6ec   : > { %v3438_v48 = vpop.f32.mrf.mxu0  ;;  %v3550_v49 = vpop.f32.mrf.mxu1 }
 0x6ed   : > { %v17392_v50 = vadd.f32 %v11703_v45, %v3590_v47  ;;  %v3589_v51 = vadd.f32 %v3550_v49, %v3419_v46  ;;  %v3439_v10 = vadd.f32 %v3438_v48, %v3309_v36 }
 0x6ee   : > { %v12950_v55 = vpop.f32.mrf.mxu1  ;;  %v12940_v62 = vpop.f32.mrf.mxu0 }
 0x6ef   : > { %v11705_v58 = vmul.f32 -1.442695, %v17392_v50  ;;  %v17395_v60 = vadd.f32 %v11703_v45, %v3589_v51  ;;  %v3592_v0 = vadd.f32 %v12950_v55, %v3434_v53  ;;  %v3454_v17 = vadd.f32 %v12940_v62, %v12924_v38 }
 0x6f0   : > { %v3560_v1 = vpop.f32.mrf.mxu1  ;;  %v3448_v11 = vpop.f32.mrf.mxu0 }
 0x6f1   : > { %14406 = vpow2.f32 %v11705_v58  ;;  %v11704_v4 = vmul.f32 -1.442695, %v17395_v60  ;;  %v3591_v6 = vadd.f32 %v3560_v1, %v3429_v57  ;;  %v17398_v7 = vadd.f32 %v11703_v45, %v3592_v0 }
 0x6f2   : > { %v12953_v9 = vpop.f32.mrf.mxu1  ;;  %v3449_v14 = vadd.f32 %v3448_v11, %v3319_v40 }
 0x6f3   : > { %14408 = vpow2.f32 %v11704_v4  ;;  %v17400_v12 = vadd.f32 %v11703_v45, %v3591_v6  ;;  %v3594_v13 = vadd.f32 %v12953_v9, %v3444_v2  ;;  %v11707_v15 = vmul.f32 -1.442695, %v17398_v7  ;;  %v3875_v2 = vld [vmem:[#allocation20 + $0x18] sm:$0xff]  ;;  %v3874_v4 = vld [vmem:[#allocation20 + $0x10] sm:$0xff] }
 0x6f4   : > { %v3570_v16 = vpop.f32.mrf.mxu1  ;;  %12973 = vmatprep.subr.mxu1 %v3875_v2 }
 0x6f5   : > { %v11706_v19 = vmul.f32 -1.442695, %v17400_v12  ;;  %v17404_v21 = vadd.f32 %v11703_v45, %v3594_v13  ;;  %v3593_v23 = vadd.f32 %v3570_v16, %v3439_v10  ;;  %14410 = vpow2.f32 %v11707_v15  ;;  %12974 = vmatpush3.msra.mxu1 %v3875_v2 }
 0x6f6   : > { %v12956_v26 = vpop.f32.mrf.mxu1  ;;  %12975 = vmatprep.subr.mxu1 %v3874_v4 }
 0x6f7   : > { %14412 = vpow2.f32 %v11706_v19  ;;  %v11709_v8 = vmul.f32 -1.442695, %v17404_v21  ;;  %v3608_v28 = vadd.f32 %v11703_v45, %v3593_v23  ;;  %v3596_v30 = vadd.f32 %v12956_v26, %v3454_v17  ;;  %12976 = vmatpush3.msra.mxu1 %v3874_v4 }
 0x6f8   : > { %v3580_v31 = vpop.f32.mrf.mxu1 }
 0x6f9   : > { %14414 = vpow2.f32 %v11709_v8  ;;  %v11708_v24 = vmul.f32 -1.442695, %v3608_v28  ;;  %v3611_v32 = vadd.f32 %v11703_v45, %v3596_v30  ;;  %v3595_v34 = vadd.f32 %v3580_v31, %v3449_v14 }
 0x6fb   : > { %14416 = vpow2.f32 %v11708_v24  ;;  %v11711_v36 = vmul.f32 -1.442695, %v3611_v32  ;;  %v3610_v37 = vadd.f32 %v11703_v45, %v3595_v34 }
 0x6fd   : > { %14418 = vpow2.f32 %v11711_v36  ;;  %v11710_v38 = vmul.f32 -1.442695, %v3610_v37 }
 0x6fe   : > { %v14407_v39 = vpop.eup %14406 }
 0x6ff   : > { %v3645_v41 = vadd.f32 1.0, %v14407_v39  ;;  %14420 = vpow2.f32 %v11710_v38 }
 0x700   : > { %v14409_v40 = vpop.eup %14408 }
 0x701   : > { %14422 = vrcp.f32 %v3645_v41  ;;  %v3644_v42 = vadd.f32 1.0, %v14409_v40  ;;  %v3872_v40 = vld [vmem:[#allocation20 + $0x8] sm:$0xff] }
 0x702   : > { %v14411_v43 = vpop.eup %14410  ;;  %12989 = vmatprep.subr.mxu0 %v3872_v40 }
 0x703   : > { %14424 = vrcp.f32 %v3644_v42  ;;  %v3647_v46 = vadd.f32 1.0, %v14411_v43  ;;  %v4136_v42 = vld [vmem:[#allocation20 + $0x28] sm:$0xff]  ;;  %v3871_v43 = vld [vmem:[#allocation20] sm:$0xff] }
 0x704   : > { %v14413_v44 = vpop.eup %14412  ;;  %13005 = vmatprep.subr.mxu1 %v4136_v42 }
 0x705   : > { %v3646_v47 = vadd.f32 1.0, %v14413_v44  ;;  %14426 = vrcp.f32 %v3647_v46  ;;  %v11712_v44 = vld [vmem:[#allocation18] ss:$0 sm:$0xff] }
 0x706   : > { %v14415_v48 = vpop.eup %14414 }
 0x707   : > { %14428 = vrcp.f32 %v3646_v47  ;;  %v3649_v49 = vadd.f32 1.0, %v14415_v48  ;;  %v3163_v47 = vadd.f32 %v17328_v52, %v17220_v18  ;;  %v4135_v18 = vld [vmem:[#allocation20 + $0x20] sm:$0xff] }
 0x708   : > { %v14417_v51 = vpop.eup %14416 }
 0x709   : > { %14430 = vrcp.f32 %v3649_v49  ;;  %v3648_v45 = vadd.f32 1.0, %v14417_v51  ;;  %v3162_v51 = vadd.f32 %v17332_v54, %v17224_v20  ;;  %v3164_v20 = vadd.f32 %v17344_v59, %v17236_v25 }
 0x70a   : > { %v14419_v53 = vpop.eup %14418  ;;  %v3166_v59 = vadd.f32 %v17356_v63, %v17248_v29  ;;  %v3168_v63 = vadd.f32 %v17370_v5, %v17262_v35 }
 0x70b   : > { %14432 = vrcp.f32 %v3648_v45  ;;  %v3651_v55 = vadd.f32 1.0, %v14419_v53 }
 0x70c   : > { %v14421_v57 = vpop.eup %14420 }
 0x70d   : > { %14434 = vrcp.f32 %v3651_v55  ;;  %v3650_v58 = vadd.f32 1.0, %v14421_v57  ;;  %v3165_v57 = vadd.f32 %v17336_v56, %v17228_v22  ;;  %v3167_v56 = vadd.f32 %v17348_v61, %v17240_v27 }
 0x70e   : > { %v14423_v62 = vpop.eup %14422 }
 0x70f   : > { %14436 = vrcp.f32 %v3650_v58  ;;  %3678 = vrot.lane.b32.xlu1 %v14423_v62, %s16418_s13 }
 0x710   : > { %v14425_v0 = vpop.eup %14424  ;;  %14438 = vtanh.f32 %v17395_v60 }
 0x711   : > { %3676 = vrot.lane.b32.xlu0 %v14425_v0, %s16418_s13  ;;  %14440 = vtanh.f32 %v17392_v50 }
 0x712   : > { %v14427_v1 = vpop.eup %14426  ;;  %14442 = vtanh.f32 %v17400_v12 }
 0x713   : > { %3682 = vrot.lane.b32.xlu1 %v14427_v1, %s16418_s13  ;;  %14444 = vtanh.f32 %v17398_v7 }
 0x714   : > { %v14429_v6 = vpop.eup %14428  ;;  %14446 = vtanh.f32 %v3608_v28 }
 0x715   : > { %3680 = vrot.lane.b32.xlu0 %v14429_v6, %s16418_s13  ;;  %14448 = vtanh.f32 %v17404_v21 }
 0x716   : > { %v14431_v9 = vpop.eup %14430  ;;  %14450 = vtanh.f32 %v3610_v37 }
 0x717   : > { %3686 = vrot.lane.b32.xlu1 %v14431_v9, %s16418_s13  ;;  %14452 = vtanh.f32 %v3611_v32 }
 0x718   : > { %v14433_v10 = vpop.eup %14432 }
 0x719   : > { %3684 = vrot.lane.b32.xlu0 %v14433_v10, %s16418_s13  ;;  %v3169_v10 = vadd.f32 %v17360_v3, %v17252_v33 }
 0x71a   : > { %v14435_v11 = vpop.eup %14434 }
 0x71b   : > { %3690 = vrot.lane.b32.xlu1 %v14435_v11, %s16418_s13 }
 0x71c   : > { %v14437_v13 = vpop.eup %14436 }
 0x71d   : > { %3688 = vrot.lane.b32.xlu0 %v14437_v13, %s16418_s13  ;;  %v14439_v16 = vpop.eup %14438 }
 0x71e   : > { %v14441_v19 = vpop.eup %14440 }
 0x71f   : > { %v14443_v60 = vpop.eup %14442 }
 0x720   : > { %v14445_v12 = vpop.eup %14444 }
 0x721   : > { %v14447_v21 = vpop.eup %14446 }
 0x722   : > { %v14449_v31 = vpop.eup %14448 }
 0x723   : > { %v14451_v36 = vpop.eup %14450 }
 0x724   : > { %v14453_v38 = vpop.eup %14452 }
 0x781   : > { %v3679_v15 = vpop.permute.xlu1 %3678 }
 0x782   : > { %v3701_v14 = vmul.f32 %v14441_v19, %v3679_v15 }
 0x783   : > { %v3677_v17 = vpop.permute.xlu0 %3676 }
 0x784   : > { %v3700_v23 = vmul.f32 %v14439_v16, %v3677_v17 }
 0x785   : > { %v3683_v26 = vpop.permute.xlu1 %3682 }
 0x786   : > { %12961 = vmatprep.mubr.msk.f32.mxu0 %vm2356_vm0, %v3700_v23  ;;  %v3703_v8 = vmul.f32 %v14445_v12, %v3683_v26  ;;  %v4365_v26 = vld [vmem:[#allocation23 + $0x8] sm:$0xff] }
 0x787   : > { %v3681_v50 = vpop.permute.xlu0 %3680  ;;  %12962 = vmatmul.mubr.msk.f32.vlgmr.msra.gmra.mxu0 %vm2356_vm0, %v3701_v14 }
 0x788   : > { %v3702_v7 = vmul.f32 %v14443_v60, %v3681_v50  ;;  %12990 = vmatpush3.msra.mxu0 %v3872_v40  ;;  %v4364_v60 = vld [vmem:[#allocation23] sm:$0xff] }
 0x789   : > { %v3687_v28 = vpop.permute.xlu1 %3686  ;;  %12991 = vmatprep.subr.mxu0 %v3871_v43 }
 0x78a   : > { %12964 = vmatprep.mubr.msk.f32.mxu0 %vm2356_vm0, %v3702_v7  ;;  %v3705_v32 = vmul.f32 %v14449_v31, %v3687_v28  ;;  %12992 = vmatpush3.msra.mxu0 %v3871_v43 }
 0x78b   : > { %v3685_v30 = vpop.permute.xlu0 %3684  ;;  %12965 = vmatmul.mubr.msk.f32.gmra.mxu0 %vm2356_vm0, %v3703_v8  ;;  %13021 = vmatprep.subr.mxu0 %v4365_v26 }
 0x78c   : > { %v3704_v24 = vmul.f32 %v14447_v21, %v3685_v30 }
 0x78d   : > { %v3691_v34 = vpop.permute.xlu1 %3690 }
 0x78e   : > { %12967 = vmatprep.mubr.msk.f32.mxu0 %vm2356_vm0, %v3704_v24  ;;  %v3707_v41 = vmul.f32 %v14453_v38, %v3691_v34 }
 0x78f   : > { %v3689_v37 = vpop.permute.xlu0 %3688  ;;  %12968 = vmatmul.mubr.msk.f32.gmra.mxu0 %vm2356_vm0, %v3705_v32 }
 0x790   : > { %v3706_v39 = vmul.f32 %v14451_v36, %v3689_v37 }
 0x792   : > { %12970 = vmatprep.mubr.msk.f32.mxu0 %vm2356_vm0, %v3706_v39 }
 0x793   : > { %12971 = vmatmul.mubr.msk.f32.gmra.mxu0 %vm2356_vm0, %v3707_v41  ;;  %v11745_v41 = vld [vmem:[#allocation21] ss:$0 sm:$0xff] }
 0x847   : > { %v12963_v46 = vpop.f32.mrf.mxu0 }
 0x848   : > { %v3813_v48 = vadd.f32 %v12963_v46, %v11712_v44 }
 0x849   : > { %v3807_v49 = vpop.f32.mrf.mxu0 }
 0x84a   : > { %v17432_v45 = vadd.f32 %v3813_v48, %v3163_v47  ;;  %3855 = vst.msk [vmem:[#allocation2 + $0x10] sm:$0xff] %vm2356_vm0, %v3813_v48  ;;  %v3808_v53 = vadd.f32 %v11712_v44, %v3807_v49 }
 0x84b   : > { %v12966_v55 = vpop.f32.mrf.mxu0 }
 0x84c   : > { %v17437_v58 = vadd.f32 %v3808_v53, %v3162_v51  ;;  %3854 = vst.msk [vmem:[#allocation2 + $0x8] sm:$0xff] %vm2356_vm0, %v3808_v53  ;;  %v3823_v62 = vadd.f32 %v12966_v55, %v11712_v44  ;;  %12977 = vmatprep.mubr.msk.f32.mxu1 %vm2356_vm0, %v3808_v53 }
 0x84d   : > { %v3817_v52 = vpop.f32.mrf.mxu0  ;;  %12978 = vmatmul.mubr.msk.f32.vlgmr.msra.gmra.mxu1 %vm2356_vm0, %v3813_v48 }
 0x84e   : > { %v17444_v54 = vadd.f32 %v3823_v62, %v3165_v57  ;;  %3857 = vst.msk [vmem:[#allocation2 + $0x20] sm:$0xff] %vm2356_vm0, %v3823_v62  ;;  %v3818_v0 = vadd.f32 %v11712_v44, %v3817_v52  ;;  %13006 = vmatpush3.msra.mxu1 %v4136_v42 }
 0x84f   : > { %v12969_v22 = vpop.f32.mrf.mxu0  ;;  %13007 = vmatprep.subr.mxu1 %v4135_v18 }
 0x850   : > { %v17449_v1 = vadd.f32 %v3818_v0, %v3164_v20  ;;  %3856 = vst.msk [vmem:[#allocation2 + $0x18] sm:$0xff] %vm2356_vm0, %v3818_v0  ;;  %v3833_v2 = vadd.f32 %v12969_v22, %v11712_v44  ;;  %12980 = vmatprep.mubr.msk.f32.mxu1 %vm2356_vm0, %v3818_v0  ;;  %13008 = vmatpush3.msra.mxu1 %v4135_v18 }
 0x851   : > { %v3827_v25 = vpop.f32.mrf.mxu0  ;;  %12981 = vmatmul.mubr.msk.f32.gmra.mxu1 %vm2356_vm0, %v3823_v62 }
 0x852   : > { %v17456_v4 = vadd.f32 %v3833_v2, %v3167_v56  ;;  %3859 = vst.msk [vmem:[#allocation2 + $0x30] sm:$0xff] %vm2356_vm0, %v3833_v2  ;;  %v3828_v6 = vadd.f32 %v11712_v44, %v3827_v25 }
 0x853   : > { %v3863_v27 = vld [vmem:[#allocation2 + $0xc] sm:$0xff]  ;;  %v12972_v61 = vpop.f32.mrf.mxu0  ;;  %v3862_v9 = vld [vmem:[#allocation2 + $0x4] sm:$0xff] }
 0x854   : > { %v17461_v11 = vadd.f32 %v3828_v6, %v3166_v59  ;;  %3858 = vst.msk [vmem:[#allocation2 + $0x28] sm:$0xff] %vm2356_vm0, %v3828_v6  ;;  %v3843_v13 = vadd.f32 %v12972_v61, %v11712_v44  ;;  %12983 = vmatprep.mubr.msk.f32.mxu1 %vm2356_vm0, %v3828_v6  ;;  %12993 = vmatprep.mubr.msk.f32.mxu0 %vm2356_vm0, %v3862_v9 }
 0x855   : > { %v3837_v29 = vpop.f32.mrf.mxu0  ;;  %12984 = vmatmul.mubr.msk.f32.gmra.mxu1 %vm2356_vm0, %v3833_v2  ;;  %12994 = vmatmul.mubr.msk.f32.vlgmr.msra.gmra.mxu0 %vm2356_vm0, %v3863_v27 }
 0x856   : > { %v17470_v15 = vadd.f32 %v3843_v13, %v3169_v10  ;;  %3861 = vst.msk [vmem:[#allocation2 + $0x40] sm:$0xff] %vm2356_vm0, %v3843_v13  ;;  %v3838_v33 = vadd.f32 %v11712_v44, %v3837_v29  ;;  %13022 = vmatpush3.msra.mxu0 %v4365_v26 }
 0x857   : > { %v3864_v3 = vld [vmem:[#allocation2 + $0x14] sm:$0xff]  ;;  %v3865_v16 = vld [vmem:[#allocation2 + $0x1c] sm:$0xff]  ;;  %13023 = vmatprep.subr.mxu0 %v4364_v60 }
 0x858   : > { %v17473_v17 = vadd.f32 %v3838_v33, %v3168_v63  ;;  %3860 = vst.msk [vmem:[#allocation2 + $0x38] sm:$0xff] %vm2356_vm0, %v3838_v33  ;;  %12986 = vmatprep.mubr.msk.f32.mxu1 %vm2356_vm0, %v3838_v33  ;;  %12996 = vmatprep.mubr.msk.f32.mxu0 %vm2356_vm0, %v3864_v3 }
 0x859   : > { %12987 = vmatmul.mubr.msk.f32.gmra.mxu1 %vm2356_vm0, %v3843_v13  ;;  %12997 = vmatmul.mubr.msk.f32.gmra.mxu0 %vm2356_vm0, %v3865_v16 }
 0x85a   : > { %13009 = vmatprep.mubr.msk.f32.mxu1 %vm2356_vm0, %v3863_v27  ;;  %13024 = vmatpush3.msra.mxu0 %v4364_v60 }
 0x85b   : > { %v3866_v35 = vld [vmem:[#allocation2 + $0x24] sm:$0xff]  ;;  %v3867_v5 = vld [vmem:[#allocation2 + $0x2c] sm:$0xff] }
 0x85c   : > { %12999 = vmatprep.mubr.msk.f32.mxu0 %vm2356_vm0, %v3866_v35 }
 0x85d   : > { %13000 = vmatmul.mubr.msk.f32.gmra.mxu0 %vm2356_vm0, %v3867_v5  ;;  %13010 = vmatmul.mubr.msk.f32.vlgmr.msra.gmra.mxu1 %vm2356_vm0, %v3864_v3  ;;  %v3870_v14 = vld [vmem:[#allocation2 + $0x44] sm:$0xff] }
 0x85e   : > { %13012 = vmatprep.mubr.msk.f32.mxu1 %vm2356_vm0, %v3865_v16 }
 0x85f   : > { %v3868_v19 = vld [vmem:[#allocation2 + $0x34] sm:$0xff]  ;;  %v3869_v23 = vld [vmem:[#allocation2 + $0x3c] sm:$0xff] }
 0x860   : > { %13002 = vmatprep.mubr.msk.f32.mxu0 %vm2356_vm0, %v3868_v19 }
 0x861   : > { %13003 = vmatmul.mubr.msk.f32.gmra.mxu0 %vm2356_vm0, %v3869_v23  ;;  %13013 = vmatmul.mubr.msk.f32.gmra.mxu1 %vm2356_vm0, %v3866_v35 }
 0x862   : > { %13015 = vmatprep.mubr.msk.f32.mxu1 %vm2356_vm0, %v3867_v5 }
 0x865   : > { %13016 = vmatmul.mubr.msk.f32.gmra.mxu1 %vm2356_vm0, %v3868_v19 }
 0x866   : > { %13018 = vmatprep.mubr.msk.f32.mxu1 %vm2356_vm0, %v3869_v23 }
 0x869   : > { %13019 = vmatmul.mubr.msk.f32.gmra.mxu1 %vm2356_vm0, %v3870_v14 }
 0x90d   : > { %v12979_v50 = vpop.f32.mrf.mxu1 }
 0x90f   : > { %v3966_v12 = vpop.f32.mrf.mxu1 }
 0x911   : > { %v12982_v7 = vpop.f32.mrf.mxu1 }
 0x913   : > { %v3976_v8 = vpop.f32.mrf.mxu1 }
 0x915   : > { %v12985_v28 = vpop.f32.mrf.mxu1  ;;  %v12995_v21 = vpop.f32.mrf.mxu0 }
 0x916   : > { %v4101_v37 = vadd.f32 %v12995_v21, %v12979_v50 }
 0x917   : > { %v3986_v30 = vpop.f32.mrf.mxu1  ;;  %v4095_v31 = vpop.f32.mrf.mxu0 }
 0x918   : > { %v4096_v40 = vadd.f32 %v4095_v31, %v3966_v12 }
 0x919   : > { %v12988_v24 = vpop.f32.mrf.mxu1  ;;  %v12998_v32 = vpop.f32.mrf.mxu0 }
 0x91a   : > { %v4111_v48 = vadd.f32 %v12998_v32, %v12982_v7 }
 0x91b   : > { %v3996_v34 = vpop.f32.mrf.mxu1  ;;  %v4105_v36 = vpop.f32.mrf.mxu0 }
 0x91c   : > { %v4106_v51 = vadd.f32 %v4105_v36, %v3976_v8 }
 0x91d   : > { %v13001_v38 = vpop.f32.mrf.mxu0  ;;  %v13011_v39 = vpop.f32.mrf.mxu1 }
 0x91e   : > { %v4246_v42 = vadd.f32 %v13011_v39, %v4101_v37  ;;  %v4121_v52 = vadd.f32 %v13001_v38, %v12985_v28 }
 0x91f   : > { %v4115_v43 = vpop.f32.mrf.mxu0  ;;  %v4206_v44 = vpop.f32.mrf.mxu1 }
 0x920   : > { %v17492_v46 = vadd.f32 %v11745_v41, %v4246_v42  ;;  %v4245_v47 = vadd.f32 %v4206_v44, %v4096_v40  ;;  %v4116_v2 = vadd.f32 %v4115_v43, %v3986_v30 }
 0x921   : > { %v13014_v49 = vpop.f32.mrf.mxu1  ;;  %v13004_v57 = vpop.f32.mrf.mxu0 }
 0x922   : > { %v11747_v53 = vmul.f32 -1.442695, %v17492_v46  ;;  %v17495_v55 = vadd.f32 %v11745_v41, %v4245_v47  ;;  %v4248_v62 = vadd.f32 %v13014_v49, %v4111_v48  ;;  %v4131_v9 = vadd.f32 %v13004_v57, %v12988_v24  ;;  %v4538_v47 = vld [vmem:[#allocation26 + $0x18] sm:$0xff]  ;;  %v4537_v48 = vld [vmem:[#allocation26 + $0x10] sm:$0xff] }
 0x923   : > { %v4216_v18 = vpop.f32.mrf.mxu1  ;;  %v4125_v25 = vpop.f32.mrf.mxu0  ;;  %13037 = vmatprep.subr.mxu1 %v4538_v47 }
 0x924   : > { %14454 = vpow2.f32 %v11747_v53  ;;  %v11746_v20 = vmul.f32 -1.442695, %v17495_v55  ;;  %v4247_v0 = vadd.f32 %v4216_v18, %v4106_v51  ;;  %v17498_v22 = vadd.f32 %v11745_v41, %v4248_v62  ;;  %13038 = vmatpush3.msra.mxu1 %v4538_v47 }
 0x925   : > { %v13017_v56 = vpop.f32.mrf.mxu1  ;;  %v4126_v63 = vadd.f32 %v4125_v25, %v3996_v34  ;;  %13039 = vmatprep.subr.mxu1 %v4537_v48 }
 0x926   : > { %14456 = vpow2.f32 %v11746_v20  ;;  %v17500_v59 = vadd.f32 %v11745_v41, %v4247_v0  ;;  %v4250_v6 = vadd.f32 %v13017_v56, %v4121_v52  ;;  %v11749_v27 = vmul.f32 -1.442695, %v17498_v22  ;;  %13040 = vmatpush3.msra.mxu1 %v4537_v48 }
 0x927   : > { %v4226_v61 = vpop.f32.mrf.mxu1 }
 0x928   : > { %v11748_v10 = vmul.f32 -1.442695, %v17500_v59  ;;  %v17504_v13 = vadd.f32 %v11745_v41, %v4250_v6  ;;  %v4249_v29 = vadd.f32 %v4226_v61, %v4116_v2  ;;  %14458 = vpow2.f32 %v11749_v27 }
 0x929   : > { %v13020_v33 = vpop.f32.mrf.mxu1 }
 0x92a   : > { %14460 = vpow2.f32 %v11748_v10  ;;  %v11751_v3 = vmul.f32 -1.442695, %v17504_v13  ;;  %v4264_v16 = vadd.f32 %v11745_v41, %v4249_v29  ;;  %v4252_v35 = vadd.f32 %v13020_v33, %v4131_v9 }
 0x92b   : > { %v4236_v5 = vpop.f32.mrf.mxu1 }
 0x92c   : > { %14462 = vpow2.f32 %v11751_v3  ;;  %v11750_v19 = vmul.f32 -1.442695, %v4264_v16  ;;  %v4267_v23 = vadd.f32 %v11745_v41, %v4252_v35  ;;  %v4251_v14 = vadd.f32 %v4236_v5, %v4126_v63 }
 0x92e   : > { %14464 = vpow2.f32 %v11750_v19  ;;  %v11753_v26 = vmul.f32 -1.442695, %v4267_v23  ;;  %v4266_v60 = vadd.f32 %v11745_v41, %v4251_v14  ;;  %v17528_v19 = vld [vmem:[#allocation2] sm:$0xff]  ;;  %v4799_v14 = vld [vmem:[#allocation26 + $0x28] sm:$0xff] }
 0x92f   : > { %13069 = vmatprep.subr.mxu1 %v4799_v14 }
 0x930   : > { %14466 = vpow2.f32 %v11753_v26  ;;  %v11752_v50 = vmul.f32 -1.442695, %v4266_v60  ;;  %v4534_v26 = vld [vmem:[#allocation26] sm:$0xff] }
 0x931   : > { %v14455_v12 = vpop.eup %14454 }
 0x932   : > { %v4301_v7 = vadd.f32 1.0, %v14455_v12  ;;  %14468 = vpow2.f32 %v11752_v50 }
 0x933   : > { %v14457_v8 = vpop.eup %14456 }
 0x934   : > { %14470 = vrcp.f32 %v4301_v7  ;;  %v4300_v28 = vadd.f32 1.0, %v14457_v8 }
 0x935   : > { %v14459_v21 = vpop.eup %14458 }
 0x936   : > { %14472 = vrcp.f32 %v4300_v28  ;;  %v4303_v31 = vadd.f32 1.0, %v14459_v21 }
 0x937   : > { %v14461_v30 = vpop.eup %14460 }
 0x938   : > { %v4302_v24 = vadd.f32 1.0, %v14461_v30  ;;  %14474 = vrcp.f32 %v4303_v31  ;;  %v4798_v31 = vld [vmem:[#allocation26 + $0x20] sm:$0xff] }
 0x939   : > { %v14463_v32 = vpop.eup %14462 }
 0x93a   : > { %14476 = vrcp.f32 %v4302_v24  ;;  %v4305_v34 = vadd.f32 1.0, %v14463_v32 }
 0x93b   : > { %v14465_v36 = vpop.eup %14464 }
 0x93c   : > { %14478 = vrcp.f32 %v4305_v34  ;;  %v4304_v37 = vadd.f32 1.0, %v14465_v36 }
 0x93d   : > { %v14467_v38 = vpop.eup %14466 }
 0x93e   : > { %14480 = vrcp.f32 %v4304_v37  ;;  %v4307_v39 = vadd.f32 1.0, %v14467_v38 }
 0x93f   : > { %v14469_v41 = vpop.eup %14468 }
 0x940   : > { %14482 = vrcp.f32 %v4307_v39  ;;  %v4306_v40 = vadd.f32 1.0, %v14469_v41 }
 0x941   : > { %v14471_v42 = vpop.eup %14470 }
 0x942   : > { %14484 = vrcp.f32 %v4306_v40  ;;  %4334 = vrot.lane.b32.xlu1 %v14471_v42, %s16418_s13 }
 0x943   : > { %v14473_v43 = vpop.eup %14472  ;;  %14486 = vtanh.f32 %v17495_v55 }
 0x944   : > { %4332 = vrot.lane.b32.xlu0 %v14473_v43, %s16418_s13  ;;  %14488 = vtanh.f32 %v17492_v46 }
 0x945   : > { %v14475_v44 = vpop.eup %14474  ;;  %14490 = vtanh.f32 %v17500_v59 }
 0x946   : > { %4338 = vrot.lane.b32.xlu1 %v14475_v44, %s16418_s13  ;;  %14492 = vtanh.f32 %v17498_v22 }
 0x947   : > { %v14477_v49 = vpop.eup %14476  ;;  %14494 = vtanh.f32 %v4264_v16 }
 0x948   : > { %4336 = vrot.lane.b32.xlu0 %v14477_v49, %s16418_s13  ;;  %14496 = vtanh.f32 %v17504_v13 }
 0x949   : > { %v14479_v51 = vpop.eup %14478  ;;  %14498 = vtanh.f32 %v4266_v60  ;;  %v11754_v60 = vld [vmem:[#allocation24] ss:$0 sm:$0xff] }
 0x94a   : > { %4342 = vrot.lane.b32.xlu1 %v14479_v51, %s16418_s13  ;;  %14500 = vtanh.f32 %v4267_v23  ;;  %v4535_v23 = vld [vmem:[#allocation26 + $0x8] sm:$0xff] }
 0x94b   : > { %v14481_v53 = vpop.eup %14480  ;;  %13053 = vmatprep.subr.mxu0 %v4535_v23 }
 0x94c   : > { %4340 = vrot.lane.b32.xlu0 %v14481_v53, %s16418_s13 }
 0x94d   : > { %v14483_v57 = vpop.eup %14482 }
 0x94e   : > { %4346 = vrot.lane.b32.xlu1 %v14483_v57, %s16418_s13  ;;  %v5049_v57 = vld [vmem:[#allocation29 + $0x8] sm:$0xff] }
 0x94f   : > { %v14485_v62 = vpop.eup %14484 }
 0x950   : > { %4344 = vrot.lane.b32.xlu0 %v14485_v62, %s16418_s13  ;;  %v14487_v52 = vpop.eup %14486  ;;  %v5048_v62 = vld [vmem:[#allocation29] sm:$0xff] }
 0x951   : > { %v14489_v0 = vpop.eup %14488 }
 0x952   : > { %v14491_v55 = vpop.eup %14490 }
 0x953   : > { %v14493_v59 = vpop.eup %14492 }
 0x954   : > { %v14495_v61 = vpop.eup %14494 }
 0x955   : > { %v14497_v10 = vpop.eup %14496 }
 0x956   : > { %v14499_v33 = vpop.eup %14498 }
 0x957   : > { %v14501_v16 = vpop.eup %14500 }
 0x9b4   : > { %v4335_v18 = vpop.permute.xlu1 %4334 }
 0x9b5   : > { %v4357_v2 = vmul.f32 %v14489_v0, %v4335_v18 }
 0x9b6   : > { %v4333_v20 = vpop.permute.xlu0 %4332 }
 0x9b7   : > { %v4356_v56 = vmul.f32 %v14487_v52, %v4333_v20 }
 0x9b8   : > { %v4339_v25 = vpop.permute.xlu1 %4338 }
 0x9b9   : > { %13025 = vmatprep.mubr.msk.f32.mxu0 %vm2356_vm0, %v4356_v56  ;;  %v4359_v6 = vmul.f32 %v14493_v59, %v4339_v25 }
 0x9ba   : > { %v4337_v46 = vpop.permute.xlu0 %4336  ;;  %13026 = vmatmul.mubr.msk.f32.vlgmr.msra.gmra.mxu0 %vm2356_vm0, %v4357_v2 }
 0x9bb   : > { %v4358_v22 = vmul.f32 %v14491_v55, %v4337_v46  ;;  %13054 = vmatpush3.msra.mxu0 %v4535_v23 }
 0x9bc   : > { %v4343_v27 = vpop.permute.xlu1 %4342  ;;  %13055 = vmatprep.subr.mxu0 %v4534_v26 }
 0x9bd   : > { %13028 = vmatprep.mubr.msk.f32.mxu0 %vm2356_vm0, %v4358_v22  ;;  %v4361_v29 = vmul.f32 %v14497_v10, %v4343_v27  ;;  %13056 = vmatpush3.msra.mxu0 %v4534_v26  ;;  %v11787_v10 = vld [vmem:[#allocation27] ss:$0 sm:$0xff] }
 0x9be   : > { %v4341_v9 = vpop.permute.xlu0 %4340  ;;  %13029 = vmatmul.mubr.msk.f32.gmra.mxu0 %vm2356_vm0, %v4359_v6  ;;  %13085 = vmatprep.subr.mxu0 %v5049_v57 }
 0x9bf   : > { %v4360_v13 = vmul.f32 %v14495_v61, %v4341_v9 }
 0x9c0   : > { %v4347_v63 = vpop.permute.xlu1 %4346 }
 0x9c1   : > { %13031 = vmatprep.mubr.msk.f32.mxu0 %vm2356_vm0, %v4360_v13  ;;  %v4363_v5 = vmul.f32 %v14501_v16, %v4347_v63 }
 0x9c2   : > { %v4345_v3 = vpop.permute.xlu0 %4344  ;;  %13032 = vmatmul.mubr.msk.f32.gmra.mxu0 %vm2356_vm0, %v4361_v29 }
 0x9c3   : > { %v4362_v35 = vmul.f32 %v14499_v33, %v4345_v3 }
 0x9c5   : > { %13034 = vmatprep.mubr.msk.f32.mxu0 %vm2356_vm0, %v4362_v35 }
 0x9c6   : > { %13035 = vmatmul.mubr.msk.f32.gmra.mxu0 %vm2356_vm0, %v4363_v5 }
 0x9c7   : > { %13057 = vmatprep.mubr.msk.f32.mxu0 %vm2356_vm0, %v17528_v19 }
 0xa7a   : > { %v13027_v50 = vpop.f32.mrf.mxu0 }
 0xa7b   : > { %v4469_v12 = vadd.f32 %v13027_v50, %v11754_v60 }
 0xa7c   : > { %v4463_v7 = vpop.f32.mrf.mxu0 }
 0xa7d   : > { %4511 = vst.msk [vmem:[#allocation2 + $0x10] sm:$0xff] %vm2356_vm0, %v4469_v12  ;;  %v4464_v8 = vadd.f32 %v11754_v60, %v4463_v7  ;;  %v17534_v28 = vadd.f32 %v4469_v12, %v17432_v45 }
 0xa7e   : > { %v13030_v21 = vpop.f32.mrf.mxu0 }
 0xa7f   : > { %4510 = vst.msk [vmem:[#allocation2 + $0x8] sm:$0xff] %vm2356_vm0, %v4464_v8  ;;  %v4479_v30 = vadd.f32 %v13030_v21, %v11754_v60  ;;  %13041 = vmatprep.mubr.msk.f32.mxu1 %vm2356_vm0, %v4464_v8  ;;  %v17539_v24 = vadd.f32 %v4464_v8, %v17437_v58 }
 0xa80   : > { %v4473_v32 = vpop.f32.mrf.mxu0  ;;  %13042 = vmatmul.mubr.msk.f32.vlgmr.msra.gmra.mxu1 %vm2356_vm0, %v4469_v12 }
 0xa81   : > { %4513 = vst.msk [vmem:[#allocation2 + $0x20] sm:$0xff] %vm2356_vm0, %v4479_v30  ;;  %v4474_v34 = vadd.f32 %v11754_v60, %v4473_v32  ;;  %13070 = vmatpush3.msra.mxu1 %v4799_v14  ;;  %v17544_v45 = vadd.f32 %v4479_v30, %v17444_v54 }
 0xa82   : > { %v13033_v36 = vpop.f32.mrf.mxu0  ;;  %13071 = vmatprep.subr.mxu1 %v4798_v31 }
 0xa83   : > { %4512 = vst.msk [vmem:[#allocation2 + $0x18] sm:$0xff] %vm2356_vm0, %v4474_v34  ;;  %v4489_v37 = vadd.f32 %v13033_v36, %v11754_v60  ;;  %13044 = vmatprep.mubr.msk.f32.mxu1 %vm2356_vm0, %v4474_v34  ;;  %13072 = vmatpush3.msra.mxu1 %v4798_v31  ;;  %v17549_v58 = vadd.f32 %v4474_v34, %v17449_v1 }
 0xa84   : > { %v4483_v38 = vpop.f32.mrf.mxu0  ;;  %13045 = vmatmul.mubr.msk.f32.gmra.mxu1 %vm2356_vm0, %v4479_v30  ;;  %v4520_v1 = vld [vmem:[#allocation2 + $0x10] sm:$0xff] }
 0xa85   : > { %4515 = vst.msk [vmem:[#allocation2 + $0x30] sm:$0xff] %vm2356_vm0, %v4489_v37  ;;  %v4484_v39 = vadd.f32 %v11754_v60, %v4483_v38  ;;  %v17554_v54 = vadd.f32 %v4489_v37, %v17456_v4 }
 0xa86   : > { %v13036_v41 = vpop.f32.mrf.mxu0  ;;  %v4519_v40 = vld [vmem:[#allocation2 + $0x8] sm:$0xff] }
 0xa87   : > { %4514 = vst.msk [vmem:[#allocation2 + $0x28] sm:$0xff] %vm2356_vm0, %v4484_v39  ;;  %v4499_v42 = vadd.f32 %v13036_v41, %v11754_v60  ;;  %13047 = vmatprep.mubr.msk.f32.mxu1 %vm2356_vm0, %v4484_v39  ;;  %13058 = vmatmul.mubr.msk.f32.vlgmr.msra.gmra.mxu0 %vm2356_vm0, %v4519_v40  ;;  %v17560_v43 = vadd.f32 %v4484_v39, %v17461_v11 }
 0xa88   : > { %v4493_v44 = vpop.f32.mrf.mxu0  ;;  %13048 = vmatmul.mubr.msk.f32.gmra.mxu1 %vm2356_vm0, %v4489_v37  ;;  %13060 = vmatprep.mubr.msk.f32.mxu0 %vm2356_vm0, %v4520_v1  ;;  %v4522_v11 = vld [vmem:[#allocation2 + $0x20] sm:$0xff] }
 0xa89   : > { %4517 = vst.msk [vmem:[#allocation2 + $0x40] sm:$0xff] %vm2356_vm0, %v4499_v42  ;;  %v4494_v4 = vadd.f32 %v11754_v60, %v4493_v44  ;;  %v17566_v47 = vadd.f32 %v4499_v42, %v17470_v15  ;;  %13086 = vmatpush3.msra.mxu0 %v5049_v57 }
 0xa8a   : > { %v4521_v48 = vld [vmem:[#allocation2 + $0x18] sm:$0xff]  ;;  %13087 = vmatprep.subr.mxu0 %v5048_v62 }
 0xa8b   : > { %4516 = vst.msk [vmem:[#allocation2 + $0x38] sm:$0xff] %vm2356_vm0, %v4494_v4  ;;  %13050 = vmatprep.mubr.msk.f32.mxu1 %vm2356_vm0, %v4494_v4  ;;  %13061 = vmatmul.mubr.msk.f32.gmra.mxu0 %vm2356_vm0, %v4521_v48  ;;  %v17572_v49 = vadd.f32 %v4494_v4, %v17473_v17 }
 0xa8c   : > { %13051 = vmatmul.mubr.msk.f32.gmra.mxu1 %vm2356_vm0, %v4499_v42  ;;  %13063 = vmatprep.mubr.msk.f32.mxu0 %vm2356_vm0, %v4522_v11  ;;  %v4524_v15 = vld [vmem:[#allocation2 + $0x30] sm:$0xff] }
 0xa8d   : > { %13073 = vmatprep.mubr.msk.f32.mxu1 %vm2356_vm0, %v4520_v1  ;;  %13088 = vmatpush3.msra.mxu0 %v5048_v62 }
 0xa8e   : > { %v4523_v51 = vld [vmem:[#allocation2 + $0x28] sm:$0xff] }
 0xa8f   : > { %13064 = vmatmul.mubr.msk.f32.gmra.mxu0 %vm2356_vm0, %v4523_v51 }
 0xa90   : > { %13066 = vmatprep.mubr.msk.f32.mxu0 %vm2356_vm0, %v4524_v15  ;;  %13074 = vmatmul.mubr.msk.f32.vlgmr.msra.gmra.mxu1 %vm2356_vm0, %v4521_v48  ;;  %v4532_v17 = vld [vmem:[#allocation2 + $0x40] sm:$0xff] }
 0xa91   : > { %13076 = vmatprep.mubr.msk.f32.mxu1 %vm2356_vm0, %v4522_v11 }
 0xa92   : > { %v4525_v53 = vld [vmem:[#allocation2 + $0x38] sm:$0xff] }
 0xa93   : > { %13067 = vmatmul.mubr.msk.f32.gmra.mxu0 %vm2356_vm0, %v4525_v53 }
 0xa94   : > { %13077 = vmatmul.mubr.msk.f32.gmra.mxu1 %vm2356_vm0, %v4523_v51 }
 0xa95   : > { %13079 = vmatprep.mubr.msk.f32.mxu1 %vm2356_vm0, %v4524_v15 }
 0xa98   : > { %13080 = vmatmul.mubr.msk.f32.gmra.mxu1 %vm2356_vm0, %v4525_v53 }
 0xa99   : > { %13082 = vmatprep.mubr.msk.f32.mxu1 %vm2356_vm0, %v4532_v17 }
 0xa9c   : > { %13083 = vmatmul.mubr.msk.f32.gmra.mxu1 %vm2356_vm0, %v17528_v19 }
 0xb40   : > { %v13043_v18 = vpop.f32.mrf.mxu1 }
 0xb42   : > { %v4629_v52 = vpop.f32.mrf.mxu1 }
 0xb44   : > { %v13046_v20 = vpop.f32.mrf.mxu1 }
 0xb46   : > { %v4639_v0 = vpop.f32.mrf.mxu1 }
 0xb47   : > { %v13059_v56 = vpop.f32.mrf.mxu0 }
 0xb48   : > { %v13049_v2 = vpop.f32.mrf.mxu1  ;;  %v4764_v27 = vadd.f32 %v13059_v56, %v13043_v18 }
 0xb49   : > { %v4758_v25 = vpop.f32.mrf.mxu0 }
 0xb4a   : > { %v4649_v55 = vpop.f32.mrf.mxu1  ;;  %v4759_v13 = vadd.f32 %v4758_v25, %v4629_v52 }
 0xb4b   : > { %v13062_v46 = vpop.f32.mrf.mxu0 }
 0xb4c   : > { %v13052_v59 = vpop.f32.mrf.mxu1  ;;  %v4774_v3 = vadd.f32 %v13062_v46, %v13046_v20 }
 0xb4d   : > { %v4768_v22 = vpop.f32.mrf.mxu0 }
 0xb4e   : > { %v4659_v6 = vpop.f32.mrf.mxu1  ;;  %v4769_v19 = vadd.f32 %v4768_v22, %v4639_v0 }
 0xb4f   : > { %v13065_v61 = vpop.f32.mrf.mxu0 }
 0xb50   : > { %v13075_v9 = vpop.f32.mrf.mxu1  ;;  %v4784_v50 = vadd.f32 %v13065_v61, %v13049_v2 }
 0xb51   : > { %v4930_v29 = vadd.f32 %v13075_v9, %v4764_v27  ;;  %v4778_v63 = vpop.f32.mrf.mxu0 }
 0xb52   : > { %v4890_v33 = vpop.f32.mrf.mxu1  ;;  %v4779_v30 = vadd.f32 %v4778_v63, %v4649_v55 }
 0xb53   : > { %v17588_v16 = vadd.f32 %v11787_v10, %v4930_v29  ;;  %v4929_v35 = vadd.f32 %v4890_v33, %v4759_v13  ;;  %v13068_v26 = vpop.f32.mrf.mxu0 }
 0xb54   : > { %v13078_v5 = vpop.f32.mrf.mxu1  ;;  %v4794_v38 = vadd.f32 %v13068_v26, %v13052_v59 }
 0xb55   : > { %v11789_v23 = vmul.f32 -1.442695, %v17588_v16  ;;  %v17591_v14 = vadd.f32 %v11787_v10, %v4929_v35  ;;  %v4932_v60 = vadd.f32 %v13078_v5, %v4774_v3  ;;  %v4788_v34 = vpop.f32.mrf.mxu0  ;;  %v5203_v3 = vld [vmem:[#allocation32 + $0x8] sm:$0xff]  ;;  %v5202_v35 = vld [vmem:[#allocation32] sm:$0xff] }
 0xb56   : > { %v4900_v12 = vpop.f32.mrf.mxu1  ;;  %v4789_v1 = vadd.f32 %v4788_v34, %v4659_v6  ;;  %13101 = vmatprep.subr.mxu1 %v5203_v3 }
 0xb57   : > { %14502 = vpow2.f32 %v11789_v23  ;;  %v11788_v7 = vmul.f32 -1.442695, %v17591_v14  ;;  %v17594_v8 = vadd.f32 %v11787_v10, %v4932_v60  ;;  %v4931_v21 = vadd.f32 %v4900_v12, %v4769_v19  ;;  %13102 = vmatpush3.msra.mxu1 %v5203_v3  ;;  %v5367_v3 = vld [vmem:[#allocation35 + $0x10] sm:$0xff] }
 0xb58   : > { %v13081_v31 = vpop.f32.mrf.mxu1  ;;  %13103 = vmatprep.subr.mxu1 %v5202_v35 }
 0xb59   : > { %14504 = vpow2.f32 %v11788_v7  ;;  %v11791_v32 = vmul.f32 -1.442695, %v17594_v8  ;;  %v17597_v36 = vadd.f32 %v11787_v10, %v4931_v21  ;;  %v4934_v37 = vadd.f32 %v13081_v31, %v4784_v50  ;;  %13104 = vmatpush3.msra.mxu1 %v5202_v35  ;;  %v5365_v35 = vld [vmem:[#allocation35] sm:$0xff] }
 0xb5a   : > { %v4910_v39 = vpop.f32.mrf.mxu1 }
 0xb5b   : > { %14506 = vpow2.f32 %v11791_v32  ;;  %v11790_v41 = vmul.f32 -1.442695, %v17597_v36  ;;  %v17600_v40 = vadd.f32 %v11787_v10, %v4934_v37  ;;  %v4933_v42 = vadd.f32 %v4910_v39, %v4779_v30 }
 0xb5c   : > { %v13084_v44 = vpop.f32.mrf.mxu1 }
 0xb5d   : > { %14508 = vpow2.f32 %v11790_v41  ;;  %v11793_v4 = vmul.f32 -1.442695, %v17600_v40  ;;  %v4948_v48 = vadd.f32 %v11787_v10, %v4933_v42  ;;  %v4936_v11 = vadd.f32 %v13084_v44, %v4794_v38 }
 0xb5e   : > { %v4920_v51 = vpop.f32.mrf.mxu1 }
 0xb5f   : > { %14510 = vpow2.f32 %v11793_v4  ;;  %v11792_v15 = vmul.f32 -1.442695, %v4948_v48  ;;  %v4951_v53 = vadd.f32 %v11787_v10, %v4936_v11  ;;  %v4935_v17 = vadd.f32 %v4920_v51, %v4789_v1 }
 0xb61   : > { %14512 = vpow2.f32 %v11792_v15  ;;  %v11795_v57 = vmul.f32 -1.442695, %v4951_v53  ;;  %v4950_v62 = vadd.f32 %v11787_v10, %v4935_v17  ;;  %v5373_v15 = vld [vmem:[#allocation35 + $0x38] sm:$0xff]  ;;  %v5371_v17 = vld [vmem:[#allocation35 + $0x28] sm:$0xff] }
 0xb62   : > { %13117 = vmatprep.subr.mxu0 %v5373_v15 }
 0xb63   : > { %14514 = vpow2.f32 %v11795_v57  ;;  %v11794_v18 = vmul.f32 -1.442695, %v4950_v62  ;;  %v11796_v57 = vld [vmem:[#allocation30] ss:$0 sm:$0xff] }
 0xb64   : > { %v14503_v52 = vpop.eup %14502 }
 0xb65   : > { %v4985_v20 = vadd.f32 1.0, %v14503_v52  ;;  %14516 = vpow2.f32 %v11794_v18 }
 0xb66   : > { %v14505_v0 = vpop.eup %14504 }
 0xb67   : > { %14518 = vrcp.f32 %v4985_v20  ;;  %v4984_v56 = vadd.f32 1.0, %v14505_v0 }
 0xb68   : > { %v14507_v2 = vpop.eup %14506 }
 0xb69   : > { %14520 = vrcp.f32 %v4984_v56  ;;  %v4987_v25 = vadd.f32 1.0, %v14507_v2 }
 0xb6a   : > { %v14509_v55 = vpop.eup %14508 }
 0xb6b   : > { %14522 = vrcp.f32 %v4987_v25  ;;  %v4986_v46 = vadd.f32 1.0, %v14509_v55 }
 0xb6c   : > { %v14511_v59 = vpop.eup %14510 }
 0xb6d   : > { %14524 = vrcp.f32 %v4986_v46  ;;  %v4989_v22 = vadd.f32 1.0, %v14511_v59 }
 0xb6e   : > { %v14513_v6 = vpop.eup %14512 }
 0xb6f   : > { %14526 = vrcp.f32 %v4989_v22  ;;  %v4988_v27 = vadd.f32 1.0, %v14513_v6 }
 0xb70   : > { %v14515_v61 = vpop.eup %14514 }
 0xb71   : > { %14528 = vrcp.f32 %v4988_v27  ;;  %v4991_v9 = vadd.f32 1.0, %v14515_v61 }
 0xb72   : > { %v14517_v10 = vpop.eup %14516 }
 0xb73   : > { %14530 = vrcp.f32 %v4991_v9  ;;  %v4990_v13 = vadd.f32 1.0, %v14517_v10 }
 0xb74   : > { %v14519_v29 = vpop.eup %14518 }
 0xb75   : > { %14532 = vrcp.f32 %v4990_v13  ;;  %5018 = vrot.lane.b32.xlu1 %v14519_v29, %s16418_s13 }
 0xb76   : > { %v14521_v63 = vpop.eup %14520  ;;  %14534 = vtanh.f32 %v17591_v14 }
 0xb77   : > { %5016 = vrot.lane.b32.xlu0 %v14521_v63, %s16418_s13  ;;  %14536 = vtanh.f32 %v17588_v16 }
 0xb78   : > { %v14523_v33 = vpop.eup %14522  ;;  %14538 = vtanh.f32 %v17597_v36 }
 0xb79   : > { %5022 = vrot.lane.b32.xlu1 %v14523_v33, %s16418_s13  ;;  %14540 = vtanh.f32 %v17594_v8  ;;  %v5636_v33 = vld [vmem:[#allocation35 + $0x58] sm:$0xff] }
 0xb7a   : > { %v14525_v5 = vpop.eup %14524  ;;  %14542 = vtanh.f32 %v4948_v48 }
 0xb7b   : > { %5020 = vrot.lane.b32.xlu0 %v14525_v5, %s16418_s13  ;;  %14544 = vtanh.f32 %v17600_v40 }
 0xb7c   : > { %v14527_v19 = vpop.eup %14526  ;;  %14546 = vtanh.f32 %v4950_v62 }
 0xb7d   : > { %5026 = vrot.lane.b32.xlu1 %v14527_v19, %s16418_s13  ;;  %14548 = vtanh.f32 %v4951_v53  ;;  %v5372_v53 = vld [vmem:[#allocation35 + $0x30] sm:$0xff] }
 0xb7e   : > { %v14529_v23 = vpop.eup %14528 }
 0xb7f   : > { %5024 = vrot.lane.b32.xlu0 %v14529_v23, %s16418_s13 }
 0xb80   : > { %v14531_v26 = vpop.eup %14530 }
 0xb81   : > { %5030 = vrot.lane.b32.xlu1 %v14531_v26, %s16418_s13 }
 0xb82   : > { %v14533_v60 = vpop.eup %14532 }
 0xb83   : > { %5028 = vrot.lane.b32.xlu0 %v14533_v60, %s16418_s13  ;;  %v14535_v12 = vpop.eup %14534  ;;  %s16422_s13 = smov [#allocation83]  }
 0xb84   : > { %v14537_v21 = vpop.eup %14536 }
 0xb85   : > { %v14539_v14 = vpop.eup %14538 }
 0xb86   : > { %v14541_v34 = vpop.eup %14540 }
 0xb87   : > { %v14543_v38 = vpop.eup %14542 }
 0xb88   : > { %v14545_v41 = vpop.eup %14544 }
 0xb89   : > { %v14547_v44 = vpop.eup %14546 }
 0xb8a   : > { %v14549_v48 = vpop.eup %14548 }
 0xbe7   : > { %v5019_v50 = vpop.permute.xlu1 %5018 }
 0xbe8   : > { %v5041_v31 = vmul.f32 %v14537_v21, %v5019_v50 }
 0xbe9   : > { %v5017_v7 = vpop.permute.xlu0 %5016 }
 0xbea   : > { %v5040_v30 = vmul.f32 %v14535_v12, %v5017_v7  ;;  %v5635_v12 = vld [vmem:[#allocation35 + $0x50] sm:$0xff] }
 0xbeb   : > { %v5023_v32 = vpop.permute.xlu1 %5022 }
 0xbec   : > { %13089 = vmatprep.mubr.msk.f32.mxu0 %vm2356_vm0, %v5040_v30  ;;  %v5043_v36 = vmul.f32 %v14541_v34, %v5023_v32  ;;  %v5634_v30 = vld [vmem:[#allocation35 + $0x48] sm:$0xff] }
 0xbed   : > { %v5021_v16 = vpop.permute.xlu0 %5020  ;;  %13090 = vmatmul.mubr.msk.f32.vlgmr.msra.gmra.mxu0 %vm2356_vm0, %v5041_v31 }
 0xbee   : > { %v5042_v8 = vmul.f32 %v14539_v14, %v5021_v16  ;;  %13118 = vmatpush3.msra.mxu0 %v5373_v15  ;;  %v5633_v14 = vld [vmem:[#allocation35 + $0x40] sm:$0xff] }
 0xbef   : > { %v5027_v37 = vpop.permute.xlu1 %5026  ;;  %13119 = vmatprep.subr.mxu0 %v5372_v53 }
 0xbf0   : > { %13092 = vmatprep.mubr.msk.f32.mxu0 %vm2356_vm0, %v5042_v8  ;;  %v5045_v42 = vmul.f32 %v14545_v41, %v5027_v37  ;;  %13120 = vmatpush3.msra.mxu0 %v5372_v53 }
 0xbf1   : > { %v5025_v39 = vpop.permute.xlu0 %5024  ;;  %13093 = vmatmul.mubr.msk.f32.gmra.mxu0 %vm2356_vm0, %v5043_v36  ;;  %13121 = vmatprep.subr.mxu0 %v5371_v17 }
 0xbf2   : > { %v5044_v40 = vmul.f32 %v14543_v38, %v5025_v39  ;;  %13122 = vmatpush3.msra.mxu0 %v5371_v17 }
 0xbf3   : > { %v5031_v1 = vpop.permute.xlu1 %5030 }
 0xbf4   : > { %13095 = vmatprep.mubr.msk.f32.mxu0 %vm2356_vm0, %v5044_v40  ;;  %v5047_v51 = vmul.f32 %v14549_v48, %v5031_v1 }
 0xbf5   : > { %v5029_v4 = vpop.permute.xlu0 %5028  ;;  %13096 = vmatmul.mubr.msk.f32.gmra.mxu0 %vm2356_vm0, %v5045_v42 }
 0xbf6   : > { %v5046_v11 = vmul.f32 %v14547_v44, %v5029_v4 }
 0xbf8   : > { %13098 = vmatprep.mubr.msk.f32.mxu0 %vm2356_vm0, %v5046_v11 }
 0xbf9   : > { %13099 = vmatmul.mubr.msk.f32.gmra.mxu0 %vm2356_vm0, %v5047_v51 }
 0xcad   : > { %v13091_v62 = vpop.f32.mrf.mxu0 }
 0xcae   : > { %v5153_v18 = vadd.f32 %v13091_v62, %v11796_v57 }
 0xcaf   : > { %v5147_v52 = vpop.f32.mrf.mxu0 }
 0xcb0   : > { %5195 = vst.msk [vmem:[#allocation2 + $0x10] sm:$0xff] %vm2356_vm0, %v5153_v18  ;;  %v5148_v20 = vadd.f32 %v11796_v57, %v5147_v52  ;;  %v5187_v25 = vadd.f32 %v5153_v18, %v17534_v28  ;;  %v5888_v52 = vld [vmem:[#allocation38 + $0x18] sm:$0xff] }
 0xcb1   : > { %v13094_v0 = vpop.f32.mrf.mxu0 }
 0xcb2   : > { %v5186_v56 = vadd.f32 %v5148_v20, %v17539_v24  ;;  %5194 = vst.msk [vmem:[#allocation2 + $0x8] sm:$0xff] %vm2356_vm0, %v5148_v20  ;;  %v5163_v2 = vadd.f32 %v13094_v0, %v11796_v57  ;;  %v5887_v20 = vld [vmem:[#allocation38 + $0x10] sm:$0xff]  ;;  %v5886_v0 = vld [vmem:[#allocation38 + $0x8] sm:$0xff] }
 0xcb3   : > { %v5157_v55 = vpop.f32.mrf.mxu0 }
 0xcb4   : > { %5197 = vst.msk [vmem:[#allocation2 + $0x20] sm:$0xff] %vm2356_vm0, %v5163_v2  ;;  %v5158_v46 = vadd.f32 %v11796_v57, %v5157_v55  ;;  %13105 = vmatprep.mubr.msk.f32.mxu1 %vm2356_vm0, %v5186_v56  ;;  %v5189_v24 = vadd.f32 %v5163_v2, %v17544_v45 }
 0xcb5   : > { %v13097_v59 = vpop.f32.mrf.mxu0  ;;  %13106 = vmatmul.mubr.msk.f32.vlgmr.msra.gmra.mxu1 %vm2356_vm0, %v5187_v25 }
 0xcb6   : > { %v5188_v22 = vadd.f32 %v5158_v46, %v17549_v58  ;;  %5196 = vst.msk [vmem:[#allocation2 + $0x18] sm:$0xff] %vm2356_vm0, %v5158_v46  ;;  %v5173_v6 = vadd.f32 %v13097_v59, %v11796_v57 }
 0xcb7   : > { %v5167_v27 = vpop.f32.mrf.mxu0 }
 0xcb8   : > { %5199 = vst.msk [vmem:[#allocation2 + $0x30] sm:$0xff] %vm2356_vm0, %v5173_v6  ;;  %v5168_v28 = vadd.f32 %v11796_v57, %v5167_v27  ;;  %13108 = vmatprep.mubr.msk.f32.mxu1 %vm2356_vm0, %v5188_v22  ;;  %v5191_v58 = vadd.f32 %v5173_v6, %v17554_v54  ;;  %v5368_v54 = vld [vmem:[#allocation35 + $0x18] sm:$0xff] }
 0xcb9   : > { %v13100_v61 = vpop.f32.mrf.mxu0  ;;  %13109 = vmatmul.mubr.msk.f32.gmra.mxu1 %vm2356_vm0, %v5189_v24  ;;  %13137 = vmatprep.subr.mxu1 %v5368_v54 }
 0xcba   : > { %v5190_v9 = vadd.f32 %v5168_v28, %v17560_v43  ;;  %5198 = vst.msk [vmem:[#allocation2 + $0x28] sm:$0xff] %vm2356_vm0, %v5168_v28  ;;  %v5183_v10 = vadd.f32 %v13100_v61, %v11796_v57  ;;  %v5370_v43 = vld [vmem:[#allocation35 + $0x20] sm:$0xff]  ;;  %13138 = vmatpush3.msra.mxu1 %v5368_v54 }
 0xcbb   : > { %v5177_v13 = vpop.f32.mrf.mxu0  ;;  %13123 = vmatprep.subr.mxu0 %v5370_v43  ;;  %13139 = vmatprep.subr.mxu1 %v5367_v3 }
 0xcbc   : > { %5201 = vst.msk [vmem:[#allocation2 + $0x40] sm:$0xff] %vm2356_vm0, %v5183_v10  ;;  %v5178_v45 = vadd.f32 %v11796_v57, %v5177_v13  ;;  %13111 = vmatprep.mubr.msk.f32.mxu1 %vm2356_vm0, %v5190_v9  ;;  %v5193_v63 = vadd.f32 %v5183_v10, %v17566_v47  ;;  %13124 = vmatpush3.msra.mxu0 %v5370_v43  ;;  %v11805_v47 = vld [vmem:[#allocation33] ss:$0 sm:$0xff]  ;;  %v11838_v13 = vld [vmem:[#allocation36] ss:$0 sm:$0xff] }
 0xcbd   : > { %13112 = vmatmul.mubr.msk.f32.gmra.mxu1 %vm2356_vm0, %v5191_v58  ;;  %13157 = vmatprep.subr.mxu0 %v5636_v33 }
 0xcbe   : > { %v5192_v29 = vadd.f32 %v5178_v45, %v17572_v49  ;;  %5200 = vst.msk [vmem:[#allocation2 + $0x38] sm:$0xff] %vm2356_vm0, %v5178_v45  ;;  %13140 = vmatpush3.msra.mxu1 %v5367_v3  ;;  %v5366_v49 = vld [vmem:[#allocation35 + $0x8] sm:$0xff] }
 0xcbf   : > { %13141 = vmatprep.subr.mxu1 %v5366_v49 }
 0xcc0   : > { %13114 = vmatprep.mubr.msk.f32.mxu1 %vm2356_vm0, %v5192_v29  ;;  %13142 = vmatpush3.msra.mxu1 %v5366_v49 }
 0xcc1   : > { %13115 = vmatmul.mubr.msk.f32.gmra.mxu1 %vm2356_vm0, %v5193_v63  ;;  %13143 = vmatprep.subr.mxu1 %v5365_v35 }
 0xcc2   : > { %13144 = vmatpush3.msra.mxu1 %v5365_v35 }
 0xcc3   : > { %13177 = vmatprep.subr.mxu1 %v5888_v52 }
 0xd75   : > { %v13107_v5 = vpop.f32.mrf.mxu1 }
 0xd76   : > { %v17648_v19 = vadd.f32 %v13107_v5, %v11805_v47 }
 0xd77   : > { %v5301_v23 = vpop.f32.mrf.mxu1 }
 0xd78   : > { %5342 = vst.msk [vmem:[#allocation2 + $0x10] sm:$0xff] %vm5340_vm1, %v17648_v19  ;;  %v17652_v26 = vadd.f32 %v11805_v47, %v5301_v23 }
 0xd79   : > { %v13110_v60 = vpop.f32.mrf.mxu1 }
 0xd7a   : > { %5341 = vst.msk [vmem:[#allocation2 + $0x8] sm:$0xff] %vm5340_vm1, %v17652_v26  ;;  %v17656_v50 = vadd.f32 %v13110_v60, %v11805_v47  ;;  %13125 = vmatprep.mubr.msk.f32.mxu0 %vm5340_vm1, %v17652_v26 }
 0xd7b   : > { %v5311_v7 = vpop.f32.mrf.mxu1  ;;  %13126 = vmatmul.mubr.msk.f32.vlgmr.msra.gmra.mxu0 %vm5340_vm1, %v17648_v19 }
 0xd7c   : > { %5344 = vst.msk [vmem:[#allocation2 + $0x20] sm:$0xff] %vm5340_vm1, %v17656_v50  ;;  %v17664_v21 = vadd.f32 %v11805_v47, %v5311_v7  ;;  %13158 = vmatpush3.msra.mxu0 %v5636_v33 }
 0xd7d   : > { %v13113_v31 = vpop.f32.mrf.mxu1  ;;  %13159 = vmatprep.subr.mxu0 %v5635_v12 }
 0xd7e   : > { %5343 = vst.msk [vmem:[#allocation2 + $0x18] sm:$0xff] %vm5340_vm1, %v17664_v21  ;;  %v17668_v32 = vadd.f32 %v13113_v31, %v11805_v47  ;;  %13128 = vmatprep.mubr.msk.f32.mxu0 %vm5340_vm1, %v17664_v21  ;;  %13160 = vmatpush3.msra.mxu0 %v5635_v12 }
 0xd7f   : > { %v5321_v16 = vpop.f32.mrf.mxu1  ;;  %13129 = vmatmul.mubr.msk.f32.gmra.mxu0 %vm5340_vm1, %v17656_v50  ;;  %13161 = vmatprep.subr.mxu0 %v5634_v30 }
 0xd80   : > { %5346 = vst.msk [vmem:[#allocation2 + $0x30] sm:$0xff] %vm5340_vm1, %v17668_v32  ;;  %v17676_v34 = vadd.f32 %v11805_v47, %v5321_v16  ;;  %13162 = vmatpush3.msra.mxu0 %v5634_v30 }
 0xd81   : > { %v13116_v8 = vpop.f32.mrf.mxu1  ;;  %v5349_v36 = vld [vmem:[#allocation2 + $0x7] sm:$0xff]  ;;  %v5350_v37 = vld [vmem:[#allocation2 + $0xf] sm:$0xff]  ;;  %13163 = vmatprep.subr.mxu0 %v5633_v14 }
 0xd82   : > { %5345 = vst.msk [vmem:[#allocation2 + $0x28] sm:$0xff] %vm5340_vm1, %v17676_v34  ;;  %v17680_v38 = vadd.f32 %v13116_v8, %v11805_v47  ;;  %13131 = vmatprep.mubr.msk.f32.mxu0 %vm5340_vm1, %v17676_v34  ;;  %13145 = vmatprep.mubr.msk.f32.mxu1 %vm5340_vm1, %v5349_v36  ;;  %v5357_v1 = vld [vmem:[#allocation2 + $0x9] sm:$0xff] }
 0xd83   : > { %v5331_v39 = vpop.f32.mrf.mxu1  ;;  %13132 = vmatmul.mubr.msk.f32.gmra.mxu0 %vm5340_vm1, %v17668_v32  ;;  %13146 = vmatmul.mubr.msk.f32.vlgmr.msra.gmra.mxu1 %vm5340_vm1, %v5350_v37 }
 0xd84   : > { %5348 = vst.msk [vmem:[#allocation2 + $0x40] sm:$0xff] %vm5340_vm1, %v17680_v38  ;;  %v17690_v41 = vadd.f32 %v11805_v47, %v5331_v39  ;;  %13164 = vmatpush3.msra.mxu0 %v5633_v14  ;;  %13178 = vmatpush3.msra.mxu1 %v5888_v52 }
 0xd85   : > { %v5351_v40 = vld [vmem:[#allocation2 + $0x17] sm:$0xff]  ;;  %v5352_v42 = vld [vmem:[#allocation2 + $0x1f] sm:$0xff]  ;;  %13179 = vmatprep.subr.mxu1 %v5887_v20 }
 0xd86   : > { %5347 = vst.msk [vmem:[#allocation2 + $0x38] sm:$0xff] %vm5340_vm1, %v17690_v41  ;;  %13134 = vmatprep.mubr.msk.f32.mxu0 %vm5340_vm1, %v17690_v41  ;;  %13148 = vmatprep.mubr.msk.f32.mxu1 %vm5340_vm1, %v5351_v40  ;;  %v5358_v48 = vld [vmem:[#allocation2 + $0x11] sm:$0xff]  ;;  %v5359_v11 = vld [vmem:[#allocation2 + $0x19] sm:$0xff] }
 0xd87   : > { %13135 = vmatmul.mubr.msk.f32.gmra.mxu0 %vm5340_vm1, %v17680_v38  ;;  %13149 = vmatmul.mubr.msk.f32.gmra.mxu1 %vm5340_vm1, %v5352_v42 }
 0xd88   : > { %13165 = vmatprep.mubr.msk.f32.mxu0 %vm5340_vm1, %v5357_v1  ;;  %13180 = vmatpush3.msra.mxu1 %v5887_v20 }
 0xd89   : > { %v5353_v44 = vld [vmem:[#allocation2 + $0x27] sm:$0xff]  ;;  %v5354_v4 = vld [vmem:[#allocation2 + $0x2f] sm:$0xff]  ;;  %13181 = vmatprep.subr.mxu1 %v5886_v0 }
 0xd8a   : > { %13151 = vmatprep.mubr.msk.f32.mxu1 %vm5340_vm1, %v5353_v44  ;;  %v5360_v53 = vld [vmem:[#allocation2 + $0x21] sm:$0xff]  ;;  %v5361_v17 = vld [vmem:[#allocation2 + $0x29] sm:$0xff]  ;;  %13182 = vmatpush3.msra.mxu1 %v5886_v0 }
 0xd8b   : > { %13152 = vmatmul.mubr.msk.f32.gmra.mxu1 %vm5340_vm1, %v5354_v4  ;;  %13166 = vmatmul.mubr.msk.f32.vlgmr.msra.gmra.mxu0 %vm5340_vm1, %v5358_v48  ;;  %v5364_v18 = vld [vmem:[#allocation2 + $0x41] sm:$0xff] }
 0xd8c   : > { %13168 = vmatprep.mubr.msk.f32.mxu0 %vm5340_vm1, %v5359_v11 }
 0xd8d   : > { %v5355_v51 = vld [vmem:[#allocation2 + $0x37] sm:$0xff]  ;;  %v5356_v15 = vld [vmem:[#allocation2 + $0x3f] sm:$0xff] }
 0xd8e   : > { %13154 = vmatprep.mubr.msk.f32.mxu1 %vm5340_vm1, %v5355_v51  ;;  %v5362_v57 = vld [vmem:[#allocation2 + $0x31] sm:$0xff]  ;;  %v5363_v62 = vld [vmem:[#allocation2 + $0x39] sm:$0xff] }
 0xd8f   : > { %13155 = vmatmul.mubr.msk.f32.gmra.mxu1 %vm5340_vm1, %v5356_v15  ;;  %13169 = vmatmul.mubr.msk.f32.gmra.mxu0 %vm5340_vm1, %v5360_v53 }
 0xd90   : > { %13171 = vmatprep.mubr.msk.f32.mxu0 %vm5340_vm1, %v5361_v17 }
 0xd93   : > { %13172 = vmatmul.mubr.msk.f32.gmra.mxu0 %vm5340_vm1, %v5362_v57 }
 0xd94   : > { %13174 = vmatprep.mubr.msk.f32.mxu0 %vm5340_vm1, %v5363_v62 }
 0xd97   : > { %13175 = vmatmul.mubr.msk.f32.gmra.mxu0 %vm5340_vm1, %v5364_v18 }
 0xe3b   : > { %v13127_v56 = vpop.f32.mrf.mxu0 }
 0xe3d   : > { %v5464_v2 = vpop.f32.mrf.mxu0 }
 0xe3f   : > { %v13130_v25 = vpop.f32.mrf.mxu0 }
 0xe41   : > { %v5474_v55 = vpop.f32.mrf.mxu0 }
 0xe43   : > { %v13133_v46 = vpop.f32.mrf.mxu0  ;;  %v13147_v59 = vpop.f32.mrf.mxu1 }
 0xe44   : > { %v5599_v9 = vadd.f32 %v13147_v59, %v13127_v56  ;;  %v5885_v59 = vld [vmem:[#allocation38] sm:$0xff] }
 0xe45   : > { %v5484_v22 = vpop.f32.mrf.mxu0  ;;  %v5593_v6 = vpop.f32.mrf.mxu1  ;;  %13183 = vmatprep.subr.mxu1 %v5885_v59 }
 0xe46   : > { %v5594_v45 = vadd.f32 %v5593_v6, %v5464_v2  ;;  %13184 = vmatpush3.msra.mxu1 %v5885_v59 }
 0xe47   : > { %v13136_v24 = vpop.f32.mrf.mxu0  ;;  %v13150_v27 = vpop.f32.mrf.mxu1 }
 0xe48   : > { %v5609_v3 = vadd.f32 %v13150_v27, %v13130_v25 }
 0xe49   : > { %v5494_v28 = vpop.f32.mrf.mxu0  ;;  %v5603_v61 = vpop.f32.mrf.mxu1 }
 0xe4a   : > { %v5604_v35 = vadd.f32 %v5603_v61, %v5474_v55 }
 0xe4b   : > { %v13153_v10 = vpop.f32.mrf.mxu1  ;;  %v13167_v58 = vpop.f32.mrf.mxu0 }
 0xe4c   : > { %v5767_v29 = vadd.f32 %v13167_v58, %v5599_v9  ;;  %v5619_v7 = vadd.f32 %v13153_v10, %v13133_v46 }
 0xe4d   : > { %v5613_v63 = vpop.f32.mrf.mxu1  ;;  %v5727_v43 = vpop.f32.mrf.mxu0 }
 0xe4e   : > { %v17712_v54 = vadd.f32 %v11838_v13, %v5767_v29  ;;  %v5766_v33 = vadd.f32 %v5727_v43, %v5594_v45  ;;  %v5614_v8 = vadd.f32 %v5613_v63, %v5484_v22 }
 0xe4f   : > { %v13170_v49 = vpop.f32.mrf.mxu0  ;;  %v13156_v23 = vpop.f32.mrf.mxu1 }
 0xe50   : > { %v11840_v47 = vmul.f32 -1.442695, %v17712_v54  ;;  %v17715_v5 = vadd.f32 %v11838_v13, %v5766_v33  ;;  %v5769_v60 = vadd.f32 %v13170_v49, %v5609_v3  ;;  %v5629_v1 = vadd.f32 %v13156_v23, %v13136_v24  ;;  %v6065_v3 = vld [vmem:[#allocation41 + $0x38] sm:$0xff]  ;;  %v6064_v49 = vld [vmem:[#allocation41 + $0x30] sm:$0xff] }
 0xe51   : > { %v5737_v12 = vpop.f32.mrf.mxu0  ;;  %v5623_v36 = vpop.f32.mrf.mxu1  ;;  %13197 = vmatprep.subr.mxu0 %v6065_v3 }
 0xe52   : > { %14550 = vpow2.f32 %v11840_v47  ;;  %v11839_v30 = vmul.f32 -1.442695, %v17715_v5  ;;  %v5768_v31 = vadd.f32 %v5737_v12, %v5604_v35  ;;  %v17718_v14 = vadd.f32 %v11838_v13, %v5769_v60  ;;  %13198 = vmatpush3.msra.mxu0 %v6065_v3  ;;  %v6063_v47 = vld [vmem:[#allocation41 + $0x28] sm:$0xff] }
 0xe53   : > { %v13173_v16 = vpop.f32.mrf.mxu0  ;;  %v5624_v11 = vadd.f32 %v5623_v36, %v5494_v28  ;;  %13199 = vmatprep.subr.mxu0 %v6064_v49 }
 0xe54   : > { %14552 = vpow2.f32 %v11839_v30  ;;  %v17720_v37 = vadd.f32 %v11838_v13, %v5768_v31  ;;  %v5771_v39 = vadd.f32 %v13173_v16, %v5619_v7  ;;  %v11842_v40 = vmul.f32 -1.442695, %v17718_v14  ;;  %13200 = vmatpush3.msra.mxu0 %v6064_v49 }
 0xe55   : > { %v5747_v42 = vpop.f32.mrf.mxu0  ;;  %13201 = vmatprep.subr.mxu0 %v6063_v47 }
 0xe56   : > { %v11841_v44 = vmul.f32 -1.442695, %v17720_v37  ;;  %v17724_v4 = vadd.f32 %v11838_v13, %v5771_v39  ;;  %v5770_v48 = vadd.f32 %v5747_v42, %v5614_v8  ;;  %14554 = vpow2.f32 %v11842_v40  ;;  %13202 = vmatpush3.msra.mxu0 %v6063_v47 }
 0xe57   : > { %v13176_v51 = vpop.f32.mrf.mxu0 }
 0xe58   : > { %14556 = vpow2.f32 %v11841_v44  ;;  %v11844_v15 = vmul.f32 -1.442695, %v17724_v4  ;;  %v17727_v53 = vadd.f32 %v11838_v13, %v5770_v48  ;;  %v5773_v17 = vadd.f32 %v13176_v51, %v5629_v1 }
 0xe59   : > { %v5757_v57 = vpop.f32.mrf.mxu0 }
 0xe5a   : > { %14558 = vpow2.f32 %v11844_v15  ;;  %v11843_v62 = vmul.f32 -1.442695, %v17727_v53  ;;  %v17730_v18 = vadd.f32 %v11838_v13, %v5773_v17  ;;  %v5772_v52 = vadd.f32 %v5757_v57, %v5624_v11 }
 0xe5c   : > { %14560 = vpow2.f32 %v11843_v62  ;;  %v11846_v20 = vmul.f32 -1.442695, %v17730_v18  ;;  %v17733_v0 = vadd.f32 %v11838_v13, %v5772_v52  ;;  %v6062_v52 = vld [vmem:[#allocation41 + $0x20] sm:$0xff] }
 0xe5d   : > { %13203 = vmatprep.subr.mxu0 %v6062_v52 }
 0xe5e   : > { %14562 = vpow2.f32 %v11846_v20  ;;  %v11845_v56 = vmul.f32 -1.442695, %v17733_v0  ;;  %13204 = vmatpush3.msra.mxu0 %v6062_v52  ;;  %v6060_v20 = vld [vmem:[#allocation41 + $0x18] sm:$0xff] }
 0xe5f   : > { %v14551_v2 = vpop.eup %14550  ;;  %13217 = vmatprep.subr.mxu1 %v6060_v20 }
 0xe60   : > { %v5822_v25 = vadd.f32 1.0, %v14551_v2  ;;  %14564 = vpow2.f32 %v11845_v56  ;;  %v6059_v56 = vld [vmem:[#allocation41 + $0x10] sm:$0xff]  ;;  %v6058_v2 = vld [vmem:[#allocation41 + $0x8] sm:$0xff] }
 0xe61   : > { %v14553_v55 = vpop.eup %14552 }
 0xe62   : > { %14566 = vrcp.f32 %v5822_v25  ;;  %v5821_v46 = vadd.f32 1.0, %v14553_v55  ;;  %v6057_v25 = vld [vmem:[#allocation41] sm:$0xff]  ;;  %v11847_v55 = vld [vmem:[#allocation39] ss:$0 sm:$0xff] }
 0xe63   : > { %v14555_v22 = vpop.eup %14554 }
 0xe64   : > { %14568 = vrcp.f32 %v5821_v46  ;;  %v5824_v24 = vadd.f32 1.0, %v14555_v22 }
 0xe65   : > { %v14557_v6 = vpop.eup %14556 }
 0xe66   : > { %v5823_v27 = vadd.f32 1.0, %v14557_v6  ;;  %14570 = vrcp.f32 %v5824_v24 }
 0xe67   : > { %v14559_v28 = vpop.eup %14558 }
 0xe68   : > { %14572 = vrcp.f32 %v5823_v27  ;;  %v5826_v61 = vadd.f32 1.0, %v14559_v28  ;;  %v6327_v28 = vld [vmem:[#allocation41 + $0x50] sm:$0xff] }
 0xe69   : > { %v14561_v9 = vpop.eup %14560 }
 0xe6a   : > { %14574 = vrcp.f32 %v5826_v61  ;;  %v5825_v10 = vadd.f32 1.0, %v14561_v9 }
 0xe6b   : > { %v14563_v58 = vpop.eup %14562 }
 0xe6c   : > { %14576 = vrcp.f32 %v5825_v10  ;;  %v5828_v13 = vadd.f32 1.0, %v14563_v58  ;;  %v6326_v10 = vld [vmem:[#allocation41 + $0x48] sm:$0xff] }
 0xe6d   : > { %v14565_v45 = vpop.eup %14564 }
 0xe6e   : > { %14578 = vrcp.f32 %v5828_v13  ;;  %v5827_v29 = vadd.f32 1.0, %v14565_v45  ;;  %v6325_v45 = vld [vmem:[#allocation41 + $0x40] sm:$0xff] }
 0xe6f   : > { %v14567_v63 = vpop.eup %14566 }
 0xe70   : > { %14580 = vrcp.f32 %v5827_v29  ;;  %5855 = vrot.lane.b32.xlu1 %v14567_v63, %s16419_s11 }
 0xe71   : > { %v14569_v43 = vpop.eup %14568  ;;  %14582 = vtanh.f32 %v17715_v5 }
 0xe72   : > { %5853 = vrot.lane.b32.xlu0 %v14569_v43, %s16419_s11  ;;  %14584 = vtanh.f32 %v17712_v54 }
 0xe73   : > { %v14571_v33 = vpop.eup %14570  ;;  %14586 = vtanh.f32 %v17720_v37 }
 0xe74   : > { %5859 = vrot.lane.b32.xlu1 %v14571_v33, %s16419_s11  ;;  %14588 = vtanh.f32 %v17718_v14 }
 0xe75   : > { %v14573_v35 = vpop.eup %14572  ;;  %14590 = vtanh.f32 %v17727_v53 }
 0xe76   : > { %5857 = vrot.lane.b32.xlu0 %v14573_v35, %s16419_s11  ;;  %14592 = vtanh.f32 %v17724_v4 }
 0xe77   : > { %v14575_v23 = vpop.eup %14574  ;;  %14594 = vtanh.f32 %v17733_v0  ;;  %v6328_v0 = vld [vmem:[#allocation41 + $0x58] sm:$0xff] }
 0xe78   : > { %5863 = vrot.lane.b32.xlu1 %v14575_v23, %s16419_s11  ;;  %14596 = vtanh.f32 %v17730_v18  ;;  %13237 = vmatprep.subr.mxu0 %v6328_v0 }
 0xe79   : > { %v14577_v60 = vpop.eup %14576 }
 0xe7a   : > { %5861 = vrot.lane.b32.xlu0 %v14577_v60, %s16419_s11 }
 0xe7b   : > { %v14579_v12 = vpop.eup %14578 }
 0xe7c   : > { %5867 = vrot.lane.b32.xlu1 %v14579_v12, %s16419_s11 }
 0xe7d   : > { %v14581_v7 = vpop.eup %14580 }
 0xe7e   : > { %5865 = vrot.lane.b32.xlu0 %v14581_v7, %s16419_s11  ;;  %v14583_v31 = vpop.eup %14582 }
 0xe7f   : > { %v14585_v8 = vpop.eup %14584 }
 0xe80   : > { %v14587_v54 = vpop.eup %14586 }
 0xe81   : > { %v14589_v14 = vpop.eup %14588 }
 0xe82   : > { %v14591_v44 = vpop.eup %14590 }
 0xe83   : > { %v14593_v48 = vpop.eup %14592 }
 0xe84   : > { %v14595_v53 = vpop.eup %14594 }
 0xe85   : > { %v14597_v57 = vpop.eup %14596 }
 0xee2   : > { %v5856_v30 = vpop.permute.xlu1 %5855 }
 0xee3   : > { %v5878_v5 = vmul.f32 %v14585_v8, %v5856_v30 }
 0xee4   : > { %v5854_v16 = vpop.permute.xlu0 %5853 }
 0xee5   : > { %v5877_v36 = vmul.f32 %v14583_v31, %v5854_v16 }
 0xee6   : > { %v5860_v39 = vpop.permute.xlu1 %5859 }
 0xee7   : > { %13185 = vmatprep.mubr.msk.f32.mxu1 %vm5340_vm1, %v5877_v36  ;;  %v5880_v42 = vmul.f32 %v14589_v14, %v5860_v39 }
 0xee8   : > { %v5858_v37 = vpop.permute.xlu0 %5857  ;;  %13186 = vmatmul.mubr.msk.f32.vlgmr.msra.gmra.mxu1 %vm5340_vm1, %v5878_v5 }
 0xee9   : > { %v5879_v40 = vmul.f32 %v14587_v54, %v5858_v37  ;;  %13218 = vmatpush3.msra.mxu1 %v6060_v20 }
 0xeea   : > { %v5864_v1 = vpop.permute.xlu1 %5863  ;;  %13219 = vmatprep.subr.mxu1 %v6059_v56 }
 0xeeb   : > { %13188 = vmatprep.mubr.msk.f32.mxu1 %vm5340_vm1, %v5879_v40  ;;  %v5882_v51 = vmul.f32 %v14593_v48, %v5864_v1  ;;  %13220 = vmatpush3.msra.mxu1 %v6059_v56  ;;  %v6580_v40 = vld [vmem:[#allocation44 + $0x18] sm:$0xff]  ;;  %v6578_v1 = vld [vmem:[#allocation44 + $0x8] sm:$0xff] }
 0xeec   : > { %v5862_v4 = vpop.permute.xlu0 %5861  ;;  %13189 = vmatmul.mubr.msk.f32.gmra.mxu1 %vm5340_vm1, %v5880_v42  ;;  %13221 = vmatprep.subr.mxu1 %v6058_v2  ;;  %v6579_v42 = vld [vmem:[#allocation44 + $0x10] sm:$0xff] }
 0xeed   : > { %v5881_v11 = vmul.f32 %v14591_v44, %v5862_v4  ;;  %13222 = vmatpush3.msra.mxu1 %v6058_v2  ;;  %v11880_v2 = vld [vmem:[#allocation42] ss:$0 sm:$0xff] }
 0xeee   : > { %v5868_v15 = vpop.permute.xlu1 %5867  ;;  %13223 = vmatprep.subr.mxu1 %v6057_v25 }
 0xeef   : > { %13191 = vmatprep.mubr.msk.f32.mxu1 %vm5340_vm1, %v5881_v11  ;;  %v5884_v18 = vmul.f32 %v14597_v57, %v5868_v15  ;;  %13224 = vmatpush3.msra.mxu1 %v6057_v25 }
 0xef0   : > { %v5866_v17 = vpop.permute.xlu0 %5865  ;;  %13192 = vmatmul.mubr.msk.f32.gmra.mxu1 %vm5340_vm1, %v5882_v51  ;;  %13257 = vmatprep.subr.mxu1 %v6580_v40 }
 0xef1   : > { %v5883_v62 = vmul.f32 %v14595_v53, %v5866_v17 }
 0xef3   : > { %13194 = vmatprep.mubr.msk.f32.mxu1 %vm5340_vm1, %v5883_v62 }
 0xef4   : > { %13195 = vmatmul.mubr.msk.f32.gmra.mxu1 %vm5340_vm1, %v5884_v18 }
 0xfa8   : > { %v13187_v46 = vpop.f32.mrf.mxu1 }
 0xfa9   : > { %v17760_v59 = vadd.f32 %v13187_v46, %v11847_v55 }
 0xfaa   : > { %v5986_v22 = vpop.f32.mrf.mxu1 }
 0xfab   : > { %6034 = vst.msk [vmem:[#allocation2 + $0x10] sm:$0xff] %vm5340_vm1, %v17760_v59  ;;  %v17764_v6 = vadd.f32 %v11847_v55, %v5986_v22 }
 0xfac   : > { %v13190_v24 = vpop.f32.mrf.mxu1 }
 0xfad   : > { %6033 = vst.msk [vmem:[#allocation2 + $0x8] sm:$0xff] %vm5340_vm1, %v17764_v6  ;;  %v17768_v27 = vadd.f32 %v13190_v24, %v11847_v55  ;;  %13205 = vmatprep.mubr.msk.f32.mxu0 %vm5340_vm1, %v17764_v6 }
 0xfae   : > { %v5996_v61 = vpop.f32.mrf.mxu1  ;;  %13206 = vmatmul.mubr.msk.f32.vlgmr.msra.gmra.mxu0 %vm5340_vm1, %v17760_v59 }
 0xfaf   : > { %6036 = vst.msk [vmem:[#allocation2 + $0x20] sm:$0xff] %vm5340_vm1, %v17768_v27  ;;  %v17776_v9 = vadd.f32 %v11847_v55, %v5996_v61  ;;  %13238 = vmatpush3.msra.mxu0 %v6328_v0 }
 0xfb0   : > { %v13193_v58 = vpop.f32.mrf.mxu1  ;;  %13239 = vmatprep.subr.mxu0 %v6327_v28 }
 0xfb1   : > { %6035 = vst.msk [vmem:[#allocation2 + $0x18] sm:$0xff] %vm5340_vm1, %v17776_v9  ;;  %v17780_v13 = vadd.f32 %v13193_v58, %v11847_v55  ;;  %13208 = vmatprep.mubr.msk.f32.mxu0 %vm5340_vm1, %v17776_v9  ;;  %13240 = vmatpush3.msra.mxu0 %v6327_v28 }
 0xfb2   : > { %v6006_v29 = vpop.f32.mrf.mxu1  ;;  %13209 = vmatmul.mubr.msk.f32.gmra.mxu0 %vm5340_vm1, %v17768_v27  ;;  %13241 = vmatprep.subr.mxu0 %v6326_v10 }
 0xfb3   : > { %6038 = vst.msk [vmem:[#allocation2 + $0x30] sm:$0xff] %vm5340_vm1, %v17780_v13  ;;  %v17788_v63 = vadd.f32 %v11847_v55, %v6006_v29  ;;  %13242 = vmatpush3.msra.mxu0 %v6326_v10 }
 0xfb4   : > { %v13196_v43 = vpop.f32.mrf.mxu1  ;;  %v6041_v33 = vld [vmem:[#allocation2 + $0x6] sm:$0xff]  ;;  %v6042_v3 = vld [vmem:[#allocation2 + $0xe] sm:$0xff]  ;;  %13243 = vmatprep.subr.mxu0 %v6325_v45 }
 0xfb5   : > { %6037 = vst.msk [vmem:[#allocation2 + $0x28] sm:$0xff] %vm5340_vm1, %v17788_v63  ;;  %v17792_v49 = vadd.f32 %v13196_v43, %v11847_v55  ;;  %13211 = vmatprep.mubr.msk.f32.mxu0 %vm5340_vm1, %v17788_v63  ;;  %13225 = vmatprep.mubr.msk.f32.mxu1 %vm5340_vm1, %v6041_v33  ;;  %v6049_v12 = vld [vmem:[#allocation2 + $0xa] sm:$0xff] }
 0xfb6   : > { %v6016_v35 = vpop.f32.mrf.mxu1  ;;  %13212 = vmatmul.mubr.msk.f32.gmra.mxu0 %vm5340_vm1, %v17780_v13  ;;  %13226 = vmatmul.mubr.msk.f32.vlgmr.msra.gmra.mxu1 %vm5340_vm1, %v6042_v3 }
 0xfb7   : > { %6040 = vst.msk [vmem:[#allocation2 + $0x40] sm:$0xff] %vm5340_vm1, %v17792_v49  ;;  %v17802_v47 = vadd.f32 %v11847_v55, %v6016_v35  ;;  %13244 = vmatpush3.msra.mxu0 %v6325_v45  ;;  %13258 = vmatpush3.msra.mxu1 %v6580_v40 }
 0xfb8   : > { %v6043_v23 = vld [vmem:[#allocation2 + $0x16] sm:$0xff]  ;;  %v6044_v60 = vld [vmem:[#allocation2 + $0x1e] sm:$0xff]  ;;  %13259 = vmatprep.subr.mxu1 %v6579_v42 }
 0xfb9   : > { %6039 = vst.msk [vmem:[#allocation2 + $0x38] sm:$0xff] %vm5340_vm1, %v17802_v47  ;;  %13214 = vmatprep.mubr.msk.f32.mxu0 %vm5340_vm1, %v17802_v47  ;;  %13228 = vmatprep.mubr.msk.f32.mxu1 %vm5340_vm1, %v6043_v23  ;;  %v6050_v31 = vld [vmem:[#allocation2 + $0x12] sm:$0xff]  ;;  %v6051_v16 = vld [vmem:[#allocation2 + $0x1a] sm:$0xff] }
 0xfba   : > { %13215 = vmatmul.mubr.msk.f32.gmra.mxu0 %vm5340_vm1, %v17792_v49  ;;  %13229 = vmatmul.mubr.msk.f32.gmra.mxu1 %vm5340_vm1, %v6044_v60 }
 0xfbb   : > { %13245 = vmatprep.mubr.msk.f32.mxu0 %vm5340_vm1, %v6049_v12  ;;  %13260 = vmatpush3.msra.mxu1 %v6579_v42 }
 0xfbc   : > { %v6045_v7 = vld [vmem:[#allocation2 + $0x26] sm:$0xff]  ;;  %v6046_v30 = vld [vmem:[#allocation2 + $0x2e] sm:$0xff]  ;;  %13261 = vmatprep.subr.mxu1 %v6578_v1 }
 0xfbd   : > { %13231 = vmatprep.mubr.msk.f32.mxu1 %vm5340_vm1, %v6045_v7  ;;  %v6052_v5 = vld [vmem:[#allocation2 + $0x22] sm:$0xff]  ;;  %v6053_v39 = vld [vmem:[#allocation2 + $0x2a] sm:$0xff]  ;;  %13262 = vmatpush3.msra.mxu1 %v6578_v1 }
 0xfbe   : > { %13232 = vmatmul.mubr.msk.f32.gmra.mxu1 %vm5340_vm1, %v6046_v30  ;;  %13246 = vmatmul.mubr.msk.f32.vlgmr.msra.gmra.mxu0 %vm5340_vm1, %v6050_v31  ;;  %v6056_v14 = vld [vmem:[#allocation2 + $0x42] sm:$0xff] }
 0xfbf   : > { %13248 = vmatprep.mubr.msk.f32.mxu0 %vm5340_vm1, %v6051_v16 }
 0xfc0   : > { %v6047_v8 = vld [vmem:[#allocation2 + $0x36] sm:$0xff]  ;;  %v6048_v36 = vld [vmem:[#allocation2 + $0x3e] sm:$0xff] }
 0xfc1   : > { %13234 = vmatprep.mubr.msk.f32.mxu1 %vm5340_vm1, %v6047_v8  ;;  %v6054_v54 = vld [vmem:[#allocation2 + $0x32] sm:$0xff]  ;;  %v6055_v37 = vld [vmem:[#allocation2 + $0x3a] sm:$0xff] }
 0xfc2   : > { %13235 = vmatmul.mubr.msk.f32.gmra.mxu1 %vm5340_vm1, %v6048_v36  ;;  %13249 = vmatmul.mubr.msk.f32.gmra.mxu0 %vm5340_vm1, %v6052_v5 }
 0xfc3   : > { %13251 = vmatprep.mubr.msk.f32.mxu0 %vm5340_vm1, %v6053_v39 }
 0xfc6   : > { %13252 = vmatmul.mubr.msk.f32.gmra.mxu0 %vm5340_vm1, %v6054_v54 }
 0xfc7   : > { %13254 = vmatprep.mubr.msk.f32.mxu0 %vm5340_vm1, %v6055_v37 }
 0xfca   : > { %13255 = vmatmul.mubr.msk.f32.gmra.mxu0 %vm5340_vm1, %v6056_v14 }
0x106e   : > { %v13207_v44 = vpop.f32.mrf.mxu0 }
0x1070   : > { %v6156_v4 = vpop.f32.mrf.mxu0 }
0x1072   : > { %v13210_v48 = vpop.f32.mrf.mxu0 }
0x1074   : > { %v6166_v11 = vpop.f32.mrf.mxu0 }
0x1076   : > { %v13213_v51 = vpop.f32.mrf.mxu0  ;;  %v13227_v15 = vpop.f32.mrf.mxu1 }
0x1077   : > { %v6291_v20 = vadd.f32 %v13227_v15, %v13207_v44 }
0x1078   : > { %v6176_v53 = vpop.f32.mrf.mxu0  ;;  %v6285_v17 = vpop.f32.mrf.mxu1 }
0x1079   : > { %v6286_v25 = vadd.f32 %v6285_v17, %v6156_v4 }
0x107a   : > { %v13216_v57 = vpop.f32.mrf.mxu0  ;;  %v13230_v62 = vpop.f32.mrf.mxu1 }
0x107b   : > { %v6301_v61 = vadd.f32 %v13230_v62, %v13210_v48 }
0x107c   : > { %v6186_v18 = vpop.f32.mrf.mxu0  ;;  %v6295_v52 = vpop.f32.mrf.mxu1 }
0x107d   : > { %v6296_v58 = vadd.f32 %v6295_v52, %v6166_v11 }
0x107e   : > { %v13233_v0 = vpop.f32.mrf.mxu1  ;;  %v13247_v56 = vpop.f32.mrf.mxu0 }
0x107f   : > { %v6459_v55 = vadd.f32 %v13247_v56, %v6291_v20  ;;  %v6311_v35 = vadd.f32 %v13233_v0, %v13213_v51  ;;  %v6577_v0 = vld [vmem:[#allocation44] sm:$0xff] }
0x1080   : > { %v6305_v46 = vpop.f32.mrf.mxu1  ;;  %v6419_v22 = vpop.f32.mrf.mxu0  ;;  %13263 = vmatprep.subr.mxu1 %v6577_v0 }
0x1081   : > { %v17824_v24 = vadd.f32 %v11880_v2, %v6459_v55  ;;  %v6458_v28 = vadd.f32 %v6419_v22, %v6286_v25  ;;  %v6306_v30 = vadd.f32 %v6305_v46, %v6176_v53  ;;  %13264 = vmatpush3.msra.mxu1 %v6577_v0  ;;  %v6747_v0 = vld [vmem:[#allocation47 + $0x20] sm:$0xff] }
0x1082   : > { %v13250_v10 = vpop.f32.mrf.mxu0  ;;  %v13236_v43 = vpop.f32.mrf.mxu1 }
0x1083   : > { %v11882_v45 = vmul.f32 -1.442695, %v17824_v24  ;;  %v17827_v29 = vadd.f32 %v11880_v2, %v6458_v28  ;;  %v6461_v33 = vadd.f32 %v13250_v10, %v6301_v61  ;;  %v6321_v39 = vadd.f32 %v13236_v43, %v13216_v57 }
0x1084   : > { %v6429_v3 = vpop.f32.mrf.mxu0  ;;  %v6315_v31 = vpop.f32.mrf.mxu1 }
0x1085   : > { %14598 = vpow2.f32 %v11882_v45  ;;  %v11881_v23 = vmul.f32 -1.442695, %v17827_v29  ;;  %v6460_v60 = vadd.f32 %v6429_v3, %v6296_v58  ;;  %v17830_v12 = vadd.f32 %v11880_v2, %v6461_v33 }
0x1086   : > { %v13253_v7 = vpop.f32.mrf.mxu0  ;;  %v6316_v40 = vadd.f32 %v6315_v31, %v6186_v18 }
0x1087   : > { %14600 = vpow2.f32 %v11881_v23  ;;  %v17832_v16 = vadd.f32 %v11880_v2, %v6460_v60  ;;  %v6463_v8 = vadd.f32 %v13253_v7, %v6311_v35  ;;  %v11884_v36 = vmul.f32 -1.442695, %v17830_v12  ;;  %v6750_v23 = vld [vmem:[#allocation47 + $0x38] sm:$0xff]  ;;  %v6749_v60 = vld [vmem:[#allocation47 + $0x30] sm:$0xff] }
0x1088   : > { %v6439_v5 = vpop.f32.mrf.mxu0  ;;  %13277 = vmatprep.subr.mxu0 %v6750_v23 }
0x1089   : > { %v11883_v54 = vmul.f32 -1.442695, %v17832_v16  ;;  %v17836_v37 = vadd.f32 %v11880_v2, %v6463_v8  ;;  %v6462_v14 = vadd.f32 %v6439_v5, %v6306_v30  ;;  %14602 = vpow2.f32 %v11884_v36  ;;  %13278 = vmatpush3.msra.mxu0 %v6750_v23  ;;  %v6748_v30 = vld [vmem:[#allocation47 + $0x28] sm:$0xff] }
0x108a   : > { %v13256_v42 = vpop.f32.mrf.mxu0  ;;  %13279 = vmatprep.subr.mxu0 %v6749_v60 }
0x108b   : > { %14604 = vpow2.f32 %v11883_v54  ;;  %v11886_v1 = vmul.f32 -1.442695, %v17836_v37  ;;  %v17839_v44 = vadd.f32 %v11880_v2, %v6462_v14  ;;  %v6465_v4 = vadd.f32 %v13256_v42, %v6321_v39  ;;  %13280 = vmatpush3.msra.mxu0 %v6749_v60 }
0x108c   : > { %v6449_v48 = vpop.f32.mrf.mxu0  ;;  %13281 = vmatprep.subr.mxu0 %v6748_v30 }
0x108d   : > { %14606 = vpow2.f32 %v11886_v1  ;;  %v11885_v11 = vmul.f32 -1.442695, %v17839_v44  ;;  %v17842_v51 = vadd.f32 %v11880_v2, %v6465_v4  ;;  %v6464_v15 = vadd.f32 %v6449_v48, %v6316_v40  ;;  %13282 = vmatpush3.msra.mxu0 %v6748_v30 }
0x108e   : > { %13283 = vmatprep.subr.mxu0 %v6747_v0  ;;  %v6030_v30 = vadd.f32 %v17780_v13, %v17668_v32 }
0x108f   : > { %14608 = vpow2.f32 %v11885_v11  ;;  %v11888_v53 = vmul.f32 -1.442695, %v17842_v51  ;;  %v6479_v17 = vadd.f32 %v11880_v2, %v6464_v15  ;;  %13284 = vmatpush3.msra.mxu0 %v6747_v0 }
0x1091   : > { %14610 = vpow2.f32 %v11888_v53  ;;  %v11887_v57 = vmul.f32 -1.442695, %v6479_v17 }
0x1092   : > { %v14599_v62 = vpop.eup %14598 }
0x1093   : > { %v6514_v18 = vadd.f32 1.0, %v14599_v62  ;;  %14612 = vpow2.f32 %v11887_v57 }
0x1094   : > { %v14601_v52 = vpop.eup %14600 }
0x1095   : > { %14614 = vrcp.f32 %v6514_v18  ;;  %v6513_v20 = vadd.f32 1.0, %v14601_v52 }
0x1096   : > { %v14603_v56 = vpop.eup %14602 }
0x1097   : > { %14616 = vrcp.f32 %v6513_v20  ;;  %v6516_v55 = vadd.f32 1.0, %v14603_v56  ;;  %v6745_v56 = vld [vmem:[#allocation47 + $0x18] sm:$0xff] }
0x1098   : > { %v14605_v25 = vpop.eup %14604  ;;  %13297 = vmatprep.subr.mxu1 %v6745_v56 }
0x1099   : > { %v6515_v46 = vadd.f32 1.0, %v14605_v25  ;;  %14618 = vrcp.f32 %v6516_v55  ;;  %v7013_v25 = vld [vmem:[#allocation47 + $0x58] sm:$0xff]  ;;  %v6744_v55 = vld [vmem:[#allocation47 + $0x10] sm:$0xff] }
0x109a   : > { %v14607_v22 = vpop.eup %14606  ;;  %13317 = vmatprep.subr.mxu0 %v7013_v25 }
0x109b   : > { %14620 = vrcp.f32 %v6515_v46  ;;  %v6518_v2 = vadd.f32 1.0, %v14607_v22  ;;  %v6743_v46 = vld [vmem:[#allocation47 + $0x8] sm:$0xff]  ;;  %v6742_v22 = vld [vmem:[#allocation47] sm:$0xff] }
0x109c   : > { %v14609_v28 = vpop.eup %14608 }
0x109d   : > { %14622 = vrcp.f32 %v6518_v2  ;;  %v6517_v61 = vadd.f32 1.0, %v14609_v28  ;;  %v11889_v2 = vld [vmem:[#allocation45] ss:$0 sm:$0xff] }
0x109e   : > { %v14611_v10 = vpop.eup %14610 }
0x109f   : > { %14624 = vrcp.f32 %v6517_v61  ;;  %v6520_v58 = vadd.f32 1.0, %v14611_v10  ;;  %v6026_v61 = vadd.f32 %v17760_v59, %v17648_v19  ;;  %v7012_v19 = vld [vmem:[#allocation47 + $0x50] sm:$0xff] }
0x10a0   : > { %v14613_v45 = vpop.eup %14612 }
0x10a1   : > { %14626 = vrcp.f32 %v6520_v58  ;;  %v6519_v43 = vadd.f32 1.0, %v14613_v45  ;;  %v6025_v45 = vadd.f32 %v17764_v6, %v17652_v26  ;;  %v6027_v26 = vadd.f32 %v17776_v9, %v17664_v21  ;;  %v7010_v21 = vld [vmem:[#allocation47 + $0x40] sm:$0xff] }
0x10a2   : > { %v14615_v33 = vpop.eup %14614 }
0x10a3   : > { %14628 = vrcp.f32 %v6519_v43  ;;  %6547 = vrot.lane.b32.xlu1 %v14615_v33, %s16419_s11 }
0x10a4   : > { %v14617_v3 = vpop.eup %14616  ;;  %14630 = vtanh.f32 %v17827_v29 }
0x10a5   : > { %6545 = vrot.lane.b32.xlu0 %v14617_v3, %s16419_s11  ;;  %14632 = vtanh.f32 %v17824_v24 }
0x10a6   : > { %v14619_v35 = vpop.eup %14618  ;;  %14634 = vtanh.f32 %v17832_v16 }
0x10a7   : > { %6551 = vrot.lane.b32.xlu1 %v14619_v35, %s16419_s11  ;;  %14636 = vtanh.f32 %v17830_v12  ;;  %v6028_v35 = vadd.f32 %v17768_v27, %v17656_v50  ;;  %v7011_v50 = vld [vmem:[#allocation47 + $0x48] sm:$0xff] }
0x10a8   : > { %v14621_v7 = vpop.eup %14620  ;;  %14638 = vtanh.f32 %v17839_v44 }
0x10a9   : > { %6549 = vrot.lane.b32.xlu0 %v14621_v7, %s16419_s11  ;;  %14640 = vtanh.f32 %v17836_v37 }
0x10aa   : > { %v14623_v31 = vpop.eup %14622  ;;  %14642 = vtanh.f32 %v6479_v17 }
0x10ab   : > { %6555 = vrot.lane.b32.xlu1 %v14623_v31, %s16419_s11  ;;  %14644 = vtanh.f32 %v17842_v51 }
0x10ac   : > { %v14625_v8 = vpop.eup %14624 }
0x10ad   : > { %6553 = vrot.lane.b32.xlu0 %v14625_v8, %s16419_s11 }
0x10ae   : > { %v14627_v36 = vpop.eup %14626 }
0x10af   : > { %6559 = vrot.lane.b32.xlu1 %v14627_v36, %s16419_s11  ;;  %v6029_v36 = vadd.f32 %v17788_v63, %v17676_v34  ;;  %v6031_v63 = vadd.f32 %v17802_v47, %v17690_v41 }
0x10b0   : > { %v14629_v5 = vpop.eup %14628 }
0x10b1   : > { %6557 = vrot.lane.b32.xlu0 %v14629_v5, %s16419_s11  ;;  %v14631_v54 = vpop.eup %14630 }
0x10b2   : > { %v14633_v40 = vpop.eup %14632 }
0x10b3   : > { %v14635_v24 = vpop.eup %14634 }
0x10b4   : > { %v14637_v12 = vpop.eup %14636 }
0x10b5   : > { %v14639_v48 = vpop.eup %14638 }
0x10b6   : > { %v14641_v51 = vpop.eup %14640 }
0x10b7   : > { %v14643_v57 = vpop.eup %14642 }
0x10b8   : > { %v14645_v18 = vpop.eup %14644 }
0x1115   : > { %v6548_v39 = vpop.permute.xlu1 %6547 }
0x1116   : > { %v6570_v1 = vmul.f32 %v14633_v40, %v6548_v39 }
0x1117   : > { %v6546_v14 = vpop.permute.xlu0 %6545 }
0x1118   : > { %v6569_v42 = vmul.f32 %v14631_v54, %v6546_v14  ;;  %v6032_v14 = vadd.f32 %v17792_v49, %v17680_v38 }
0x1119   : > { %v6552_v29 = vpop.permute.xlu1 %6551 }
0x111a   : > { %13265 = vmatprep.mubr.msk.f32.mxu1 %vm5340_vm1, %v6569_v42  ;;  %v6572_v4 = vmul.f32 %v14637_v12, %v6552_v29 }
0x111b   : > { %v6550_v16 = vpop.permute.xlu0 %6549  ;;  %13266 = vmatmul.mubr.msk.f32.vlgmr.msra.gmra.mxu1 %vm5340_vm1, %v6570_v1 }
0x111c   : > { %v6571_v44 = vmul.f32 %v14635_v24, %v6550_v16  ;;  %13298 = vmatpush3.msra.mxu1 %v6745_v56 }
0x111d   : > { %v6556_v37 = vpop.permute.xlu1 %6555  ;;  %13299 = vmatprep.subr.mxu1 %v6744_v55 }
0x111e   : > { %13268 = vmatprep.mubr.msk.f32.mxu1 %vm5340_vm1, %v6571_v44  ;;  %v6574_v53 = vmul.f32 %v14641_v51, %v6556_v37  ;;  %13300 = vmatpush3.msra.mxu1 %v6744_v55  ;;  %v7243_v37 = vld [vmem:[#allocation50 + $0x10] sm:$0xff] }
0x111f   : > { %v6554_v11 = vpop.permute.xlu0 %6553  ;;  %13269 = vmatmul.mubr.msk.f32.gmra.mxu1 %vm5340_vm1, %v6572_v4  ;;  %13301 = vmatprep.subr.mxu1 %v6743_v46  ;;  %v7244_v4 = vld [vmem:[#allocation50 + $0x18] sm:$0xff] }
0x1120   : > { %v6573_v15 = vmul.f32 %v14639_v48, %v6554_v11  ;;  %13302 = vmatpush3.msra.mxu1 %v6743_v46  ;;  %v7242_v48 = vld [vmem:[#allocation50 + $0x8] sm:$0xff] }
0x1121   : > { %v6560_v17 = vpop.permute.xlu1 %6559  ;;  %13303 = vmatprep.subr.mxu1 %v6742_v22 }
0x1122   : > { %13271 = vmatprep.mubr.msk.f32.mxu1 %vm5340_vm1, %v6573_v15  ;;  %v6576_v20 = vmul.f32 %v14645_v18, %v6560_v17  ;;  %13304 = vmatpush3.msra.mxu1 %v6742_v22  ;;  %v11922_v22 = vld [vmem:[#allocation48] ss:$0 sm:$0xff] }
0x1123   : > { %v6558_v62 = vpop.permute.xlu0 %6557  ;;  %13272 = vmatmul.mubr.msk.f32.gmra.mxu1 %vm5340_vm1, %v6574_v53  ;;  %13337 = vmatprep.subr.mxu1 %v7244_v4 }
0x1124   : > { %v6575_v52 = vmul.f32 %v14643_v57, %v6558_v62 }
0x1126   : > { %13274 = vmatprep.mubr.msk.f32.mxu1 %vm5340_vm1, %v6575_v52 }
0x1127   : > { %13275 = vmatmul.mubr.msk.f32.gmra.mxu1 %vm5340_vm1, %v6576_v20 }
0x11db   : > { %v13267_v28 = vpop.f32.mrf.mxu1 }
0x11dc   : > { %v6684_v10 = vadd.f32 %v13267_v28, %v11889_v2 }
0x11dd   : > { %v6678_v58 = vpop.f32.mrf.mxu1 }
0x11de   : > { %v17872_v43 = vadd.f32 %v6684_v10, %v6026_v61  ;;  %6726 = vst.msk [vmem:[#allocation2 + $0x10] sm:$0xff] %vm5340_vm1, %v6684_v10  ;;  %v6679_v33 = vadd.f32 %v11889_v2, %v6678_v58 }
0x11df   : > { %v13270_v3 = vpop.f32.mrf.mxu1 }
0x11e0   : > { %v17877_v23 = vadd.f32 %v6679_v33, %v6025_v45  ;;  %6725 = vst.msk [vmem:[#allocation2 + $0x8] sm:$0xff] %vm5340_vm1, %v6679_v33  ;;  %v6694_v60 = vadd.f32 %v13270_v3, %v11889_v2  ;;  %13285 = vmatprep.mubr.msk.f32.mxu0 %vm5340_vm1, %v6679_v33 }
0x11e1   : > { %v6688_v59 = vpop.f32.mrf.mxu1  ;;  %13286 = vmatmul.mubr.msk.f32.vlgmr.msra.gmra.mxu0 %vm5340_vm1, %v6684_v10 }
0x11e2   : > { %v17884_v6 = vadd.f32 %v6694_v60, %v6028_v35  ;;  %6728 = vst.msk [vmem:[#allocation2 + $0x20] sm:$0xff] %vm5340_vm1, %v6694_v60  ;;  %v6689_v7 = vadd.f32 %v11889_v2, %v6688_v59  ;;  %13318 = vmatpush3.msra.mxu0 %v7013_v25 }
0x11e3   : > { %v13273_v27 = vpop.f32.mrf.mxu1  ;;  %13319 = vmatprep.subr.mxu0 %v7012_v19 }
0x11e4   : > { %v17889_v31 = vadd.f32 %v6689_v7, %v6027_v26  ;;  %6727 = vst.msk [vmem:[#allocation2 + $0x18] sm:$0xff] %vm5340_vm1, %v6689_v7  ;;  %v6704_v8 = vadd.f32 %v13273_v27, %v11889_v2  ;;  %13288 = vmatprep.mubr.msk.f32.mxu0 %vm5340_vm1, %v6689_v7  ;;  %13320 = vmatpush3.msra.mxu0 %v7012_v19 }
0x11e5   : > { %v6698_v9 = vpop.f32.mrf.mxu1  ;;  %13289 = vmatmul.mubr.msk.f32.gmra.mxu0 %vm5340_vm1, %v6694_v60  ;;  %13321 = vmatprep.subr.mxu0 %v7011_v50 }
0x11e6   : > { %v17896_v5 = vadd.f32 %v6704_v8, %v6030_v30  ;;  %6730 = vst.msk [vmem:[#allocation2 + $0x30] sm:$0xff] %vm5340_vm1, %v6704_v8  ;;  %v6699_v32 = vadd.f32 %v11889_v2, %v6698_v9  ;;  %13322 = vmatpush3.msra.mxu0 %v7011_v50 }
0x11e7   : > { %v13276_v13 = vpop.f32.mrf.mxu1  ;;  %v6733_v39 = vld [vmem:[#allocation2 + $0x4] sm:$0xff]  ;;  %v6734_v54 = vld [vmem:[#allocation2 + $0xc] sm:$0xff]  ;;  %13323 = vmatprep.subr.mxu0 %v7010_v21 }
0x11e8   : > { %v17901_v40 = vadd.f32 %v6699_v32, %v6029_v36  ;;  %6729 = vst.msk [vmem:[#allocation2 + $0x28] sm:$0xff] %vm5340_vm1, %v6699_v32  ;;  %v6714_v42 = vadd.f32 %v13276_v13, %v11889_v2  ;;  %13291 = vmatprep.mubr.msk.f32.mxu0 %vm5340_vm1, %v6699_v32  ;;  %13305 = vmatprep.mubr.msk.f32.mxu1 %vm5340_vm1, %v6733_v39 }
0x11e9   : > { %v6708_v34 = vpop.f32.mrf.mxu1  ;;  %13292 = vmatmul.mubr.msk.f32.gmra.mxu0 %vm5340_vm1, %v6704_v8  ;;  %13306 = vmatmul.mubr.msk.f32.vlgmr.msra.gmra.mxu1 %vm5340_vm1, %v6734_v54 }
0x11ea   : > { %v17910_v1 = vadd.f32 %v6714_v42, %v6032_v14  ;;  %6732 = vst.msk [vmem:[#allocation2 + $0x40] sm:$0xff] %vm5340_vm1, %v6714_v42  ;;  %v6709_v38 = vadd.f32 %v11889_v2, %v6708_v34  ;;  %13324 = vmatpush3.msra.mxu0 %v7010_v21  ;;  %13338 = vmatpush3.msra.mxu1 %v7244_v4 }
0x11eb   : > { %v6735_v49 = vld [vmem:[#allocation2 + $0x14] sm:$0xff]  ;;  %v6736_v29 = vld [vmem:[#allocation2 + $0x1c] sm:$0xff]  ;;  %13339 = vmatprep.subr.mxu1 %v7243_v37 }
0x11ec   : > { %v17913_v24 = vadd.f32 %v6709_v38, %v6031_v63  ;;  %6731 = vst.msk [vmem:[#allocation2 + $0x38] sm:$0xff] %vm5340_vm1, %v6709_v38  ;;  %13294 = vmatprep.mubr.msk.f32.mxu0 %vm5340_vm1, %v6709_v38  ;;  %13308 = vmatprep.mubr.msk.f32.mxu1 %vm5340_vm1, %v6735_v49 }
0x11ed   : > { %13295 = vmatmul.mubr.msk.f32.gmra.mxu0 %vm5340_vm1, %v6714_v42  ;;  %13309 = vmatmul.mubr.msk.f32.gmra.mxu1 %vm5340_vm1, %v6736_v29 }
0x11ee   : > { %13325 = vmatprep.mubr.msk.f32.mxu0 %vm5340_vm1, %v6734_v54  ;;  %13340 = vmatpush3.msra.mxu1 %v7243_v37 }
0x11ef   : > { %v6737_v41 = vld [vmem:[#allocation2 + $0x24] sm:$0xff]  ;;  %v6738_v47 = vld [vmem:[#allocation2 + $0x2c] sm:$0xff]  ;;  %13341 = vmatprep.subr.mxu1 %v7242_v48 }
0x11f0   : > { %13311 = vmatprep.mubr.msk.f32.mxu1 %vm5340_vm1, %v6737_v41  ;;  %13342 = vmatpush3.msra.mxu1 %v7242_v48 }
0x11f1   : > { %13312 = vmatmul.mubr.msk.f32.gmra.mxu1 %vm5340_vm1, %v6738_v47  ;;  %13326 = vmatmul.mubr.msk.f32.vlgmr.msra.gmra.mxu0 %vm5340_vm1, %v6735_v49  ;;  %v6741_v44 = vld [vmem:[#allocation2 + $0x44] sm:$0xff] }
0x11f2   : > { %13328 = vmatprep.mubr.msk.f32.mxu0 %vm5340_vm1, %v6736_v29 }
0x11f3   : > { %v6739_v16 = vld [vmem:[#allocation2 + $0x34] sm:$0xff]  ;;  %v6740_v12 = vld [vmem:[#allocation2 + $0x3c] sm:$0xff] }
0x11f4   : > { %13314 = vmatprep.mubr.msk.f32.mxu1 %vm5340_vm1, %v6739_v16 }
0x11f5   : > { %13315 = vmatmul.mubr.msk.f32.gmra.mxu1 %vm5340_vm1, %v6740_v12  ;;  %13329 = vmatmul.mubr.msk.f32.gmra.mxu0 %vm5340_vm1, %v6737_v41 }
0x11f6   : > { %13331 = vmatprep.mubr.msk.f32.mxu0 %vm5340_vm1, %v6738_v47 }
0x11f9   : > { %13332 = vmatmul.mubr.msk.f32.gmra.mxu0 %vm5340_vm1, %v6739_v16 }
0x11fa   : > { %13334 = vmatprep.mubr.msk.f32.mxu0 %vm5340_vm1, %v6740_v12 }
0x11fd   : > { %13335 = vmatmul.mubr.msk.f32.gmra.mxu0 %vm5340_vm1, %v6741_v44 }
0x12a1   : > { %v13287_v11 = vpop.f32.mrf.mxu0 }
0x12a3   : > { %v6841_v51 = vpop.f32.mrf.mxu0 }
0x12a5   : > { %v13290_v15 = vpop.f32.mrf.mxu0 }
0x12a7   : > { %v6851_v53 = vpop.f32.mrf.mxu0 }
0x12a9   : > { %v13293_v17 = vpop.f32.mrf.mxu0  ;;  %v13307_v57 = vpop.f32.mrf.mxu1 }
0x12aa   : > { %v6976_v25 = vadd.f32 %v13307_v57, %v13287_v11  ;;  %v7241_v57 = vld [vmem:[#allocation50] sm:$0xff] }
0x12ab   : > { %v6861_v62 = vpop.f32.mrf.mxu0  ;;  %v6970_v18 = vpop.f32.mrf.mxu1  ;;  %13343 = vmatprep.subr.mxu1 %v7241_v57 }
0x12ac   : > { %v6971_v2 = vadd.f32 %v6970_v18, %v6841_v51  ;;  %13344 = vmatpush3.msra.mxu1 %v7241_v57 }
0x12ad   : > { %v13296_v52 = vpop.f32.mrf.mxu0  ;;  %v13310_v20 = vpop.f32.mrf.mxu1 }
0x12ae   : > { %v6986_v33 = vadd.f32 %v13310_v20, %v13290_v15 }
0x12af   : > { %v6871_v0 = vpop.f32.mrf.mxu0  ;;  %v6980_v56 = vpop.f32.mrf.mxu1 }
0x12b0   : > { %v6981_v35 = vadd.f32 %v6980_v56, %v6851_v53 }
0x12b1   : > { %v13313_v55 = vpop.f32.mrf.mxu1  ;;  %v13327_v46 = vpop.f32.mrf.mxu0 }
0x12b2   : > { %v7123_v28 = vadd.f32 %v13327_v46, %v6976_v25  ;;  %v6996_v50 = vadd.f32 %v13313_v55, %v13293_v17 }
0x12b3   : > { %v6990_v61 = vpop.f32.mrf.mxu1  ;;  %v7083_v10 = vpop.f32.mrf.mxu0 }
0x12b4   : > { %v17932_v58 = vadd.f32 %v11922_v22, %v7123_v28  ;;  %v7122_v45 = vadd.f32 %v7083_v10, %v6971_v2  ;;  %v6991_v9 = vadd.f32 %v6990_v61, %v6861_v62 }
0x12b5   : > { %v13330_v3 = vpop.f32.mrf.mxu0  ;;  %v13316_v59 = vpop.f32.mrf.mxu1 }
0x12b6   : > { %v11924_v60 = vmul.f32 -1.442695, %v17932_v58  ;;  %v17935_v19 = vadd.f32 %v11922_v22, %v7122_v45  ;;  %v7125_v26 = vadd.f32 %v13330_v3, %v6986_v33  ;;  %v7006_v14 = vadd.f32 %v13316_v59, %v13296_v52  ;;  %v7421_v33 = vld [vmem:[#allocation53 + $0x38] sm:$0xff]  ;;  %v7420_v3 = vld [vmem:[#allocation53 + $0x30] sm:$0xff] }
0x12b7   : > { %v7093_v7 = vpop.f32.mrf.mxu0  ;;  %v7000_v36 = vpop.f32.mrf.mxu1  ;;  %13357 = vmatprep.subr.mxu0 %v7421_v33 }
0x12b8   : > { %14646 = vpow2.f32 %v11924_v60  ;;  %v11923_v27 = vmul.f32 -1.442695, %v17935_v19  ;;  %v7124_v30 = vadd.f32 %v7093_v7, %v6981_v35  ;;  %v17938_v8 = vadd.f32 %v11922_v22, %v7125_v26  ;;  %13358 = vmatpush3.msra.mxu0 %v7421_v33  ;;  %v7419_v60 = vld [vmem:[#allocation53 + $0x28] sm:$0xff] }
0x12b9   : > { %v13333_v21 = vpop.f32.mrf.mxu0  ;;  %v7001_v38 = vadd.f32 %v7000_v36, %v6871_v0  ;;  %13359 = vmatprep.subr.mxu0 %v7420_v3 }
0x12ba   : > { %14648 = vpow2.f32 %v11923_v27  ;;  %v17940_v32 = vadd.f32 %v11922_v22, %v7124_v30  ;;  %v7127_v13 = vadd.f32 %v13333_v21, %v6996_v50  ;;  %v11926_v39 = vmul.f32 -1.442695, %v17938_v8  ;;  %13360 = vmatpush3.msra.mxu0 %v7420_v3 }
0x12bb   : > { %v7103_v54 = vpop.f32.mrf.mxu0  ;;  %13361 = vmatprep.subr.mxu0 %v7419_v60 }
0x12bc   : > { %v11925_v42 = vmul.f32 -1.442695, %v17940_v32  ;;  %v17944_v34 = vadd.f32 %v11922_v22, %v7127_v13  ;;  %v7126_v63 = vadd.f32 %v7103_v54, %v6991_v9  ;;  %14650 = vpow2.f32 %v11926_v39  ;;  %13362 = vmatpush3.msra.mxu0 %v7419_v60 }
0x12bd   : > { %v13336_v49 = vpop.f32.mrf.mxu0 }
0x12be   : > { %14652 = vpow2.f32 %v11925_v42  ;;  %v11928_v29 = vmul.f32 -1.442695, %v17944_v34  ;;  %v17947_v41 = vadd.f32 %v11922_v22, %v7126_v63  ;;  %v7129_v47 = vadd.f32 %v13336_v49, %v7006_v14 }
0x12bf   : > { %v7113_v16 = vpop.f32.mrf.mxu0 }
0x12c0   : > { %14654 = vpow2.f32 %v11928_v29  ;;  %v11927_v12 = vmul.f32 -1.442695, %v17947_v41  ;;  %v17950_v44 = vadd.f32 %v11922_v22, %v7129_v47  ;;  %v7128_v4 = vadd.f32 %v7113_v16, %v7001_v38 }
0x12c2   : > { %14656 = vpow2.f32 %v11927_v12  ;;  %v11930_v37 = vmul.f32 -1.442695, %v17950_v44  ;;  %v7143_v48 = vadd.f32 %v11922_v22, %v7128_v4  ;;  %v17976_v4 = vld [vmem:[#allocation2] sm:$0xff] }
0x12c4   : > { %14658 = vpow2.f32 %v11930_v37  ;;  %v11929_v11 = vmul.f32 -1.442695, %v7143_v48  ;;  %v7418_v37 = vld [vmem:[#allocation53 + $0x20] sm:$0xff] }
0x12c5   : > { %v14647_v51 = vpop.eup %14646  ;;  %13363 = vmatprep.subr.mxu0 %v7418_v37 }
0x12c6   : > { %v7178_v15 = vadd.f32 1.0, %v14647_v51  ;;  %14660 = vpow2.f32 %v11929_v11  ;;  %13364 = vmatpush3.msra.mxu0 %v7418_v37  ;;  %v7684_v11 = vld [vmem:[#allocation53 + $0x58] sm:$0xff]  ;;  %v7415_v51 = vld [vmem:[#allocation53 + $0x10] sm:$0xff] }
0x12c7   : > { %v14649_v53 = vpop.eup %14648  ;;  %13397 = vmatprep.subr.mxu0 %v7684_v11 }
0x12c8   : > { %14662 = vrcp.f32 %v7178_v15  ;;  %v7177_v17 = vadd.f32 1.0, %v14649_v53  ;;  %v7414_v15 = vld [vmem:[#allocation53 + $0x8] sm:$0xff]  ;;  %v7413_v53 = vld [vmem:[#allocation53] sm:$0xff] }
0x12c9   : > { %v14651_v62 = vpop.eup %14650 }
0x12ca   : > { %14664 = vrcp.f32 %v7177_v17  ;;  %v7180_v52 = vadd.f32 1.0, %v14651_v62  ;;  %v11931_v17 = vld [vmem:[#allocation51] ss:$0 sm:$0xff] }
0x12cb   : > { %v14653_v18 = vpop.eup %14652 }
0x12cc   : > { %v7179_v20 = vadd.f32 1.0, %v14653_v18  ;;  %14666 = vrcp.f32 %v7180_v52 }
0x12cd   : > { %v14655_v0 = vpop.eup %14654 }
0x12ce   : > { %14668 = vrcp.f32 %v7179_v20  ;;  %v7182_v56 = vadd.f32 1.0, %v14655_v0 }
0x12cf   : > { %v14657_v25 = vpop.eup %14656 }
0x12d0   : > { %14670 = vrcp.f32 %v7182_v56  ;;  %v7181_v55 = vadd.f32 1.0, %v14657_v25  ;;  %v7683_v25 = vld [vmem:[#allocation53 + $0x50] sm:$0xff] }
0x12d1   : > { %v14659_v46 = vpop.eup %14658 }
0x12d2   : > { %14672 = vrcp.f32 %v7181_v55  ;;  %v7184_v22 = vadd.f32 1.0, %v14659_v46 }
0x12d3   : > { %v14661_v2 = vpop.eup %14660 }
0x12d4   : > { %14674 = vrcp.f32 %v7184_v22  ;;  %v7183_v28 = vadd.f32 1.0, %v14661_v2  ;;  %v7682_v2 = vld [vmem:[#allocation53 + $0x48] sm:$0xff] }
0x12d5   : > { %v14663_v61 = vpop.eup %14662 }
0x12d6   : > { %14676 = vrcp.f32 %v7183_v28  ;;  %7211 = vrot.lane.b32.xlu1 %v14663_v61, %s16419_s11 }
0x12d7   : > { %v14665_v10 = vpop.eup %14664  ;;  %14678 = vtanh.f32 %v17935_v19 }
0x12d8   : > { %7209 = vrot.lane.b32.xlu0 %v14665_v10, %s16419_s11  ;;  %14680 = vtanh.f32 %v17932_v58 }
0x12d9   : > { %v14667_v45 = vpop.eup %14666  ;;  %14682 = vtanh.f32 %v17940_v32 }
0x12da   : > { %7215 = vrot.lane.b32.xlu1 %v14667_v45, %s16419_s11  ;;  %14684 = vtanh.f32 %v17938_v8 }
0x12db   : > { %v14669_v35 = vpop.eup %14668  ;;  %14686 = vtanh.f32 %v17947_v41 }
0x12dc   : > { %7213 = vrot.lane.b32.xlu0 %v14669_v35, %s16419_s11  ;;  %14688 = vtanh.f32 %v17944_v34 }
0x12dd   : > { %v14671_v59 = vpop.eup %14670  ;;  %14690 = vtanh.f32 %v7143_v48  ;;  %v7416_v48 = vld [vmem:[#allocation53 + $0x18] sm:$0xff] }
0x12de   : > { %7219 = vrot.lane.b32.xlu1 %v14671_v59, %s16419_s11  ;;  %14692 = vtanh.f32 %v17950_v44  ;;  %13377 = vmatprep.subr.mxu1 %v7416_v48 }
0x12df   : > { %v14673_v26 = vpop.eup %14672 }
0x12e0   : > { %7217 = vrot.lane.b32.xlu0 %v14673_v26, %s16419_s11 }
0x12e1   : > { %v14675_v7 = vpop.eup %14674 }
0x12e2   : > { %7223 = vrot.lane.b32.xlu1 %v14675_v7, %s16419_s11 }
0x12e3   : > { %v14677_v50 = vpop.eup %14676 }
0x12e4   : > { %7221 = vrot.lane.b32.xlu0 %v14677_v50, %s16419_s11  ;;  %v14679_v30 = vpop.eup %14678 }
0x12e5   : > { %v14681_v9 = vpop.eup %14680 }
0x12e6   : > { %v14683_v58 = vpop.eup %14682 }
0x12e7   : > { %v14685_v8 = vpop.eup %14684 }
0x12e8   : > { %v14687_v42 = vpop.eup %14686 }
0x12e9   : > { %v14689_v63 = vpop.eup %14688 }
0x12ea   : > { %v14691_v41 = vpop.eup %14690 }
0x12eb   : > { %v14693_v16 = vpop.eup %14692 }
0x1348   : > { %v7212_v27 = vpop.permute.xlu1 %7211 }
0x1349   : > { %v7234_v13 = vmul.f32 %v14681_v9, %v7212_v27  ;;  %v7936_v9 = vld [vmem:[#allocation56 + $0x18] sm:$0xff] }
0x134a   : > { %v7210_v21 = vpop.permute.xlu0 %7209 }
0x134b   : > { %v7233_v36 = vmul.f32 %v14679_v30, %v7210_v21 }
0x134c   : > { %v7216_v19 = vpop.permute.xlu1 %7215 }
0x134d   : > { %13345 = vmatprep.mubr.msk.f32.mxu1 %vm5340_vm1, %v7233_v36  ;;  %v7236_v54 = vmul.f32 %v14685_v8, %v7216_v19  ;;  %v7935_v36 = vld [vmem:[#allocation56 + $0x10] sm:$0xff] }
0x134e   : > { %v7214_v32 = vpop.permute.xlu0 %7213  ;;  %13346 = vmatmul.mubr.msk.f32.vlgmr.msra.gmra.mxu1 %vm5340_vm1, %v7234_v13  ;;  %v7934_v13 = vld [vmem:[#allocation56 + $0x8] sm:$0xff] }
0x134f   : > { %v7235_v39 = vmul.f32 %v14683_v58, %v7214_v32  ;;  %13378 = vmatpush3.msra.mxu1 %v7416_v48 }
0x1350   : > { %v7220_v14 = vpop.permute.xlu1 %7219  ;;  %13379 = vmatprep.subr.mxu1 %v7415_v51 }
0x1351   : > { %13348 = vmatprep.mubr.msk.f32.mxu1 %vm5340_vm1, %v7235_v39  ;;  %v7238_v49 = vmul.f32 %v14689_v63, %v7220_v14  ;;  %13380 = vmatpush3.msra.mxu1 %v7415_v51 }
0x1352   : > { %v7218_v34 = vpop.permute.xlu0 %7217  ;;  %13349 = vmatmul.mubr.msk.f32.gmra.mxu1 %vm5340_vm1, %v7236_v54  ;;  %13381 = vmatprep.subr.mxu1 %v7414_v15 }
0x1353   : > { %v7237_v38 = vmul.f32 %v14687_v42, %v7218_v34  ;;  %13382 = vmatpush3.msra.mxu1 %v7414_v15 }
0x1354   : > { %v7224_v29 = vpop.permute.xlu1 %7223  ;;  %13383 = vmatprep.subr.mxu1 %v7413_v53 }
0x1355   : > { %13351 = vmatprep.mubr.msk.f32.mxu1 %vm5340_vm1, %v7237_v38  ;;  %v7240_v44 = vmul.f32 %v14693_v16, %v7224_v29  ;;  %13384 = vmatpush3.msra.mxu1 %v7413_v53  ;;  %v11964_v16 = vld [vmem:[#allocation54] ss:$0 sm:$0xff] }
0x1356   : > { %v7222_v47 = vpop.permute.xlu0 %7221  ;;  %13352 = vmatmul.mubr.msk.f32.gmra.mxu1 %vm5340_vm1, %v7238_v49  ;;  %13417 = vmatprep.subr.mxu1 %v7936_v9 }
0x1357   : > { %v7239_v12 = vmul.f32 %v14691_v41, %v7222_v47 }
0x1359   : > { %13354 = vmatprep.mubr.msk.f32.mxu1 %vm5340_vm1, %v7239_v12 }
0x135a   : > { %13355 = vmatmul.mubr.msk.f32.gmra.mxu1 %vm5340_vm1, %v7240_v44 }
0x135b   : > { %13385 = vmatprep.mubr.msk.f32.mxu1 %vm5340_vm1, %v17976_v4 }
0x140e   : > { %v13347_v57 = vpop.f32.mrf.mxu1 }
0x140f   : > { %v7348_v62 = vadd.f32 %v13347_v57, %v11931_v17 }
0x1410   : > { %v7342_v18 = vpop.f32.mrf.mxu1 }
0x1411   : > { %7390 = vst.msk [vmem:[#allocation2 + $0x10] sm:$0xff] %vm5340_vm1, %v7348_v62  ;;  %v7343_v52 = vadd.f32 %v11931_v17, %v7342_v18  ;;  %v17982_v20 = vadd.f32 %v7348_v62, %v17872_v43 }
0x1412   : > { %v13350_v0 = vpop.f32.mrf.mxu1 }
0x1413   : > { %7389 = vst.msk [vmem:[#allocation2 + $0x8] sm:$0xff] %vm5340_vm1, %v7343_v52  ;;  %v7358_v56 = vadd.f32 %v13350_v0, %v11931_v17  ;;  %13365 = vmatprep.mubr.msk.f32.mxu0 %vm5340_vm1, %v7343_v52  ;;  %v17987_v55 = vadd.f32 %v7343_v52, %v17877_v23  ;;  %v7681_v23 = vld [vmem:[#allocation53 + $0x40] sm:$0xff] }
0x1414   : > { %v7352_v46 = vpop.f32.mrf.mxu1  ;;  %13366 = vmatmul.mubr.msk.f32.vlgmr.msra.gmra.mxu0 %vm5340_vm1, %v7348_v62 }
0x1415   : > { %7392 = vst.msk [vmem:[#allocation2 + $0x20] sm:$0xff] %vm5340_vm1, %v7358_v56  ;;  %v7353_v22 = vadd.f32 %v11931_v17, %v7352_v46  ;;  %13398 = vmatpush3.msra.mxu0 %v7684_v11  ;;  %v17992_v43 = vadd.f32 %v7358_v56, %v17884_v6 }
0x1416   : > { %v13353_v28 = vpop.f32.mrf.mxu1  ;;  %13399 = vmatprep.subr.mxu0 %v7683_v25 }
0x1417   : > { %7391 = vst.msk [vmem:[#allocation2 + $0x18] sm:$0xff] %vm5340_vm1, %v7353_v22  ;;  %v7368_v61 = vadd.f32 %v13353_v28, %v11931_v17  ;;  %13368 = vmatprep.mubr.msk.f32.mxu0 %vm5340_vm1, %v7353_v22  ;;  %13400 = vmatpush3.msra.mxu0 %v7683_v25  ;;  %v17997_v10 = vadd.f32 %v7353_v22, %v17889_v31 }
0x1418   : > { %v7362_v45 = vpop.f32.mrf.mxu1  ;;  %13369 = vmatmul.mubr.msk.f32.gmra.mxu0 %vm5340_vm1, %v7358_v56  ;;  %13401 = vmatprep.subr.mxu0 %v7682_v2  ;;  %v7399_v31 = vld [vmem:[#allocation2 + $0x10] sm:$0xff] }
0x1419   : > { %7394 = vst.msk [vmem:[#allocation2 + $0x30] sm:$0xff] %vm5340_vm1, %v7368_v61  ;;  %v7363_v6 = vadd.f32 %v11931_v17, %v7362_v45  ;;  %13402 = vmatpush3.msra.mxu0 %v7682_v2  ;;  %v18002_v33 = vadd.f32 %v7368_v61, %v17896_v5 }
0x141a   : > { %v13356_v3 = vpop.f32.mrf.mxu1  ;;  %v7398_v35 = vld [vmem:[#allocation2 + $0x8] sm:$0xff]  ;;  %13403 = vmatprep.subr.mxu0 %v7681_v23 }
0x141b   : > { %7393 = vst.msk [vmem:[#allocation2 + $0x28] sm:$0xff] %vm5340_vm1, %v7363_v6  ;;  %v7378_v60 = vadd.f32 %v13356_v3, %v11931_v17  ;;  %13371 = vmatprep.mubr.msk.f32.mxu0 %vm5340_vm1, %v7363_v6  ;;  %13386 = vmatmul.mubr.msk.f32.vlgmr.msra.gmra.mxu1 %vm5340_vm1, %v7398_v35  ;;  %v18008_v59 = vadd.f32 %v7363_v6, %v17901_v40 }
0x141c   : > { %v7372_v26 = vpop.f32.mrf.mxu1  ;;  %13372 = vmatmul.mubr.msk.f32.gmra.mxu0 %vm5340_vm1, %v7368_v61  ;;  %13388 = vmatprep.mubr.msk.f32.mxu1 %vm5340_vm1, %v7399_v31  ;;  %v7401_v40 = vld [vmem:[#allocation2 + $0x20] sm:$0xff] }
0x141d   : > { %7396 = vst.msk [vmem:[#allocation2 + $0x40] sm:$0xff] %vm5340_vm1, %v7378_v60  ;;  %v7373_v5 = vadd.f32 %v11931_v17, %v7372_v26  ;;  %13404 = vmatpush3.msra.mxu0 %v7681_v23  ;;  %v18014_v7 = vadd.f32 %v7378_v60, %v17910_v1  ;;  %13418 = vmatpush3.msra.mxu1 %v7936_v9 }
0x141e   : > { %v7400_v50 = vld [vmem:[#allocation2 + $0x18] sm:$0xff]  ;;  %13419 = vmatprep.subr.mxu1 %v7935_v36 }
0x141f   : > { %7395 = vst.msk [vmem:[#allocation2 + $0x38] sm:$0xff] %vm5340_vm1, %v7373_v5  ;;  %13374 = vmatprep.mubr.msk.f32.mxu0 %vm5340_vm1, %v7373_v5  ;;  %13389 = vmatmul.mubr.msk.f32.gmra.mxu1 %vm5340_vm1, %v7400_v50  ;;  %v18020_v27 = vadd.f32 %v7373_v5, %v17913_v24 }
0x1420   : > { %13375 = vmatmul.mubr.msk.f32.gmra.mxu0 %vm5340_vm1, %v7378_v60  ;;  %13391 = vmatprep.mubr.msk.f32.mxu1 %vm5340_vm1, %v7401_v40  ;;  %v7403_v1 = vld [vmem:[#allocation2 + $0x30] sm:$0xff] }
0x1421   : > { %13405 = vmatprep.mubr.msk.f32.mxu0 %vm5340_vm1, %v7399_v31  ;;  %13420 = vmatpush3.msra.mxu1 %v7935_v36 }
0x1422   : > { %v7402_v30 = vld [vmem:[#allocation2 + $0x28] sm:$0xff]  ;;  %13421 = vmatprep.subr.mxu1 %v7934_v13 }
0x1423   : > { %13392 = vmatmul.mubr.msk.f32.gmra.mxu1 %vm5340_vm1, %v7402_v30 }
0x1424   : > { %13394 = vmatprep.mubr.msk.f32.mxu1 %vm5340_vm1, %v7403_v1  ;;  %13406 = vmatmul.mubr.msk.f32.vlgmr.msra.gmra.mxu0 %vm5340_vm1, %v7400_v50  ;;  %v7411_v24 = vld [vmem:[#allocation2 + $0x40] sm:$0xff] }
0x1425   : > { %13408 = vmatprep.mubr.msk.f32.mxu0 %vm5340_vm1, %v7401_v40  ;;  %13422 = vmatpush3.msra.mxu1 %v7934_v13 }
0x1426   : > { %v7404_v21 = vld [vmem:[#allocation2 + $0x38] sm:$0xff] }
0x1427   : > { %13395 = vmatmul.mubr.msk.f32.gmra.mxu1 %vm5340_vm1, %v7404_v21 }
0x1428   : > { %13409 = vmatmul.mubr.msk.f32.gmra.mxu0 %vm5340_vm1, %v7402_v30 }
0x1429   : > { %13411 = vmatprep.mubr.msk.f32.mxu0 %vm5340_vm1, %v7403_v1 }
0x142c   : > { %13412 = vmatmul.mubr.msk.f32.gmra.mxu0 %vm5340_vm1, %v7404_v21 }
0x142d   : > { %13414 = vmatprep.mubr.msk.f32.mxu0 %vm5340_vm1, %v7411_v24 }
0x1430   : > { %13415 = vmatmul.mubr.msk.f32.gmra.mxu0 %vm5340_vm1, %v17976_v4 }
0x14d4   : > { %v13367_v19 = vpop.f32.mrf.mxu0 }
0x14d6   : > { %v7512_v58 = vpop.f32.mrf.mxu0 }
0x14d8   : > { %v13370_v32 = vpop.f32.mrf.mxu0 }
0x14da   : > { %v7522_v8 = vpop.f32.mrf.mxu0 }
0x14db   : > { %v13387_v39 = vpop.f32.mrf.mxu1 }
0x14dc   : > { %v13373_v54 = vpop.f32.mrf.mxu0  ;;  %v7647_v29 = vadd.f32 %v13387_v39, %v13367_v19 }
0x14dd   : > { %v7641_v14 = vpop.f32.mrf.mxu1 }
0x14de   : > { %v7532_v42 = vpop.f32.mrf.mxu0  ;;  %v7642_v12 = vadd.f32 %v7641_v14, %v7512_v58  ;;  %v7933_v14 = vld [vmem:[#allocation56] sm:$0xff] }
0x14df   : > { %v13390_v34 = vpop.f32.mrf.mxu1  ;;  %13423 = vmatprep.subr.mxu1 %v7933_v14 }
0x14e0   : > { %v13376_v63 = vpop.f32.mrf.mxu0  ;;  %v7657_v48 = vadd.f32 %v13390_v34, %v13370_v32  ;;  %13424 = vmatpush3.msra.mxu1 %v7933_v14 }
0x14e1   : > { %v7651_v38 = vpop.f32.mrf.mxu1 }
0x14e2   : > { %v7542_v49 = vpop.f32.mrf.mxu0  ;;  %v7652_v53 = vadd.f32 %v7651_v38, %v7522_v8 }
0x14e3   : > { %v13393_v41 = vpop.f32.mrf.mxu1 }
0x14e4   : > { %v13407_v47 = vpop.f32.mrf.mxu0  ;;  %v7667_v52 = vadd.f32 %v13393_v41, %v13373_v54 }
0x14e5   : > { %v7815_v44 = vadd.f32 %v13407_v47, %v7647_v29  ;;  %v7661_v4 = vpop.f32.mrf.mxu1 }
0x14e6   : > { %v7775_v37 = vpop.f32.mrf.mxu0  ;;  %v7662_v22 = vadd.f32 %v7661_v4, %v7532_v42 }
0x14e7   : > { %v18036_v11 = vadd.f32 %v11964_v16, %v7815_v44  ;;  %v7814_v51 = vadd.f32 %v7775_v37, %v7642_v12  ;;  %v13396_v62 = vpop.f32.mrf.mxu1 }
0x14e8   : > { %v13410_v15 = vpop.f32.mrf.mxu0  ;;  %v7677_v6 = vadd.f32 %v13396_v62, %v13376_v63 }
0x14e9   : > { %v11966_v17 = vmul.f32 -1.442695, %v18036_v11  ;;  %v18039_v57 = vadd.f32 %v11964_v16, %v7814_v51  ;;  %v7817_v18 = vadd.f32 %v13410_v15, %v7657_v48  ;;  %v7671_v61 = vpop.f32.mrf.mxu1  ;;  %v8092_v51 = vld [vmem:[#allocation59 + $0x18] sm:$0xff]  ;;  %v8091_v15 = vld [vmem:[#allocation59 + $0x10] sm:$0xff] }
0x14ea   : > { %v7785_v0 = vpop.f32.mrf.mxu0  ;;  %v7672_v26 = vadd.f32 %v7671_v61, %v7542_v49  ;;  %13437 = vmatprep.subr.mxu0 %v8092_v51 }
0x14eb   : > { %14694 = vpow2.f32 %v11966_v17  ;;  %v11965_v56 = vmul.f32 -1.442695, %v18039_v57  ;;  %v18042_v25 = vadd.f32 %v11964_v16, %v7817_v18  ;;  %v7816_v46 = vadd.f32 %v7785_v0, %v7652_v53  ;;  %13438 = vmatpush3.msra.mxu0 %v8092_v51  ;;  %v8090_v17 = vld [vmem:[#allocation59 + $0x8] sm:$0xff] }
0x14ec   : > { %v13413_v2 = vpop.f32.mrf.mxu0  ;;  %13439 = vmatprep.subr.mxu0 %v8091_v15 }
0x14ed   : > { %14696 = vpow2.f32 %v11965_v56  ;;  %v11968_v28 = vmul.f32 -1.442695, %v18042_v25  ;;  %v18045_v23 = vadd.f32 %v11964_v16, %v7816_v46  ;;  %v7819_v45 = vadd.f32 %v13413_v2, %v7667_v52  ;;  %13440 = vmatpush3.msra.mxu0 %v8091_v15 }
0x14ee   : > { %v7795_v3 = vpop.f32.mrf.mxu0  ;;  %13441 = vmatprep.subr.mxu0 %v8090_v17 }
0x14ef   : > { %14698 = vpow2.f32 %v11968_v28  ;;  %v11967_v35 = vmul.f32 -1.442695, %v18045_v23  ;;  %v18048_v60 = vadd.f32 %v11964_v16, %v7819_v45  ;;  %v7818_v31 = vadd.f32 %v7795_v3, %v7662_v22  ;;  %13442 = vmatpush3.msra.mxu0 %v8090_v17 }
0x14f0   : > { %v13416_v5 = vpop.f32.mrf.mxu0 }
0x14f1   : > { %14700 = vpow2.f32 %v11967_v35  ;;  %v11970_v50 = vmul.f32 -1.442695, %v18048_v60  ;;  %v18051_v40 = vadd.f32 %v11964_v16, %v7818_v31  ;;  %v7821_v30 = vadd.f32 %v13416_v5, %v7677_v6 }
0x14f2   : > { %v7805_v1 = vpop.f32.mrf.mxu0 }
0x14f3   : > { %14702 = vpow2.f32 %v11970_v50  ;;  %v11969_v21 = vmul.f32 -1.442695, %v18051_v40  ;;  %v18054_v24 = vadd.f32 %v11964_v16, %v7821_v30  ;;  %v7820_v9 = vadd.f32 %v7805_v1, %v7672_v26 }
0x14f5   : > { %14704 = vpow2.f32 %v11969_v21  ;;  %v11972_v36 = vmul.f32 -1.442695, %v18054_v24  ;;  %v7835_v13 = vadd.f32 %v11964_v16, %v7820_v9  ;;  %v8089_v9 = vld [vmem:[#allocation59] sm:$0xff] }
0x14f6   : > { %13443 = vmatprep.subr.mxu0 %v8089_v9 }
0x14f7   : > { %14706 = vpow2.f32 %v11972_v36  ;;  %v11971_v19 = vmul.f32 -1.442695, %v7835_v13  ;;  %13444 = vmatpush3.msra.mxu0 %v8089_v9  ;;  %v8270_v36 = vld [vmem:[#allocation62 + $0x78] sm:$0xff] }
0x14f8   : > { %v14695_v58 = vpop.eup %14694  ;;  %13457 = vmatprep.subr.mxu1 %v8270_v36 }
0x14f9   : > { %v7870_v32 = vadd.f32 1.0, %v14695_v58  ;;  %14708 = vpow2.f32 %v11971_v19  ;;  %v8261_v19 = vld [vmem:[#allocation62 + $0x38] sm:$0xff]  ;;  %v8268_v58 = vld [vmem:[#allocation62 + $0x68] sm:$0xff] }
0x14fa   : > { %v14697_v8 = vpop.eup %14696  ;;  %13485 = vmatprep.subr.mxu0 %v8261_v19 }
0x14fb   : > { %14710 = vrcp.f32 %v7870_v32  ;;  %v7869_v39 = vadd.f32 1.0, %v14697_v8  ;;  %v8267_v32 = vld [vmem:[#allocation62 + $0x60] sm:$0xff]  ;;  %v8266_v8 = vld [vmem:[#allocation62 + $0x58] sm:$0xff] }
0x14fc   : > { %v14699_v54 = vpop.eup %14698 }
0x14fd   : > { %14712 = vrcp.f32 %v7869_v39  ;;  %v7872_v42 = vadd.f32 1.0, %v14699_v54  ;;  %v8265_v39 = vld [vmem:[#allocation62 + $0x50] sm:$0xff]  ;;  %v11973_v54 = vld [vmem:[#allocation57] ss:$0 sm:$0xff] }
0x14fe   : > { %v14701_v34 = vpop.eup %14700 }
0x14ff   : > { %14714 = vrcp.f32 %v7872_v42  ;;  %v7871_v63 = vadd.f32 1.0, %v14701_v34 }
0x1500   : > { %v14703_v38 = vpop.eup %14702 }
0x1501   : > { %14716 = vrcp.f32 %v7871_v63  ;;  %v7874_v49 = vadd.f32 1.0, %v14703_v38 }
0x1502   : > { %v14705_v29 = vpop.eup %14704 }
0x1503   : > { %14718 = vrcp.f32 %v7874_v49  ;;  %v7873_v41 = vadd.f32 1.0, %v14705_v29 }
0x1504   : > { %v14707_v47 = vpop.eup %14706 }
0x1505   : > { %14720 = vrcp.f32 %v7873_v41  ;;  %v7876_v16 = vadd.f32 1.0, %v14707_v47 }
0x1506   : > { %v14709_v12 = vpop.eup %14708 }
0x1507   : > { %14722 = vrcp.f32 %v7876_v16  ;;  %v7875_v44 = vadd.f32 1.0, %v14709_v12 }
0x1508   : > { %v14711_v4 = vpop.eup %14710 }
0x1509   : > { %14724 = vrcp.f32 %v7875_v44  ;;  %7903 = vrot.lane.b32.xlu1 %v14711_v4, %s16419_s11 }
0x150a   : > { %v14713_v37 = vpop.eup %14712  ;;  %14726 = vtanh.f32 %v18039_v57 }
0x150b   : > { %7901 = vrot.lane.b32.xlu0 %v14713_v37, %s16419_s11  ;;  %14728 = vtanh.f32 %v18036_v11 }
0x150c   : > { %v14715_v48 = vpop.eup %14714  ;;  %14730 = vtanh.f32 %v18045_v23 }
0x150d   : > { %7907 = vrot.lane.b32.xlu1 %v14715_v48, %s16419_s11  ;;  %14732 = vtanh.f32 %v18042_v25 }
0x150e   : > { %v14717_v53 = vpop.eup %14716  ;;  %14734 = vtanh.f32 %v18051_v40 }
0x150f   : > { %7905 = vrot.lane.b32.xlu0 %v14717_v53, %s16419_s11  ;;  %14736 = vtanh.f32 %v18048_v60 }
0x1510   : > { %v14719_v62 = vpop.eup %14718  ;;  %14738 = vtanh.f32 %v7835_v13  ;;  %v8269_v13 = vld [vmem:[#allocation62 + $0x70] sm:$0xff] }
0x1511   : > { %7911 = vrot.lane.b32.xlu1 %v14719_v62, %s16419_s11  ;;  %14740 = vtanh.f32 %v18054_v24 }
0x1512   : > { %v14721_v18 = vpop.eup %14720 }
0x1513   : > { %7909 = vrot.lane.b32.xlu0 %v14721_v18, %s16419_s11  ;;  %v8259_v18 = vld [vmem:[#allocation62 + $0x28] sm:$0xff] }
0x1514   : > { %v14723_v52 = vpop.eup %14722 }
0x1515   : > { %7915 = vrot.lane.b32.xlu1 %v14723_v52, %s16419_s11  ;;  %v8263_v52 = vld [vmem:[#allocation62 + $0x40] sm:$0xff] }
0x1516   : > { %v14725_v0 = vpop.eup %14724 }
0x1517   : > { %7913 = vrot.lane.b32.xlu0 %v14725_v0, %s16419_s11  ;;  %v14727_v46 = vpop.eup %14726  ;;  %v8257_v0 = vld [vmem:[#allocation62 + $0x18] sm:$0xff]  ;;  %s16142_s11 = sshll.u32 %s16422_s13, 4  ;;  %s16143_s11 = int_to_ptr.vmem [resolvable:$false] %s16142_s11 }
0x1518   : > { %v14729_v2 = vpop.eup %14728  ;;  %s16144_s28 = scalar_lea.vmem %s16143_s11, 32  ;;  %p16145_p5 = scmp.lt.s32.totalorder %s10912_s18, %s16143_s11 }
0x1519   : > { %v14731_v11 = vpop.eup %14730  ;;  %p16146_p4 = scmp.lt.s32.totalorder %s16144_s28, %s16138_s10 }
0x151a   : > { %v14733_v25 = vpop.eup %14732 }
0x151b   : > { %v14735_v35 = vpop.eup %14734  ;;  %p16147_p7 = por %p16146_p4, %p16145_p5 }
0x151c   : > { %v14737_v31 = vpop.eup %14736 }
0x151d   : > { %v14739_v40 = vpop.eup %14738  ;;  %p16148_p8 = pnand %p16147_p7, %p16141_p6 }
0x151e   : > { %v14741_v1 = vpop.eup %14740 }
0x157b   : > { %v7904_v56 = vpop.permute.xlu1 %7903 }
0x157c   : > { %v7926_v61 = vmul.f32 %v14729_v2, %v7904_v56  ;;  %v8256_v56 = vld [vmem:[#allocation62 + $0x10] sm:$0xff]  ;;  %v11982_v2 = vld [vmem:[#allocation60] ss:$0 sm:$0xff] }
0x157d   : > { %v7902_v22 = vpop.permute.xlu0 %7901 }
0x157e   : > { %v7925_v28 = vmul.f32 %v14727_v46, %v7902_v22  ;;  %v8255_v46 = vld [vmem:[#allocation62 + $0x8] sm:$0xff]  ;;  %v8254_v22 = vld [vmem:[#allocation62] sm:$0xff] }
0x157f   : > { %v7908_v57 = vpop.permute.xlu1 %7907 }
0x1580   : > { %13425 = vmatprep.mubr.msk.f32.mxu1 %vm5340_vm1, %v7925_v28  ;;  %v7928_v6 = vmul.f32 %v14733_v25, %v7908_v57 }
0x1581   : > { %v7906_v23 = vpop.permute.xlu0 %7905  ;;  %13426 = vmatmul.mubr.msk.f32.vlgmr.msra.gmra.mxu1 %vm5340_vm1, %v7926_v61 }
0x1582   : > { %v7927_v45 = vmul.f32 %v14731_v11, %v7906_v23  ;;  %13458 = vmatpush3.msra.mxu1 %v8270_v36  ;;  %v8532_v36 = vld [vmem:[#allocation62 + $0x90] sm:$0xff] }
0x1583   : > { %v7912_v3 = vpop.permute.xlu1 %7911  ;;  %13459 = vmatprep.subr.mxu1 %v8269_v13 }
0x1584   : > { %13428 = vmatprep.mubr.msk.f32.mxu1 %vm5340_vm1, %v7927_v45  ;;  %v7930_v5 = vmul.f32 %v14737_v31, %v7912_v3  ;;  %13460 = vmatpush3.msra.mxu1 %v8269_v13  ;;  %v8536_v45 = vld [vmem:[#allocation62 + $0xb0] sm:$0xff] }
0x1585   : > { %v7910_v60 = vpop.permute.xlu0 %7909  ;;  %13429 = vmatmul.mubr.msk.f32.gmra.mxu1 %vm5340_vm1, %v7928_v6  ;;  %13461 = vmatprep.subr.mxu1 %v8268_v58 }
0x1586   : > { %v7929_v26 = vmul.f32 %v14735_v35, %v7910_v60  ;;  %13462 = vmatpush3.msra.mxu1 %v8268_v58  ;;  %v8535_v35 = vld [vmem:[#allocation62 + $0xa8] sm:$0xff] }
0x1587   : > { %v7916_v50 = vpop.permute.xlu1 %7915  ;;  %13463 = vmatprep.subr.mxu1 %v8267_v32  ;;  %v8531_v58 = vld [vmem:[#allocation62 + $0x88] sm:$0xff] }
0x1588   : > { %13431 = vmatprep.mubr.msk.f32.mxu1 %vm5340_vm1, %v7929_v26  ;;  %v7932_v24 = vmul.f32 %v14741_v1, %v7916_v50  ;;  %13464 = vmatpush3.msra.mxu1 %v8267_v32  ;;  %v8534_v26 = vld [vmem:[#allocation62 + $0xa0] sm:$0xff] }
0x1589   : > { %v7914_v30 = vpop.permute.xlu0 %7913  ;;  %13432 = vmatmul.mubr.msk.f32.gmra.mxu1 %vm5340_vm1, %v7930_v5  ;;  %13465 = vmatprep.subr.mxu1 %v8266_v8 }
0x158a   : > { %v7931_v21 = vmul.f32 %v14739_v40, %v7914_v30  ;;  %13466 = vmatpush3.msra.mxu1 %v8266_v8  ;;  %v8533_v40 = vld [vmem:[#allocation62 + $0x98] sm:$0xff]  ;;  %v8530_v8 = vld [vmem:[#allocation62 + $0x80] sm:$0xff] }
0x158b   : > { %13467 = vmatprep.subr.mxu1 %v8265_v39 }
0x158c   : > { %13434 = vmatprep.mubr.msk.f32.mxu1 %vm5340_vm1, %v7931_v21  ;;  %13468 = vmatpush3.msra.mxu1 %v8265_v39 }
0x158d   : > { %13435 = vmatmul.mubr.msk.f32.gmra.mxu1 %vm5340_vm1, %v7932_v24 }
0x1641   : > { %v13427_v14 = vpop.f32.mrf.mxu1 }
0x1642   : > { %v8040_v42 = vadd.f32 %v13427_v14, %v11973_v54 }
0x1643   : > { %v8034_v34 = vpop.f32.mrf.mxu1 }
0x1644   : > { %8082 = vst.msk [vmem:[#allocation2 + $0x10] sm:$0xff] %vm5340_vm1, %v8040_v42  ;;  %v8035_v63 = vadd.f32 %v11973_v54, %v8034_v34  ;;  %v8074_v41 = vadd.f32 %v8040_v42, %v17982_v20 }
0x1645   : > { %v13430_v38 = vpop.f32.mrf.mxu1 }
0x1646   : > { %v8073_v49 = vadd.f32 %v8035_v63, %v17987_v55  ;;  %8081 = vst.msk [vmem:[#allocation2 + $0x8] sm:$0xff] %vm5340_vm1, %v8035_v63  ;;  %v8050_v29 = vadd.f32 %v13430_v38, %v11973_v54 }
0x1647   : > { %v8044_v47 = vpop.f32.mrf.mxu1 }
0x1648   : > { %8084 = vst.msk [vmem:[#allocation2 + $0x20] sm:$0xff] %vm5340_vm1, %v8050_v29  ;;  %v8045_v16 = vadd.f32 %v11973_v54, %v8044_v47  ;;  %13445 = vmatprep.mubr.msk.f32.mxu0 %vm5340_vm1, %v8073_v49  ;;  %v8076_v55 = vadd.f32 %v8050_v29, %v17992_v43 }
0x1649   : > { %v13433_v12 = vpop.f32.mrf.mxu1  ;;  %13446 = vmatmul.mubr.msk.f32.vlgmr.msra.gmra.mxu0 %vm5340_vm1, %v8074_v41 }
0x164a   : > { %v8075_v44 = vadd.f32 %v8045_v16, %v17997_v10  ;;  %8083 = vst.msk [vmem:[#allocation2 + $0x18] sm:$0xff] %vm5340_vm1, %v8045_v16  ;;  %v8060_v4 = vadd.f32 %v13433_v12, %v11973_v54  ;;  %13486 = vmatpush3.msra.mxu0 %v8261_v19  ;;  %v8793_v12 = vld [vmem:[#allocation65 + $0x38] sm:$0xff] }
0x164b   : > { %v8054_v37 = vpop.f32.mrf.mxu1 }
0x164c   : > { %8086 = vst.msk [vmem:[#allocation2 + $0x30] sm:$0xff] %vm5340_vm1, %v8060_v4  ;;  %v8055_v20 = vadd.f32 %v11973_v54, %v8054_v37  ;;  %13448 = vmatprep.mubr.msk.f32.mxu0 %vm5340_vm1, %v8075_v44  ;;  %v8078_v15 = vadd.f32 %v8060_v4, %v18002_v33  ;;  %v8264_v33 = vld [vmem:[#allocation62 + $0x48] sm:$0xff]  ;;  %v8792_v44 = vld [vmem:[#allocation65 + $0x30] sm:$0xff]  ;;  %v8789_v37 = vld [vmem:[#allocation65 + $0x18] sm:$0xff] }
0x164d   : > { %v13436_v48 = vpop.f32.mrf.mxu1  ;;  %13449 = vmatmul.mubr.msk.f32.gmra.mxu0 %vm5340_vm1, %v8076_v55  ;;  %13469 = vmatprep.subr.mxu1 %v8264_v33  ;;  %v8791_v4 = vld [vmem:[#allocation65 + $0x28] sm:$0xff]  ;;  %v8790_v55 = vld [vmem:[#allocation65 + $0x20] sm:$0xff] }
0x164e   : > { %v8077_v51 = vadd.f32 %v8055_v20, %v18008_v59  ;;  %8085 = vst.msk [vmem:[#allocation2 + $0x28] sm:$0xff] %vm5340_vm1, %v8055_v20  ;;  %v8070_v10 = vadd.f32 %v13436_v48, %v11973_v54  ;;  %v8260_v59 = vld [vmem:[#allocation62 + $0x30] sm:$0xff]  ;;  %13470 = vmatpush3.msra.mxu1 %v8264_v33 }
0x164f   : > { %v8064_v53 = vpop.f32.mrf.mxu1  ;;  %13487 = vmatprep.subr.mxu0 %v8260_v59  ;;  %13471 = vmatprep.subr.mxu1 %v8263_v52  ;;  %v8788_v20 = vld [vmem:[#allocation65 + $0x10] sm:$0xff] }
0x1650   : > { %8088 = vst.msk [vmem:[#allocation2 + $0x40] sm:$0xff] %vm5340_vm1, %v8070_v10  ;;  %v8065_v43 = vadd.f32 %v11973_v54, %v8064_v53  ;;  %13451 = vmatprep.mubr.msk.f32.mxu0 %vm5340_vm1, %v8077_v51  ;;  %v8080_v62 = vadd.f32 %v8070_v10, %v18014_v7  ;;  %13488 = vmatpush3.msra.mxu0 %v8260_v59  ;;  %v8537_v7 = vld [vmem:[#allocation62 + $0xb8] sm:$0xff] }
0x1651   : > { %13452 = vmatmul.mubr.msk.f32.gmra.mxu0 %vm5340_vm1, %v8078_v15  ;;  %13489 = vmatprep.subr.mxu0 %v8259_v18 }
0x1652   : > { %v8079_v17 = vadd.f32 %v8065_v43, %v18020_v27  ;;  %8087 = vst.msk [vmem:[#allocation2 + $0x38] sm:$0xff] %vm5340_vm1, %v8065_v43  ;;  %13490 = vmatpush3.msra.mxu0 %v8259_v18  ;;  %v8258_v27 = vld [vmem:[#allocation62 + $0x20] sm:$0xff]  ;;  %13472 = vmatpush3.msra.mxu1 %v8263_v52 }
0x1653   : > { %13491 = vmatprep.subr.mxu0 %v8258_v27  ;;  %13513 = vmatprep.subr.mxu1 %v8537_v7 }
0x1654   : > { %13454 = vmatprep.mubr.msk.f32.mxu0 %vm5340_vm1, %v8079_v17  ;;  %13492 = vmatpush3.msra.mxu0 %v8258_v27 }
0x1655   : > { %13455 = vmatmul.mubr.msk.f32.gmra.mxu0 %vm5340_vm1, %v8080_v62  ;;  %13493 = vmatprep.subr.mxu0 %v8257_v0 }
0x1656   : > { %13494 = vmatpush3.msra.mxu0 %v8257_v0  ;;  %v12015_v0 = vld [vmem:[#allocation63] ss:$0 sm:$0xff] }
0x1657   : > { %13495 = vmatprep.subr.mxu0 %v8256_v56 }
0x1658   : > { %13496 = vmatpush3.msra.mxu0 %v8256_v56 }
0x1659   : > { %13497 = vmatprep.subr.mxu0 %v8255_v46 }
0x165a   : > { %13498 = vmatpush3.msra.mxu0 %v8255_v46 }
0x165b   : > { %13499 = vmatprep.subr.mxu0 %v8254_v22 }
0x165c   : > { %13500 = vmatpush3.msra.mxu0 %v8254_v22 }
0x165d   : > { %13541 = vmatprep.subr.mxu0 %v8793_v12 }
0x1709   : > { %v13447_v28 = vpop.f32.mrf.mxu0 }
0x170a   : > { %v18104_v61 = vadd.f32 %v13447_v28, %v11982_v2 }
0x170b   : > { %v8190_v57 = vpop.f32.mrf.mxu0 }
0x170c   : > { %v18106_v11 = vadd.f32 %v11982_v2, %v8190_v57  ;;  %8231 = vst.msk [vmem:[#allocation2 + $0x10] sm:$0xff] %vm8229_vm2, %v18104_v61 }
0x170d   : > { %v13450_v23 = vpop.f32.mrf.mxu0 }
0x170e   : > { %v18110_v25 = vadd.f32 %v13450_v23, %v11982_v2  ;;  %13473 = vmatprep.mubr.msk.f32.mxu1 %vm8229_vm2, %v18106_v11  ;;  %8230 = vst.msk [vmem:[#allocation2 + $0x8] sm:$0xff] %vm8229_vm2, %v18106_v11 }
0x170f   : > { %v8200_v6 = vpop.f32.mrf.mxu0  ;;  %13474 = vmatmul.mubr.msk.f32.vlgmr.msra.gmra.mxu1 %vm8229_vm2, %v18104_v61 }
0x1710   : > { %8233 = vst.msk [vmem:[#allocation2 + $0x20] sm:$0xff] %vm8229_vm2, %v18110_v25  ;;  %v18120_v3 = vadd.f32 %v11982_v2, %v8200_v6  ;;  %13514 = vmatpush3.msra.mxu1 %v8537_v7 }
0x1711   : > { %13515 = vmatprep.subr.mxu1 %v8536_v45  ;;  %v13453_v60 = vpop.f32.mrf.mxu0 }
0x1712   : > { %8232 = vst.msk [vmem:[#allocation2 + $0x18] sm:$0xff] %vm8229_vm2, %v18120_v3  ;;  %v18124_v31 = vadd.f32 %v13453_v60, %v11982_v2  ;;  %13516 = vmatpush3.msra.mxu1 %v8536_v45  ;;  %13476 = vmatprep.mubr.msk.f32.mxu1 %vm8229_vm2, %v18120_v3 }
0x1713   : > { %13517 = vmatprep.subr.mxu1 %v8535_v35  ;;  %v8210_v5 = vpop.f32.mrf.mxu0  ;;  %13477 = vmatmul.mubr.msk.f32.gmra.mxu1 %vm8229_vm2, %v18110_v25 }
0x1714   : > { %8235 = vst.msk [vmem:[#allocation2 + $0x30] sm:$0xff] %vm8229_vm2, %v18124_v31  ;;  %v18132_v50 = vadd.f32 %v11982_v2, %v8210_v5  ;;  %13518 = vmatpush3.msra.mxu1 %v8535_v35 }
0x1715   : > { %13519 = vmatprep.subr.mxu1 %v8534_v26  ;;  %v13456_v30 = vpop.f32.mrf.mxu0  ;;  %v8238_v1 = vld [vmem:[#allocation2 + $0x7] sm:$0xff]  ;;  %v8239_v21 = vld [vmem:[#allocation2 + $0xf] sm:$0xff] }
0x1716   : > { %8234 = vst.msk [vmem:[#allocation2 + $0x28] sm:$0xff] %vm8229_vm2, %v18132_v50  ;;  %v18136_v24 = vadd.f32 %v13456_v30, %v11982_v2  ;;  %13520 = vmatpush3.msra.mxu1 %v8534_v26  ;;  %13479 = vmatprep.mubr.msk.f32.mxu1 %vm8229_vm2, %v18132_v50  ;;  %v8246_v39 = vld [vmem:[#allocation2 + $0x9] sm:$0xff] }
0x1717   : > { %13501 = vmatprep.mubr.msk.f32.mxu0 %vm8229_vm2, %v8238_v1  ;;  %13521 = vmatprep.subr.mxu1 %v8533_v40  ;;  %v8220_v9 = vpop.f32.mrf.mxu0 }
0x1718   : > { %8237 = vst.msk [vmem:[#allocation2 + $0x40] sm:$0xff] %vm8229_vm2, %v18136_v24  ;;  %v18143_v13 = vadd.f32 %v11982_v2, %v8220_v9  ;;  %13480 = vmatmul.mubr.msk.f32.gmra.mxu1 %vm8229_vm2, %v18124_v31  ;;  %13502 = vmatmul.mubr.msk.f32.vlgmr.msra.gmra.mxu0 %vm8229_vm2, %v8239_v21 }
0x1719   : > { %13522 = vmatpush3.msra.mxu1 %v8533_v40  ;;  %v8240_v19 = vld [vmem:[#allocation2 + $0x17] sm:$0xff]  ;;  %v8241_v32 = vld [vmem:[#allocation2 + $0x1f] sm:$0xff]  ;;  %13542 = vmatpush3.msra.mxu0 %v8793_v12 }
0x171a   : > { %8236 = vst.msk [vmem:[#allocation2 + $0x38] sm:$0xff] %vm8229_vm2, %v18143_v13  ;;  %13523 = vmatprep.subr.mxu1 %v8532_v36  ;;  %13482 = vmatprep.mubr.msk.f32.mxu1 %vm8229_vm2, %v18143_v13  ;;  %v8247_v42 = vld [vmem:[#allocation2 + $0x11] sm:$0xff]  ;;  %v8248_v34 = vld [vmem:[#allocation2 + $0x19] sm:$0xff] }
0x171b   : > { %13524 = vmatpush3.msra.mxu1 %v8532_v36  ;;  %13504 = vmatprep.mubr.msk.f32.mxu0 %vm8229_vm2, %v8240_v19 }
0x171c   : > { %13525 = vmatprep.subr.mxu1 %v8531_v58  ;;  %13483 = vmatmul.mubr.msk.f32.gmra.mxu1 %vm8229_vm2, %v18136_v24 }
0x171d   : > { %13505 = vmatmul.mubr.msk.f32.gmra.mxu0 %vm8229_vm2, %v8241_v32  ;;  %13526 = vmatpush3.msra.mxu1 %v8531_v58  ;;  %v8242_v54 = vld [vmem:[#allocation2 + $0x27] sm:$0xff]  ;;  %v8243_v14 = vld [vmem:[#allocation2 + $0x2f] sm:$0xff] }
0x171e   : > { %13527 = vmatprep.subr.mxu1 %v8530_v8  ;;  %13529 = vmatprep.mubr.msk.f32.mxu1 %vm8229_vm2, %v8246_v39  ;;  %v8249_v49 = vld [vmem:[#allocation2 + $0x21] sm:$0xff]  ;;  %v8250_v29 = vld [vmem:[#allocation2 + $0x29] sm:$0xff] }
0x171f   : > { %13528 = vmatpush3.msra.mxu1 %v8530_v8  ;;  %13507 = vmatprep.mubr.msk.f32.mxu0 %vm8229_vm2, %v8242_v54  ;;  %v8253_v16 = vld [vmem:[#allocation2 + $0x41] sm:$0xff] }
0x1720   : > { %13530 = vmatmul.mubr.msk.f32.vlgmr.msra.gmra.mxu1 %vm8229_vm2, %v8247_v42  ;;  %13543 = vmatprep.subr.mxu0 %v8792_v44 }
0x1721   : > { %13508 = vmatmul.mubr.msk.f32.gmra.mxu0 %vm8229_vm2, %v8243_v14  ;;  %13532 = vmatprep.mubr.msk.f32.mxu1 %vm8229_vm2, %v8248_v34  ;;  %v8244_v63 = vld [vmem:[#allocation2 + $0x37] sm:$0xff]  ;;  %v8245_v38 = vld [vmem:[#allocation2 + $0x3f] sm:$0xff] }
0x1722   : > { %13510 = vmatprep.mubr.msk.f32.mxu0 %vm8229_vm2, %v8244_v63  ;;  %v8251_v41 = vld [vmem:[#allocation2 + $0x31] sm:$0xff]  ;;  %v8252_v47 = vld [vmem:[#allocation2 + $0x39] sm:$0xff]  ;;  %13544 = vmatpush3.msra.mxu0 %v8792_v44 }
0x1723   : > { %13545 = vmatprep.subr.mxu0 %v8791_v4 }
0x1724   : > { %13533 = vmatmul.mubr.msk.f32.gmra.mxu1 %vm8229_vm2, %v8249_v49  ;;  %13546 = vmatpush3.msra.mxu0 %v8791_v4 }
0x1725   : > { %13511 = vmatmul.mubr.msk.f32.gmra.mxu0 %vm8229_vm2, %v8245_v38  ;;  %13535 = vmatprep.mubr.msk.f32.mxu1 %vm8229_vm2, %v8250_v29 }
0x1726   : > { %13547 = vmatprep.subr.mxu0 %v8790_v55 }
0x1727   : > { %13548 = vmatpush3.msra.mxu0 %v8790_v55 }
0x1728   : > { %13536 = vmatmul.mubr.msk.f32.gmra.mxu1 %vm8229_vm2, %v8251_v41  ;;  %13549 = vmatprep.subr.mxu0 %v8789_v37 }
0x1729   : > { %13538 = vmatprep.mubr.msk.f32.mxu1 %vm8229_vm2, %v8252_v47  ;;  %13550 = vmatpush3.msra.mxu0 %v8789_v37 }
0x172a   : > { %13551 = vmatprep.subr.mxu0 %v8788_v20 }
0x172b   : > { %13552 = vmatpush3.msra.mxu0 %v8788_v20 }
0x172c   : > { %13539 = vmatmul.mubr.msk.f32.gmra.mxu1 %vm8229_vm2, %v8253_v16 }
0x17cf   : > { %v13475_v48 = vpop.f32.mrf.mxu1 }
0x17d1   : > { %v8361_v51 = vpop.f32.mrf.mxu1 }
0x17d3   : > { %v13478_v10 = vpop.f32.mrf.mxu1 }
0x17d5   : > { %v8371_v15 = vpop.f32.mrf.mxu1 }
0x17d8   : > { %v13481_v53 = vpop.f32.mrf.mxu1  ;;  %v13503_v43 = vpop.f32.mrf.mxu0 }
0x17d9   : > { %v8496_v52 = vadd.f32 %v13503_v43, %v13475_v48 }
0x17da   : > { %v8381_v17 = vpop.f32.mrf.mxu1  ;;  %v8490_v62 = vpop.f32.mrf.mxu0 }
0x17db   : > { %v8491_v56 = vadd.f32 %v8490_v62, %v8361_v51 }
0x17dc   : > { %v13484_v59 = vpop.f32.mrf.mxu1 }
0x17dd   : > { %v13506_v33 = vpop.f32.mrf.mxu0 }
0x17de   : > { %v8391_v18 = vpop.f32.mrf.mxu1  ;;  %v8506_v28 = vadd.f32 %v13506_v33, %v13478_v10  ;;  %v8786_v33 = vld [vmem:[#allocation65] sm:$0xff] }
0x17df   : > { %v8500_v27 = vpop.f32.mrf.mxu0 }
0x17e0   : > { %v13531_v7 = vpop.f32.mrf.mxu1  ;;  %v8501_v35 = vadd.f32 %v8500_v27, %v8371_v15 }
0x17e1   : > { %v13509_v46 = vpop.f32.mrf.mxu0  ;;  %v8668_v22 = vadd.f32 %v13531_v7, %v8496_v52 }
0x17e2   : > { %v8628_v2 = vpop.f32.mrf.mxu1  ;;  %v8516_v30 = vadd.f32 %v13509_v46, %v13481_v53 }
0x17e3   : > { %v18168_v57 = vadd.f32 %v12015_v0, %v8668_v22  ;;  %v8510_v23 = vpop.f32.mrf.mxu0  ;;  %v8667_v45 = vadd.f32 %v8628_v2, %v8491_v56 }
0x17e4   : > { %v13534_v6 = vpop.f32.mrf.mxu1  ;;  %v8511_v19 = vadd.f32 %v8510_v23, %v8381_v17  ;;  %v8787_v17 = vld [vmem:[#allocation65 + $0x8] sm:$0xff] }
0x17e5   : > { %v12017_v60 = vmul.f32 -1.442695, %v18168_v57  ;;  %v18171_v26 = vadd.f32 %v12015_v0, %v8667_v45  ;;  %v13512_v5 = vpop.f32.mrf.mxu0  ;;  %v8670_v40 = vadd.f32 %v13534_v6, %v8506_v28  ;;  %13553 = vmatprep.subr.mxu0 %v8787_v17  ;;  %v8978_v6 = vld [vmem:[#allocation68 + $0x78] sm:$0xff] }
0x17e6   : > { %v8638_v1 = vpop.f32.mrf.mxu1  ;;  %v8526_v14 = vadd.f32 %v13512_v5, %v13484_v59  ;;  %13554 = vmatpush3.msra.mxu0 %v8787_v17  ;;  %13569 = vmatprep.subr.mxu1 %v8978_v6  ;;  %v8969_v5 = vld [vmem:[#allocation68 + $0x38] sm:$0xff]  ;;  %v8966_v17 = vld [vmem:[#allocation68 + $0x20] sm:$0xff] }
0x17e7   : > { %14742 = vpow2.f32 %v12017_v60  ;;  %v12016_v21 = vmul.f32 -1.442695, %v18171_v26  ;;  %v18174_v9 = vadd.f32 %v12015_v0, %v8670_v40  ;;  %v8669_v36 = vadd.f32 %v8638_v1, %v8501_v35  ;;  %v8520_v8 = vpop.f32.mrf.mxu0  ;;  %13555 = vmatprep.subr.mxu0 %v8786_v33  ;;  %v8977_v35 = vld [vmem:[#allocation68 + $0x70] sm:$0xff]  ;;  %13570 = vmatpush3.msra.mxu1 %v8978_v6  ;;  %v8976_v40 = vld [vmem:[#allocation68 + $0x68] sm:$0xff]  ;;  %v8975_v1 = vld [vmem:[#allocation68 + $0x60] sm:$0xff] }
0x17e8   : > { %v13537_v58 = vpop.f32.mrf.mxu1  ;;  %v8521_v49 = vadd.f32 %v8520_v8, %v8391_v18  ;;  %13556 = vmatpush3.msra.mxu0 %v8786_v33  ;;  %13571 = vmatprep.subr.mxu1 %v8977_v35  ;;  %v8964_v33 = vld [vmem:[#allocation68 + $0x10] sm:$0xff]  ;;  %v9243_v6 = vld [vmem:[#allocation68 + $0xa8] sm:$0xff] }
0x17e9   : > { %14744 = vpow2.f32 %v12016_v21  ;;  %v12019_v32 = vmul.f32 -1.442695, %v18174_v9  ;;  %v18177_v39 = vadd.f32 %v12015_v0, %v8669_v36  ;;  %v8672_v54 = vadd.f32 %v13537_v58, %v8516_v30  ;;  %13597 = vmatprep.subr.mxu0 %v8969_v5  ;;  %13572 = vmatpush3.msra.mxu1 %v8977_v35  ;;  %v8974_v36 = vld [vmem:[#allocation68 + $0x58] sm:$0xff]  ;;  %v8973_v58 = vld [vmem:[#allocation68 + $0x50] sm:$0xff] }
0x17ea   : > { %v8648_v42 = vpop.f32.mrf.mxu1  ;;  %13573 = vmatprep.subr.mxu1 %v8976_v40 }
0x17eb   : > { %14746 = vpow2.f32 %v12019_v32  ;;  %v12018_v34 = vmul.f32 -1.442695, %v18177_v39  ;;  %v18180_v63 = vadd.f32 %v12015_v0, %v8672_v54  ;;  %v8671_v38 = vadd.f32 %v8648_v42, %v8511_v19  ;;  %13574 = vmatpush3.msra.mxu1 %v8976_v40 }
0x17ec   : > { %v13540_v29 = vpop.f32.mrf.mxu1  ;;  %13575 = vmatprep.subr.mxu1 %v8975_v1 }
0x17ed   : > { %14748 = vpow2.f32 %v12018_v34  ;;  %v12021_v41 = vmul.f32 -1.442695, %v18180_v63  ;;  %v18183_v47 = vadd.f32 %v12015_v0, %v8671_v38  ;;  %v8674_v16 = vadd.f32 %v13540_v29, %v8526_v14  ;;  %13576 = vmatpush3.msra.mxu1 %v8975_v1  ;;  %v9241_v1 = vld [vmem:[#allocation68 + $0x98] sm:$0xff] }
0x17ee   : > { %v8658_v12 = vpop.f32.mrf.mxu1  ;;  %13577 = vmatprep.subr.mxu1 %v8974_v36 }
0x17ef   : > { %14750 = vpow2.f32 %v12021_v41  ;;  %v12020_v44 = vmul.f32 -1.442695, %v18183_v47  ;;  %v18186_v4 = vadd.f32 %v12015_v0, %v8674_v16  ;;  %v8673_v55 = vadd.f32 %v8658_v12, %v8521_v49  ;;  %13578 = vmatpush3.msra.mxu1 %v8974_v36 }
0x17f0   : > { %13579 = vmatprep.subr.mxu1 %v8973_v58 }
0x17f1   : > { %14752 = vpow2.f32 %v12020_v44  ;;  %v12023_v37 = vmul.f32 -1.442695, %v18186_v4  ;;  %v18189_v20 = vadd.f32 %v12015_v0, %v8673_v55  ;;  %13580 = vmatpush3.msra.mxu1 %v8973_v58 }
0x17f3   : > { %14754 = vpow2.f32 %v12023_v37  ;;  %v12022_v48 = vmul.f32 -1.442695, %v18189_v20 }
0x17f4   : > { %v14743_v51 = vpop.eup %14742 }
0x17f5   : > { %v8723_v10 = vadd.f32 1.0, %v14743_v51  ;;  %14756 = vpow2.f32 %v12022_v48 }
0x17f6   : > { %v14745_v15 = vpop.eup %14744 }
0x17f7   : > { %14758 = vrcp.f32 %v8723_v10  ;;  %v8722_v53 = vadd.f32 1.0, %v14745_v15  ;;  %v8968_v10 = vld [vmem:[#allocation68 + $0x30] sm:$0xff]  ;;  %v8972_v15 = vld [vmem:[#allocation68 + $0x48] sm:$0xff] }
0x17f8   : > { %v14747_v43 = vpop.eup %14746  ;;  %13581 = vmatprep.subr.mxu1 %v8972_v15 }
0x17f9   : > { %14760 = vrcp.f32 %v8722_v53  ;;  %v8725_v62 = vadd.f32 1.0, %v14747_v43  ;;  %v8967_v53 = vld [vmem:[#allocation68 + $0x28] sm:$0xff]  ;;  %13582 = vmatpush3.msra.mxu1 %v8972_v15  ;;  %v8971_v43 = vld [vmem:[#allocation68 + $0x40] sm:$0xff] }
0x17fa   : > { %v14749_v59 = vpop.eup %14748  ;;  %13583 = vmatprep.subr.mxu1 %v8971_v43 }
0x17fb   : > { %14762 = vrcp.f32 %v8725_v62  ;;  %v8724_v18 = vadd.f32 1.0, %v14749_v59  ;;  %13584 = vmatpush3.msra.mxu1 %v8971_v43  ;;  %v9245_v62 = vld [vmem:[#allocation68 + $0xb8] sm:$0xff] }
0x17fc   : > { %v14751_v52 = vpop.eup %14750  ;;  %v8965_v59 = vld [vmem:[#allocation68 + $0x18] sm:$0xff]  ;;  %13625 = vmatprep.subr.mxu1 %v9245_v62 }
0x17fd   : > { %14764 = vrcp.f32 %v8724_v18  ;;  %v8727_v27 = vadd.f32 1.0, %v14751_v52  ;;  %v8963_v18 = vld [vmem:[#allocation68 + $0x8] sm:$0xff]  ;;  %v8962_v52 = vld [vmem:[#allocation68] sm:$0xff] }
0x17fe   : > { %v14753_v7 = vpop.eup %14752 }
0x17ff   : > { %14766 = vrcp.f32 %v8727_v27  ;;  %v8726_v0 = vadd.f32 1.0, %v14753_v7  ;;  %v12024_v27 = vld [vmem:[#allocation66] ss:$0 sm:$0xff] }
0x1800   : > { %v14755_v56 = vpop.eup %14754 }
0x1801   : > { %14768 = vrcp.f32 %v8726_v0  ;;  %v8729_v46 = vadd.f32 1.0, %v14755_v56 }
0x1802   : > { %v14757_v22 = vpop.eup %14756 }
0x1803   : > { %14770 = vrcp.f32 %v8729_v46  ;;  %v8728_v2 = vadd.f32 1.0, %v14757_v22 }
0x1804   : > { %v14759_v28 = vpop.eup %14758 }
0x1805   : > { %14772 = vrcp.f32 %v8728_v2  ;;  %8756 = vrot.lane.b32.xlu1 %v14759_v28, %s16420_s23  ;;  %v9244_v28 = vld [vmem:[#allocation68 + $0xb0] sm:$0xff] }
0x1806   : > { %v14761_v23 = vpop.eup %14760  ;;  %14774 = vtanh.f32 %v18171_v26 }
0x1807   : > { %8754 = vrot.lane.b32.xlu0 %v14761_v23, %s16420_s23  ;;  %14776 = vtanh.f32 %v18168_v57 }
0x1808   : > { %v14763_v45 = vpop.eup %14762  ;;  %14778 = vtanh.f32 %v18177_v39 }
0x1809   : > { %8760 = vrot.lane.b32.xlu1 %v14763_v45, %s16420_s23  ;;  %14780 = vtanh.f32 %v18174_v9 }
0x180a   : > { %v14765_v60 = vpop.eup %14764  ;;  %14782 = vtanh.f32 %v18183_v47 }
0x180b   : > { %8758 = vrot.lane.b32.xlu0 %v14765_v60, %s16420_s23  ;;  %14784 = vtanh.f32 %v18180_v63 }
0x180c   : > { %v14767_v30 = vpop.eup %14766  ;;  %14786 = vtanh.f32 %v18189_v20 }
0x180d   : > { %8764 = vrot.lane.b32.xlu1 %v14767_v30, %s16420_s23  ;;  %14788 = vtanh.f32 %v18186_v4 }
0x180e   : > { %v14769_v21 = vpop.eup %14768 }
0x180f   : > { %8762 = vrot.lane.b32.xlu0 %v14769_v21, %s16420_s23 }
0x1810   : > { %v14771_v19 = vpop.eup %14770 }
0x1811   : > { %8768 = vrot.lane.b32.xlu1 %v14771_v19, %s16420_s23 }
0x1812   : > { %v14773_v32 = vpop.eup %14772 }
0x1813   : > { %8766 = vrot.lane.b32.xlu0 %v14773_v32, %s16420_s23  ;;  %v14775_v54 = vpop.eup %14774 }
0x1814   : > { %v14777_v42 = vpop.eup %14776 }
0x1815   : > { %v14779_v57 = vpop.eup %14778 }
0x1816   : > { %v14781_v9 = vpop.eup %14780 }
0x1817   : > { %v14783_v41 = vpop.eup %14782 }
0x1818   : > { %v14785_v16 = vpop.eup %14784 }
0x1819   : > { %v14787_v55 = vpop.eup %14786 }
0x181a   : > { %v14789_v20 = vpop.eup %14788 }
0x1877   : > { %v8757_v8 = vpop.permute.xlu1 %8756 }
0x1878   : > { %v8779_v26 = vmul.f32 %v14777_v42, %v8757_v8  ;;  %v9240_v8 = vld [vmem:[#allocation68 + $0x90] sm:$0xff]  ;;  %v9239_v42 = vld [vmem:[#allocation68 + $0x88] sm:$0xff] }
0x1879   : > { %v8755_v14 = vpop.permute.xlu0 %8754 }
0x187a   : > { %v8778_v34 = vmul.f32 %v14775_v54, %v8755_v14 }
0x187b   : > { %v8761_v38 = vpop.permute.xlu1 %8760 }
0x187c   : > { %13557 = vmatprep.mubr.msk.f32.mxu0 %vm8229_vm2, %v8778_v34  ;;  %v8781_v63 = vmul.f32 %v14781_v9, %v8761_v38 }
0x187d   : > { %v8759_v39 = vpop.permute.xlu0 %8758  ;;  %13558 = vmatmul.mubr.msk.f32.vlgmr.msra.gmra.mxu0 %vm8229_vm2, %v8779_v26  ;;  %v9238_v26 = vld [vmem:[#allocation68 + $0x80] sm:$0xff] }
0x187e   : > { %v8780_v49 = vmul.f32 %v14779_v57, %v8759_v39  ;;  %13598 = vmatpush3.msra.mxu0 %v8969_v5  ;;  %v9242_v5 = vld [vmem:[#allocation68 + $0xa0] sm:$0xff] }
0x187f   : > { %v8765_v29 = vpop.permute.xlu1 %8764  ;;  %13599 = vmatprep.subr.mxu0 %v8968_v10 }
0x1880   : > { %13560 = vmatprep.mubr.msk.f32.mxu0 %vm8229_vm2, %v8780_v49  ;;  %v8783_v44 = vmul.f32 %v14785_v16, %v8765_v29  ;;  %13600 = vmatpush3.msra.mxu0 %v8968_v10 }
0x1881   : > { %v8763_v47 = vpop.permute.xlu0 %8762  ;;  %13561 = vmatmul.mubr.msk.f32.gmra.mxu0 %vm8229_vm2, %v8781_v63  ;;  %13601 = vmatprep.subr.mxu0 %v8967_v53 }
0x1882   : > { %v8782_v12 = vmul.f32 %v14783_v41, %v8763_v47  ;;  %13602 = vmatpush3.msra.mxu0 %v8967_v53 }
0x1883   : > { %v8769_v4 = vpop.permute.xlu1 %8768  ;;  %13603 = vmatprep.subr.mxu0 %v8966_v17 }
0x1884   : > { %13563 = vmatprep.mubr.msk.f32.mxu0 %vm8229_vm2, %v8782_v12  ;;  %v8785_v51 = vmul.f32 %v14789_v20, %v8769_v4  ;;  %13604 = vmatpush3.msra.mxu0 %v8966_v17  ;;  %v9501_v4 = vld [vmem:[#allocation71 + $0x38] sm:$0xff]  ;;  %v9498_v20 = vld [vmem:[#allocation71 + $0x20] sm:$0xff] }
0x1885   : > { %v8767_v37 = vpop.permute.xlu0 %8766  ;;  %13564 = vmatmul.mubr.msk.f32.gmra.mxu0 %vm8229_vm2, %v8783_v44  ;;  %13605 = vmatprep.subr.mxu0 %v8965_v59 }
0x1886   : > { %v8784_v48 = vmul.f32 %v14787_v55, %v8767_v37  ;;  %13606 = vmatpush3.msra.mxu0 %v8965_v59  ;;  %v9500_v55 = vld [vmem:[#allocation71 + $0x30] sm:$0xff]  ;;  %v9499_v37 = vld [vmem:[#allocation71 + $0x28] sm:$0xff] }
0x1887   : > { %13607 = vmatprep.subr.mxu0 %v8964_v33 }
0x1888   : > { %13566 = vmatprep.mubr.msk.f32.mxu0 %vm8229_vm2, %v8784_v48  ;;  %13608 = vmatpush3.msra.mxu0 %v8964_v33  ;;  %v9497_v48 = vld [vmem:[#allocation71 + $0x18] sm:$0xff] }
0x1889   : > { %13567 = vmatmul.mubr.msk.f32.gmra.mxu0 %vm8229_vm2, %v8785_v51  ;;  %13609 = vmatprep.subr.mxu0 %v8963_v18  ;;  %v9496_v51 = vld [vmem:[#allocation71 + $0x10] sm:$0xff] }
0x188a   : > { %13610 = vmatpush3.msra.mxu0 %v8963_v18 }
0x188b   : > { %13611 = vmatprep.subr.mxu0 %v8962_v52 }
0x188c   : > { %13612 = vmatpush3.msra.mxu0 %v8962_v52 }
0x188d   : > { %13653 = vmatprep.subr.mxu0 %v9501_v4 }
0x193d   : > { %v13559_v7 = vpop.f32.mrf.mxu0 }
0x193e   : > { %v18216_v0 = vadd.f32 %v13559_v7, %v12024_v27 }
0x193f   : > { %v8891_v56 = vpop.f32.mrf.mxu0 }
0x1940   : > { %8939 = vst.msk [vmem:[#allocation2 + $0x10] sm:$0xff] %vm8229_vm2, %v18216_v0  ;;  %v18220_v46 = vadd.f32 %v12024_v27, %v8891_v56 }
0x1941   : > { %v13562_v22 = vpop.f32.mrf.mxu0 }
0x1942   : > { %8938 = vst.msk [vmem:[#allocation2 + $0x8] sm:$0xff] %vm8229_vm2, %v18220_v46  ;;  %v18224_v2 = vadd.f32 %v13562_v22, %v12024_v27  ;;  %13585 = vmatprep.mubr.msk.f32.mxu1 %vm8229_vm2, %v18220_v46 }
0x1943   : > { %v8901_v23 = vpop.f32.mrf.mxu0  ;;  %13586 = vmatmul.mubr.msk.f32.vlgmr.msra.gmra.mxu1 %vm8229_vm2, %v18216_v0 }
0x1944   : > { %8941 = vst.msk [vmem:[#allocation2 + $0x20] sm:$0xff] %vm8229_vm2, %v18224_v2  ;;  %v18232_v45 = vadd.f32 %v12024_v27, %v8901_v23  ;;  %13626 = vmatpush3.msra.mxu1 %v9245_v62 }
0x1945   : > { %13627 = vmatprep.subr.mxu1 %v9244_v28  ;;  %v13565_v35 = vpop.f32.mrf.mxu0 }
0x1946   : > { %8940 = vst.msk [vmem:[#allocation2 + $0x18] sm:$0xff] %vm8229_vm2, %v18232_v45  ;;  %v18236_v60 = vadd.f32 %v13565_v35, %v12024_v27  ;;  %13628 = vmatpush3.msra.mxu1 %v9244_v28  ;;  %13588 = vmatprep.mubr.msk.f32.mxu1 %vm8229_vm2, %v18232_v45  ;;  %v12057_v28 = vld [vmem:[#allocation69] ss:$0 sm:$0xff] }
0x1947   : > { %13629 = vmatprep.subr.mxu1 %v9243_v6  ;;  %v8911_v40 = vpop.f32.mrf.mxu0  ;;  %13589 = vmatmul.mubr.msk.f32.gmra.mxu1 %vm8229_vm2, %v18224_v2 }
0x1948   : > { %8943 = vst.msk [vmem:[#allocation2 + $0x30] sm:$0xff] %vm8229_vm2, %v18236_v60  ;;  %v18244_v30 = vadd.f32 %v12024_v27, %v8911_v40  ;;  %13630 = vmatpush3.msra.mxu1 %v9243_v6 }
0x1949   : > { %13631 = vmatprep.subr.mxu1 %v9242_v5  ;;  %v13568_v21 = vpop.f32.mrf.mxu0  ;;  %v8946_v36 = vld [vmem:[#allocation2 + $0x6] sm:$0xff]  ;;  %v8947_v19 = vld [vmem:[#allocation2 + $0xe] sm:$0xff] }
0x194a   : > { %8942 = vst.msk [vmem:[#allocation2 + $0x28] sm:$0xff] %vm8229_vm2, %v18244_v30  ;;  %v18248_v58 = vadd.f32 %v13568_v21, %v12024_v27  ;;  %13632 = vmatpush3.msra.mxu1 %v9242_v5  ;;  %13591 = vmatprep.mubr.msk.f32.mxu1 %vm8229_vm2, %v18244_v30  ;;  %v8954_v38 = vld [vmem:[#allocation2 + $0xa] sm:$0xff] }
0x194b   : > { %13613 = vmatprep.mubr.msk.f32.mxu0 %vm8229_vm2, %v8946_v36  ;;  %13633 = vmatprep.subr.mxu1 %v9241_v1  ;;  %v8921_v32 = vpop.f32.mrf.mxu0 }
0x194c   : > { %8945 = vst.msk [vmem:[#allocation2 + $0x40] sm:$0xff] %vm8229_vm2, %v18248_v58  ;;  %v18255_v54 = vadd.f32 %v12024_v27, %v8921_v32  ;;  %13592 = vmatmul.mubr.msk.f32.gmra.mxu1 %vm8229_vm2, %v18236_v60  ;;  %13614 = vmatmul.mubr.msk.f32.vlgmr.msra.gmra.mxu0 %vm8229_vm2, %v8947_v19 }
0x194d   : > { %13634 = vmatpush3.msra.mxu1 %v9241_v1  ;;  %v8948_v14 = vld [vmem:[#allocation2 + $0x16] sm:$0xff]  ;;  %v8949_v34 = vld [vmem:[#allocation2 + $0x1e] sm:$0xff]  ;;  %13654 = vmatpush3.msra.mxu0 %v9501_v4 }
0x194e   : > { %8944 = vst.msk [vmem:[#allocation2 + $0x38] sm:$0xff] %vm8229_vm2, %v18255_v54  ;;  %13635 = vmatprep.subr.mxu1 %v9240_v8  ;;  %13594 = vmatprep.mubr.msk.f32.mxu1 %vm8229_vm2, %v18255_v54  ;;  %v8955_v9 = vld [vmem:[#allocation2 + $0x12] sm:$0xff]  ;;  %v8956_v49 = vld [vmem:[#allocation2 + $0x1a] sm:$0xff] }
0x194f   : > { %13636 = vmatpush3.msra.mxu1 %v9240_v8  ;;  %13616 = vmatprep.mubr.msk.f32.mxu0 %vm8229_vm2, %v8948_v14 }
0x1950   : > { %13637 = vmatprep.subr.mxu1 %v9239_v42  ;;  %13595 = vmatmul.mubr.msk.f32.gmra.mxu1 %vm8229_vm2, %v18248_v58 }
0x1951   : > { %13617 = vmatmul.mubr.msk.f32.gmra.mxu0 %vm8229_vm2, %v8949_v34  ;;  %13638 = vmatpush3.msra.mxu1 %v9239_v42  ;;  %v8950_v57 = vld [vmem:[#allocation2 + $0x26] sm:$0xff]  ;;  %v8951_v39 = vld [vmem:[#allocation2 + $0x2e] sm:$0xff] }
0x1952   : > { %13639 = vmatprep.subr.mxu1 %v9238_v26  ;;  %13641 = vmatprep.mubr.msk.f32.mxu1 %vm8229_vm2, %v8954_v38  ;;  %v8957_v41 = vld [vmem:[#allocation2 + $0x22] sm:$0xff]  ;;  %v8958_v47 = vld [vmem:[#allocation2 + $0x2a] sm:$0xff] }
0x1953   : > { %13640 = vmatpush3.msra.mxu1 %v9238_v26  ;;  %13619 = vmatprep.mubr.msk.f32.mxu0 %vm8229_vm2, %v8950_v57  ;;  %v8961_v44 = vld [vmem:[#allocation2 + $0x42] sm:$0xff] }
0x1954   : > { %13642 = vmatmul.mubr.msk.f32.vlgmr.msra.gmra.mxu1 %vm8229_vm2, %v8955_v9  ;;  %13655 = vmatprep.subr.mxu0 %v9500_v55 }
0x1955   : > { %13620 = vmatmul.mubr.msk.f32.gmra.mxu0 %vm8229_vm2, %v8951_v39  ;;  %13644 = vmatprep.mubr.msk.f32.mxu1 %vm8229_vm2, %v8956_v49  ;;  %v8952_v63 = vld [vmem:[#allocation2 + $0x36] sm:$0xff]  ;;  %v8953_v29 = vld [vmem:[#allocation2 + $0x3e] sm:$0xff] }
0x1956   : > { %13622 = vmatprep.mubr.msk.f32.mxu0 %vm8229_vm2, %v8952_v63  ;;  %v8959_v16 = vld [vmem:[#allocation2 + $0x32] sm:$0xff]  ;;  %v8960_v12 = vld [vmem:[#allocation2 + $0x3a] sm:$0xff]  ;;  %13656 = vmatpush3.msra.mxu0 %v9500_v55 }
0x1957   : > { %13657 = vmatprep.subr.mxu0 %v9499_v37 }
0x1958   : > { %13645 = vmatmul.mubr.msk.f32.gmra.mxu1 %vm8229_vm2, %v8957_v41  ;;  %13658 = vmatpush3.msra.mxu0 %v9499_v37 }
0x1959   : > { %13623 = vmatmul.mubr.msk.f32.gmra.mxu0 %vm8229_vm2, %v8953_v29  ;;  %13647 = vmatprep.mubr.msk.f32.mxu1 %vm8229_vm2, %v8958_v47 }
0x195a   : > { %13659 = vmatprep.subr.mxu0 %v9498_v20 }
0x195b   : > { %13660 = vmatpush3.msra.mxu0 %v9498_v20 }
0x195c   : > { %13648 = vmatmul.mubr.msk.f32.gmra.mxu1 %vm8229_vm2, %v8959_v16  ;;  %13661 = vmatprep.subr.mxu0 %v9497_v48 }
0x195d   : > { %13650 = vmatprep.mubr.msk.f32.mxu1 %vm8229_vm2, %v8960_v12  ;;  %13662 = vmatpush3.msra.mxu0 %v9497_v48 }
0x195e   : > { %13663 = vmatprep.subr.mxu0 %v9496_v51 }
0x195f   : > { %13664 = vmatpush3.msra.mxu0 %v9496_v51 }
0x1960   : > { %13651 = vmatmul.mubr.msk.f32.gmra.mxu1 %vm8229_vm2, %v8961_v44 }
0x1a03   : > { %v13587_v10 = vpop.f32.mrf.mxu1 }
0x1a05   : > { %v9069_v15 = vpop.f32.mrf.mxu1 }
0x1a07   : > { %v13590_v53 = vpop.f32.mrf.mxu1 }
0x1a09   : > { %v9079_v43 = vpop.f32.mrf.mxu1 }
0x1a0c   : > { %v13593_v17 = vpop.f32.mrf.mxu1  ;;  %v13615_v62 = vpop.f32.mrf.mxu0 }
0x1a0d   : > { %v9204_v7 = vadd.f32 %v13615_v62, %v13587_v10 }
0x1a0e   : > { %v9089_v59 = vpop.f32.mrf.mxu1  ;;  %v9198_v33 = vpop.f32.mrf.mxu0 }
0x1a0f   : > { %v9199_v23 = vadd.f32 %v9198_v33, %v9069_v15 }
0x1a10   : > { %v13596_v18 = vpop.f32.mrf.mxu1 }
0x1a11   : > { %v13618_v52 = vpop.f32.mrf.mxu0 }
0x1a12   : > { %v9099_v27 = vpop.f32.mrf.mxu1  ;;  %v9214_v40 = vadd.f32 %v13618_v52, %v13590_v53 }
0x1a13   : > { %v9208_v56 = vpop.f32.mrf.mxu0 }
0x1a14   : > { %v13643_v22 = vpop.f32.mrf.mxu1  ;;  %v9209_v32 = vadd.f32 %v9208_v56, %v9079_v43 }
0x1a15   : > { %v13621_v6 = vpop.f32.mrf.mxu0  ;;  %v9376_v35 = vadd.f32 %v13643_v22, %v9204_v7 }
0x1a16   : > { %v9336_v5 = vpop.f32.mrf.mxu1  ;;  %v9224_v26 = vadd.f32 %v13621_v6, %v13593_v17 }
0x1a17   : > { %v18280_v1 = vadd.f32 %v12057_v28, %v9376_v35  ;;  %v9218_v21 = vpop.f32.mrf.mxu0  ;;  %v9375_v36 = vadd.f32 %v9336_v5, %v9199_v23  ;;  %v9495_v23 = vld [vmem:[#allocation71 + $0x8] sm:$0xff]  ;;  %v9494_v5 = vld [vmem:[#allocation71] sm:$0xff] }
0x1a18   : > { %v13646_v19 = vpop.f32.mrf.mxu1  ;;  %v9219_v49 = vadd.f32 %v9218_v21, %v9089_v59  ;;  %13665 = vmatprep.subr.mxu0 %v9495_v23 }
0x1a19   : > { %v12059_v8 = vmul.f32 -1.442695, %v18280_v1  ;;  %v18283_v14 = vadd.f32 %v12057_v28, %v9375_v36  ;;  %v13624_v42 = vpop.f32.mrf.mxu0  ;;  %v9378_v34 = vadd.f32 %v13646_v19, %v9214_v40  ;;  %13666 = vmatpush3.msra.mxu0 %v9495_v23 }
0x1a1a   : > { %v9346_v38 = vpop.f32.mrf.mxu1  ;;  %v9234_v12 = vadd.f32 %v13624_v42, %v13596_v18  ;;  %13667 = vmatprep.subr.mxu0 %v9494_v5 }
0x1a1b   : > { %14790 = vpow2.f32 %v12059_v8  ;;  %v12058_v57 = vmul.f32 -1.442695, %v18283_v14  ;;  %v18286_v39 = vadd.f32 %v12057_v28, %v9378_v34  ;;  %v9377_v9 = vadd.f32 %v9346_v38, %v9209_v32  ;;  %v9228_v41 = vpop.f32.mrf.mxu0  ;;  %13668 = vmatpush3.msra.mxu0 %v9494_v5  ;;  %v9656_v5 = vld [vmem:[#allocation74 + $0x10] sm:$0xff] }
0x1a1c   : > { %v13649_v63 = vpop.f32.mrf.mxu1  ;;  %v9229_v20 = vadd.f32 %v9228_v41, %v9099_v27 }
0x1a1d   : > { %14792 = vpow2.f32 %v12058_v57  ;;  %v12061_v29 = vmul.f32 -1.442695, %v18286_v39  ;;  %v18289_v47 = vadd.f32 %v12057_v28, %v9377_v9  ;;  %v9380_v16 = vadd.f32 %v13649_v63, %v9224_v26  ;;  %v9661_v9 = vld [vmem:[#allocation74 + $0x38] sm:$0xff] }
0x1a1e   : > { %v9356_v44 = vpop.f32.mrf.mxu1  ;;  %13681 = vmatprep.subr.mxu1 %v9661_v9 }
0x1a1f   : > { %14794 = vpow2.f32 %v12061_v29  ;;  %v12060_v4 = vmul.f32 -1.442695, %v18289_v47  ;;  %v18292_v55 = vadd.f32 %v12057_v28, %v9380_v16  ;;  %v9379_v37 = vadd.f32 %v9356_v44, %v9219_v49  ;;  %v9660_v49 = vld [vmem:[#allocation74 + $0x30] sm:$0xff]  ;;  %13682 = vmatpush3.msra.mxu1 %v9661_v9  ;;  %v9659_v29 = vld [vmem:[#allocation74 + $0x28] sm:$0xff]  ;;  %v9658_v16 = vld [vmem:[#allocation74 + $0x20] sm:$0xff] }
0x1a20   : > { %v13652_v48 = vpop.f32.mrf.mxu1  ;;  %13683 = vmatprep.subr.mxu1 %v9660_v49  ;;  %v9657_v44 = vld [vmem:[#allocation74 + $0x18] sm:$0xff] }
0x1a21   : > { %14796 = vpow2.f32 %v12060_v4  ;;  %v12063_v51 = vmul.f32 -1.442695, %v18292_v55  ;;  %v18295_v10 = vadd.f32 %v12057_v28, %v9379_v37  ;;  %v9382_v15 = vadd.f32 %v13652_v48, %v9234_v12  ;;  %13684 = vmatpush3.msra.mxu1 %v9660_v49  ;;  %v12106_v9 = vld [vmem:[%s18854_s2 + $0x1b0] sm:$0xff]  ;;  %v12105_v49 = vld [vmem:[%s18854_s2 + $0x1a8] sm:$0xff] }
0x1a22   : > { %v9366_v53 = vpop.f32.mrf.mxu1  ;;  %13685 = vmatprep.subr.mxu1 %v9659_v29 }
0x1a23   : > { %14798 = vpow2.f32 %v12063_v51  ;;  %v12062_v43 = vmul.f32 -1.442695, %v18295_v10  ;;  %v18298_v17 = vadd.f32 %v12057_v28, %v9382_v15  ;;  %v9381_v62 = vadd.f32 %v9366_v53, %v9229_v20  ;;  %13686 = vmatpush3.msra.mxu1 %v9659_v29  ;;  %v12103_v29 = vld [vmem:[%s18854_s2 + $0x198] sm:$0xff] }
0x1a24   : > { %13687 = vmatprep.subr.mxu1 %v9658_v16 }
0x1a25   : > { %14800 = vpow2.f32 %v12062_v43  ;;  %v12065_v59 = vmul.f32 -1.442695, %v18298_v17  ;;  %v18301_v33 = vadd.f32 %v12057_v28, %v9381_v62  ;;  %13688 = vmatpush3.msra.mxu1 %v9658_v16  ;;  %v12101_v16 = vld [vmem:[%s18854_s2 + $0x188] sm:$0xff] }
0x1a26   : > { %13689 = vmatprep.subr.mxu1 %v9657_v44 }
0x1a27   : > { %14802 = vpow2.f32 %v12065_v59  ;;  %v12064_v18 = vmul.f32 -1.442695, %v18301_v33  ;;  %13690 = vmatpush3.msra.mxu1 %v9657_v44  ;;  %v12099_v44 = vld [vmem:[%s18854_s2 + $0x178] sm:$0xff] }
0x1a28   : > { %v14791_v52 = vpop.eup %14790  ;;  %13691 = vmatprep.subr.mxu1 %v9656_v5 }
0x1a29   : > { %v9431_v27 = vadd.f32 1.0, %v14791_v52  ;;  %14804 = vpow2.f32 %v12064_v18  ;;  %13692 = vmatpush3.msra.mxu1 %v9656_v5 }
0x1a2a   : > { %v14793_v7 = vpop.eup %14792 }
0x1a2b   : > { %14806 = vrcp.f32 %v9431_v27  ;;  %v9430_v56 = vadd.f32 1.0, %v14793_v7 }
0x1a2c   : > { %v14795_v22 = vpop.eup %14794 }
0x1a2d   : > { %14808 = vrcp.f32 %v9430_v56  ;;  %v9433_v6 = vadd.f32 1.0, %v14795_v22 }
0x1a2e   : > { %v14797_v35 = vpop.eup %14796 }
0x1a2f   : > { %14810 = vrcp.f32 %v9433_v6  ;;  %v9432_v28 = vadd.f32 1.0, %v14797_v35  ;;  %v18328_v35 = vld [vmem:[#allocation2] sm:$0xff] }
0x1a30   : > { %v14799_v40 = vpop.eup %14798 }
0x1a31   : > { %14812 = vrcp.f32 %v9432_v28  ;;  %v9435_v21 = vadd.f32 1.0, %v14799_v40  ;;  %v9655_v28 = vld [vmem:[#allocation74 + $0x8] sm:$0xff]  ;;  %v9654_v40 = vld [vmem:[#allocation74] sm:$0xff] }
0x1a32   : > { %v14801_v36 = vpop.eup %14800  ;;  %13693 = vmatprep.subr.mxu1 %v9655_v28 }
0x1a33   : > { %14814 = vrcp.f32 %v9435_v21  ;;  %v9434_v19 = vadd.f32 1.0, %v14801_v36  ;;  %13694 = vmatpush3.msra.mxu1 %v9655_v28  ;;  %v12115_v21 = vld [vmem:[%s18854_s2 + $0x1f8] sm:$0xff]  ;;  %v12114_v36 = vld [vmem:[%s18854_s2 + $0x1f0] sm:$0xff] }
0x1a34   : > { %v14803_v32 = vpop.eup %14802  ;;  %13695 = vmatprep.subr.mxu1 %v9654_v40  ;;  %9887 = vmatprep.subr.mxu0 %v12115_v21  ;;  %v9848_v21 = vld [vmem:[%s18854_s2 + $0xd0] sm:$0xff] }
0x1a35   : > { %14816 = vrcp.f32 %v9434_v19  ;;  %v9437_v8 = vadd.f32 1.0, %v14803_v32  ;;  %13696 = vmatpush3.msra.mxu1 %v9654_v40  ;;  %v12113_v19 = vld [vmem:[%s18854_s2 + $0x1e8] sm:$0xff]  ;;  %v12112_v32 = vld [vmem:[%s18854_s2 + $0x1e0] sm:$0xff] }
0x1a36   : > { %v14805_v42 = vpop.eup %14804 }
0x1a37   : > { %14818 = vrcp.f32 %v9437_v8  ;;  %v9436_v34 = vadd.f32 1.0, %v14805_v42  ;;  %v12111_v8 = vld [vmem:[%s18854_s2 + $0x1d8] sm:$0xff]  ;;  %v12110_v42 = vld [vmem:[%s18854_s2 + $0x1d0] sm:$0xff] }
0x1a38   : > { %v14807_v26 = vpop.eup %14806 }
0x1a39   : > { %14820 = vrcp.f32 %v9436_v34  ;;  %9464 = vrot.lane.b32.xlu1 %v14807_v26, %s16420_s23  ;;  %v9853_v34 = vld [vmem:[%s18854_s2 + $0xf8] sm:$0xff]  ;;  %v12109_v26 = vld [vmem:[%s18854_s2 + $0x1c8] sm:$0xff] }
0x1a3a   : > { %v14809_v38 = vpop.eup %14808  ;;  %14822 = vtanh.f32 %v18283_v14  ;;  %10000 = vmatprep.subr.mxu1 %v9853_v34 }
0x1a3b   : > { %9462 = vrot.lane.b32.xlu0 %v14809_v38, %s16420_s23  ;;  %14824 = vtanh.f32 %v18280_v1  ;;  %v12108_v38 = vld [vmem:[%s18854_s2 + $0x1c0] sm:$0xff] }
0x1a3c   : > { %v14811_v57 = vpop.eup %14810  ;;  %14826 = vtanh.f32 %v18289_v47 }
0x1a3d   : > { %9468 = vrot.lane.b32.xlu1 %v14811_v57, %s16420_s23  ;;  %14828 = vtanh.f32 %v18286_v39  ;;  %v12107_v57 = vld [vmem:[%s18854_s2 + $0x1b8] sm:$0xff] }
0x1a3e   : > { %v14813_v63 = vpop.eup %14812  ;;  %14830 = vtanh.f32 %v18295_v10 }
0x1a3f   : > { %9466 = vrot.lane.b32.xlu0 %v14813_v63, %s16420_s23  ;;  %14832 = vtanh.f32 %v18292_v55  ;;  %v12104_v63 = vld [vmem:[%s18854_s2 + $0x1a0] sm:$0xff] }
0x1a40   : > { %v14815_v41 = vpop.eup %14814  ;;  %14834 = vtanh.f32 %v18301_v33 }
0x1a41   : > { %9472 = vrot.lane.b32.xlu1 %v14815_v41, %s16420_s23  ;;  %14836 = vtanh.f32 %v18298_v17  ;;  %v12102_v41 = vld [vmem:[%s18854_s2 + $0x190] sm:$0xff] }
0x1a42   : > { %v14817_v12 = vpop.eup %14816 }
0x1a43   : > { %9470 = vrot.lane.b32.xlu0 %v14817_v12, %s16420_s23  ;;  %v12100_v12 = vld [vmem:[%s18854_s2 + $0x180] sm:$0xff] }
0x1a44   : > { %v14819_v4 = vpop.eup %14818 }
0x1a45   : > { %9476 = vrot.lane.b32.xlu1 %v14819_v4, %s16420_s23  ;;  %v12098_v4 = vld [vmem:[%s18854_s2 + $0x170] sm:$0xff] }
0x1a46   : > { %v14821_v37 = vpop.eup %14820 }
0x1a47   : > { %9474 = vrot.lane.b32.xlu0 %v14821_v37, %s16420_s23  ;;  %v14823_v48 = vpop.eup %14822  ;;  %v12097_v37 = vld [vmem:[%s18854_s2 + $0x168] sm:$0xff] }
0x1a48   : > { %v14825_v15 = vpop.eup %14824 }
0x1a49   : > { %v14827_v1 = vpop.eup %14826 }
0x1a4a   : > { %v14829_v39 = vpop.eup %14828 }
0x1a4b   : > { %v14831_v59 = vpop.eup %14830 }
0x1a4c   : > { %v14833_v17 = vpop.eup %14832 }
0x1a4d   : > { %v14835_v7 = vpop.eup %14834 }
0x1a4e   : > { %v14837_v22 = vpop.eup %14836 }
0x1aab   : > { %v9465_v20 = vpop.permute.xlu1 %9464 }
0x1aac   : > { %v9487_v14 = vmul.f32 %v14825_v15, %v9465_v20  ;;  %v12096_v20 = vld [vmem:[%s18854_s2 + $0x160] sm:$0xff]  ;;  %v12093_v15 = vld [vmem:[%s18854_s2 + $0x148] sm:$0xff] }
0x1aad   : > { %v9463_v51 = vpop.permute.xlu0 %9462 }
0x1aae   : > { %v9486_v53 = vmul.f32 %v14823_v48, %v9463_v51  ;;  %v12095_v48 = vld [vmem:[%s18854_s2 + $0x158] sm:$0xff]  ;;  %v12094_v51 = vld [vmem:[%s18854_s2 + $0x150] sm:$0xff] }
0x1aaf   : > { %v9469_v43 = vpop.permute.xlu1 %9468 }
0x1ab0   : > { %13669 = vmatprep.mubr.msk.f32.mxu0 %vm8229_vm2, %v9486_v53  ;;  %v9489_v55 = vmul.f32 %v14829_v39, %v9469_v43  ;;  %v12092_v53 = vld [vmem:[%s18854_s2 + $0x140] sm:$0xff]  ;;  %v12090_v43 = vld [vmem:[%s18854_s2 + $0x130] sm:$0xff]  ;;  %v12066_v39 = vld [vmem:[#allocation72] ss:$0 sm:$0xff] }
0x1ab1   : > { %v9467_v47 = vpop.permute.xlu0 %9466  ;;  %13670 = vmatmul.mubr.msk.f32.vlgmr.msra.gmra.mxu0 %vm8229_vm2, %v9487_v14  ;;  %v12091_v14 = vld [vmem:[%s18854_s2 + $0x138] sm:$0xff] }
0x1ab2   : > { %v9488_v10 = vmul.f32 %v14827_v1, %v9467_v47  ;;  %9888 = vmatpush1.msra.mxu0 %v12114_v36  ;;  %v12089_v1 = vld [vmem:[%s18854_s2 + $0x128] sm:$0xff]  ;;  %v12088_v47 = vld [vmem:[%s18854_s2 + $0x120] sm:$0xff] }
0x1ab3   : > { %v9473_v62 = vpop.permute.xlu1 %9472  ;;  %9889 = vmatprep.subr.mxu0 %v12113_v19  ;;  %v9847_v36 = vld [vmem:[%s18854_s2 + $0xc8] sm:$0xff]  ;;  %v8935_v19 = vadd.f32 %v18236_v60, %v18124_v31  ;;  %v8936_v31 = vadd.f32 %v18255_v54, %v18143_v13  ;;  %v9841_v13 = vld [vmem:[%s18854_s2 + $0x98] sm:$0xff] }
0x1ab4   : > { %13672 = vmatprep.mubr.msk.f32.mxu0 %vm8229_vm2, %v9488_v10  ;;  %v9491_v52 = vmul.f32 %v14833_v17, %v9473_v62  ;;  %9890 = vmatpush1.msra.mxu0 %v12112_v32  ;;  %v8931_v17 = vadd.f32 %v18216_v0, %v18104_v61  ;;  %v9851_v61 = vld [vmem:[%s18854_s2 + $0xe8] sm:$0xff]  ;;  %v8933_v0 = vadd.f32 %v18224_v2, %v18110_v25 }
0x1ab5   : > { %v9471_v33 = vpop.permute.xlu0 %9470  ;;  %13673 = vmatmul.mubr.msk.f32.gmra.mxu0 %vm8229_vm2, %v9489_v55  ;;  %9891 = vmatprep.subr.mxu0 %v12111_v8  ;;  %v8934_v25 = vadd.f32 %v18244_v30, %v18132_v50  ;;  %v9846_v8 = vld [vmem:[%s18854_s2 + $0xc0] sm:$0xff]  ;;  %v9845_v50 = vld [vmem:[%s18854_s2 + $0xb8] sm:$0xff] }
0x1ab6   : > { %v9490_v18 = vmul.f32 %v14831_v59, %v9471_v33  ;;  %9892 = vmatpush1.msra.mxu0 %v12110_v42  ;;  %v8930_v59 = vadd.f32 %v18220_v46, %v18106_v11 }
0x1ab7   : > { %v9477_v27 = vpop.permute.xlu1 %9476  ;;  %9893 = vmatprep.subr.mxu0 %v12109_v26 }
0x1ab8   : > { %13675 = vmatprep.mubr.msk.f32.mxu0 %vm8229_vm2, %v9490_v18  ;;  %v9493_v6 = vmul.f32 %v14837_v22, %v9477_v27  ;;  %9894 = vmatpush1.msra.mxu0 %v12108_v38  ;;  %v9852_v22 = vld [vmem:[%s18854_s2 + $0xf0] sm:$0xff] }
0x1ab9   : > { %v9475_v56 = vpop.permute.xlu0 %9474  ;;  %13676 = vmatmul.mubr.msk.f32.gmra.mxu0 %vm8229_vm2, %v9491_v52  ;;  %9895 = vmatprep.subr.mxu0 %v12107_v57  ;;  %v9844_v38 = vld [vmem:[%s18854_s2 + $0xb0] sm:$0xff]  ;;  %v9843_v57 = vld [vmem:[%s18854_s2 + $0xa8] sm:$0xff] }
0x1aba   : > { %v9492_v23 = vmul.f32 %v14835_v7, %v9475_v56  ;;  %9896 = vmatpush1.msra.mxu0 %v12106_v9  ;;  %v8937_v9 = vadd.f32 %v18248_v58, %v18136_v24  ;;  %v9839_v24 = vld [vmem:[%s18854_s2 + $0x88] sm:$0xff]  ;;  %v9838_v58 = vld [vmem:[%s18854_s2 + $0x80] sm:$0xff] }
0x1abb   : > { %9897 = vmatprep.subr.mxu0 %v12105_v49  ;;  %v9842_v49 = vld [vmem:[%s18854_s2 + $0xa0] sm:$0xff] }
0x1abc   : > { %13678 = vmatprep.mubr.msk.f32.mxu0 %vm8229_vm2, %v9492_v23  ;;  %9898 = vmatpush1.msra.mxu0 %v12104_v63  ;;  %v8932_v23 = vadd.f32 %v18232_v45, %v18120_v3  ;;  %v9849_v3 = vld [vmem:[%s18854_s2 + $0xd8] sm:$0xff] }
0x1abd   : > { %13679 = vmatmul.mubr.msk.f32.gmra.mxu0 %vm8229_vm2, %v9493_v6  ;;  %9899 = vmatprep.subr.mxu0 %v12103_v29  ;;  %v9850_v6 = vld [vmem:[%s18854_s2 + $0xe0] sm:$0xff]  ;;  %v9840_v29 = vld [vmem:[%s18854_s2 + $0x90] sm:$0xff] }
0x1abe   : > { %9951 = vmatprep.mubr.f32.mxu0 %v18328_v35  ;;  %9900 = vmatpush1.msra.mxu0 %v12102_v41  ;;  %v9837_v41 = vld [vmem:[%s18854_s2 + $0x78] sm:$0xff] }
0x1abf   : > { %9901 = vmatprep.subr.mxu0 %v12101_v16  ;;  %v9836_v16 = vld [vmem:[%s18854_s2 + $0x70] sm:$0xff] }
0x1ac0   : > { %9902 = vmatpush1.msra.mxu0 %v12100_v12  ;;  %v9835_v12 = vld [vmem:[%s18854_s2 + $0x68] sm:$0xff] }
0x1ac1   : > { %9903 = vmatprep.subr.mxu0 %v12099_v44  ;;  %v9834_v44 = vld [vmem:[%s18854_s2 + $0x60] sm:$0xff] }
0x1ac2   : > { %9904 = vmatpush1.msra.mxu0 %v12098_v4  ;;  %v12087_v4 = vld [vmem:[%s18854_s2 + $0x118] sm:$0xff] }
0x1ac3   : > { %9905 = vmatprep.subr.mxu0 %v12097_v37  ;;  %v9833_v37 = vld [vmem:[%s18854_s2 + $0x58] sm:$0xff] }
0x1ac4   : > { %9906 = vmatpush1.msra.mxu0 %v12096_v20  ;;  %v12086_v20 = vld [vmem:[%s18854_s2 + $0x110] sm:$0xff] }
0x1ac5   : > { %9907 = vmatprep.subr.mxu0 %v12095_v48  ;;  %v9832_v48 = vld [vmem:[%s18854_s2 + $0x50] sm:$0xff] }
0x1ac6   : > { %9908 = vmatpush1.msra.mxu0 %v12094_v51  ;;  %v12085_v51 = vld [vmem:[%s18854_s2 + $0x108] sm:$0xff] }
0x1ac7   : > { %9909 = vmatprep.subr.mxu0 %v12093_v15  ;;  %v9831_v15 = vld [vmem:[%s18854_s2 + $0x48] sm:$0xff] }
0x1ac8   : > { %9910 = vmatpush1.msra.mxu0 %v12092_v53  ;;  %v12084_v53 = vld [vmem:[%s18854_s2 + $0x100] sm:$0xff] }
0x1ac9   : > { %9911 = vmatprep.subr.mxu0 %v12091_v14  ;;  %v9830_v14 = vld [vmem:[%s18854_s2 + $0x40] sm:$0xff] }
0x1aca   : > { %9912 = vmatpush1.msra.mxu0 %v12090_v43  ;;  %v12147_v43 = vld [vmem:[%s18854_s2 + $0x2f8] sm:$0xff] }
0x1acb   : > { %9913 = vmatprep.subr.mxu0 %v12089_v1  ;;  %v9829_v1 = vld [vmem:[%s18854_s2 + $0x38] sm:$0xff] }
0x1acc   : > { %9914 = vmatpush1.msra.mxu0 %v12088_v47  ;;  %v9828_v47 = vld [vmem:[%s18854_s2 + $0x30] sm:$0xff] }
0x1acd   : > { %9915 = vmatprep.subr.mxu0 %v12087_v4  ;;  %v12121_v4 = vld [vmem:[%s18854_s2 + $0x228] sm:$0xff] }
0x1ace   : > { %9916 = vmatpush1.msra.mxu0 %v12086_v20  ;;  %v12120_v20 = vld [vmem:[%s18854_s2 + $0x220] sm:$0xff] }
0x1acf   : > { %9917 = vmatprep.subr.mxu0 %v12085_v51  ;;  %v12118_v51 = vld [vmem:[%s18854_s2 + $0x210] sm:$0xff] }
0x1ad0   : > { %9918 = vmatpush1.msra.mxu0 %v12084_v53 }
0x1ad1   : > { %10146 = vmatprep.subr.mxu0 %v12147_v43 }
0x1b71   : > { %v13671_v10 = vpop.f32.mrf.mxu0 }
0x1b72   : > { %v9605_v55 = vadd.f32 %v13671_v10, %v12066_v39  ;;  %v9826_v10 = vld [vmem:[%s18854_s2 + $0x20] sm:$0xff] }
0x1b73   : > { %v9599_v62 = vpop.f32.mrf.mxu0 }
0x1b74   : > { %9647 = vst.msk [vmem:[#allocation2 + $0x10] sm:$0xff] %vm8229_vm2, %v9605_v55  ;;  %v9600_v33 = vadd.f32 %v12066_v39, %v9599_v62  ;;  %v9639_v7 = vadd.f32 %v9605_v55, %v8931_v17  ;;  %v9825_v55 = vld [vmem:[%s18854_s2 + $0x18] sm:$0xff]  ;;  %v9824_v62 = vld [vmem:[%s18854_s2 + $0x10] sm:$0xff] }
0x1b75   : > { %v13674_v18 = vpop.f32.mrf.mxu0  ;;  %v12075_v17 = vld [vmem:[#allocation75] ss:$0 sm:$0xff] }
0x1b76   : > { %v9638_v52 = vadd.f32 %v9600_v33, %v8930_v59  ;;  %9646 = vst.msk [vmem:[#allocation2 + $0x8] sm:$0xff] %vm8229_vm2, %v9600_v33  ;;  %v9615_v27 = vadd.f32 %v13674_v18, %v12066_v39  ;;  %v9823_v59 = vld [vmem:[%s18854_s2 + $0x8] sm:$0xff]  ;;  %v9822_v33 = vld [vmem:[%s18854_s2] sm:$0xff] }
0x1b77   : > { %v9609_v56 = vpop.f32.mrf.mxu0 }
0x1b78   : > { %9649 = vst.msk [vmem:[#allocation2 + $0x20] sm:$0xff] %vm8229_vm2, %v9615_v27  ;;  %v9610_v11 = vadd.f32 %v12066_v39, %v9609_v56  ;;  %13697 = vmatprep.mubr.msk.f32.mxu1 %vm8229_vm2, %v9638_v52  ;;  %v9641_v45 = vadd.f32 %v9615_v27, %v8933_v0  ;;  %v12146_v56 = vld [vmem:[%s18854_s2 + $0x2f0] sm:$0xff] }
0x1b79   : > { %v13677_v46 = vpop.f32.mrf.mxu0  ;;  %13698 = vmatmul.mubr.msk.f32.vlgmr.msra.gmra.mxu1 %vm8229_vm2, %v9639_v7 }
0x1b7a   : > { %v9640_v5 = vadd.f32 %v9610_v11, %v8932_v23  ;;  %9648 = vst.msk [vmem:[#allocation2 + $0x18] sm:$0xff] %vm8229_vm2, %v9610_v11  ;;  %v9625_v28 = vadd.f32 %v13677_v46, %v12066_v39  ;;  %10001 = vmatpush1.msra.mxu1 %v9852_v22  ;;  %v12145_v23 = vld [vmem:[%s18854_s2 + $0x2e8] sm:$0xff]  ;;  %v12143_v46 = vld [vmem:[%s18854_s2 + $0x2d8] sm:$0xff] }
0x1b7b   : > { %v9619_v40 = vpop.f32.mrf.mxu0  ;;  %10002 = vmatprep.subr.mxu1 %v9851_v61  ;;  %v12144_v61 = vld [vmem:[%s18854_s2 + $0x2e0] sm:$0xff] }
0x1b7c   : > { %9651 = vst.msk [vmem:[#allocation2 + $0x30] sm:$0xff] %vm8229_vm2, %v9625_v28  ;;  %v9620_v2 = vadd.f32 %v12066_v39, %v9619_v40  ;;  %13700 = vmatprep.mubr.msk.f32.mxu1 %vm8229_vm2, %v9640_v5  ;;  %10003 = vmatpush1.msra.mxu1 %v9850_v6  ;;  %v9643_v30 = vadd.f32 %v9625_v28, %v8935_v19  ;;  %v12142_v5 = vld [vmem:[%s18854_s2 + $0x2d0] sm:$0xff]  ;;  %v12140_v40 = vld [vmem:[%s18854_s2 + $0x2c0] sm:$0xff] }
0x1b7d   : > { %v13680_v32 = vpop.f32.mrf.mxu0  ;;  %13701 = vmatmul.mubr.msk.f32.gmra.mxu1 %vm8229_vm2, %v9641_v45  ;;  %10004 = vmatprep.subr.mxu1 %v9849_v3  ;;  %v12141_v3 = vld [vmem:[%s18854_s2 + $0x2c8] sm:$0xff] }
0x1b7e   : > { %v9642_v42 = vadd.f32 %v9620_v2, %v8934_v25  ;;  %9650 = vst.msk [vmem:[#allocation2 + $0x28] sm:$0xff] %vm8229_vm2, %v9620_v2  ;;  %v9635_v34 = vadd.f32 %v13680_v32, %v12066_v39  ;;  %10005 = vmatpush1.msra.mxu1 %v9848_v21  ;;  %v12139_v25 = vld [vmem:[%s18854_s2 + $0x2b8] sm:$0xff] }
0x1b7f   : > { %v9629_v26 = vpop.f32.mrf.mxu0  ;;  %10006 = vmatprep.subr.mxu1 %v9847_v36  ;;  %v12138_v36 = vld [vmem:[%s18854_s2 + $0x2b0] sm:$0xff] }
0x1b80   : > { %9653 = vst.msk [vmem:[#allocation2 + $0x40] sm:$0xff] %vm8229_vm2, %v9635_v34  ;;  %v9630_v60 = vadd.f32 %v12066_v39, %v9629_v26  ;;  %13703 = vmatprep.mubr.msk.f32.mxu1 %vm8229_vm2, %v9642_v42  ;;  %10007 = vmatpush1.msra.mxu1 %v9846_v8  ;;  %v9645_v54 = vadd.f32 %v9635_v34, %v8937_v9  ;;  %v9827_v39 = vld [vmem:[%s18854_s2 + $0x28] sm:$0xff]  ;;  %v12136_v34 = vld [vmem:[%s18854_s2 + $0x2a0] sm:$0xff]  ;;  %v12131_v9 = vld [vmem:[%s18854_s2 + $0x278] sm:$0xff] }
0x1b81   : > { %13704 = vmatmul.mubr.msk.f32.gmra.mxu1 %vm8229_vm2, %v9643_v30  ;;  %10008 = vmatprep.subr.mxu1 %v9845_v50  ;;  %v12137_v8 = vld [vmem:[%s18854_s2 + $0x2a8] sm:$0xff]  ;;  %v12135_v30 = vld [vmem:[%s18854_s2 + $0x298] sm:$0xff] }
0x1b82   : > { %v9644_v63 = vadd.f32 %v9630_v60, %v8936_v31  ;;  %9652 = vst.msk [vmem:[#allocation2 + $0x38] sm:$0xff] %vm8229_vm2, %v9630_v60  ;;  %10009 = vmatpush1.msra.mxu1 %v9844_v38  ;;  %v12134_v38 = vld [vmem:[%s18854_s2 + $0x290] sm:$0xff]  ;;  %v12133_v31 = vld [vmem:[%s18854_s2 + $0x288] sm:$0xff] }
0x1b83   : > { %10010 = vmatprep.subr.mxu1 %v9843_v57  ;;  %v12132_v57 = vld [vmem:[%s18854_s2 + $0x280] sm:$0xff] }
0x1b84   : > { %13706 = vmatprep.mubr.msk.f32.mxu1 %vm8229_vm2, %v9644_v63  ;;  %10011 = vmatpush1.msra.mxu1 %v9842_v49  ;;  %v12130_v49 = vld [vmem:[%s18854_s2 + $0x270] sm:$0xff]  ;;  %v12129_v63 = vld [vmem:[%s18854_s2 + $0x268] sm:$0xff] }
0x1b85   : > { %13707 = vmatmul.mubr.msk.f32.gmra.mxu1 %vm8229_vm2, %v9645_v54  ;;  %10012 = vmatprep.subr.mxu1 %v9841_v13  ;;  %v12128_v54 = vld [vmem:[%s18854_s2 + $0x260] sm:$0xff] }
0x1b86   : > { %10013 = vmatpush1.msra.mxu1 %v9840_v29  ;;  %10064 = vmatprep.mubr.f32.mxu1 %v18328_v35  ;;  %v12127_v29 = vld [vmem:[%s18854_s2 + $0x258] sm:$0xff] }
0x1b87   : > { %10014 = vmatprep.subr.mxu1 %v9839_v24  ;;  %v12126_v24 = vld [vmem:[%s18854_s2 + $0x250] sm:$0xff] }
0x1b88   : > { %10015 = vmatpush1.msra.mxu1 %v9838_v58  ;;  %v12125_v58 = vld [vmem:[%s18854_s2 + $0x248] sm:$0xff] }
0x1b89   : > { %10016 = vmatprep.subr.mxu1 %v9837_v41 }
0x1b8a   : > { %10017 = vmatpush1.msra.mxu1 %v9836_v16  ;;  %v12124_v16 = vld [vmem:[%s18854_s2 + $0x240] sm:$0xff] }
0x1b8b   : > { %10018 = vmatprep.subr.mxu1 %v9835_v12  ;;  %v12123_v12 = vld [vmem:[%s18854_s2 + $0x238] sm:$0xff] }
0x1b8c   : > { %10019 = vmatpush1.msra.mxu1 %v9834_v44  ;;  %v12122_v44 = vld [vmem:[%s18854_s2 + $0x230] sm:$0xff] }
0x1b8d   : > { %10020 = vmatprep.subr.mxu1 %v9833_v37 }
0x1b8e   : > { %10021 = vmatpush1.msra.mxu1 %v9832_v48  ;;  %v12119_v48 = vld [vmem:[%s18854_s2 + $0x218] sm:$0xff] }
0x1b8f   : > { %10022 = vmatprep.subr.mxu1 %v9831_v15  ;;  %v12117_v15 = vld [vmem:[%s18854_s2 + $0x208] sm:$0xff] }
0x1b90   : > { %10023 = vmatpush1.msra.mxu1 %v9830_v14  ;;  %v12116_v14 = vld [vmem:[%s18854_s2 + $0x200] sm:$0xff] }
0x1b91   : > { %10024 = vmatprep.subr.mxu1 %v9829_v1 }
0x1b92   : > { %10025 = vmatpush1.msra.mxu1 %v9828_v47 }
0x1b93   : > { %10026 = vmatprep.subr.mxu1 %v9827_v39 }
0x1b94   : > { %10027 = vmatpush1.msra.mxu1 %v9826_v10 }
0x1b95   : > { %10028 = vmatprep.subr.mxu1 %v9825_v55 }
0x1b96   : > { %10029 = vmatpush1.msra.mxu1 %v9824_v62 }
0x1b97   : > { %10030 = vmatprep.subr.mxu1 %v9823_v59 }
0x1b98   : > { %10031 = vmatpush1.msra.mxu1 %v9822_v33 }
0x1c39   : > { %v13699_v18 = vpop.f32.mrf.mxu1 }
0x1c3a   : > { %v18429_v52 = vadd.f32 %v13699_v18, %v12075_v17  ;;  %v10382_v18 = vld [vmem:[#allocation78 + $0x78] sm:$0xff] }
0x1c3b   : > { %v9759_v27 = vpop.f32.mrf.mxu1  ;;  %13709 = vmatprep.subr.mxu1 %v10382_v18 }
0x1c3c   : > { %9799 = vst [vmem:[#allocation2 + $0x10] sm:$0xff] %v18429_v52  ;;  %v18432_v7 = vadd.f32 %v12075_v17, %v9759_v27  ;;  %v10381_v27 = vld [vmem:[#allocation78 + $0x70] sm:$0xff] }
0x1c3d   : > { %v13702_v22 = vpop.f32.mrf.mxu1 }
0x1c3e   : > { %9798 = vst [vmem:[#allocation2 + $0x8] sm:$0xff] %v18432_v7  ;;  %v18437_v11 = vadd.f32 %v13702_v22, %v12075_v17  ;;  %9952 = vmatmul.mubr.f32.vlgmr.msra.gmra.mxu0 %v18432_v7  ;;  %v10379_v22 = vld [vmem:[#allocation78 + $0x60] sm:$0xff] }
0x1c3f   : > { %10147 = vmatpush1.msra.mxu0 %v12146_v56  ;;  %v9769_v0 = vpop.f32.mrf.mxu1  ;;  %9957 = vmatprep.mubr.f32.mxu0 %v18328_v35  ;;  %v10380_v56 = vld [vmem:[#allocation78 + $0x68] sm:$0xff] }
0x1c40   : > { %9801 = vst [vmem:[#allocation2 + $0x20] sm:$0xff] %v18437_v11  ;;  %v18444_v6 = vadd.f32 %v12075_v17, %v9769_v0  ;;  %10148 = vmatprep.subr.mxu0 %v12145_v23  ;;  %v10378_v23 = vld [vmem:[#allocation78 + $0x58] sm:$0xff]  ;;  %v10376_v0 = vld [vmem:[#allocation78 + $0x48] sm:$0xff] }
0x1c41   : > { %10149 = vmatpush1.msra.mxu0 %v12144_v61  ;;  %v13705_v28 = vpop.f32.mrf.mxu1  ;;  %v10377_v61 = vld [vmem:[#allocation78 + $0x50] sm:$0xff] }
0x1c42   : > { %9800 = vst [vmem:[#allocation2 + $0x18] sm:$0xff] %v18444_v6  ;;  %v18449_v45 = vadd.f32 %v13705_v28, %v12075_v17  ;;  %10150 = vmatprep.subr.mxu0 %v12143_v46  ;;  %9958 = vmatmul.mubr.f32.gmra.mxu0 %v18429_v52  ;;  %v10375_v46 = vld [vmem:[#allocation78 + $0x40] sm:$0xff]  ;;  %v10373_v28 = vld [vmem:[#allocation78 + $0x30] sm:$0xff] }
0x1c43   : > { %10151 = vmatpush1.msra.mxu0 %v12142_v5  ;;  %v9779_v21 = vpop.f32.mrf.mxu1  ;;  %9963 = vmatprep.mubr.f32.mxu0 %v18328_v35  ;;  %v10374_v5 = vld [vmem:[#allocation78 + $0x38] sm:$0xff] }
0x1c44   : > { %9803 = vst [vmem:[#allocation2 + $0x30] sm:$0xff] %v18449_v45  ;;  %v18456_v2 = vadd.f32 %v12075_v17, %v9779_v21  ;;  %10152 = vmatprep.subr.mxu0 %v12141_v3  ;;  %v10372_v3 = vld [vmem:[#allocation78 + $0x28] sm:$0xff]  ;;  %v10370_v21 = vld [vmem:[#allocation78 + $0x18] sm:$0xff] }
0x1c45   : > { %10153 = vmatpush1.msra.mxu0 %v12140_v40  ;;  %v13708_v19 = vpop.f32.mrf.mxu1  ;;  %v9806_v32 = vld [vmem:[#allocation2 + $0x7] sm:$0xff]  ;;  %v9807_v60 = vld [vmem:[#allocation2 + $0xf] sm:$0xff] }
0x1c46   : > { %9802 = vst [vmem:[#allocation2 + $0x28] sm:$0xff] %v18456_v2  ;;  %v18461_v42 = vadd.f32 %v13708_v19, %v12075_v17  ;;  %10154 = vmatprep.subr.mxu0 %v12139_v25  ;;  %9964 = vmatmul.mubr.f32.gmra.mxu0 %v18444_v6  ;;  %v9814_v43 = vld [vmem:[#allocation2 + $0x9] sm:$0xff]  ;;  %v10369_v25 = vld [vmem:[#allocation78 + $0x10] sm:$0xff] }
0x1c47   : > { %10065 = vmatmul.mubr.f32.vlgmr.msra.gmra.mxu1 %v9806_v32  ;;  %10155 = vmatpush1.msra.mxu0 %v12138_v36  ;;  %v9789_v50 = vpop.f32.mrf.mxu1  ;;  %v10371_v40 = vld [vmem:[#allocation78 + $0x20] sm:$0xff]  ;;  %v10368_v36 = vld [vmem:[#allocation78 + $0x8] sm:$0xff]  ;;  %v10536_v32 = vld [vmem:[%s16696_s4 + $0x78] sm:$0xff] }
0x1c48   : > { %9805 = vst [vmem:[#allocation2 + $0x40] sm:$0xff] %v18461_v42  ;;  %v18467_v26 = vadd.f32 %v12075_v17, %v9789_v50  ;;  %10156 = vmatprep.subr.mxu0 %v12137_v8  ;;  %9969 = vmatprep.mubr.f32.mxu0 %v18328_v35  ;;  %v10367_v19 = vld [vmem:[#allocation78] sm:$0xff]  ;;  %v10535_v8 = vld [vmem:[%s16696_s4 + $0x70] sm:$0xff] }
0x1c49   : > { %10157 = vmatpush1.msra.mxu0 %v12136_v34  ;;  %10070 = vmatprep.mubr.f32.mxu1 %v18328_v35  ;;  %v9808_v13 = vld [vmem:[#allocation2 + $0x17] sm:$0xff]  ;;  %v9809_v41 = vld [vmem:[#allocation2 + $0x1f] sm:$0xff]  ;;  %v10534_v34 = vld [vmem:[%s16696_s4 + $0x68] sm:$0xff] }
0x1c4a   : > { %9804 = vst [vmem:[#allocation2 + $0x38] sm:$0xff] %v18467_v26  ;;  %10158 = vmatprep.subr.mxu0 %v12135_v30  ;;  %9970 = vmatmul.mubr.f32.gmra.mxu0 %v18437_v11  ;;  %v9815_v47 = vld [vmem:[#allocation2 + $0x11] sm:$0xff]  ;;  %v9816_v10 = vld [vmem:[#allocation2 + $0x19] sm:$0xff] }
0x1c4b   : > { %10071 = vmatmul.mubr.f32.gmra.mxu1 %v9807_v60  ;;  %10159 = vmatpush1.msra.mxu0 %v12134_v38  ;;  %v10533_v50 = vld [vmem:[%s16696_s4 + $0x60] sm:$0xff]  ;;  %v10532_v30 = vld [vmem:[%s16696_s4 + $0x58] sm:$0xff] }
0x1c4c   : > { %10160 = vmatprep.subr.mxu0 %v12133_v31  ;;  %9975 = vmatprep.mubr.f32.mxu0 %v18328_v35 }
0x1c4d   : > { %10161 = vmatpush1.msra.mxu0 %v12132_v57  ;;  %10076 = vmatprep.mubr.f32.mxu1 %v18328_v35  ;;  %v9810_v37 = vld [vmem:[#allocation2 + $0x27] sm:$0xff]  ;;  %v9811_v53 = vld [vmem:[#allocation2 + $0x2f] sm:$0xff] }
0x1c4e   : > { %10162 = vmatprep.subr.mxu0 %v12131_v9  ;;  %9976 = vmatmul.mubr.f32.gmra.mxu0 %v18456_v2  ;;  %v9817_v55 = vld [vmem:[#allocation2 + $0x21] sm:$0xff]  ;;  %v9818_v62 = vld [vmem:[#allocation2 + $0x29] sm:$0xff] }
0x1c4f   : > { %10077 = vmatmul.mubr.f32.gmra.mxu1 %v9808_v13  ;;  %10163 = vmatpush1.msra.mxu0 %v12130_v49  ;;  %v9821_v17 = vld [vmem:[#allocation2 + $0x41] sm:$0xff] }
0x1c50   : > { %10164 = vmatprep.subr.mxu0 %v12129_v63  ;;  %9981 = vmatprep.mubr.f32.mxu0 %v18328_v35 }
0x1c51   : > { %10165 = vmatpush1.msra.mxu0 %v12128_v54  ;;  %10082 = vmatprep.mubr.f32.mxu1 %v18328_v35  ;;  %v9812_v1 = vld [vmem:[#allocation2 + $0x37] sm:$0xff]  ;;  %v9813_v39 = vld [vmem:[#allocation2 + $0x3f] sm:$0xff] }
0x1c52   : > { %10166 = vmatprep.subr.mxu0 %v12127_v29  ;;  %9982 = vmatmul.mubr.f32.gmra.mxu0 %v18449_v45  ;;  %v9819_v59 = vld [vmem:[#allocation2 + $0x31] sm:$0xff]  ;;  %v9820_v33 = vld [vmem:[#allocation2 + $0x39] sm:$0xff] }
0x1c53   : > { %10083 = vmatmul.mubr.f32.gmra.mxu1 %v9809_v41  ;;  %10167 = vmatpush1.msra.mxu0 %v12126_v24 }
0x1c54   : > { %10168 = vmatprep.subr.mxu0 %v12125_v58  ;;  %9987 = vmatprep.mubr.f32.mxu0 %v18328_v35 }
0x1c55   : > { %10169 = vmatpush1.msra.mxu0 %v12124_v16  ;;  %10088 = vmatprep.mubr.f32.mxu1 %v18328_v35 }
0x1c56   : > { %10170 = vmatprep.subr.mxu0 %v12123_v12  ;;  %9988 = vmatmul.mubr.f32.gmra.mxu0 %v18467_v26 }
0x1c57   : > { %10089 = vmatmul.mubr.f32.gmra.mxu1 %v9810_v37  ;;  %10171 = vmatpush1.msra.mxu0 %v12122_v44 }
0x1c58   : > { %10172 = vmatprep.subr.mxu0 %v12121_v4  ;;  %9993 = vmatprep.mubr.f32.mxu0 %v18328_v35 }
0x1c59   : > { %10173 = vmatpush1.msra.mxu0 %v12120_v20  ;;  %10094 = vmatprep.mubr.f32.mxu1 %v18328_v35  ;;  %v10277_v20 = vlaneseq }
0x1c5a   : > { %10174 = vmatprep.subr.mxu0 %v12119_v48  ;;  %9994 = vmatmul.mubr.f32.gmra.mxu0 %v18461_v42 }
0x1c5b   : > { %10095 = vmatmul.mubr.f32.gmra.mxu1 %v9811_v53  ;;  %10175 = vmatpush1.msra.mxu0 %v12118_v51  ;;  %v10278_v53 = vshrl.u32 %v10277_v20, 7 }
0x1c5c   : > { %10176 = vmatprep.subr.mxu0 %v12117_v15  ;;  %10100 = vmatprep.mubr.f32.mxu1 %v18328_v35 }
0x1c5d   : > { %10177 = vmatpush1.msra.mxu0 %v12116_v14  ;;  %10210 = vmatprep.mubr.f32.mxu0 %v18328_v35 }
0x1c5e   : > { %10211 = vmatmul.mubr.f32.vlgmr.msra.gmra.mxu0 %v9814_v43  ;;  %13753 = vmatprep.subr.mxu0 %v18328_v35  ;;  %v10283_v43 = vsub.s32 1, %v10278_v53 }
0x1c5f   : > { %10101 = vmatmul.mubr.f32.gmra.mxu1 %v9812_v1  ;;  %10216 = vmatprep.mubr.f32.mxu0 %v18328_v35 }
0x1c60   : > { %10106 = vmatprep.mubr.f32.mxu1 %v18328_v35  ;;  %13710 = vmatpush3.msra.mxu1 %v10382_v18 }
0x1c61   : > { %13711 = vmatprep.subr.mxu1 %v10381_v27  ;;  %13754 = vmatpush3.msra.mxu0 %v10536_v32 }
0x1c62   : > { %10217 = vmatmul.mubr.f32.gmra.mxu0 %v9815_v47  ;;  %13712 = vmatpush3.msra.mxu1 %v10381_v27 }
0x1c63   : > { %10107 = vmatmul.mubr.f32.gmra.mxu1 %v9813_v39  ;;  %10222 = vmatprep.mubr.f32.mxu0 %v18328_v35 }
0x1c64   : > { %13713 = vmatprep.subr.mxu1 %v10380_v56  ;;  %13755 = vmatprep.subr.mxu0 %v18328_v35 }
0x1c65   : > { %13714 = vmatpush3.msra.mxu1 %v10380_v56  ;;  %13756 = vmatpush3.msra.mxu0 %v10535_v8 }
0x1c66   : > { %10223 = vmatmul.mubr.f32.gmra.mxu0 %v9816_v10  ;;  %13715 = vmatprep.subr.mxu1 %v10379_v22  ;;  %v10275_v10 = vld [vmem:[#allocation77] sm:$0x3] }
0x1c67   : > { %10228 = vmatprep.mubr.f32.mxu0 %v18328_v35  ;;  %13716 = vmatpush3.msra.mxu1 %v10379_v22 }
0x1c68   : > { %13717 = vmatprep.subr.mxu1 %v10378_v23  ;;  %13757 = vmatprep.subr.mxu0 %v18328_v35 }
0x1c69   : > { %13718 = vmatpush3.msra.mxu1 %v10378_v23  ;;  %13758 = vmatpush3.msra.mxu0 %v10534_v34 }
0x1c6a   : > { %10229 = vmatmul.mubr.f32.gmra.mxu0 %v9817_v55  ;;  %13719 = vmatprep.subr.mxu1 %v10377_v61 }
0x1c6b   : > { %10234 = vmatprep.mubr.f32.mxu0 %v18328_v35  ;;  %13720 = vmatpush3.msra.mxu1 %v10377_v61 }
0x1c6c   : > { %13721 = vmatprep.subr.mxu1 %v10376_v0  ;;  %13759 = vmatprep.subr.mxu0 %v18328_v35 }
0x1c6d   : > { %13722 = vmatpush3.msra.mxu1 %v10376_v0  ;;  %13760 = vmatpush3.msra.mxu0 %v10533_v50 }
0x1c6e   : > { %10235 = vmatmul.mubr.f32.gmra.mxu0 %v9818_v62  ;;  %13723 = vmatprep.subr.mxu1 %v10375_v46  ;;  %v18550_v62 = vrot.slane %v10275_v10, %v10283_v43 }
0x1c6f   : > { %10240 = vmatprep.mubr.f32.mxu0 %v18328_v35  ;;  %13724 = vmatpush3.msra.mxu1 %v10375_v46 }
0x1c70   : > { %13725 = vmatprep.subr.mxu1 %v10374_v5  ;;  %13761 = vmatprep.subr.mxu0 %v18328_v35 }
0x1c71   : > { %13726 = vmatpush3.msra.mxu1 %v10374_v5  ;;  %13762 = vmatpush3.msra.mxu0 %v10532_v30 }
0x1c72   : > { %10241 = vmatmul.mubr.f32.gmra.mxu0 %v9819_v59  ;;  %13727 = vmatprep.subr.mxu1 %v10373_v28 }
0x1c73   : > { %10246 = vmatprep.mubr.f32.mxu0 %v18328_v35  ;;  %13728 = vmatpush3.msra.mxu1 %v10373_v28 }
0x1c74   : > { %13729 = vmatprep.subr.mxu1 %v10372_v3  ;;  %13763 = vmatprep.subr.mxu0 %v18328_v35 }
0x1c75   : > { %13730 = vmatpush3.msra.mxu1 %v10372_v3 }
0x1c76   : > { %10247 = vmatmul.mubr.f32.gmra.mxu0 %v9820_v33  ;;  %13731 = vmatprep.subr.mxu1 %v10371_v40 }
0x1c77   : > { %10252 = vmatprep.mubr.f32.mxu0 %v18328_v35  ;;  %13732 = vmatpush3.msra.mxu1 %v10371_v40 }
0x1c78   : > { %13733 = vmatprep.subr.mxu1 %v10370_v21 }
0x1c79   : > { %13734 = vmatpush3.msra.mxu1 %v10370_v21 }
0x1c7a   : > { %10253 = vmatmul.mubr.f32.gmra.mxu0 %v9821_v17  ;;  %13735 = vmatprep.subr.mxu1 %v10369_v25 }
0x1c7b   : > { %13736 = vmatpush3.msra.mxu1 %v10369_v25 }
0x1c7c   : > { %13737 = vmatprep.subr.mxu1 %v10368_v36 }
0x1c7d   : > { %13738 = vmatpush3.msra.mxu1 %v10368_v36  ;;  %v10279_v36 = vsub.s32 0, %v10278_v53 }
0x1c7e   : > { %13739 = vmatprep.subr.mxu1 %v10367_v19 }
0x1c7f   : > { %13740 = vmatpush3.msra.mxu1 %v10367_v19 }
0x1c80   : > { %13788 = vmatprep.subr.mxu1 %v18328_v35 }
0x1cfe   : > { %v9953_v38 = vpop.f32.mrf.mxu0 }
0x1d00   : > { %v9955_v31 = vpop.f32.mrf.mxu0 }
0x1d02   : > { %v18526_v60 = vpop.f32.mrf.mxu0 }
0x1d04   : > { %v9961_v57 = vpop.f32.mrf.mxu0 }
0x1d06   : > { %v18528_v9 = vpop.f32.mrf.mxu0 }
0x1d07   : > { %v10066_v49 = vpop.f32.mrf.mxu1 }
0x1d08   : > { %v9967_v63 = vpop.f32.mrf.mxu0  ;;  %v10067_v34 = vadd.f32 %v10066_v49, %v9953_v38 }
0x1d09   : > { %v10068_v13 = vpop.f32.mrf.mxu1 }
0x1d0a   : > { %v18530_v54 = vpop.f32.mrf.mxu0  ;;  %v10069_v55 = vadd.f32 %v10068_v13, %v9955_v31  ;;  %v18559_v13 = vrot.slane %v10275_v10, %v10279_v36 }
0x1d0b   : > { %v10072_v29 = vpop.f32.mrf.mxu1 }
0x1d0c   : > { %v9973_v24 = vpop.f32.mrf.mxu0  ;;  %v10073_v53 = vadd.f32 %v10072_v29, %v18526_v60 }
0x1d0d   : > { %v10074_v58 = vpop.f32.mrf.mxu1 }
0x1d0e   : > { %v18532_v41 = vpop.f32.mrf.mxu0  ;;  %v10075_v27 = vadd.f32 %v10074_v58, %v9961_v57 }
0x1d0f   : > { %v18534_v16 = vpop.f32.mrf.mxu1 }
0x1d10   : > { %v9979_v35 = vpop.f32.mrf.mxu0 }
0x1d11   : > { %v10080_v12 = vpop.f32.mrf.mxu1 }
0x1d12   : > { %v18536_v44 = vpop.f32.mrf.mxu0  ;;  %v10081_v5 = vadd.f32 %v10080_v12, %v9967_v63 }
0x1d13   : > { %v18538_v4 = vpop.f32.mrf.mxu1 }
0x1d14   : > { %v9985_v37 = vpop.f32.mrf.mxu0 }
0x1d15   : > { %v10086_v51 = vpop.f32.mrf.mxu1 }
0x1d16   : > { %v18540_v48 = vpop.f32.mrf.mxu0  ;;  %v10087_v32 = vadd.f32 %v10086_v51, %v9973_v24 }
0x1d17   : > { %v18546_v1 = vpop.f32.mrf.mxu1 }
0x1d18   : > { %v18542_v15 = vpop.f32.mrf.mxu0 }
0x1d19   : > { %v10092_v59 = vpop.f32.mrf.mxu1 }
0x1d1a   : > { %v18544_v14 = vpop.f32.mrf.mxu0  ;;  %v10093_v12 = vadd.f32 %v10092_v59, %v9979_v35  ;;  %v10079_v35 = vadd.f32 %v18534_v16, %v18528_v9 }
0x1d1b   : > { %v18553_v22 = vpop.f32.mrf.mxu1 }
0x1d1c   : > { %v18548_v47 = vpop.f32.mrf.mxu0 }
0x1d1d   : > { %v10098_v3 = vpop.f32.mrf.mxu1 }
0x1d1e   : > { %v10212_v39 = vpop.f32.mrf.mxu0 }
0x1d1f   : > { %v18557_v50 = vpop.f32.mrf.mxu1  ;;  %v10259_v63 = vadd.f32 %v10212_v39, %v10067_v34 }
0x1d20   : > { %v10214_v33 = vpop.f32.mrf.mxu0 }
0x1d21   : > { %v10260_v17 = vadd.f32 %v10214_v33, %v10069_v55  ;;  %v10104_v24 = vpop.f32.mrf.mxu1  ;;  %v10287_v38 = vadd.f32 %v18559_v13, %v10259_v63 }
0x1d22   : > { %v10218_v18 = vpop.f32.mrf.mxu0  ;;  %v10105_v9 = vadd.f32 %v10104_v24, %v18542_v15  ;;  %v10091_v15 = vadd.f32 %v18546_v1, %v18532_v41 }
0x1d23   : > { %v10288_v56 = vadd.f32 %v18550_v62, %v10260_v17  ;;  %v10261_v49 = vadd.f32 %v10218_v18, %v10073_v53  ;;  %v10099_v17 = vadd.f32 %v10098_v3, %v9985_v37  ;;  %v18567_v59 = vpop.f32.mrf.mxu1 }
0x1d24   : > { %v10220_v23 = vpop.f32.mrf.mxu0 }
0x1d25   : > { %v12148_v61 = vmul.f32 -1.442695, %v10288_v56  ;;  %v10262_v0 = vadd.f32 %v10220_v23, %v10075_v27  ;;  %v10289_v23 = vadd.f32 %v18559_v13, %v10261_v49  ;;  %v10110_v16 = vpop.f32.mrf.mxu1 }
0x1d26   : > { %v10224_v46 = vpop.f32.mrf.mxu0 }
0x1d27   : > { %14838 = vpow2.f32 %v12148_v61  ;;  %v10290_v28 = vadd.f32 %v18550_v62, %v10262_v0  ;;  %v10263_v61 = vadd.f32 %v10224_v46, %v10079_v35 }
0x1d28   : > { %v10226_v40 = vpop.f32.mrf.mxu0 }
0x1d29   : > { %v12149_v21 = vmul.f32 -1.442695, %v10290_v28  ;;  %v10264_v25 = vadd.f32 %v10226_v40, %v10081_v5  ;;  %v10085_v5 = vadd.f32 %v18538_v4, %v18530_v54 }
0x1d2a   : > { %v10230_v19 = vpop.f32.mrf.mxu0 }
0x1d2b   : > { %14840 = vpow2.f32 %v12149_v21  ;;  %v10292_v8 = vadd.f32 %v18550_v62, %v10264_v25  ;;  %v10291_v21 = vadd.f32 %v18559_v13, %v10263_v61  ;;  %v10265_v25 = vadd.f32 %v10230_v19, %v10085_v5 }
0x1d2c   : > { %v10232_v30 = vpop.f32.mrf.mxu0 }
0x1d2d   : > { %v12150_v31 = vmul.f32 -1.442695, %v10292_v8  ;;  %v10266_v57 = vadd.f32 %v10232_v30, %v10087_v32  ;;  %v10111_v32 = vadd.f32 %v10110_v16, %v18548_v47 }
0x1d2e   : > { %v10236_v58 = vpop.f32.mrf.mxu0 }
0x1d2f   : > { %14842 = vpow2.f32 %v12150_v31  ;;  %v10294_v20 = vadd.f32 %v18550_v62, %v10266_v57  ;;  %v10293_v31 = vadd.f32 %v18559_v13, %v10265_v25  ;;  %v10267_v19 = vadd.f32 %v10236_v58, %v10091_v15  ;;  %v10530_v15 = vld [vmem:[%s16696_s4 + $0x48] sm:$0xff] }
0x1d30   : > { %v10238_v51 = vpop.f32.mrf.mxu0 }
0x1d31   : > { %v12151_v43 = vmul.f32 -1.442695, %v10294_v20  ;;  %v10268_v55 = vadd.f32 %v10238_v51, %v10093_v12  ;;  %v10097_v12 = vadd.f32 %v18553_v22, %v18536_v44  ;;  %v10295_v41 = vadd.f32 %v18559_v13, %v10267_v19  ;;  %v12168_v19 = vld [vmem:[%s16696_s4 + $0xd8] sm:$0xff] }
0x1d32   : > { %v10242_v33 = vpop.f32.mrf.mxu0 }
0x1d33   : > { %14844 = vpow2.f32 %v12151_v43  ;;  %v10296_v39 = vadd.f32 %v18550_v62, %v10268_v55  ;;  %v10269_v1 = vadd.f32 %v10242_v33, %v10097_v12  ;;  %v10109_v33 = vadd.f32 %v18567_v59, %v18544_v14  ;;  %v10526_v12 = vld [vmem:[%s16696_s4 + $0x28] sm:$0xff] }
0x1d34   : > { %v14839_v10 = vpop.eup %14838  ;;  %v10244_v27 = vpop.f32.mrf.mxu0  ;;  %14846 = vtanh.f32 %v10287_v38 }
0x1d35   : > { %v10335_v60 = vadd.f32 1.0, %v14839_v10  ;;  %v12152_v29 = vmul.f32 -1.442695, %v10296_v39  ;;  %v10270_v56 = vadd.f32 %v10244_v27, %v10099_v17  ;;  %v10297_v44 = vadd.f32 %v18559_v13, %v10269_v1  ;;  %v12172_v10 = vld [vmem:[%s16696_s4 + $0xf8] sm:$0xff] }
0x1d36   : > { %v10248_v18 = vpop.f32.mrf.mxu0  ;;  %v12164_v1 = vld [vmem:[%s16696_s4 + $0xb8] sm:$0xff] }
0x1d37   : > { %14848 = vrcp.f32 %v10335_v60  ;;  %v10298_v37 = vadd.f32 %v18550_v62, %v10270_v56 }
0x1d38   : > { %v14841_v0 = vpop.eup %14840  ;;  %14850 = vpow2.f32 %v12152_v29  ;;  %v10250_v28 = vpop.f32.mrf.mxu0 }
0x1d39   : > { %v10336_v3 = vadd.f32 1.0, %v14841_v0  ;;  %v12153_v40 = vmul.f32 -1.442695, %v10298_v37  ;;  %14852 = vtanh.f32 %v10289_v23  ;;  %v10272_v46 = vadd.f32 %v10250_v28, %v10105_v9  ;;  %v18591_v23 = vld [vmem:[#allocation2] sm:$0xff] }
0x1d3a   : > { %v10254_v36 = vpop.f32.mrf.mxu0  ;;  %13785 = vmatprep.mubr.msk.f32.mxu0 %vm16421_vm3, %v18591_v23 }
0x1d3b   : > { %14854 = vrcp.f32 %v10336_v3  ;;  %v10300_v54 = vadd.f32 %v18550_v62, %v10272_v46 }
0x1d3c   : > { %v14843_v8 = vpop.eup %14842  ;;  %14856 = vpow2.f32 %v12153_v40  ;;  %v10256_v4 = vpop.f32.mrf.mxu0 }
0x1d3d   : > { %v10337_v34 = vadd.f32 1.0, %v14843_v8  ;;  %v10274_v30 = vadd.f32 %v10256_v4, %v10111_v32  ;;  %14858 = vtanh.f32 %v10291_v21  ;;  %v12154_v57 = vmul.f32 -1.442695, %v10300_v54  ;;  %v10531_v54 = vld [vmem:[%s16696_s4 + $0x50] sm:$0xff] }
0x1d3e   : > { %v12171_v4 = vld [vmem:[%s16696_s4 + $0xf0] sm:$0xff]  ;;  %13764 = vmatpush3.msra.mxu0 %v10531_v54 }
0x1d3f   : > { %14860 = vrcp.f32 %v10337_v34  ;;  %v10302_v63 = vadd.f32 %v18550_v62, %v10274_v30  ;;  %v10103_v62 = vadd.f32 %v18557_v50, %v18540_v48  ;;  %v10273_v50 = vadd.f32 %v10254_v36, %v10109_v33  ;;  %13765 = vmatprep.subr.mxu0 %v18591_v23  ;;  %v12170_v34 = vld [vmem:[%s16696_s4 + $0xe8] sm:$0xff]  ;;  %v10529_v30 = vld [vmem:[%s16696_s4 + $0x40] sm:$0xff]  ;;  %v12187_v54 = vld [vmem:[%s16696_s4 + $0x170] sm:$0xff] }
0x1d40   : > { %v14845_v47 = vpop.eup %14844  ;;  %14862 = vpow2.f32 %v12154_v57  ;;  %13766 = vmatpush3.msra.mxu0 %v10530_v15  ;;  %v10528_v57 = vld [vmem:[%s16696_s4 + $0x38] sm:$0xff]  ;;  %v12156_v33 = vld [vmem:[#allocation80] ss:$0 sm:$0xff] }
0x1d41   : > { %v10338_v20 = vadd.f32 1.0, %v14845_v47  ;;  %v12155_v53 = vmul.f32 -1.442695, %v10302_v63  ;;  %14864 = vtanh.f32 %v10293_v31  ;;  %v14847_v24 = vpop.eup %14846  ;;  %v10271_v22 = vadd.f32 %v10248_v18, %v10103_v62  ;;  %13767 = vmatprep.subr.mxu0 %v18591_v23  ;;  %v12169_v31 = vld [vmem:[%s16696_s4 + $0xe0] sm:$0xff]  ;;  %v10527_v63 = vld [vmem:[%s16696_s4 + $0x30] sm:$0xff]  ;;  %v10522_v62 = vld [vmem:[%s16696_s4 + $0x8] sm:$0xff] }
0x1d42   : > { %v10301_v59 = vadd.f32 %v18559_v13, %v10273_v50  ;;  %13768 = vmatpush3.msra.mxu0 %v10529_v30  ;;  %v12167_v47 = vld [vmem:[%s16696_s4 + $0xd0] sm:$0xff]  ;;  %v12186_v30 = vld [vmem:[%s16696_s4 + $0x168] sm:$0xff] }
0x1d43   : > { %14866 = vrcp.f32 %v10338_v20  ;;  %v10299_v48 = vadd.f32 %v18559_v13, %v10271_v22  ;;  %13769 = vmatprep.subr.mxu0 %v18591_v23  ;;  %v12166_v20 = vld [vmem:[%s16696_s4 + $0xc8] sm:$0xff]  ;;  %v12159_v22 = vld [vmem:[%s16696_s4 + $0x90] sm:$0xff] }
0x1d44   : > { %v14849_v51 = vpop.eup %14848  ;;  %14868 = vpow2.f32 %v12155_v53  ;;  %13770 = vmatpush3.msra.mxu0 %v10528_v57  ;;  %v10525_v53 = vld [vmem:[%s16696_s4 + $0x20] sm:$0xff] }
0x1d45   : > { %v14851_v43 = vpop.eup %14850  ;;  %v10359_v58 = vmul.f32 %v14849_v51, %v14847_v24  ;;  %14870 = vtanh.f32 %v10295_v41  ;;  %13771 = vmatprep.subr.mxu0 %v18591_v23  ;;  %v12165_v24 = vld [vmem:[%s16696_s4 + $0xc0] sm:$0xff]  ;;  %v10524_v41 = vld [vmem:[%s16696_s4 + $0x18] sm:$0xff]  ;;  %v10523_v51 = vld [vmem:[%s16696_s4 + $0x10] sm:$0xff] }
0x1d46   : > { %v10339_v55 = vadd.f32 1.0, %v14851_v43  ;;  %v14853_v38 = vpop.eup %14852  ;;  %13772 = vmatpush3.msra.mxu0 %v10527_v63  ;;  %v12163_v43 = vld [vmem:[%s16696_s4 + $0xb0] sm:$0xff] }
0x1d47   : > { %13741 = vmatprep.mubr.f32.mxu1 %v10359_v58  ;;  %13773 = vmatprep.subr.mxu0 %v18591_v23  ;;  %v12162_v58 = vld [vmem:[%s16696_s4 + $0xa8] sm:$0xff] }
0x1d48   : > { %v14855_v49 = vpop.eup %14854  ;;  %14872 = vrcp.f32 %v10339_v55  ;;  %13774 = vmatpush3.msra.mxu0 %v10526_v12  ;;  %v10521_v55 = vld [vmem:[%s16696_s4] sm:$0xff]  ;;  %v12184_v12 = vld [vmem:[%s16696_s4 + $0x158] sm:$0xff] }
0x1d49   : > { %v14857_v17 = vpop.eup %14856  ;;  %v10360_v39 = vmul.f32 %v14855_v49, %v14853_v38  ;;  %14874 = vtanh.f32 %v10297_v44  ;;  %13775 = vmatprep.subr.mxu0 %v18591_v23  ;;  %v12161_v38 = vld [vmem:[%s16696_s4 + $0xa0] sm:$0xff]  ;;  %v12160_v44 = vld [vmem:[%s16696_s4 + $0x98] sm:$0xff]  ;;  %v12158_v49 = vld [vmem:[%s16696_s4 + $0x88] sm:$0xff] }
0x1d4a   : > { %v10340_v35 = vadd.f32 1.0, %v14857_v17  ;;  %v14859_v27 = vpop.eup %14858  ;;  %13776 = vmatpush3.msra.mxu0 %v10525_v53  ;;  %v12157_v17 = vld [vmem:[%s16696_s4 + $0x80] sm:$0xff] }
0x1d4b   : > { %13742 = vmatmul.mubr.f32.vlgmr.msra.gmra.mxu1 %v10360_v39  ;;  %13777 = vmatprep.subr.mxu0 %v18591_v23 }
0x1d4c   : > { %v14861_v60 = vpop.eup %14860  ;;  %14876 = vrcp.f32 %v10340_v35  ;;  %13789 = vmatpush3.msra.mxu1 %v12172_v10  ;;  %13778 = vmatpush3.msra.mxu0 %v10524_v41  ;;  %v12183_v41 = vld [vmem:[%s16696_s4 + $0x150] sm:$0xff] }
0x1d4d   : > { %v14863_v29 = vpop.eup %14862  ;;  %v10361_v56 = vmul.f32 %v14861_v60, %v14859_v27  ;;  %13790 = vmatprep.subr.mxu1 %v18591_v23  ;;  %14878 = vtanh.f32 %v10299_v48  ;;  %13779 = vmatprep.subr.mxu0 %v18591_v23 }
0x1d4e   : > { %v10341_v61 = vadd.f32 1.0, %v14863_v29  ;;  %v14865_v14 = vpop.eup %14864  ;;  %13791 = vmatpush3.msra.mxu1 %v12171_v4  ;;  %13780 = vmatpush3.msra.mxu0 %v10523_v51 }
0x1d4f   : > { %13744 = vmatprep.mubr.f32.mxu1 %v10361_v56  ;;  %13792 = vmatprep.subr.mxu1 %v18591_v23 }
0x1d50   : > { %v14867_v18 = vpop.eup %14866  ;;  %14880 = vrcp.f32 %v10341_v61  ;;  %13793 = vmatpush3.msra.mxu1 %v12170_v34  ;;  %13781 = vmatprep.subr.mxu0 %v18591_v23 }
0x1d51   : > { %v14869_v37 = vpop.eup %14868  ;;  %v10362_v0 = vmul.f32 %v14867_v18, %v14865_v14  ;;  %14882 = vtanh.f32 %v10301_v59  ;;  %13794 = vmatprep.subr.mxu1 %v18591_v23  ;;  %13782 = vmatpush3.msra.mxu0 %v10522_v62  ;;  %v12202_v62 = vld [vmem:[%s16696_s4 + $0x1e8] sm:$0xff] }
0x1d52   : > { %v10342_v5 = vadd.f32 1.0, %v14869_v37  ;;  %v14871_v9 = vpop.eup %14870  ;;  %13795 = vmatpush3.msra.mxu1 %v12169_v31  ;;  %13783 = vmatprep.subr.mxu0 %v18591_v23 }
0x1d53   : > { %13745 = vmatmul.mubr.f32.gmra.mxu1 %v10362_v0  ;;  %13796 = vmatprep.subr.mxu1 %v18591_v23 }
0x1d54   : > { %14884 = vrcp.f32 %v10342_v5  ;;  %13797 = vmatpush3.msra.mxu1 %v12168_v19  ;;  %13784 = vmatpush3.msra.mxu0 %v10521_v55 }
0x1d55   : > { %v14873_v16 = vpop.eup %14872  ;;  %13798 = vmatprep.subr.mxu1 %v18591_v23  ;;  %13823 = vmatprep.subr.mxu0 %v18591_v23 }
0x1d56   : > { %v10363_v28 = vmul.f32 %v14873_v16, %v14871_v9  ;;  %v14875_v3 = vpop.eup %14874  ;;  %13799 = vmatpush3.msra.mxu1 %v12167_v47 }
0x1d57   : > { %13800 = vmatprep.subr.mxu1 %v18591_v23 }
0x1d58   : > { %13747 = vmatprep.mubr.f32.mxu1 %v10363_v28  ;;  %13801 = vmatpush3.msra.mxu1 %v12166_v20  ;;  %v12204_v20 = vld [vmem:[%s16696_s4 + $0x1f8] sm:$0xff] }
0x1d59   : > { %v14877_v40 = vpop.eup %14876  ;;  %13802 = vmatprep.subr.mxu1 %v18591_v23 }
0x1d5a   : > { %v10364_v21 = vmul.f32 %v14877_v40, %v14875_v3  ;;  %v14879_v13 = vpop.eup %14878  ;;  %13803 = vmatpush3.msra.mxu1 %v12165_v24 }
0x1d5b   : > { %13804 = vmatprep.subr.mxu1 %v18591_v23 }
0x1d5c   : > { %13748 = vmatmul.mubr.f32.gmra.mxu1 %v10364_v21 }
0x1d5d   : > { %v14881_v25 = vpop.eup %14880  ;;  %13805 = vmatpush3.msra.mxu1 %v12164_v1  ;;  %v12203_v1 = vld [vmem:[%s16696_s4 + $0x1f0] sm:$0xff] }
0x1d5e   : > { %v10365_v46 = vmul.f32 %v14881_v25, %v14879_v13  ;;  %v14883_v36 = vpop.eup %14882  ;;  %13806 = vmatprep.subr.mxu1 %v18591_v23 }
0x1d5f   : > { %13807 = vmatpush3.msra.mxu1 %v12163_v43 }
0x1d60   : > { %13750 = vmatprep.mubr.f32.mxu1 %v10365_v46  ;;  %13808 = vmatprep.subr.mxu1 %v18591_v23 }
0x1d61   : > { %v14885_v32 = vpop.eup %14884  ;;  %13809 = vmatpush3.msra.mxu1 %v12162_v58  ;;  %v12201_v58 = vld [vmem:[%s16696_s4 + $0x1e0] sm:$0xff] }
0x1d62   : > { %v10366_v8 = vmul.f32 %v14885_v32, %v14883_v36  ;;  %13810 = vmatprep.subr.mxu1 %v18591_v23 }
0x1d63   : > { %13811 = vmatpush3.msra.mxu1 %v12161_v38 }
0x1d64   : > { %13751 = vmatmul.mubr.f32.gmra.mxu1 %v10366_v8  ;;  %13812 = vmatprep.subr.mxu1 %v18591_v23 }
0x1d65   : > { %13813 = vmatpush3.msra.mxu1 %v12160_v44  ;;  %13820 = vmatprep.mubr.msk.f32.mxu1 %vm16421_vm3, %v18591_v23  ;;  %v12180_v44 = vld [vmem:[%s16696_s4 + $0x138] sm:$0xff] }
0x1d66   : > { %13814 = vmatprep.subr.mxu1 %v18591_v23 }
0x1d67   : > { %13815 = vmatpush3.msra.mxu1 %v12159_v22  ;;  %v12200_v22 = vld [vmem:[%s16696_s4 + $0x1d8] sm:$0xff] }
0x1d68   : > { %13816 = vmatprep.subr.mxu1 %v18591_v23 }
0x1d69   : > { %13817 = vmatpush3.msra.mxu1 %v12158_v49  ;;  %v12179_v49 = vld [vmem:[%s16696_s4 + $0x130] sm:$0xff] }
0x1d6a   : > { %13818 = vmatprep.subr.mxu1 %v18591_v23 }
0x1d6b   : > { %13819 = vmatpush3.msra.mxu1 %v12157_v17  ;;  %v12199_v17 = vld [vmem:[%s16696_s4 + $0x1d0] sm:$0xff] }
0x1d6c   : > { %13858 = vmatprep.subr.mxu1 %v18591_v23 }
0x1e0b   : > { %v13743_v39 = vpop.f32.mrf.mxu1 }
0x1e0c   : > { %v10462_v10 = vadd.f32 %v13743_v39, %v12156_v33 }
0x1e0d   : > { %v10456_v35 = vpop.f32.mrf.mxu1 }
0x1e0e   : > { %10504 = vst [vmem:[#allocation2 + $0x10] sm:$0xff] %v10462_v10  ;;  %v10457_v27 = vadd.f32 %v12156_v33, %v10456_v35  ;;  %v10496_v48 = vadd.f32 %v10462_v10, %v18429_v52  ;;  %v12178_v10 = vld [vmem:[%s16696_s4 + $0x128] sm:$0xff] }
0x1e0f   : > { %v12198_v35 = vld [vmem:[%s16696_s4 + $0x1c8] sm:$0xff] }
0x1e10   : > { %v10495_v50 = vadd.f32 %v10457_v27, %v18432_v7  ;;  %10503 = vst [vmem:[#allocation2 + $0x8] sm:$0xff] %v10457_v27  ;;  %v12177_v27 = vld [vmem:[%s16696_s4 + $0x120] sm:$0xff] }
0x1e12   : > { %v10512_v60 = vadd.f32 %v10496_v48, %v10495_v50  ;;  %v12197_v48 = vld [vmem:[%s16696_s4 + $0x1c0] sm:$0xff] }
0x1e13   : > { %v13746_v29 = vpop.f32.mrf.mxu1 }
0x1e14   : > { %v10513_v56 = vrot.slane %v10512_v60, 4  ;;  %v10472_v61 = vadd.f32 %v13746_v29, %v12156_v33  ;;  %v12176_v29 = vld [vmem:[%s16696_s4 + $0x118] sm:$0xff] }
0x1e15   : > { %v10466_v14 = vpop.f32.mrf.mxu1 }
0x1e16   : > { %v10514_v59 = vadd.f32 %v10513_v56, %v10512_v60  ;;  %10506 = vst [vmem:[#allocation2 + $0x20] sm:$0xff] %v10472_v61  ;;  %v10467_v18 = vadd.f32 %v12156_v33, %v10466_v14  ;;  %v10498_v0 = vadd.f32 %v10472_v61, %v18437_v11  ;;  %v12188_v11 = vld [vmem:[%s16696_s4 + $0x178] sm:$0xff]  ;;  %v12175_v61 = vld [vmem:[%s16696_s4 + $0x110] sm:$0xff] }
0x1e17   : > { %v12196_v56 = vld [vmem:[%s16696_s4 + $0x1b8] sm:$0xff]  ;;  %v12195_v14 = vld [vmem:[%s16696_s4 + $0x1b0] sm:$0xff] }
0x1e18   : > { %v10515_v37 = vrot.slane %v10514_v59, 2  ;;  %v10497_v5 = vadd.f32 %v10467_v18, %v18444_v6  ;;  %10505 = vst [vmem:[#allocation2 + $0x18] sm:$0xff] %v10467_v18 }
0x1e1a   : > { %v10516_v9 = vadd.f32 %v10515_v37, %v10514_v59  ;;  %v10608_v52 = vadd.f32 %v10498_v0, %v10497_v5  ;;  %v12174_v37 = vld [vmem:[%s16696_s4 + $0x108] sm:$0xff]  ;;  %v12173_v5 = vld [vmem:[%s16696_s4 + $0x100] sm:$0xff] }
0x1e1b   : > { %v12194_v0 = vld [vmem:[%s16696_s4 + $0x1a8] sm:$0xff] }
0x1e1c   : > { %v10517_v16 = vrot.slane %v10516_v9, 1  ;;  %v10609_v7 = vrot.slane %v10608_v52, 4  ;;  %v13749_v28 = vpop.f32.mrf.mxu1 }
0x1e1d   : > { %v10482_v3 = vadd.f32 %v13749_v28, %v12156_v33  ;;  %v12191_v28 = vld [vmem:[%s16696_s4 + $0x190] sm:$0xff] }
0x1e1e   : > { %v10518_v40 = vadd.f32 %v10517_v16, %v10516_v9  ;;  %v10610_v21 = vadd.f32 %v10609_v7, %v10608_v52  ;;  %v10476_v13 = vpop.f32.mrf.mxu1  ;;  %v12193_v9 = vld [vmem:[%s16696_s4 + $0x1a0] sm:$0xff]  ;;  %v12192_v7 = vld [vmem:[%s16696_s4 + $0x198] sm:$0xff] }
0x1e1f   : > { %10508 = vst [vmem:[#allocation2 + $0x30] sm:$0xff] %v10482_v3  ;;  %v10477_v25 = vadd.f32 %v12156_v33, %v10476_v13  ;;  %v10500_v8 = vadd.f32 %v10482_v3, %v18449_v45  ;;  %v12185_v45 = vld [vmem:[%s16696_s4 + $0x160] sm:$0xff] }
0x1e20   : > { %v10520_v46 = vmul.f32 0.0625, %v10518_v40  ;;  %v10611_v36 = vrot.slane %v10610_v21, 2  ;;  %v12190_v40 = vld [vmem:[%s16696_s4 + $0x188] sm:$0xff] }
0x1e21   : > { %v10499_v32 = vadd.f32 %v10477_v25, %v18456_v2  ;;  %10507 = vst [vmem:[#allocation2 + $0x28] sm:$0xff] %v10477_v25 }
0x1e22   : > { %v10612_v6 = vadd.f32 %v10611_v36, %v10610_v21  ;;  %13786 = vmatmul.mubr.f32.vlgmr.msra.gmra.mxu0 %v10520_v46  ;;  %v12189_v21 = vld [vmem:[%s16696_s4 + $0x180] sm:$0xff] }
0x1e23   : > { %13824 = vmatpush3.msra.mxu0 %v12188_v11  ;;  %13855 = vmatprep.mubr.msk.f32.mxu0 %vm16421_vm3, %v18591_v23  ;;  %v10704_v15 = vadd.f32 %v10500_v8, %v10499_v32  ;;  %v10511_v32 = vld [vmem:[#allocation81] sm:$0x1] }
0x1e24   : > { %v10613_v4 = vrot.slane %v10612_v6, 1  ;;  %v13752_v34 = vpop.f32.mrf.mxu1  ;;  %13825 = vmatprep.subr.mxu0 %v18591_v23 }
0x1e25   : > { %v10492_v2 = vadd.f32 %v13752_v34, %v12156_v33  ;;  %13826 = vmatpush3.msra.mxu0 %v12187_v54  ;;  %v10705_v47 = vrot.slane %v10704_v15, 4 }
0x1e26   : > { %v10614_v31 = vadd.f32 %v10613_v4, %v10612_v6  ;;  %v10486_v57 = vpop.f32.mrf.mxu1  ;;  %13827 = vmatprep.subr.mxu0 %v18591_v23 }
0x1e27   : > { %10510 = vst [vmem:[#allocation2 + $0x40] sm:$0xff] %v10492_v2  ;;  %v10487_v19 = vadd.f32 %v12156_v33, %v10486_v57  ;;  %13828 = vmatpush3.msra.mxu0 %v12186_v30  ;;  %v10502_v24 = vadd.f32 %v10492_v2, %v18461_v42  ;;  %v10706_v51 = vadd.f32 %v10705_v47, %v10704_v15  ;;  %v12181_v42 = vld [vmem:[%s16696_s4 + $0x140] sm:$0xff] }
0x1e28   : > { %v10615_v63 = vmul.f32 0.0625, %v10614_v31  ;;  %13829 = vmatprep.subr.mxu0 %v18591_v23 }
0x1e29   : > { %v10501_v53 = vadd.f32 %v10487_v19, %v18467_v26  ;;  %10509 = vst [vmem:[#allocation2 + $0x38] sm:$0xff] %v10487_v19  ;;  %13830 = vmatpush3.msra.mxu0 %v12185_v45  ;;  %v12182_v26 = vld [vmem:[%s16696_s4 + $0x148] sm:$0xff]  ;;  %v10707_v55 = vrot.slane %v10706_v51, 2 }
0x1e2a   : > { %13831 = vmatprep.subr.mxu0 %v18591_v23  ;;  %13821 = vmatmul.mubr.f32.vlgmr.msra.gmra.mxu1 %v10615_v63 }
0x1e2b   : > { %13832 = vmatpush3.msra.mxu0 %v12184_v12  ;;  %13859 = vmatpush3.msra.mxu1 %v12204_v20  ;;  %v10800_v43 = vadd.f32 %v10502_v24, %v10501_v53  ;;  %v10708_v33 = vadd.f32 %v10707_v55, %v10706_v51 }
0x1e2c   : > { %13833 = vmatprep.subr.mxu0 %v18591_v23  ;;  %13860 = vmatprep.subr.mxu1 %v18591_v23 }
0x1e2d   : > { %13834 = vmatpush3.msra.mxu0 %v12183_v41  ;;  %13861 = vmatpush3.msra.mxu1 %v12203_v1  ;;  %v10801_v38 = vrot.slane %v10800_v43, 4  ;;  %v10709_v50 = vrot.slane %v10708_v33, 1 }
0x1e2e   : > { %13835 = vmatprep.subr.mxu0 %v18591_v23  ;;  %13862 = vmatprep.subr.mxu1 %v18591_v23 }
0x1e2f   : > { %13836 = vmatpush3.msra.mxu0 %v12182_v26  ;;  %13863 = vmatpush3.msra.mxu1 %v12202_v62  ;;  %v10802_v39 = vadd.f32 %v10801_v38, %v10800_v43  ;;  %v10710_v59 = vadd.f32 %v10709_v50, %v10708_v33 }
0x1e30   : > { %13837 = vmatprep.subr.mxu0 %v18591_v23  ;;  %13864 = vmatprep.subr.mxu1 %v18591_v23 }
0x1e31   : > { %13838 = vmatpush3.msra.mxu0 %v12181_v42  ;;  %13865 = vmatpush3.msra.mxu1 %v12201_v58  ;;  %v10803_v60 = vrot.slane %v10802_v39, 2  ;;  %v10711_v52 = vmul.f32 0.0625, %v10710_v59 }
0x1e32   : > { %13839 = vmatprep.subr.mxu0 %v18591_v23  ;;  %13866 = vmatprep.subr.mxu1 %v18591_v23 }
0x1e33   : > { %13840 = vmatpush3.msra.mxu0 %v12180_v44  ;;  %13867 = vmatpush3.msra.mxu1 %v12200_v22  ;;  %v10804_v18 = vadd.f32 %v10803_v60, %v10802_v39 }
0x1e34   : > { %13841 = vmatprep.subr.mxu0 %v18591_v23  ;;  %13868 = vmatprep.subr.mxu1 %v18591_v23 }
0x1e35   : > { %13842 = vmatpush3.msra.mxu0 %v12179_v49  ;;  %13869 = vmatpush3.msra.mxu1 %v12199_v17  ;;  %v10805_v16 = vrot.slane %v10804_v18, 1 }
0x1e36   : > { %13843 = vmatprep.subr.mxu0 %v18591_v23  ;;  %13870 = vmatprep.subr.mxu1 %v18591_v23 }
0x1e37   : > { %13844 = vmatpush3.msra.mxu0 %v12178_v10  ;;  %13871 = vmatpush3.msra.mxu1 %v12198_v35  ;;  %v10806_v3 = vadd.f32 %v10805_v16, %v10804_v18 }
0x1e38   : > { %13845 = vmatprep.subr.mxu0 %v18591_v23  ;;  %13872 = vmatprep.subr.mxu1 %v18591_v23 }
0x1e39   : > { %13846 = vmatpush3.msra.mxu0 %v12177_v27  ;;  %13873 = vmatpush3.msra.mxu1 %v12197_v48  ;;  %v10807_v13 = vmul.f32 0.0625, %v10806_v3 }
0x1e3a   : > { %13847 = vmatprep.subr.mxu0 %v18591_v23  ;;  %13874 = vmatprep.subr.mxu1 %v18591_v23 }
0x1e3b   : > { %13848 = vmatpush3.msra.mxu0 %v12176_v29  ;;  %13875 = vmatpush3.msra.mxu1 %v12196_v56 }
0x1e3c   : > { %13849 = vmatprep.subr.mxu0 %v18591_v23  ;;  %13876 = vmatprep.subr.mxu1 %v18591_v23 }
0x1e3d   : > { %13850 = vmatpush3.msra.mxu0 %v12175_v61  ;;  %13877 = vmatpush3.msra.mxu1 %v12195_v14 }
0x1e3e   : > { %13851 = vmatprep.subr.mxu0 %v18591_v23  ;;  %13878 = vmatprep.subr.mxu1 %v18591_v23 }
0x1e3f   : > { %13852 = vmatpush3.msra.mxu0 %v12174_v37  ;;  %13879 = vmatpush3.msra.mxu1 %v12194_v0 }
0x1e40   : > { %13853 = vmatprep.subr.mxu0 %v18591_v23  ;;  %13880 = vmatprep.subr.mxu1 %v18591_v23 }
0x1e41   : > { %13854 = vmatpush3.msra.mxu0 %v12173_v5  ;;  %13881 = vmatpush3.msra.mxu1 %v12193_v9 }
0x1e42   : > { %13856 = vmatmul.mubr.f32.vlgmr.msra.gmra.mxu0 %v10711_v52  ;;  %13882 = vmatprep.subr.mxu1 %v18591_v23 }
0x1e43   : > { %13883 = vmatpush3.msra.mxu1 %v12192_v7  ;;  %13890 = vmatprep.mubr.msk.f32.mxu1 %vm16421_vm3, %v18591_v23 }
0x1e44   : > { %13884 = vmatprep.subr.mxu1 %v18591_v23 }
0x1e45   : > { %13885 = vmatpush3.msra.mxu1 %v12191_v28 }
0x1e46   : > { %13886 = vmatprep.subr.mxu1 %v18591_v23 }
0x1e47   : > { %13887 = vmatpush3.msra.mxu1 %v12190_v40 }
0x1e48   : > { %13888 = vmatprep.subr.mxu1 %v18591_v23 }
0x1e49   : > { %13889 = vmatpush3.msra.mxu1 %v12189_v21 }
0x1e4a   : > { %13891 = vmatmul.mubr.f32.vlgmr.msra.gmra.mxu1 %v10807_v13 }
0x1ee2   : > { %v10603_v25 = vpop.f32.mrf.mxu0 }
0x1ee3   : > { %v10607_v54 = vadd.f32 %v10603_v25, %v10511_v32 }
0x1ee4   : > { %v13787_v46 = vpop.f32.mrf.mxu0 }
0x1eea   : > { %v10699_v36 = vpop.f32.mrf.mxu1 }
0x1eeb   : > { %v10703_v4 = vadd.f32 %v10699_v36, %v10607_v54 }
0x1eec   : > { %v13822_v11 = vpop.f32.mrf.mxu1 }
0x1f02   : > { %v10795_v6 = vpop.f32.mrf.mxu0 }
0x1f03   : > { %v10799_v15 = vadd.f32 %v10795_v6, %v10703_v4 }
0x1f04   : > { %v13857_v8 = vpop.f32.mrf.mxu0 }
0x1f0a   : > { %v10891_v34 = vpop.f32.mrf.mxu1 }
0x1f0b   : > { %v10895_v23 = vadd.f32 %v10891_v34, %v10799_v15 }
0x1f0c   : > { %v13892_v30 = vpop.f32.mrf.mxu1 }
0x1f0d   : > { %10897 = vst.msk [vmem:[%s2323_s0] sm:$0x1] %vm10896_vm4, %v10895_v23 }
0x1f0e   : > { %16151 = shalt.err (!%p16148_p8)
}
0x1f0f   : > { %s16152_s23 = scalar_lea.hbm %s18728_s16, 16  ;;  %s16156_s7 = scalar_lea.hbm %s16706_s20, 32 }
0x1f10   : > { %p16153_p11 = scmp.ne.s32.totalorder %s18728_s16, %s16152_s23  ;;  %p16157_p0 = scmp.lt.s32.totalorder %s18728_s16, %s16706_s20 }
0x1f11   : > { %p16158_p1 = scmp.lt.s32.totalorder %s16156_s7, %s16152_s23 }
0x1f12   : > { %p16154_p12 = pnand %p16153_p11, %p18855_p2 }
0x1f13   : > { %p16159_p9 = por %p16158_p1, %p16157_p0 }
0x1f14   : > { %p16155_p13 = pneg %p16154_p12 }
0x1f16   : > { %p16160_p10 = pnand %p16159_p9, %p16155_p13 }
0x1f18   : > { %16163 = shalt.err (!%p16160_p10)
}
0x1f19   : > { %14101 = dma.vmem_to_hbm [thread:$0]  (%p18855_p2), %s10912_s18, 16, %s18728_s16, %s10899_s3  }
0x1f1a PF: > { %s18856_s1 = sld [smem:[#allocation152_spill]]  ;;  %p14211_p3 = scmp.ge.s32.totalorder %s16306_s26, 2 }
0x1f1b   : > { %s18857_s0 = sld [smem:[#allocation156_spill]] }
0x1f20   : > { %s10923_s10 = sand.u32 1, %s18856_s1  }
0x1f21   : > { %p18858_p6 = scmp.ne.s32.totalorder %s18857_s0, 0  ;;  %s10924_s13 = scalar_lea.sflag [#allocation5], %s10923_s10 }
0x1f23   : > { %p14104_p5 = pnand %p14211_p3, %p18858_p6 }
0x1f25   : > { %p14105_p4 = pneg %p14104_p5 }
0x1f27   : > { %16289 = dma.done.wait (%p14105_p4), %s10924_s13, 16  }
0x1f28   : > { %16291 = vsyncadd (%p14105_p4), %s10924_s13, 4294967280  ;;  %s18859_s26 = sld [smem:[#allocation154_spill]]  ;;  %s18862_s0 = smov %s16298_s22 }
0x1f29   : > { %s18860_s11 = sld [smem:[#allocation153_spill]] }
0x1f2a   : > { %s18861_s23 = sld [smem:[#allocation155_spill]] }
0x1f2e   : > { %p148_p7 = scmp.ge.s32.totalorder %s18859_s26, 4  }
0x1f2f   : > { %s18863_s22 = smov %s18860_s11 }
0x1f30   :  { %150 = sbr.rel (!%p148_p7) target bundleno = 127 (0x7f), region = 564 }
0x1f35   :  { %10928 = vsyncpa [#allocation4], 1 }
0x1f36   :  { %10930 = vsyncpa [#allocation4 + $0x1], 1 }
0x1f37   :  { %10931 = vsyncpa [#allocation7], 1 }
0x1f38   :  { %10932 = vsyncpa [#allocation10], 1 }
0x1f39   :  { %10933 = vsyncpa [#allocation13], 1 }
0x1f3a   :  { %10934 = vsyncpa [#allocation16], 1 }
0x1f3b   :  { %10935 = vsyncpa [#allocation19], 1 }
0x1f3c   :  { %10936 = vsyncpa [#allocation22], 1 }
0x1f3d   :  { %10937 = vsyncpa [#allocation25], 1 }
0x1f3e   :  { %10938 = vsyncpa [#allocation28], 1 }
0x1f3f   :  { %10939 = vsyncpa [#allocation31], 1 }
0x1f40   :  { %10940 = vsyncpa [#allocation34], 1 }
0x1f41   :  { %10941 = vsyncpa [#allocation37], 1 }
0x1f42   :  { %10942 = vsyncpa [#allocation40], 1 }
0x1f43   :  { %10943 = vsyncpa [#allocation43], 1 }
0x1f44   :  { %10944 = vsyncpa [#allocation46], 1 }
0x1f45   :  { %10945 = vsyncpa [#allocation49], 1 }
0x1f46   :  { %10946 = vsyncpa [#allocation52], 1 }
0x1f47   :  { %10947 = vsyncpa [#allocation55], 1 }
0x1f48   :  { %10948 = vsyncpa [#allocation58], 1 }
0x1f49   :  { %10949 = vsyncpa [#allocation61], 1 }
0x1f4a   :  { %10950 = vsyncpa [#allocation64], 1 }
0x1f4b   :  { %10951 = vsyncpa [#allocation67], 1 }
0x1f4c   :  { %10952 = vsyncpa [#allocation70], 1 }
0x1f4d   :  { %10953 = vsyncpa [#allocation73], 1 }
0x1f4e   :  { %10954 = vsyncpa [#allocation76], 1 }
0x1f4f   :  { %10955 = vsyncpa [#allocation79], 1 }
0x1f50   :  { %10956 = vsyncpa [#allocation82], 1 }
0x1f51   :  { %10957 = vsyncpa [#allocation5], 1 }
0x1f52   :  { %10959 = vsyncpa [#allocation5 + $0x1], 1 }

</bundles_post_ra>
